<compile_context>
chip_gen: v7x
topology: tpu7x:2x2x1
jax: 0.10.0
libtpu: 0.0.40
codegen_flags: <defaults>
</compile_context>

<pallas_src>
import functools
import numpy as np
import jax
import jax.numpy as jnp
from jax.experimental import pallas as pl


# --------------------------- in-kernel math helpers ---------------------------

def _ln(v, g, b, eps=1e-5):
    mu = jnp.mean(v, axis=-1, keepdims=True)
    var = jnp.mean(jnp.square(v - mu), axis=-1, keepdims=True)
    return (v - mu) * jax.lax.rsqrt(var + eps) * g + b


def _gelu_tanh(y):
    # TODO(synk): nn.GELU uses exact erf; tanh approximation used here (tiny delta).
    c = jnp.float32(0.7978845608028654)  # sqrt(2/pi)
    return 0.5 * y * (1.0 + jnp.tanh(c * (y + 0.044715 * y * y * y)))


def _mm(a, b):
    # bf16 MXU operands, f32 accumulation (weights are already stored bf16 at init).
    return jnp.dot(a.astype(jnp.bfloat16), b.astype(jnp.bfloat16),
                   preferred_element_type=jnp.float32)


# canonical per-block parameter order (wrapper flattening == kernel unpacking)
_BLOCK_KEYS = ("n1g", "n1b", "wq", "bq", "wk", "bk", "wv", "bv",
               "attn_add", "wproj", "bproj", "n2g", "n2b",
               "wfc1", "bfc1", "wfc2", "bfc2")


def _block_compute(x, p, *, heads, scale):
    """One Swin block, register-resident: LN1 -> per-head q/k/v matmuls -> masked
    softmax attention (one [T, T] score matmul per head; cross-window / cross-image
    pairs killed by the folded additive mask) -> per-head proj folded into the
    residual sum -> LN2 -> MLP (+residual).  Everything stays 2-D / token-major."""
    xn = _ln(x, p["n1g"][...], p["n1b"][...])
    x1 = x + p["bproj"][...]                                    # residual + proj bias
    for h in range(heads):
        q = (_mm(xn, p["wq"][h]) + p["bq"][h]) * scale          # [T, hd] f32
        k = _mm(xn, p["wk"][h]) + p["bk"][h]
        v = _mm(xn, p["wv"][h]) + p["bv"][h]
        s = jax.lax.dot_general(q.astype(jnp.bfloat16), k.astype(jnp.bfloat16),
                                (((1,), (1,)), ((), ())),
                                preferred_element_type=jnp.float32)      # [T, T]
        s = s + p["attn_add"][h].astype(jnp.float32)            # bias + shift + window/image mask
        s = s - jnp.max(s, axis=-1, keepdims=True)
        e = jnp.exp(s)
        prob = e * pl.reciprocal(jnp.sum(e, axis=-1, keepdims=True), approx=True)
        o = jnp.dot(prob.astype(jnp.bfloat16), v.astype(jnp.bfloat16),
                    preferred_element_type=jnp.float32)                  # [T, hd]
        x1 = x1 + jnp.dot(o.astype(jnp.bfloat16), p["wproj"][h],
                          preferred_element_type=jnp.float32)            # [T, C]
    xn2 = _ln(x1, p["n2g"][...], p["n2b"][...])
    h1 = _gelu_tanh(_mm(xn2, p["wfc1"][...]) + p["bfc1"][...])           # [T, 4C] lane-dense
    h2 = _mm(h1, p["wfc2"][...]) + p["bfc2"][...]
    return x1 + h2


# ------------------------------- fused kernels --------------------------------

def _stage0_kernel(*refs, n_blocks, heads, scale):
    """PatchEmbed (patch matmul + bias + LN) + all stage-0 Swin blocks, fused."""
    it = iter(refs)
    xp_ref = next(it)
    we, be, eg, ebt = next(it), next(it), next(it), next(it)
    blocks = [{k: next(it) for k in _BLOCK_KEYS} for _ in range(n_blocks)]
    o_ref = next(it)

    x = _ln(_mm(xp_ref[...], we[...]) + be[...], eg[...], ebt[...])      # [T, C]
    for bp in blocks:
        x = _block_compute(x, bp, heads=heads, scale=scale)
    o_ref[...] = x


def _stage1_kernel(*refs, n_blocks, heads, scale, B, L):
    """PatchMerging (LN + bias-free reduction matmul) + all stage-1 blocks +
    final LN + per-image mean pool + head Linear + Sigmoid, fused.
    (nn.Dropout(p=0.2) is identity at inference.)"""
    it = iter(refs)
    xm_ref = next(it)
    mg, mb, mw = next(it), next(it), next(it)
    blocks = [{k: next(it) for k in _BLOCK_KEYS} for _ in range(n_blocks)]
    ng, nb, hw, hb = next(it), next(it), next(it), next(it)
    o_ref = next(it)

    x = _mm(_ln(xm_ref[...], mg[...], mb[...]), mw[...])                 # [T2, 2C]
    for bp in blocks:
        x = _block_compute(x, bp, heads=heads, scale=scale)
    xn = _ln(x, ng[...], nb[...])
    hw_v = hw[...]
    hb_v = hb[...]
    for b in range(B):                                                   # per-image pool + head
        pooled = jnp.mean(xn[b * L:(b + 1) * L, :], axis=0, keepdims=True)   # [1, 2C]
        logits = _mm(pooled, hw_v) + hb_v
        o_ref[b:(b + 1), :] = jax.nn.sigmoid(logits)


# ------------------------------ kernel wrappers --------------------------------

def _flat_blocks(blocks):
    out = []
    for blk in blocks:
        out.extend(blk[k] for k in _BLOCK_KEYS)
    return out


def run_stage0(xp, params, cfg):
    pe = params["patch_embed"]
    blocks = params["stages"][0]["blocks"]
    heads = cfg["num_heads"][0]
    C = pe["w"].shape[1]
    hd = C // heads
    T = xp.shape[0]
    kernel = functools.partial(_stage0_kernel, n_blocks=len(blocks),
                               heads=heads, scale=float(hd) ** -0.5)
    args = [xp, pe["w"], pe["b"], pe["g"], pe["beta"]] + _flat_blocks(blocks)
    return pl.pallas_call(
        kernel, out_shape=jax.ShapeDtypeStruct((T, C), jnp.float32))(*args)


def run_stage1(xm, params, cfg, *, B, L):
    ds = params["stages"][0]["downsample"]
    blocks = params["stages"][1]["blocks"]
    heads = cfg["num_heads"][1]
    C2 = ds["w"].shape[1]
    hd = C2 // heads
    n_classes = params["head_w"].shape[1]
    kernel = functools.partial(_stage1_kernel, n_blocks=len(blocks),
                               heads=heads, scale=float(hd) ** -0.5, B=B, L=L)
    args = ([xm, ds["g"], ds["beta"], ds["w"]] + _flat_blocks(blocks)
            + [params["norm_g"], params["norm_b"], params["head_w"], params["head_b"]])
    return pl.pallas_call(
        kernel, out_shape=jax.ShapeDtypeStruct((B, n_classes), jnp.float32))(*args)


# --------------------- static attention-structure precompute -------------------

def relative_position_index(ws):
    coords = np.stack(np.meshgrid(np.arange(ws), np.arange(ws), indexing="ij"))
    coords = coords.reshape(2, -1)
    rel = (coords[:, :, None] - coords[:, None, :]).transpose(1, 2, 0).astype(np.int64)
    rel[:, :, 0] += ws - 1
    rel[:, :, 1] += ws - 1
    rel[:, :, 0] *= 2 * ws - 1
    return rel.sum(-1)  # [Lw, Lw]


def shifted_window_mask(H, W, ws, shift):
    img_mask = np.zeros((H, W), np.float32)
    cnt = 0
    for hs in (slice(0, -ws), slice(-ws, -shift), slice(-shift, None)):
        for wsl in (slice(0, -ws), slice(-ws, -shift), slice(-shift, None)):
            img_mask[hs, wsl] = cnt
            cnt += 1
    m = img_mask.reshape(H // ws, ws, W // ws, ws).transpose(0, 2, 1, 3).reshape(-1, ws * ws)
    diff = m[:, None, :] - m[:, :, None]
    return np.where(diff != 0, -100.0, 0.0).astype(np.float32)  # [nW, Lw, Lw]


def build_attn_add(table, heads, H, W, ws, shift, B):
    """Fold rel-pos bias, shifted-window (-100) mask, cross-window (-1e9) mask and
    cross-image (-1e9) block-diagonal masking into ONE additive [heads, B*L, B*L]
    bf16 tensor over tokens in raster order.  Precomputed once at init -> no
    gather / roll / window partition / per-image loop at forward time."""
    L = H * W
    table = np.asarray(table, np.float32)
    rel_idx = relative_position_index(ws)                        # [Lw, Lw]
    ys, xs = np.meshgrid(np.arange(H), np.arange(W), indexing="ij")
    ys_r = (ys - shift) % H                                      # rolled coords
    xs_r = (xs - shift) % W
    win = ((ys_r // ws) * (W // ws) + (xs_r // ws)).reshape(-1)  # [L] window id
    pos = ((ys_r % ws) * ws + (xs_r % ws)).reshape(-1)           # [L] in-window pos
    same = (win[:, None] == win[None, :])                        # [L, L]
    bias_idx = rel_idx[pos[:, None], pos[None, :]]               # [L, L]
    if shift > 0:
        smask = shifted_window_mask(H, W, ws, shift)             # [nW, Lw, Lw]
        shift_add = smask[win[:, None], pos[:, None], pos[None, :]]
    else:
        shift_add = np.zeros((L, L), np.float32)
    bias = table[bias_idx.reshape(-1)].reshape(L, L, heads).transpose(2, 0, 1)
    add = bias + shift_add[None]
    add = np.where(same[None], add, np.float32(-1e9)).astype(np.float32)  # [heads, L, L]
    out = np.full((heads, B * L, B * L), -1e9, np.float32)       # block-diag across images
    for b in range(B):
        out[:, b * L:(b + 1) * L, b * L:(b + 1) * L] = add
    return jnp.asarray(out).astype(jnp.bfloat16)


# --------------------------------- parameters ----------------------------------

CFG = dict(img_size=16, patch_size=4, in_chans=3, embed_dim=32,
           depths=(2, 2), num_heads=(2, 4), window_size=2, mlp_ratio=4)


class KeyGen:
    def __init__(self, key):
        self.key = key

    def __call__(self):
        self.key, sub = jax.random.split(self.key)
        return sub


def init_params(key, n_classes, batch_size, cfg=CFG):
    kg = KeyGen(key)
    ps, cin, ed = cfg["patch_size"], cfg["in_chans"], cfg["embed_dim"]

    def w_init(din, dout):
        return jax.random.normal(kg(), (din, dout), jnp.float32) * 0.02

    def row(v):  # 1-D params stored as [1, D] so kernels see 2-D lane vectors
        return v.reshape(1, -1)

    params = {
        "patch_embed": {"w": w_init(ps * ps * cin, ed).astype(jnp.bfloat16),
                        "b": row(jnp.zeros((ed,), jnp.float32)),
                        "g": row(jnp.ones((ed,), jnp.float32)),
                        "beta": row(jnp.zeros((ed,), jnp.float32))},
        "stages": [],
    }
    dim, res = ed, cfg["img_size"] // ps
    for si, depth in enumerate(cfg["depths"]):
        heads = cfg["num_heads"][si]
        hd = dim // heads
        ws = min(cfg["window_size"], res)
        blocks = []
        for bi in range(depth):
            shift = 0 if (bi % 2 == 0 or ws == res) else ws // 2
            table = jax.random.normal(kg(), ((2 * ws - 1) ** 2, heads), jnp.float32) * 0.02
            qkv_w = w_init(dim, 3 * dim)           # [C, 3C], split per head below
            proj_w = w_init(dim, dim)

            def per_head(wfull):                   # [C, C] -> [heads, C, hd] (bf16)
                return jnp.transpose(wfull.reshape(dim, heads, hd),
                                     (1, 0, 2)).astype(jnp.bfloat16)

            blocks.append({
                "n1g": row(jnp.ones((dim,), jnp.float32)),
                "n1b": row(jnp.zeros((dim,), jnp.float32)),
                "wq": per_head(qkv_w[:, :dim]),
                "wk": per_head(qkv_w[:, dim:2 * dim]),
                "wv": per_head(qkv_w[:, 2 * dim:]),
                "bq": jnp.zeros((heads, 1, hd), jnp.float32),
                "bk": jnp.zeros((heads, 1, hd), jnp.float32),
                "bv": jnp.zeros((heads, 1, hd), jnp.float32),
                "attn_add": build_attn_add(table, heads, res, res, ws, shift, batch_size),
                "wproj": proj_w.reshape(heads, hd, dim).astype(jnp.bfloat16),
                "bproj": row(jnp.zeros((dim,), jnp.float32)),
                "n2g": row(jnp.ones((dim,), jnp.float32)),
                "n2b": row(jnp.zeros((dim,), jnp.float32)),
                "wfc1": w_init(dim, cfg["mlp_ratio"] * dim).astype(jnp.bfloat16),
                "bfc1": row(jnp.zeros((cfg["mlp_ratio"] * dim,), jnp.float32)),
                "wfc2": w_init(cfg["mlp_ratio"] * dim, dim).astype(jnp.bfloat16),
                "bfc2": row(jnp.zeros((dim,), jnp.float32)),
            })
        stage = {"blocks": blocks}
        if si < len(cfg["depths"]) - 1:
            stage["downsample"] = {"g": row(jnp.ones((4 * dim,), jnp.float32)),
                                   "beta": row(jnp.zeros((4 * dim,), jnp.float32)),
                                   "w": w_init(4 * dim, 2 * dim).astype(jnp.bfloat16)}
        params["stages"].append(stage)
        if si < len(cfg["depths"]) - 1:
            dim *= 2
            res //= 2
    params["norm_g"] = row(jnp.ones((dim,), jnp.float32))
    params["norm_b"] = row(jnp.zeros((dim,), jnp.float32))
    params["head_w"] = w_init(dim, n_classes).astype(jnp.bfloat16)
    params["head_b"] = row(jnp.zeros((n_classes,), jnp.float32))
    return params


# ----------------------------------- forward -----------------------------------

def swin_forward(params, x, cfg=CFG):
    """Full forward in TWO fused pallas_calls.  The only XLA glue is the one-time
    NCHW -> token-major im2col and the exact even/odd PatchMerging re-index
    between the calls (pure data movement, fused by XLA)."""
    B = x.shape[0]
    ps = cfg["patch_size"]
    x = jnp.transpose(x, (0, 2, 3, 1)).astype(jnp.float32)        # NCHW -> NHWC
    Hi, Wi, Cin = x.shape[1], x.shape[2], x.shape[3]
    H, W = Hi // ps, Wi // ps
    xp = x.reshape(B, H, ps, W, ps, Cin).transpose(0, 1, 3, 2, 4, 5)
    xp = xp.reshape(B * H * W, ps * ps * Cin)                     # im2col (glue, once)

    t = run_stage0(xp, params, cfg)                               # embed + stage-0 blocks

    C0 = t.shape[-1]
    t4 = t.reshape(B, H, W, C0)                                   # exact merge re-index
    xm = jnp.concatenate([t4[:, 0::2, 0::2, :], t4[:, 1::2, 0::2, :],
                          t4[:, 0::2, 1::2, :], t4[:, 1::2, 1::2, :]], axis=-1)
    H, W = H // 2, W // 2
    xm = xm.reshape(B * H * W, 4 * C0)

    return run_stage1(xm, params, cfg, B=B, L=H * W)              # merge + stage-1 + head


# ------------------------------------- main -------------------------------------

if __name__ == "__main__":
    n_classes = 5
    B = 2
    key = jax.random.PRNGKey(0)
    pkey, xkey = jax.random.split(key)
    params = init_params(pkey, n_classes, batch_size=B)
    x = jax.random.normal(xkey, (B, 3, 16, 16), jnp.float32)      # NCHW, like PyTorch
    fwd = jax.jit(swin_forward)
    out = jax.block_until_ready(fwd(params, x))
    assert out.shape == (B, n_classes)
    assert bool(jnp.all((out >= 0.0) & (out <= 1.0)))             # sigmoid range
    print("KERNEL_OK")
</pallas_src>

<mosaic_0001>
module attributes {stable_mosaic.version = 11 : i64} {
  func.func @_stage0_kernel(%arg0: memref<32x48xf32, #tpu.memory_space<vmem>>, %arg1: memref<48x32xbf16, #tpu.memory_space<vmem>>, %arg2: memref<1x32xf32, #tpu.memory_space<vmem>>, %arg3: memref<1x32xf32, #tpu.memory_space<vmem>>, %arg4: memref<1x32xf32, #tpu.memory_space<vmem>>, %arg5: memref<1x32xf32, #tpu.memory_space<vmem>>, %arg6: memref<1x32xf32, #tpu.memory_space<vmem>>, %arg7: memref<2x32x16xbf16, #tpu.memory_space<vmem>>, %arg8: memref<2x1x16xf32, #tpu.memory_space<vmem>>, %arg9: memref<2x32x16xbf16, #tpu.memory_space<vmem>>, %arg10: memref<2x1x16xf32, #tpu.memory_space<vmem>>, %arg11: memref<2x32x16xbf16, #tpu.memory_space<vmem>>, %arg12: memref<2x1x16xf32, #tpu.memory_space<vmem>>, %arg13: memref<2x32x32xbf16, #tpu.memory_space<vmem>>, %arg14: memref<2x16x32xbf16, #tpu.memory_space<vmem>>, %arg15: memref<1x32xf32, #tpu.memory_space<vmem>>, %arg16: memref<1x32xf32, #tpu.memory_space<vmem>>, %arg17: memref<1x32xf32, #tpu.memory_space<vmem>>, %arg18: memref<32x128xbf16, #tpu.memory_space<vmem>>, %arg19: memref<1x128xf32, #tpu.memory_space<vmem>>, %arg20: memref<128x32xbf16, #tpu.memory_space<vmem>>, %arg21: memref<1x32xf32, #tpu.memory_space<vmem>>, %arg22: memref<1x32xf32, #tpu.memory_space<vmem>>, %arg23: memref<1x32xf32, #tpu.memory_space<vmem>>, %arg24: memref<2x32x16xbf16, #tpu.memory_space<vmem>>, %arg25: memref<2x1x16xf32, #tpu.memory_space<vmem>>, %arg26: memref<2x32x16xbf16, #tpu.memory_space<vmem>>, %arg27: memref<2x1x16xf32, #tpu.memory_space<vmem>>, %arg28: memref<2x32x16xbf16, #tpu.memory_space<vmem>>, %arg29: memref<2x1x16xf32, #tpu.memory_space<vmem>>, %arg30: memref<2x32x32xbf16, #tpu.memory_space<vmem>>, %arg31: memref<2x16x32xbf16, #tpu.memory_space<vmem>>, %arg32: memref<1x32xf32, #tpu.memory_space<vmem>>, %arg33: memref<1x32xf32, #tpu.memory_space<vmem>>, %arg34: memref<1x32xf32, #tpu.memory_space<vmem>>, %arg35: memref<32x128xbf16, #tpu.memory_space<vmem>>, %arg36: memref<1x128xf32, #tpu.memory_space<vmem>>, %arg37: memref<128x32xbf16, #tpu.memory_space<vmem>>, %arg38: memref<1x32xf32, #tpu.memory_space<vmem>>, %arg39: memref<32x32xf32, #tpu.memory_space<vmem>>) attributes {dimension_semantics = [], scalar_prefetch = 0 : i64, scratch_operands = 0 : i64, tpu.core_type = #tpu.core_type<tc>} {
    %c0 = arith.constant 0 : index
    %c0_0 = arith.constant 0 : index
    %0 = vector.load %arg0[%c0, %c0_0] : memref<32x48xf32, #tpu.memory_space<vmem>>, vector<32x48xf32>
    %c0_1 = arith.constant 0 : index
    %c0_2 = arith.constant 0 : index
    %1 = vector.load %arg1[%c0_1, %c0_2] : memref<48x32xbf16, #tpu.memory_space<vmem>>, vector<48x32xbf16>
    %2 = arith.truncf %0 : vector<32x48xf32> to vector<32x48xbf16>
    %cst = arith.constant dense<0.000000e+00> : vector<32x32xf32>
    %3 = tpu.matmul %2, %1, %cst {dimension_numbers = #tpu.dot_dimension_numbers<[1], [0], [0], [1], [0, 0, 1, 1], [], []>} : vector<32x48xbf16>, vector<48x32xbf16>, vector<32x32xf32> -> vector<32x32xf32>
    %c0_3 = arith.constant 0 : index
    %c0_4 = arith.constant 0 : index
    %4 = vector.load %arg2[%c0_3, %c0_4] : memref<1x32xf32, #tpu.memory_space<vmem>>, vector<1x32xf32>
    %5 = vector.broadcast %4 : vector<1x32xf32> to vector<32x32xf32>
    %6 = arith.addf %3, %5 : vector<32x32xf32>
    %c0_5 = arith.constant 0 : index
    %c0_6 = arith.constant 0 : index
    %7 = vector.load %arg3[%c0_5, %c0_6] : memref<1x32xf32, #tpu.memory_space<vmem>>, vector<1x32xf32>
    %c0_7 = arith.constant 0 : index
    %c0_8 = arith.constant 0 : index
    %8 = vector.load %arg4[%c0_7, %c0_8] : memref<1x32xf32, #tpu.memory_space<vmem>>, vector<1x32xf32>
    %cst_9 = arith.constant dense<0.000000e+00> : vector<32xf32>
    %9 = vector.multi_reduction <add>, %6, %cst_9 [1] : vector<32x32xf32> to vector<32xf32>
    %10 = vector.shape_cast %9 : vector<32xf32> to vector<32x1xf32>
    %cst_10 = arith.constant 3.200000e+01 : f32
    %11 = vector.broadcast %cst_10 : f32 to vector<32x1xf32>
    %12 = arith.divf %10, %11 : vector<32x1xf32>
    %13 = vector.broadcast %12 : vector<32x1xf32> to vector<32x32xf32>
    %14 = arith.subf %6, %13 : vector<32x32xf32>
    %15 = arith.mulf %14, %14 : vector<32x32xf32>
    %cst_11 = arith.constant dense<0.000000e+00> : vector<32xf32>
    %16 = vector.multi_reduction <add>, %15, %cst_11 [1] : vector<32x32xf32> to vector<32xf32>
    %17 = vector.shape_cast %16 : vector<32xf32> to vector<32x1xf32>
    %cst_12 = arith.constant 3.200000e+01 : f32
    %18 = vector.broadcast %cst_12 : f32 to vector<32x1xf32>
    %19 = arith.divf %17, %18 : vector<32x1xf32>
    %20 = vector.broadcast %12 : vector<32x1xf32> to vector<32x32xf32>
    %21 = arith.subf %6, %20 : vector<32x32xf32>
    %cst_13 = arith.constant 9.99999974E-6 : f32
    %22 = vector.broadcast %cst_13 : f32 to vector<32x1xf32>
    %23 = arith.addf %19, %22 : vector<32x1xf32>
    %24 = math.rsqrt %23 : vector<32x1xf32>
    %25 = vector.broadcast %24 : vector<32x1xf32> to vector<32x32xf32>
    %26 = arith.mulf %21, %25 : vector<32x32xf32>
    %27 = vector.broadcast %7 : vector<1x32xf32> to vector<32x32xf32>
    %28 = arith.mulf %26, %27 : vector<32x32xf32>
    %29 = vector.broadcast %8 : vector<1x32xf32> to vector<32x32xf32>
    %30 = arith.addf %28, %29 : vector<32x32xf32>
    %c0_14 = arith.constant 0 : index
    %c0_15 = arith.constant 0 : index
    %31 = vector.load %arg5[%c0_14, %c0_15] : memref<1x32xf32, #tpu.memory_space<vmem>>, vector<1x32xf32>
    %c0_16 = arith.constant 0 : index
    %c0_17 = arith.constant 0 : index
    %32 = vector.load %arg6[%c0_16, %c0_17] : memref<1x32xf32, #tpu.memory_space<vmem>>, vector<1x32xf32>
    %cst_18 = arith.constant dense<0.000000e+00> : vector<32xf32>
    %33 = vector.multi_reduction <add>, %30, %cst_18 [1] : vector<32x32xf32> to vector<32xf32>
    %34 = vector.shape_cast %33 : vector<32xf32> to vector<32x1xf32>
    %cst_19 = arith.constant 3.200000e+01 : f32
    %35 = vector.broadcast %cst_19 : f32 to vector<32x1xf32>
    %36 = arith.divf %34, %35 : vector<32x1xf32>
    %37 = vector.broadcast %36 : vector<32x1xf32> to vector<32x32xf32>
    %38 = arith.subf %30, %37 : vector<32x32xf32>
    %39 = arith.mulf %38, %38 : vector<32x32xf32>
    %cst_20 = arith.constant dense<0.000000e+00> : vector<32xf32>
    %40 = vector.multi_reduction <add>, %39, %cst_20 [1] : vector<32x32xf32> to vector<32xf32>
    %41 = vector.shape_cast %40 : vector<32xf32> to vector<32x1xf32>
    %cst_21 = arith.constant 3.200000e+01 : f32
    %42 = vector.broadcast %cst_21 : f32 to vector<32x1xf32>
    %43 = arith.divf %41, %42 : vector<32x1xf32>
    %44 = vector.broadcast %36 : vector<32x1xf32> to vector<32x32xf32>
    %45 = arith.subf %30, %44 : vector<32x32xf32>
    %cst_22 = arith.constant 9.99999974E-6 : f32
    %46 = vector.broadcast %cst_22 : f32 to vector<32x1xf32>
    %47 = arith.addf %43, %46 : vector<32x1xf32>
    %48 = math.rsqrt %47 : vector<32x1xf32>
    %49 = vector.broadcast %48 : vector<32x1xf32> to vector<32x32xf32>
    %50 = arith.mulf %45, %49 : vector<32x32xf32>
    %51 = vector.broadcast %31 : vector<1x32xf32> to vector<32x32xf32>
    %52 = arith.mulf %50, %51 : vector<32x32xf32>
    %53 = vector.broadcast %32 : vector<1x32xf32> to vector<32x32xf32>
    %54 = arith.addf %52, %53 : vector<32x32xf32>
    %c0_23 = arith.constant 0 : index
    %c0_24 = arith.constant 0 : index
    %55 = vector.load %arg15[%c0_23, %c0_24] : memref<1x32xf32, #tpu.memory_space<vmem>>, vector<1x32xf32>
    %56 = vector.broadcast %55 : vector<1x32xf32> to vector<32x32xf32>
    %57 = arith.addf %30, %56 : vector<32x32xf32>
    %c0_25 = arith.constant 0 : index
    %c0_26 = arith.constant 0 : index
    %c0_27 = arith.constant 0 : index
    %58 = vector.load %arg7[%c0_25, %c0_26, %c0_27] : memref<2x32x16xbf16, #tpu.memory_space<vmem>>, vector<1x32x16xbf16>
    %59 = vector.shape_cast %58 : vector<1x32x16xbf16> to vector<32x16xbf16>
    %60 = arith.truncf %54 : vector<32x32xf32> to vector<32x32xbf16>
    %cst_28 = arith.constant dense<0.000000e+00> : vector<32x16xf32>
    %61 = tpu.matmul %60, %59, %cst_28 {dimension_numbers = #tpu.dot_dimension_numbers<[1], [0], [0], [1], [0, 0, 1, 1], [], []>} : vector<32x32xbf16>, vector<32x16xbf16>, vector<32x16xf32> -> vector<32x16xf32>
    %c0_29 = arith.constant 0 : index
    %c0_30 = arith.constant 0 : index
    %c0_31 = arith.constant 0 : index
    %62 = vector.load %arg8[%c0_29, %c0_30, %c0_31] : memref<2x1x16xf32, #tpu.memory_space<vmem>>, vector<1x1x16xf32>
    %63 = vector.shape_cast %62 : vector<1x1x16xf32> to vector<1x16xf32>
    %64 = vector.broadcast %63 : vector<1x16xf32> to vector<32x16xf32>
    %65 = arith.addf %61, %64 : vector<32x16xf32>
    %cst_32 = arith.constant 2.500000e-01 : f32
    %66 = vector.broadcast %cst_32 : f32 to vector<32x16xf32>
    %67 = arith.mulf %65, %66 : vector<32x16xf32>
    %c0_33 = arith.constant 0 : index
    %c0_34 = arith.constant 0 : index
    %c0_35 = arith.constant 0 : index
    %68 = vector.load %arg9[%c0_33, %c0_34, %c0_35] : memref<2x32x16xbf16, #tpu.memory_space<vmem>>, vector<1x32x16xbf16>
    %69 = vector.shape_cast %68 : vector<1x32x16xbf16> to vector<32x16xbf16>
    %70 = arith.truncf %54 : vector<32x32xf32> to vector<32x32xbf16>
    %cst_36 = arith.constant dense<0.000000e+00> : vector<32x16xf32>
    %71 = tpu.matmul %70, %69, %cst_36 {dimension_numbers = #tpu.dot_dimension_numbers<[1], [0], [0], [1], [0, 0, 1, 1], [], []>} : vector<32x32xbf16>, vector<32x16xbf16>, vector<32x16xf32> -> vector<32x16xf32>
    %c0_37 = arith.constant 0 : index
    %c0_38 = arith.constant 0 : index
    %c0_39 = arith.constant 0 : index
    %72 = vector.load %arg10[%c0_37, %c0_38, %c0_39] : memref<2x1x16xf32, #tpu.memory_space<vmem>>, vector<1x1x16xf32>
    %73 = vector.shape_cast %72 : vector<1x1x16xf32> to vector<1x16xf32>
    %74 = vector.broadcast %73 : vector<1x16xf32> to vector<32x16xf32>
    %75 = arith.addf %71, %74 : vector<32x16xf32>
    %c0_40 = arith.constant 0 : index
    %c0_41 = arith.constant 0 : index
    %c0_42 = arith.constant 0 : index
    %76 = vector.load %arg11[%c0_40, %c0_41, %c0_42] : memref<2x32x16xbf16, #tpu.memory_space<vmem>>, vector<1x32x16xbf16>
    %77 = vector.shape_cast %76 : vector<1x32x16xbf16> to vector<32x16xbf16>
    %78 = arith.truncf %54 : vector<32x32xf32> to vector<32x32xbf16>
    %cst_43 = arith.constant dense<0.000000e+00> : vector<32x16xf32>
    %79 = tpu.matmul %78, %77, %cst_43 {dimension_numbers = #tpu.dot_dimension_numbers<[1], [0], [0], [1], [0, 0, 1, 1], [], []>} : vector<32x32xbf16>, vector<32x16xbf16>, vector<32x16xf32> -> vector<32x16xf32>
    %c0_44 = arith.constant 0 : index
    %c0_45 = arith.constant 0 : index
    %c0_46 = arith.constant 0 : index
    %80 = vector.load %arg12[%c0_44, %c0_45, %c0_46] : memref<2x1x16xf32, #tpu.memory_space<vmem>>, vector<1x1x16xf32>
    %81 = vector.shape_cast %80 : vector<1x1x16xf32> to vector<1x16xf32>
    %82 = vector.broadcast %81 : vector<1x16xf32> to vector<32x16xf32>
    %83 = arith.addf %79, %82 : vector<32x16xf32>
    %84 = arith.truncf %67 : vector<32x16xf32> to vector<32x16xbf16>
    %85 = arith.truncf %75 : vector<32x16xf32> to vector<32x16xbf16>
    %cst_47 = arith.constant dense<0.000000e+00> : vector<32x32xf32>
    %86 = tpu.matmul %84, %85, %cst_47 {dimension_numbers = #tpu.dot_dimension_numbers<[1], [1], [0], [0], [0, 0, 1, 0], [], []>} : vector<32x16xbf16>, vector<32x16xbf16>, vector<32x32xf32> -> vector<32x32xf32>
    %c0_48 = arith.constant 0 : index
    %c0_49 = arith.constant 0 : index
    %c0_50 = arith.constant 0 : index
    %87 = vector.load %arg13[%c0_48, %c0_49, %c0_50] : memref<2x32x32xbf16, #tpu.memory_space<vmem>>, vector<1x32x32xbf16>
    %88 = vector.shape_cast %87 : vector<1x32x32xbf16> to vector<32x32xbf16>
    %89 = arith.extf %88 : vector<32x32xbf16> to vector<32x32xf32>
    %90 = arith.addf %86, %89 : vector<32x32xf32>
    %cst_51 = arith.constant dense<0xFF800000> : vector<32xf32>
    %91 = vector.multi_reduction <maximumf>, %90, %cst_51 [1] : vector<32x32xf32> to vector<32xf32>
    %92 = vector.shape_cast %91 : vector<32xf32> to vector<32x1xf32>
    %93 = vector.broadcast %92 : vector<32x1xf32> to vector<32x32xf32>
    %94 = arith.subf %90, %93 : vector<32x32xf32>
    %95 = math.exp %94 : vector<32x32xf32>
    %cst_52 = arith.constant dense<0.000000e+00> : vector<32xf32>
    %96 = vector.multi_reduction <add>, %95, %cst_52 [1] : vector<32x32xf32> to vector<32xf32>
    %97 = vector.shape_cast %96 : vector<32xf32> to vector<32x1xf32>
    %98 = tpu.reciprocal %97 {approx = true} : vector<32x1xf32> -> vector<32x1xf32>
    %99 = vector.broadcast %98 : vector<32x1xf32> to vector<32x32xf32>
    %100 = arith.mulf %95, %99 : vector<32x32xf32>
    %101 = arith.truncf %100 : vector<32x32xf32> to vector<32x32xbf16>
    %102 = arith.truncf %83 : vector<32x16xf32> to vector<32x16xbf16>
    %cst_53 = arith.constant dense<0.000000e+00> : vector<32x16xf32>
    %103 = tpu.matmul %101, %102, %cst_53 {dimension_numbers = #tpu.dot_dimension_numbers<[1], [0], [0], [1], [0, 0, 1, 1], [], []>} : vector<32x32xbf16>, vector<32x16xbf16>, vector<32x16xf32> -> vector<32x16xf32>
    %104 = arith.truncf %103 : vector<32x16xf32> to vector<32x16xbf16>
    %c0_54 = arith.constant 0 : index
    %c0_55 = arith.constant 0 : index
    %c0_56 = arith.constant 0 : index
    %105 = vector.load %arg14[%c0_54, %c0_55, %c0_56] : memref<2x16x32xbf16, #tpu.memory_space<vmem>>, vector<1x16x32xbf16>
    %106 = vector.shape_cast %105 : vector<1x16x32xbf16> to vector<16x32xbf16>
    %cst_57 = arith.constant dense<0.000000e+00> : vector<32x32xf32>
    %107 = tpu.matmul %104, %106, %cst_57 {dimension_numbers = #tpu.dot_dimension_numbers<[1], [0], [0], [1], [0, 0, 1, 1], [], []>} : vector<32x16xbf16>, vector<16x32xbf16>, vector<32x32xf32> -> vector<32x32xf32>
    %108 = arith.addf %57, %107 : vector<32x32xf32>
    %c1 = arith.constant 1 : index
    %c0_58 = arith.constant 0 : index
    %c0_59 = arith.constant 0 : index
    %109 = vector.load %arg7[%c1, %c0_58, %c0_59] : memref<2x32x16xbf16, #tpu.memory_space<vmem>>, vector<1x32x16xbf16>
    %110 = vector.shape_cast %109 : vector<1x32x16xbf16> to vector<32x16xbf16>
    %111 = arith.truncf %54 : vector<32x32xf32> to vector<32x32xbf16>
    %cst_60 = arith.constant dense<0.000000e+00> : vector<32x16xf32>
    %112 = tpu.matmul %111, %110, %cst_60 {dimension_numbers = #tpu.dot_dimension_numbers<[1], [0], [0], [1], [0, 0, 1, 1], [], []>} : vector<32x32xbf16>, vector<32x16xbf16>, vector<32x16xf32> -> vector<32x16xf32>
    %c1_61 = arith.constant 1 : index
    %c0_62 = arith.constant 0 : index
    %c0_63 = arith.constant 0 : index
    %113 = vector.load %arg8[%c1_61, %c0_62, %c0_63] : memref<2x1x16xf32, #tpu.memory_space<vmem>>, vector<1x1x16xf32>
    %114 = vector.shape_cast %113 : vector<1x1x16xf32> to vector<1x16xf32>
    %115 = vector.broadcast %114 : vector<1x16xf32> to vector<32x16xf32>
    %116 = arith.addf %112, %115 : vector<32x16xf32>
    %cst_64 = arith.constant 2.500000e-01 : f32
    %117 = vector.broadcast %cst_64 : f32 to vector<32x16xf32>
    %118 = arith.mulf %116, %117 : vector<32x16xf32>
    %c1_65 = arith.constant 1 : index
    %c0_66 = arith.constant 0 : index
    %c0_67 = arith.constant 0 : index
    %119 = vector.load %arg9[%c1_65, %c0_66, %c0_67] : memref<2x32x16xbf16, #tpu.memory_space<vmem>>, vector<1x32x16xbf16>
    %120 = vector.shape_cast %119 : vector<1x32x16xbf16> to vector<32x16xbf16>
    %121 = arith.truncf %54 : vector<32x32xf32> to vector<32x32xbf16>
    %cst_68 = arith.constant dense<0.000000e+00> : vector<32x16xf32>
    %122 = tpu.matmul %121, %120, %cst_68 {dimension_numbers = #tpu.dot_dimension_numbers<[1], [0], [0], [1], [0, 0, 1, 1], [], []>} : vector<32x32xbf16>, vector<32x16xbf16>, vector<32x16xf32> -> vector<32x16xf32>
    %c1_69 = arith.constant 1 : index
    %c0_70 = arith.constant 0 : index
    %c0_71 = arith.constant 0 : index
    %123 = vector.load %arg10[%c1_69, %c0_70, %c0_71] : memref<2x1x16xf32, #tpu.memory_space<vmem>>, vector<1x1x16xf32>
    %124 = vector.shape_cast %123 : vector<1x1x16xf32> to vector<1x16xf32>
    %125 = vector.broadcast %124 : vector<1x16xf32> to vector<32x16xf32>
    %126 = arith.addf %122, %125 : vector<32x16xf32>
    %c1_72 = arith.constant 1 : index
    %c0_73 = arith.constant 0 : index
    %c0_74 = arith.constant 0 : index
    %127 = vector.load %arg11[%c1_72, %c0_73, %c0_74] : memref<2x32x16xbf16, #tpu.memory_space<vmem>>, vector<1x32x16xbf16>
    %128 = vector.shape_cast %127 : vector<1x32x16xbf16> to vector<32x16xbf16>
    %129 = arith.truncf %54 : vector<32x32xf32> to vector<32x32xbf16>
    %cst_75 = arith.constant dense<0.000000e+00> : vector<32x16xf32>
    %130 = tpu.matmul %129, %128, %cst_75 {dimension_numbers = #tpu.dot_dimension_numbers<[1], [0], [0], [1], [0, 0, 1, 1], [], []>} : vector<32x32xbf16>, vector<32x16xbf16>, vector<32x16xf32> -> vector<32x16xf32>
    %c1_76 = arith.constant 1 : index
    %c0_77 = arith.constant 0 : index
    %c0_78 = arith.constant 0 : index
    %131 = vector.load %arg12[%c1_76, %c0_77, %c0_78] : memref<2x1x16xf32, #tpu.memory_space<vmem>>, vector<1x1x16xf32>
    %132 = vector.shape_cast %131 : vector<1x1x16xf32> to vector<1x16xf32>
    %133 = vector.broadcast %132 : vector<1x16xf32> to vector<32x16xf32>
    %134 = arith.addf %130, %133 : vector<32x16xf32>
    %135 = arith.truncf %118 : vector<32x16xf32> to vector<32x16xbf16>
    %136 = arith.truncf %126 : vector<32x16xf32> to vector<32x16xbf16>
    %cst_79 = arith.constant dense<0.000000e+00> : vector<32x32xf32>
    %137 = tpu.matmul %135, %136, %cst_79 {dimension_numbers = #tpu.dot_dimension_numbers<[1], [1], [0], [0], [0, 0, 1, 0], [], []>} : vector<32x16xbf16>, vector<32x16xbf16>, vector<32x32xf32> -> vector<32x32xf32>
    %c1_80 = arith.constant 1 : index
    %c0_81 = arith.constant 0 : index
    %c0_82 = arith.constant 0 : index
    %138 = vector.load %arg13[%c1_80, %c0_81, %c0_82] : memref<2x32x32xbf16, #tpu.memory_space<vmem>>, vector<1x32x32xbf16>
    %139 = vector.shape_cast %138 : vector<1x32x32xbf16> to vector<32x32xbf16>
    %140 = arith.extf %139 : vector<32x32xbf16> to vector<32x32xf32>
    %141 = arith.addf %137, %140 : vector<32x32xf32>
    %cst_83 = arith.constant dense<0xFF800000> : vector<32xf32>
    %142 = vector.multi_reduction <maximumf>, %141, %cst_83 [1] : vector<32x32xf32> to vector<32xf32>
    %143 = vector.shape_cast %142 : vector<32xf32> to vector<32x1xf32>
    %144 = vector.broadcast %143 : vector<32x1xf32> to vector<32x32xf32>
    %145 = arith.subf %141, %144 : vector<32x32xf32>
    %146 = math.exp %145 : vector<32x32xf32>
    %cst_84 = arith.constant dense<0.000000e+00> : vector<32xf32>
    %147 = vector.multi_reduction <add>, %146, %cst_84 [1] : vector<32x32xf32> to vector<32xf32>
    %148 = vector.shape_cast %147 : vector<32xf32> to vector<32x1xf32>
    %149 = tpu.reciprocal %148 {approx = true} : vector<32x1xf32> -> vector<32x1xf32>
    %150 = vector.broadcast %149 : vector<32x1xf32> to vector<32x32xf32>
    %151 = arith.mulf %146, %150 : vector<32x32xf32>
    %152 = arith.truncf %151 : vector<32x32xf32> to vector<32x32xbf16>
    %153 = arith.truncf %134 : vector<32x16xf32> to vector<32x16xbf16>
    %cst_85 = arith.constant dense<0.000000e+00> : vector<32x16xf32>
    %154 = tpu.matmul %152, %153, %cst_85 {dimension_numbers = #tpu.dot_dimension_numbers<[1], [0], [0], [1], [0, 0, 1, 1], [], []>} : vector<32x32xbf16>, vector<32x16xbf16>, vector<32x16xf32> -> vector<32x16xf32>
    %155 = arith.truncf %154 : vector<32x16xf32> to vector<32x16xbf16>
    %c1_86 = arith.constant 1 : index
    %c0_87 = arith.constant 0 : index
    %c0_88 = arith.constant 0 : index
    %156 = vector.load %arg14[%c1_86, %c0_87, %c0_88] : memref<2x16x32xbf16, #tpu.memory_space<vmem>>, vector<1x16x32xbf16>
    %157 = vector.shape_cast %156 : vector<1x16x32xbf16> to vector<16x32xbf16>
    %cst_89 = arith.constant dense<0.000000e+00> : vector<32x32xf32>
    %158 = tpu.matmul %155, %157, %cst_89 {dimension_numbers = #tpu.dot_dimension_numbers<[1], [0], [0], [1], [0, 0, 1, 1], [], []>} : vector<32x16xbf16>, vector<16x32xbf16>, vector<32x32xf32> -> vector<32x32xf32>
    %159 = arith.addf %108, %158 : vector<32x32xf32>
    %c0_90 = arith.constant 0 : index
    %c0_91 = arith.constant 0 : index
    %160 = vector.load %arg16[%c0_90, %c0_91] : memref<1x32xf32, #tpu.memory_space<vmem>>, vector<1x32xf32>
    %c0_92 = arith.constant 0 : index
    %c0_93 = arith.constant 0 : index
    %161 = vector.load %arg17[%c0_92, %c0_93] : memref<1x32xf32, #tpu.memory_space<vmem>>, vector<1x32xf32>
    %cst_94 = arith.constant dense<0.000000e+00> : vector<32xf32>
    %162 = vector.multi_reduction <add>, %159, %cst_94 [1] : vector<32x32xf32> to vector<32xf32>
    %163 = vector.shape_cast %162 : vector<32xf32> to vector<32x1xf32>
    %cst_95 = arith.constant 3.200000e+01 : f32
    %164 = vector.broadcast %cst_95 : f32 to vector<32x1xf32>
    %165 = arith.divf %163, %164 : vector<32x1xf32>
    %166 = vector.broadcast %165 : vector<32x1xf32> to vector<32x32xf32>
    %167 = arith.subf %159, %166 : vector<32x32xf32>
    %168 = arith.mulf %167, %167 : vector<32x32xf32>
    %cst_96 = arith.constant dense<0.000000e+00> : vector<32xf32>
    %169 = vector.multi_reduction <add>, %168, %cst_96 [1] : vector<32x32xf32> to vector<32xf32>
    %170 = vector.shape_cast %169 : vector<32xf32> to vector<32x1xf32>
    %cst_97 = arith.constant 3.200000e+01 : f32
    %171 = vector.broadcast %cst_97 : f32 to vector<32x1xf32>
    %172 = arith.divf %170, %171 : vector<32x1xf32>
    %173 = vector.broadcast %165 : vector<32x1xf32> to vector<32x32xf32>
    %174 = arith.subf %159, %173 : vector<32x32xf32>
    %cst_98 = arith.constant 9.99999974E-6 : f32
    %175 = vector.broadcast %cst_98 : f32 to vector<32x1xf32>
    %176 = arith.addf %172, %175 : vector<32x1xf32>
    %177 = math.rsqrt %176 : vector<32x1xf32>
    %178 = vector.broadcast %177 : vector<32x1xf32> to vector<32x32xf32>
    %179 = arith.mulf %174, %178 : vector<32x32xf32>
    %180 = vector.broadcast %160 : vector<1x32xf32> to vector<32x32xf32>
    %181 = arith.mulf %179, %180 : vector<32x32xf32>
    %182 = vector.broadcast %161 : vector<1x32xf32> to vector<32x32xf32>
    %183 = arith.addf %181, %182 : vector<32x32xf32>
    %c0_99 = arith.constant 0 : index
    %c0_100 = arith.constant 0 : index
    %184 = vector.load %arg18[%c0_99, %c0_100] : memref<32x128xbf16, #tpu.memory_space<vmem>>, vector<32x128xbf16>
    %185 = arith.truncf %183 : vector<32x32xf32> to vector<32x32xbf16>
    %cst_101 = arith.constant dense<0.000000e+00> : vector<32x128xf32>
    %186 = tpu.matmul %185, %184, %cst_101 {dimension_numbers = #tpu.dot_dimension_numbers<[1], [0], [0], [1], [0, 0, 1, 1], [], []>} : vector<32x32xbf16>, vector<32x128xbf16>, vector<32x128xf32> -> vector<32x128xf32>
    %c0_102 = arith.constant 0 : index
    %c0_103 = arith.constant 0 : index
    %187 = vector.load %arg19[%c0_102, %c0_103] : memref<1x128xf32, #tpu.memory_space<vmem>>, vector<1x128xf32>
    %188 = vector.broadcast %187 : vector<1x128xf32> to vector<32x128xf32>
    %189 = arith.addf %186, %188 : vector<32x128xf32>
    %cst_104 = arith.constant 5.000000e-01 : f32
    %190 = vector.broadcast %cst_104 : f32 to vector<32x128xf32>
    %191 = arith.mulf %190, %189 : vector<32x128xf32>
    %cst_105 = arith.constant 4.471500e-02 : f32
    %192 = vector.broadcast %cst_105 : f32 to vector<32x128xf32>
    %193 = arith.mulf %192, %189 : vector<32x128xf32>
    %194 = arith.mulf %193, %189 : vector<32x128xf32>
    %195 = arith.mulf %194, %189 : vector<32x128xf32>
    %196 = arith.addf %189, %195 : vector<32x128xf32>
    %cst_106 = arith.constant 0.797884583 : f32
    %197 = vector.broadcast %cst_106 : f32 to vector<32x128xf32>
    %198 = arith.mulf %197, %196 : vector<32x128xf32>
    %199 = math.tanh %198 : vector<32x128xf32>
    %cst_107 = arith.constant 1.000000e+00 : f32
    %200 = vector.broadcast %cst_107 : f32 to vector<32x128xf32>
    %201 = arith.addf %200, %199 : vector<32x128xf32>
    %202 = arith.mulf %191, %201 : vector<32x128xf32>
    %c0_108 = arith.constant 0 : index
    %c0_109 = arith.constant 0 : index
    %203 = vector.load %arg20[%c0_108, %c0_109] : memref<128x32xbf16, #tpu.memory_space<vmem>>, vector<128x32xbf16>
    %204 = arith.truncf %202 : vector<32x128xf32> to vector<32x128xbf16>
    %cst_110 = arith.constant dense<0.000000e+00> : vector<32x32xf32>
    %205 = tpu.matmul %204, %203, %cst_110 {dimension_numbers = #tpu.dot_dimension_numbers<[1], [0], [0], [1], [0, 0, 1, 1], [], []>} : vector<32x128xbf16>, vector<128x32xbf16>, vector<32x32xf32> -> vector<32x32xf32>
    %c0_111 = arith.constant 0 : index
    %c0_112 = arith.constant 0 : index
    %206 = vector.load %arg21[%c0_111, %c0_112] : memref<1x32xf32, #tpu.memory_space<vmem>>, vector<1x32xf32>
    %207 = vector.broadcast %206 : vector<1x32xf32> to vector<32x32xf32>
    %208 = arith.addf %205, %207 : vector<32x32xf32>
    %209 = arith.addf %159, %208 : vector<32x32xf32>
    %c0_113 = arith.constant 0 : index
    %c0_114 = arith.constant 0 : index
    %210 = vector.load %arg22[%c0_113, %c0_114] : memref<1x32xf32, #tpu.memory_space<vmem>>, vector<1x32xf32>
    %c0_115 = arith.constant 0 : index
    %c0_116 = arith.constant 0 : index
    %211 = vector.load %arg23[%c0_115, %c0_116] : memref<1x32xf32, #tpu.memory_space<vmem>>, vector<1x32xf32>
    %cst_117 = arith.constant dense<0.000000e+00> : vector<32xf32>
    %212 = vector.multi_reduction <add>, %209, %cst_117 [1] : vector<32x32xf32> to vector<32xf32>
    %213 = vector.shape_cast %212 : vector<32xf32> to vector<32x1xf32>
    %cst_118 = arith.constant 3.200000e+01 : f32
    %214 = vector.broadcast %cst_118 : f32 to vector<32x1xf32>
    %215 = arith.divf %213, %214 : vector<32x1xf32>
    %216 = vector.broadcast %215 : vector<32x1xf32> to vector<32x32xf32>
    %217 = arith.subf %209, %216 : vector<32x32xf32>
    %218 = arith.mulf %217, %217 : vector<32x32xf32>
    %cst_119 = arith.constant dense<0.000000e+00> : vector<32xf32>
    %219 = vector.multi_reduction <add>, %218, %cst_119 [1] : vector<32x32xf32> to vector<32xf32>
    %220 = vector.shape_cast %219 : vector<32xf32> to vector<32x1xf32>
    %cst_120 = arith.constant 3.200000e+01 : f32
    %221 = vector.broadcast %cst_120 : f32 to vector<32x1xf32>
    %222 = arith.divf %220, %221 : vector<32x1xf32>
    %223 = vector.broadcast %215 : vector<32x1xf32> to vector<32x32xf32>
    %224 = arith.subf %209, %223 : vector<32x32xf32>
    %cst_121 = arith.constant 9.99999974E-6 : f32
    %225 = vector.broadcast %cst_121 : f32 to vector<32x1xf32>
    %226 = arith.addf %222, %225 : vector<32x1xf32>
    %227 = math.rsqrt %226 : vector<32x1xf32>
    %228 = vector.broadcast %227 : vector<32x1xf32> to vector<32x32xf32>
    %229 = arith.mulf %224, %228 : vector<32x32xf32>
    %230 = vector.broadcast %210 : vector<1x32xf32> to vector<32x32xf32>
    %231 = arith.mulf %229, %230 : vector<32x32xf32>
    %232 = vector.broadcast %211 : vector<1x32xf32> to vector<32x32xf32>
    %233 = arith.addf %231, %232 : vector<32x32xf32>
    %c0_122 = arith.constant 0 : index
    %c0_123 = arith.constant 0 : index
    %234 = vector.load %arg32[%c0_122, %c0_123] : memref<1x32xf32, #tpu.memory_space<vmem>>, vector<1x32xf32>
    %235 = vector.broadcast %234 : vector<1x32xf32> to vector<32x32xf32>
    %236 = arith.addf %209, %235 : vector<32x32xf32>
    %c0_124 = arith.constant 0 : index
    %c0_125 = arith.constant 0 : index
    %c0_126 = arith.constant 0 : index
    %237 = vector.load %arg24[%c0_124, %c0_125, %c0_126] : memref<2x32x16xbf16, #tpu.memory_space<vmem>>, vector<1x32x16xbf16>
    %238 = vector.shape_cast %237 : vector<1x32x16xbf16> to vector<32x16xbf16>
    %239 = arith.truncf %233 : vector<32x32xf32> to vector<32x32xbf16>
    %cst_127 = arith.constant dense<0.000000e+00> : vector<32x16xf32>
    %240 = tpu.matmul %239, %238, %cst_127 {dimension_numbers = #tpu.dot_dimension_numbers<[1], [0], [0], [1], [0, 0, 1, 1], [], []>} : vector<32x32xbf16>, vector<32x16xbf16>, vector<32x16xf32> -> vector<32x16xf32>
    %c0_128 = arith.constant 0 : index
    %c0_129 = arith.constant 0 : index
    %c0_130 = arith.constant 0 : index
    %241 = vector.load %arg25[%c0_128, %c0_129, %c0_130] : memref<2x1x16xf32, #tpu.memory_space<vmem>>, vector<1x1x16xf32>
    %242 = vector.shape_cast %241 : vector<1x1x16xf32> to vector<1x16xf32>
    %243 = vector.broadcast %242 : vector<1x16xf32> to vector<32x16xf32>
    %244 = arith.addf %240, %243 : vector<32x16xf32>
    %cst_131 = arith.constant 2.500000e-01 : f32
    %245 = vector.broadcast %cst_131 : f32 to vector<32x16xf32>
    %246 = arith.mulf %244, %245 : vector<32x16xf32>
    %c0_132 = arith.constant 0 : index
    %c0_133 = arith.constant 0 : index
    %c0_134 = arith.constant 0 : index
    %247 = vector.load %arg26[%c0_132, %c0_133, %c0_134] : memref<2x32x16xbf16, #tpu.memory_space<vmem>>, vector<1x32x16xbf16>
    %248 = vector.shape_cast %247 : vector<1x32x16xbf16> to vector<32x16xbf16>
    %249 = arith.truncf %233 : vector<32x32xf32> to vector<32x32xbf16>
    %cst_135 = arith.constant dense<0.000000e+00> : vector<32x16xf32>
    %250 = tpu.matmul %249, %248, %cst_135 {dimension_numbers = #tpu.dot_dimension_numbers<[1], [0], [0], [1], [0, 0, 1, 1], [], []>} : vector<32x32xbf16>, vector<32x16xbf16>, vector<32x16xf32> -> vector<32x16xf32>
    %c0_136 = arith.constant 0 : index
    %c0_137 = arith.constant 0 : index
    %c0_138 = arith.constant 0 : index
    %251 = vector.load %arg27[%c0_136, %c0_137, %c0_138] : memref<2x1x16xf32, #tpu.memory_space<vmem>>, vector<1x1x16xf32>
    %252 = vector.shape_cast %251 : vector<1x1x16xf32> to vector<1x16xf32>
    %253 = vector.broadcast %252 : vector<1x16xf32> to vector<32x16xf32>
    %254 = arith.addf %250, %253 : vector<32x16xf32>
    %c0_139 = arith.constant 0 : index
    %c0_140 = arith.constant 0 : index
    %c0_141 = arith.constant 0 : index
    %255 = vector.load %arg28[%c0_139, %c0_140, %c0_141] : memref<2x32x16xbf16, #tpu.memory_space<vmem>>, vector<1x32x16xbf16>
    %256 = vector.shape_cast %255 : vector<1x32x16xbf16> to vector<32x16xbf16>
    %257 = arith.truncf %233 : vector<32x32xf32> to vector<32x32xbf16>
    %cst_142 = arith.constant dense<0.000000e+00> : vector<32x16xf32>
    %258 = tpu.matmul %257, %256, %cst_142 {dimension_numbers = #tpu.dot_dimension_numbers<[1], [0], [0], [1], [0, 0, 1, 1], [], []>} : vector<32x32xbf16>, vector<32x16xbf16>, vector<32x16xf32> -> vector<32x16xf32>
    %c0_143 = arith.constant 0 : index
    %c0_144 = arith.constant 0 : index
    %c0_145 = arith.constant 0 : index
    %259 = vector.load %arg29[%c0_143, %c0_144, %c0_145] : memref<2x1x16xf32, #tpu.memory_space<vmem>>, vector<1x1x16xf32>
    %260 = vector.shape_cast %259 : vector<1x1x16xf32> to vector<1x16xf32>
    %261 = vector.broadcast %260 : vector<1x16xf32> to vector<32x16xf32>
    %262 = arith.addf %258, %261 : vector<32x16xf32>
    %263 = arith.truncf %246 : vector<32x16xf32> to vector<32x16xbf16>
    %264 = arith.truncf %254 : vector<32x16xf32> to vector<32x16xbf16>
    %cst_146 = arith.constant dense<0.000000e+00> : vector<32x32xf32>
    %265 = tpu.matmul %263, %264, %cst_146 {dimension_numbers = #tpu.dot_dimension_numbers<[1], [1], [0], [0], [0, 0, 1, 0], [], []>} : vector<32x16xbf16>, vector<32x16xbf16>, vector<32x32xf32> -> vector<32x32xf32>
    %c0_147 = arith.constant 0 : index
    %c0_148 = arith.constant 0 : index
    %c0_149 = arith.constant 0 : index
    %266 = vector.load %arg30[%c0_147, %c0_148, %c0_149] : memref<2x32x32xbf16, #tpu.memory_space<vmem>>, vector<1x32x32xbf16>
    %267 = vector.shape_cast %266 : vector<1x32x32xbf16> to vector<32x32xbf16>
    %268 = arith.extf %267 : vector<32x32xbf16> to vector<32x32xf32>
    %269 = arith.addf %265, %268 : vector<32x32xf32>
    %cst_150 = arith.constant dense<0xFF800000> : vector<32xf32>
    %270 = vector.multi_reduction <maximumf>, %269, %cst_150 [1] : vector<32x32xf32> to vector<32xf32>
    %271 = vector.shape_cast %270 : vector<32xf32> to vector<32x1xf32>
    %272 = vector.broadcast %271 : vector<32x1xf32> to vector<32x32xf32>
    %273 = arith.subf %269, %272 : vector<32x32xf32>
    %274 = math.exp %273 : vector<32x32xf32>
    %cst_151 = arith.constant dense<0.000000e+00> : vector<32xf32>
    %275 = vector.multi_reduction <add>, %274, %cst_151 [1] : vector<32x32xf32> to vector<32xf32>
    %276 = vector.shape_cast %275 : vector<32xf32> to vector<32x1xf32>
    %277 = tpu.reciprocal %276 {approx = true} : vector<32x1xf32> -> vector<32x1xf32>
    %278 = vector.broadcast %277 : vector<32x1xf32> to vector<32x32xf32>
    %279 = arith.mulf %274, %278 : vector<32x32xf32>
    %280 = arith.truncf %279 : vector<32x32xf32> to vector<32x32xbf16>
    %281 = arith.truncf %262 : vector<32x16xf32> to vector<32x16xbf16>
    %cst_152 = arith.constant dense<0.000000e+00> : vector<32x16xf32>
    %282 = tpu.matmul %280, %281, %cst_152 {dimension_numbers = #tpu.dot_dimension_numbers<[1], [0], [0], [1], [0, 0, 1, 1], [], []>} : vector<32x32xbf16>, vector<32x16xbf16>, vector<32x16xf32> -> vector<32x16xf32>
    %283 = arith.truncf %282 : vector<32x16xf32> to vector<32x16xbf16>
    %c0_153 = arith.constant 0 : index
    %c0_154 = arith.constant 0 : index
    %c0_155 = arith.constant 0 : index
    %284 = vector.load %arg31[%c0_153, %c0_154, %c0_155] : memref<2x16x32xbf16, #tpu.memory_space<vmem>>, vector<1x16x32xbf16>
    %285 = vector.shape_cast %284 : vector<1x16x32xbf16> to vector<16x32xbf16>
    %cst_156 = arith.constant dense<0.000000e+00> : vector<32x32xf32>
    %286 = tpu.matmul %283, %285, %cst_156 {dimension_numbers = #tpu.dot_dimension_numbers<[1], [0], [0], [1], [0, 0, 1, 1], [], []>} : vector<32x16xbf16>, vector<16x32xbf16>, vector<32x32xf32> -> vector<32x32xf32>
    %287 = arith.addf %236, %286 : vector<32x32xf32>
    %c1_157 = arith.constant 1 : index
    %c0_158 = arith.constant 0 : index
    %c0_159 = arith.constant 0 : index
    %288 = vector.load %arg24[%c1_157, %c0_158, %c0_159] : memref<2x32x16xbf16, #tpu.memory_space<vmem>>, vector<1x32x16xbf16>
    %289 = vector.shape_cast %288 : vector<1x32x16xbf16> to vector<32x16xbf16>
    %290 = arith.truncf %233 : vector<32x32xf32> to vector<32x32xbf16>
    %cst_160 = arith.constant dense<0.000000e+00> : vector<32x16xf32>
    %291 = tpu.matmul %290, %289, %cst_160 {dimension_numbers = #tpu.dot_dimension_numbers<[1], [0], [0], [1], [0, 0, 1, 1], [], []>} : vector<32x32xbf16>, vector<32x16xbf16>, vector<32x16xf32> -> vector<32x16xf32>
    %c1_161 = arith.constant 1 : index
    %c0_162 = arith.constant 0 : index
    %c0_163 = arith.constant 0 : index
    %292 = vector.load %arg25[%c1_161, %c0_162, %c0_163] : memref<2x1x16xf32, #tpu.memory_space<vmem>>, vector<1x1x16xf32>
    %293 = vector.shape_cast %292 : vector<1x1x16xf32> to vector<1x16xf32>
    %294 = vector.broadcast %293 : vector<1x16xf32> to vector<32x16xf32>
    %295 = arith.addf %291, %294 : vector<32x16xf32>
    %cst_164 = arith.constant 2.500000e-01 : f32
    %296 = vector.broadcast %cst_164 : f32 to vector<32x16xf32>
    %297 = arith.mulf %295, %296 : vector<32x16xf32>
    %c1_165 = arith.constant 1 : index
    %c0_166 = arith.constant 0 : index
    %c0_167 = arith.constant 0 : index
    %298 = vector.load %arg26[%c1_165, %c0_166, %c0_167] : memref<2x32x16xbf16, #tpu.memory_space<vmem>>, vector<1x32x16xbf16>
    %299 = vector.shape_cast %298 : vector<1x32x16xbf16> to vector<32x16xbf16>
    %300 = arith.truncf %233 : vector<32x32xf32> to vector<32x32xbf16>
    %cst_168 = arith.constant dense<0.000000e+00> : vector<32x16xf32>
    %301 = tpu.matmul %300, %299, %cst_168 {dimension_numbers = #tpu.dot_dimension_numbers<[1], [0], [0], [1], [0, 0, 1, 1], [], []>} : vector<32x32xbf16>, vector<32x16xbf16>, vector<32x16xf32> -> vector<32x16xf32>
    %c1_169 = arith.constant 1 : index
    %c0_170 = arith.constant 0 : index
    %c0_171 = arith.constant 0 : index
    %302 = vector.load %arg27[%c1_169, %c0_170, %c0_171] : memref<2x1x16xf32, #tpu.memory_space<vmem>>, vector<1x1x16xf32>
    %303 = vector.shape_cast %302 : vector<1x1x16xf32> to vector<1x16xf32>
    %304 = vector.broadcast %303 : vector<1x16xf32> to vector<32x16xf32>
    %305 = arith.addf %301, %304 : vector<32x16xf32>
    %c1_172 = arith.constant 1 : index
    %c0_173 = arith.constant 0 : index
    %c0_174 = arith.constant 0 : index
    %306 = vector.load %arg28[%c1_172, %c0_173, %c0_174] : memref<2x32x16xbf16, #tpu.memory_space<vmem>>, vector<1x32x16xbf16>
    %307 = vector.shape_cast %306 : vector<1x32x16xbf16> to vector<32x16xbf16>
    %308 = arith.truncf %233 : vector<32x32xf32> to vector<32x32xbf16>
    %cst_175 = arith.constant dense<0.000000e+00> : vector<32x16xf32>
    %309 = tpu.matmul %308, %307, %cst_175 {dimension_numbers = #tpu.dot_dimension_numbers<[1], [0], [0], [1], [0, 0, 1, 1], [], []>} : vector<32x32xbf16>, vector<32x16xbf16>, vector<32x16xf32> -> vector<32x16xf32>
    %c1_176 = arith.constant 1 : index
    %c0_177 = arith.constant 0 : index
    %c0_178 = arith.constant 0 : index
    %310 = vector.load %arg29[%c1_176, %c0_177, %c0_178] : memref<2x1x16xf32, #tpu.memory_space<vmem>>, vector<1x1x16xf32>
    %311 = vector.shape_cast %310 : vector<1x1x16xf32> to vector<1x16xf32>
    %312 = vector.broadcast %311 : vector<1x16xf32> to vector<32x16xf32>
    %313 = arith.addf %309, %312 : vector<32x16xf32>
    %314 = arith.truncf %297 : vector<32x16xf32> to vector<32x16xbf16>
    %315 = arith.truncf %305 : vector<32x16xf32> to vector<32x16xbf16>
    %cst_179 = arith.constant dense<0.000000e+00> : vector<32x32xf32>
    %316 = tpu.matmul %314, %315, %cst_179 {dimension_numbers = #tpu.dot_dimension_numbers<[1], [1], [0], [0], [0, 0, 1, 0], [], []>} : vector<32x16xbf16>, vector<32x16xbf16>, vector<32x32xf32> -> vector<32x32xf32>
    %c1_180 = arith.constant 1 : index
    %c0_181 = arith.constant 0 : index
    %c0_182 = arith.constant 0 : index
    %317 = vector.load %arg30[%c1_180, %c0_181, %c0_182] : memref<2x32x32xbf16, #tpu.memory_space<vmem>>, vector<1x32x32xbf16>
    %318 = vector.shape_cast %317 : vector<1x32x32xbf16> to vector<32x32xbf16>
    %319 = arith.extf %318 : vector<32x32xbf16> to vector<32x32xf32>
    %320 = arith.addf %316, %319 : vector<32x32xf32>
    %cst_183 = arith.constant dense<0xFF800000> : vector<32xf32>
    %321 = vector.multi_reduction <maximumf>, %320, %cst_183 [1] : vector<32x32xf32> to vector<32xf32>
    %322 = vector.shape_cast %321 : vector<32xf32> to vector<32x1xf32>
    %323 = vector.broadcast %322 : vector<32x1xf32> to vector<32x32xf32>
    %324 = arith.subf %320, %323 : vector<32x32xf32>
    %325 = math.exp %324 : vector<32x32xf32>
    %cst_184 = arith.constant dense<0.000000e+00> : vector<32xf32>
    %326 = vector.multi_reduction <add>, %325, %cst_184 [1] : vector<32x32xf32> to vector<32xf32>
    %327 = vector.shape_cast %326 : vector<32xf32> to vector<32x1xf32>
    %328 = tpu.reciprocal %327 {approx = true} : vector<32x1xf32> -> vector<32x1xf32>
    %329 = vector.broadcast %328 : vector<32x1xf32> to vector<32x32xf32>
    %330 = arith.mulf %325, %329 : vector<32x32xf32>
    %331 = arith.truncf %330 : vector<32x32xf32> to vector<32x32xbf16>
    %332 = arith.truncf %313 : vector<32x16xf32> to vector<32x16xbf16>
    %cst_185 = arith.constant dense<0.000000e+00> : vector<32x16xf32>
    %333 = tpu.matmul %331, %332, %cst_185 {dimension_numbers = #tpu.dot_dimension_numbers<[1], [0], [0], [1], [0, 0, 1, 1], [], []>} : vector<32x32xbf16>, vector<32x16xbf16>, vector<32x16xf32> -> vector<32x16xf32>
    %334 = arith.truncf %333 : vector<32x16xf32> to vector<32x16xbf16>
    %c1_186 = arith.constant 1 : index
    %c0_187 = arith.constant 0 : index
    %c0_188 = arith.constant 0 : index
    %335 = vector.load %arg31[%c1_186, %c0_187, %c0_188] : memref<2x16x32xbf16, #tpu.memory_space<vmem>>, vector<1x16x32xbf16>
    %336 = vector.shape_cast %335 : vector<1x16x32xbf16> to vector<16x32xbf16>
    %cst_189 = arith.constant dense<0.000000e+00> : vector<32x32xf32>
    %337 = tpu.matmul %334, %336, %cst_189 {dimension_numbers = #tpu.dot_dimension_numbers<[1], [0], [0], [1], [0, 0, 1, 1], [], []>} : vector<32x16xbf16>, vector<16x32xbf16>, vector<32x32xf32> -> vector<32x32xf32>
    %338 = arith.addf %287, %337 : vector<32x32xf32>
    %c0_190 = arith.constant 0 : index
    %c0_191 = arith.constant 0 : index
    %339 = vector.load %arg33[%c0_190, %c0_191] : memref<1x32xf32, #tpu.memory_space<vmem>>, vector<1x32xf32>
    %c0_192 = arith.constant 0 : index
    %c0_193 = arith.constant 0 : index
    %340 = vector.load %arg34[%c0_192, %c0_193] : memref<1x32xf32, #tpu.memory_space<vmem>>, vector<1x32xf32>
    %cst_194 = arith.constant dense<0.000000e+00> : vector<32xf32>
    %341 = vector.multi_reduction <add>, %338, %cst_194 [1] : vector<32x32xf32> to vector<32xf32>
    %342 = vector.shape_cast %341 : vector<32xf32> to vector<32x1xf32>
    %cst_195 = arith.constant 3.200000e+01 : f32
    %343 = vector.broadcast %cst_195 : f32 to vector<32x1xf32>
    %344 = arith.divf %342, %343 : vector<32x1xf32>
    %345 = vector.broadcast %344 : vector<32x1xf32> to vector<32x32xf32>
    %346 = arith.subf %338, %345 : vector<32x32xf32>
    %347 = arith.mulf %346, %346 : vector<32x32xf32>
    %cst_196 = arith.constant dense<0.000000e+00> : vector<32xf32>
    %348 = vector.multi_reduction <add>, %347, %cst_196 [1] : vector<32x32xf32> to vector<32xf32>
    %349 = vector.shape_cast %348 : vector<32xf32> to vector<32x1xf32>
    %cst_197 = arith.constant 3.200000e+01 : f32
    %350 = vector.broadcast %cst_197 : f32 to vector<32x1xf32>
    %351 = arith.divf %349, %350 : vector<32x1xf32>
    %352 = vector.broadcast %344 : vector<32x1xf32> to vector<32x32xf32>
    %353 = arith.subf %338, %352 : vector<32x32xf32>
    %cst_198 = arith.constant 9.99999974E-6 : f32
    %354 = vector.broadcast %cst_198 : f32 to vector<32x1xf32>
    %355 = arith.addf %351, %354 : vector<32x1xf32>
    %356 = math.rsqrt %355 : vector<32x1xf32>
    %357 = vector.broadcast %356 : vector<32x1xf32> to vector<32x32xf32>
    %358 = arith.mulf %353, %357 : vector<32x32xf32>
    %359 = vector.broadcast %339 : vector<1x32xf32> to vector<32x32xf32>
    %360 = arith.mulf %358, %359 : vector<32x32xf32>
    %361 = vector.broadcast %340 : vector<1x32xf32> to vector<32x32xf32>
    %362 = arith.addf %360, %361 : vector<32x32xf32>
    %c0_199 = arith.constant 0 : index
    %c0_200 = arith.constant 0 : index
    %363 = vector.load %arg35[%c0_199, %c0_200] : memref<32x128xbf16, #tpu.memory_space<vmem>>, vector<32x128xbf16>
    %364 = arith.truncf %362 : vector<32x32xf32> to vector<32x32xbf16>
    %cst_201 = arith.constant dense<0.000000e+00> : vector<32x128xf32>
    %365 = tpu.matmul %364, %363, %cst_201 {dimension_numbers = #tpu.dot_dimension_numbers<[1], [0], [0], [1], [0, 0, 1, 1], [], []>} : vector<32x32xbf16>, vector<32x128xbf16>, vector<32x128xf32> -> vector<32x128xf32>
    %c0_202 = arith.constant 0 : index
    %c0_203 = arith.constant 0 : index
    %366 = vector.load %arg36[%c0_202, %c0_203] : memref<1x128xf32, #tpu.memory_space<vmem>>, vector<1x128xf32>
    %367 = vector.broadcast %366 : vector<1x128xf32> to vector<32x128xf32>
    %368 = arith.addf %365, %367 : vector<32x128xf32>
    %cst_204 = arith.constant 5.000000e-01 : f32
    %369 = vector.broadcast %cst_204 : f32 to vector<32x128xf32>
    %370 = arith.mulf %369, %368 : vector<32x128xf32>
    %cst_205 = arith.constant 4.471500e-02 : f32
    %371 = vector.broadcast %cst_205 : f32 to vector<32x128xf32>
    %372 = arith.mulf %371, %368 : vector<32x128xf32>
    %373 = arith.mulf %372, %368 : vector<32x128xf32>
    %374 = arith.mulf %373, %368 : vector<32x128xf32>
    %375 = arith.addf %368, %374 : vector<32x128xf32>
    %cst_206 = arith.constant 0.797884583 : f32
    %376 = vector.broadcast %cst_206 : f32 to vector<32x128xf32>
    %377 = arith.mulf %376, %375 : vector<32x128xf32>
    %378 = math.tanh %377 : vector<32x128xf32>
    %cst_207 = arith.constant 1.000000e+00 : f32
    %379 = vector.broadcast %cst_207 : f32 to vector<32x128xf32>
    %380 = arith.addf %379, %378 : vector<32x128xf32>
    %381 = arith.mulf %370, %380 : vector<32x128xf32>
    %c0_208 = arith.constant 0 : index
    %c0_209 = arith.constant 0 : index
    %382 = vector.load %arg37[%c0_208, %c0_209] : memref<128x32xbf16, #tpu.memory_space<vmem>>, vector<128x32xbf16>
    %383 = arith.truncf %381 : vector<32x128xf32> to vector<32x128xbf16>
    %cst_210 = arith.constant dense<0.000000e+00> : vector<32x32xf32>
    %384 = tpu.matmul %383, %382, %cst_210 {dimension_numbers = #tpu.dot_dimension_numbers<[1], [0], [0], [1], [0, 0, 1, 1], [], []>} : vector<32x128xbf16>, vector<128x32xbf16>, vector<32x32xf32> -> vector<32x32xf32>
    %c0_211 = arith.constant 0 : index
    %c0_212 = arith.constant 0 : index
    %385 = vector.load %arg38[%c0_211, %c0_212] : memref<1x32xf32, #tpu.memory_space<vmem>>, vector<1x32xf32>
    %386 = vector.broadcast %385 : vector<1x32xf32> to vector<32x32xf32>
    %387 = arith.addf %384, %386 : vector<32x32xf32>
    %388 = arith.addf %338, %387 : vector<32x32xf32>
    %c0_213 = arith.constant 0 : index
    %c0_214 = arith.constant 0 : index
    %389 = vector.load %arg39[%c0_213, %c0_214] : memref<32x32xf32, #tpu.memory_space<vmem>>, vector<32x32xf32>
    tpu.vector_store %arg39[%c0_213, %c0_214], %388 {strides = array<i32>} : memref<32x32xf32, #tpu.memory_space<vmem>>, vector<32x32xf32>,
    return
  }
}

module attributes {stable_mosaic.version = 11 : i64} {
  func.func @_stage1_kernel(%arg0: memref<8x128xf32, #tpu.memory_space<vmem>>, %arg1: memref<1x128xf32, #tpu.memory_space<vmem>>, %arg2: memref<1x128xf32, #tpu.memory_space<vmem>>, %arg3: memref<128x64xbf16, #tpu.memory_space<vmem>>, %arg4: memref<1x64xf32, #tpu.memory_space<vmem>>, %arg5: memref<1x64xf32, #tpu.memory_space<vmem>>, %arg6: memref<4x64x16xbf16, #tpu.memory_space<vmem>>, %arg7: memref<4x1x16xf32, #tpu.memory_space<vmem>>, %arg8: memref<4x64x16xbf16, #tpu.memory_space<vmem>>, %arg9: memref<4x1x16xf32, #tpu.memory_space<vmem>>, %arg10: memref<4x64x16xbf16, #tpu.memory_space<vmem>>, %arg11: memref<4x1x16xf32, #tpu.memory_space<vmem>>, %arg12: memref<4x8x8xbf16, #tpu.memory_space<vmem>>, %arg13: memref<4x16x64xbf16, #tpu.memory_space<vmem>>, %arg14: memref<1x64xf32, #tpu.memory_space<vmem>>, %arg15: memref<1x64xf32, #tpu.memory_space<vmem>>, %arg16: memref<1x64xf32, #tpu.memory_space<vmem>>, %arg17: memref<64x256xbf16, #tpu.memory_space<vmem>>, %arg18: memref<1x256xf32, #tpu.memory_space<vmem>>, %arg19: memref<256x64xbf16, #tpu.memory_space<vmem>>, %arg20: memref<1x64xf32, #tpu.memory_space<vmem>>, %arg21: memref<1x64xf32, #tpu.memory_space<vmem>>, %arg22: memref<1x64xf32, #tpu.memory_space<vmem>>, %arg23: memref<4x64x16xbf16, #tpu.memory_space<vmem>>, %arg24: memref<4x1x16xf32, #tpu.memory_space<vmem>>, %arg25: memref<4x64x16xbf16, #tpu.memory_space<vmem>>, %arg26: memref<4x1x16xf32, #tpu.memory_space<vmem>>, %arg27: memref<4x64x16xbf16, #tpu.memory_space<vmem>>, %arg28: memref<4x1x16xf32, #tpu.memory_space<vmem>>, %arg29: memref<4x8x8xbf16, #tpu.memory_space<vmem>>, %arg30: memref<4x16x64xbf16, #tpu.memory_space<vmem>>, %arg31: memref<1x64xf32, #tpu.memory_space<vmem>>, %arg32: memref<1x64xf32, #tpu.memory_space<vmem>>, %arg33: memref<1x64xf32, #tpu.memory_space<vmem>>, %arg34: memref<64x256xbf16, #tpu.memory_space<vmem>>, %arg35: memref<1x256xf32, #tpu.memory_space<vmem>>, %arg36: memref<256x64xbf16, #tpu.memory_space<vmem>>, %arg37: memref<1x64xf32, #tpu.memory_space<vmem>>, %arg38: memref<1x64xf32, #tpu.memory_space<vmem>>, %arg39: memref<1x64xf32, #tpu.memory_space<vmem>>, %arg40: memref<64x5xbf16, #tpu.memory_space<vmem>>, %arg41: memref<1x5xf32, #tpu.memory_space<vmem>>, %arg42: memref<2x5xf32, #tpu.memory_space<vmem>>) attributes {dimension_semantics = [], scalar_prefetch = 0 : i64, scratch_operands = 0 : i64, tpu.core_type = #tpu.core_type<tc>} {
    %c0 = arith.constant 0 : index
    %c0_0 = arith.constant 0 : index
    %0 = vector.load %arg0[%c0, %c0_0] : memref<8x128xf32, #tpu.memory_space<vmem>>, vector<8x128xf32>
    %c0_1 = arith.constant 0 : index
    %c0_2 = arith.constant 0 : index
    %1 = vector.load %arg1[%c0_1, %c0_2] : memref<1x128xf32, #tpu.memory_space<vmem>>, vector<1x128xf32>
    %c0_3 = arith.constant 0 : index
    %c0_4 = arith.constant 0 : index
    %2 = vector.load %arg2[%c0_3, %c0_4] : memref<1x128xf32, #tpu.memory_space<vmem>>, vector<1x128xf32>
    %cst = arith.constant dense<0.000000e+00> : vector<8xf32>
    %3 = vector.multi_reduction <add>, %0, %cst [1] : vector<8x128xf32> to vector<8xf32>
    %4 = vector.shape_cast %3 : vector<8xf32> to vector<8x1xf32>
    %cst_5 = arith.constant 1.280000e+02 : f32
    %5 = vector.broadcast %cst_5 : f32 to vector<8x1xf32>
    %6 = arith.divf %4, %5 : vector<8x1xf32>
    %7 = vector.broadcast %6 : vector<8x1xf32> to vector<8x128xf32>
    %8 = arith.subf %0, %7 : vector<8x128xf32>
    %9 = arith.mulf %8, %8 : vector<8x128xf32>
    %cst_6 = arith.constant dense<0.000000e+00> : vector<8xf32>
    %10 = vector.multi_reduction <add>, %9, %cst_6 [1] : vector<8x128xf32> to vector<8xf32>
    %11 = vector.shape_cast %10 : vector<8xf32> to vector<8x1xf32>
    %cst_7 = arith.constant 1.280000e+02 : f32
    %12 = vector.broadcast %cst_7 : f32 to vector<8x1xf32>
    %13 = arith.divf %11, %12 : vector<8x1xf32>
    %14 = vector.broadcast %6 : vector<8x1xf32> to vector<8x128xf32>
    %15 = arith.subf %0, %14 : vector<8x128xf32>
    %cst_8 = arith.constant 9.99999974E-6 : f32
    %16 = vector.broadcast %cst_8 : f32 to vector<8x1xf32>
    %17 = arith.addf %13, %16 : vector<8x1xf32>
    %18 = math.rsqrt %17 : vector<8x1xf32>
    %19 = vector.broadcast %18 : vector<8x1xf32> to vector<8x128xf32>
    %20 = arith.mulf %15, %19 : vector<8x128xf32>
    %21 = vector.broadcast %1 : vector<1x128xf32> to vector<8x128xf32>
    %22 = arith.mulf %20, %21 : vector<8x128xf32>
    %23 = vector.broadcast %2 : vector<1x128xf32> to vector<8x128xf32>
    %24 = arith.addf %22, %23 : vector<8x128xf32>
    %c0_9 = arith.constant 0 : index
    %c0_10 = arith.constant 0 : index
    %25 = vector.load %arg3[%c0_9, %c0_10] : memref<128x64xbf16, #tpu.memory_space<vmem>>, vector<128x64xbf16>
    %26 = arith.truncf %24 : vector<8x128xf32> to vector<8x128xbf16>
    %cst_11 = arith.constant dense<0.000000e+00> : vector<8x64xf32>
    %27 = tpu.matmul %26, %25, %cst_11 {dimension_numbers = #tpu.dot_dimension_numbers<[1], [0], [0], [1], [0, 0, 1, 1], [], []>} : vector<8x128xbf16>, vector<128x64xbf16>, vector<8x64xf32> -> vector<8x64xf32>
    %c0_12 = arith.constant 0 : index
    %c0_13 = arith.constant 0 : index
    %28 = vector.load %arg4[%c0_12, %c0_13] : memref<1x64xf32, #tpu.memory_space<vmem>>, vector<1x64xf32>
    %c0_14 = arith.constant 0 : index
    %c0_15 = arith.constant 0 : index
    %29 = vector.load %arg5[%c0_14, %c0_15] : memref<1x64xf32, #tpu.memory_space<vmem>>, vector<1x64xf32>
    %cst_16 = arith.constant dense<0.000000e+00> : vector<8xf32>
    %30 = vector.multi_reduction <add>, %27, %cst_16 [1] : vector<8x64xf32> to vector<8xf32>
    %31 = vector.shape_cast %30 : vector<8xf32> to vector<8x1xf32>
    %cst_17 = arith.constant 6.400000e+01 : f32
    %32 = vector.broadcast %cst_17 : f32 to vector<8x1xf32>
    %33 = arith.divf %31, %32 : vector<8x1xf32>
    %34 = vector.broadcast %33 : vector<8x1xf32> to vector<8x64xf32>
    %35 = arith.subf %27, %34 : vector<8x64xf32>
    %36 = arith.mulf %35, %35 : vector<8x64xf32>
    %cst_18 = arith.constant dense<0.000000e+00> : vector<8xf32>
    %37 = vector.multi_reduction <add>, %36, %cst_18 [1] : vector<8x64xf32> to vector<8xf32>
    %38 = vector.shape_cast %37 : vector<8xf32> to vector<8x1xf32>
    %cst_19 = arith.constant 6.400000e+01 : f32
    %39 = vector.broadcast %cst_19 : f32 to vector<8x1xf32>
    %40 = arith.divf %38, %39 : vector<8x1xf32>
    %41 = vector.broadcast %33 : vector<8x1xf32> to vector<8x64xf32>
    %42 = arith.subf %27, %41 : vector<8x64xf32>
    %cst_20 = arith.constant 9.99999974E-6 : f32
    %43 = vector.broadcast %cst_20 : f32 to vector<8x1xf32>
    %44 = arith.addf %40, %43 : vector<8x1xf32>
    %45 = math.rsqrt %44 : vector<8x1xf32>
    %46 = vector.broadcast %45 : vector<8x1xf32> to vector<8x64xf32>
    %47 = arith.mulf %42, %46 : vector<8x64xf32>
    %48 = vector.broadcast %28 : vector<1x64xf32> to vector<8x64xf32>
    %49 = arith.mulf %47, %48 : vector<8x64xf32>
    %50 = vector.broadcast %29 : vector<1x64xf32> to vector<8x64xf32>
    %51 = arith.addf %49, %50 : vector<8x64xf32>
    %c0_21 = arith.constant 0 : index
    %c0_22 = arith.constant 0 : index
    %52 = vector.load %arg14[%c0_21, %c0_22] : memref<1x64xf32, #tpu.memory_space<vmem>>, vector<1x64xf32>
    %53 = vector.broadcast %52 : vector<1x64xf32> to vector<8x64xf32>
    %54 = arith.addf %27, %53 : vector<8x64xf32>
    %c0_23 = arith.constant 0 : index
    %c0_24 = arith.constant 0 : index
    %c0_25 = arith.constant 0 : index
    %55 = vector.load %arg6[%c0_23, %c0_24, %c0_25] : memref<4x64x16xbf16, #tpu.memory_space<vmem>>, vector<1x64x16xbf16>
    %56 = vector.shape_cast %55 : vector<1x64x16xbf16> to vector<64x16xbf16>
    %57 = arith.truncf %51 : vector<8x64xf32> to vector<8x64xbf16>
    %cst_26 = arith.constant dense<0.000000e+00> : vector<8x16xf32>
    %58 = tpu.matmul %57, %56, %cst_26 {dimension_numbers = #tpu.dot_dimension_numbers<[1], [0], [0], [1], [0, 0, 1, 1], [], []>} : vector<8x64xbf16>, vector<64x16xbf16>, vector<8x16xf32> -> vector<8x16xf32>
    %c0_27 = arith.constant 0 : index
    %c0_28 = arith.constant 0 : index
    %c0_29 = arith.constant 0 : index
    %59 = vector.load %arg7[%c0_27, %c0_28, %c0_29] : memref<4x1x16xf32, #tpu.memory_space<vmem>>, vector<1x1x16xf32>
    %60 = vector.shape_cast %59 : vector<1x1x16xf32> to vector<1x16xf32>
    %61 = vector.broadcast %60 : vector<1x16xf32> to vector<8x16xf32>
    %62 = arith.addf %58, %61 : vector<8x16xf32>
    %cst_30 = arith.constant 2.500000e-01 : f32
    %63 = vector.broadcast %cst_30 : f32 to vector<8x16xf32>
    %64 = arith.mulf %62, %63 : vector<8x16xf32>
    %c0_31 = arith.constant 0 : index
    %c0_32 = arith.constant 0 : index
    %c0_33 = arith.constant 0 : index
    %65 = vector.load %arg8[%c0_31, %c0_32, %c0_33] : memref<4x64x16xbf16, #tpu.memory_space<vmem>>, vector<1x64x16xbf16>
    %66 = vector.shape_cast %65 : vector<1x64x16xbf16> to vector<64x16xbf16>
    %67 = arith.truncf %51 : vector<8x64xf32> to vector<8x64xbf16>
    %cst_34 = arith.constant dense<0.000000e+00> : vector<8x16xf32>
    %68 = tpu.matmul %67, %66, %cst_34 {dimension_numbers = #tpu.dot_dimension_numbers<[1], [0], [0], [1], [0, 0, 1, 1], [], []>} : vector<8x64xbf16>, vector<64x16xbf16>, vector<8x16xf32> -> vector<8x16xf32>
    %c0_35 = arith.constant 0 : index
    %c0_36 = arith.constant 0 : index
    %c0_37 = arith.constant 0 : index
    %69 = vector.load %arg9[%c0_35, %c0_36, %c0_37] : memref<4x1x16xf32, #tpu.memory_space<vmem>>, vector<1x1x16xf32>
    %70 = vector.shape_cast %69 : vector<1x1x16xf32> to vector<1x16xf32>
    %71 = vector.broadcast %70 : vector<1x16xf32> to vector<8x16xf32>
    %72 = arith.addf %68, %71 : vector<8x16xf32>
    %c0_38 = arith.constant 0 : index
    %c0_39 = arith.constant 0 : index
    %c0_40 = arith.constant 0 : index
    %73 = vector.load %arg10[%c0_38, %c0_39, %c0_40] : memref<4x64x16xbf16, #tpu.memory_space<vmem>>, vector<1x64x16xbf16>
    %74 = vector.shape_cast %73 : vector<1x64x16xbf16> to vector<64x16xbf16>
    %75 = arith.truncf %51 : vector<8x64xf32> to vector<8x64xbf16>
    %cst_41 = arith.constant dense<0.000000e+00> : vector<8x16xf32>
    %76 = tpu.matmul %75, %74, %cst_41 {dimension_numbers = #tpu.dot_dimension_numbers<[1], [0], [0], [1], [0, 0, 1, 1], [], []>} : vector<8x64xbf16>, vector<64x16xbf16>, vector<8x16xf32> -> vector<8x16xf32>
    %c0_42 = arith.constant 0 : index
    %c0_43 = arith.constant 0 : index
    %c0_44 = arith.constant 0 : index
    %77 = vector.load %arg11[%c0_42, %c0_43, %c0_44] : memref<4x1x16xf32, #tpu.memory_space<vmem>>, vector<1x1x16xf32>
    %78 = vector.shape_cast %77 : vector<1x1x16xf32> to vector<1x16xf32>
    %79 = vector.broadcast %78 : vector<1x16xf32> to vector<8x16xf32>
    %80 = arith.addf %76, %79 : vector<8x16xf32>
    %81 = arith.truncf %64 : vector<8x16xf32> to vector<8x16xbf16>
    %82 = arith.truncf %72 : vector<8x16xf32> to vector<8x16xbf16>
    %cst_45 = arith.constant dense<0.000000e+00> : vector<8x8xf32>
    %83 = tpu.matmul %81, %82, %cst_45 {dimension_numbers = #tpu.dot_dimension_numbers<[1], [1], [0], [0], [0, 0, 1, 0], [], []>} : vector<8x16xbf16>, vector<8x16xbf16>, vector<8x8xf32> -> vector<8x8xf32>
    %c0_46 = arith.constant 0 : index
    %c0_47 = arith.constant 0 : index
    %c0_48 = arith.constant 0 : index
    %84 = vector.load %arg12[%c0_46, %c0_47, %c0_48] : memref<4x8x8xbf16, #tpu.memory_space<vmem>>, vector<1x8x8xbf16>
    %85 = vector.shape_cast %84 : vector<1x8x8xbf16> to vector<8x8xbf16>
    %86 = arith.extf %85 : vector<8x8xbf16> to vector<8x8xf32>
    %87 = arith.addf %83, %86 : vector<8x8xf32>
    %cst_49 = arith.constant dense<0xFF800000> : vector<8xf32>
    %88 = vector.multi_reduction <maximumf>, %87, %cst_49 [1] : vector<8x8xf32> to vector<8xf32>
    %89 = vector.shape_cast %88 : vector<8xf32> to vector<8x1xf32>
    %90 = vector.broadcast %89 : vector<8x1xf32> to vector<8x8xf32>
    %91 = arith.subf %87, %90 : vector<8x8xf32>
    %92 = math.exp %91 : vector<8x8xf32>
    %cst_50 = arith.constant dense<0.000000e+00> : vector<8xf32>
    %93 = vector.multi_reduction <add>, %92, %cst_50 [1] : vector<8x8xf32> to vector<8xf32>
    %94 = vector.shape_cast %93 : vector<8xf32> to vector<8x1xf32>
    %95 = tpu.reciprocal %94 {approx = true} : vector<8x1xf32> -> vector<8x1xf32>
    %96 = vector.broadcast %95 : vector<8x1xf32> to vector<8x8xf32>
    %97 = arith.mulf %92, %96 : vector<8x8xf32>
    %98 = arith.truncf %97 : vector<8x8xf32> to vector<8x8xbf16>
    %99 = arith.truncf %80 : vector<8x16xf32> to vector<8x16xbf16>
    %cst_51 = arith.constant dense<0.000000e+00> : vector<8x16xf32>
    %100 = tpu.matmul %98, %99, %cst_51 {dimension_numbers = #tpu.dot_dimension_numbers<[1], [0], [0], [1], [0, 0, 1, 1], [], []>} : vector<8x8xbf16>, vector<8x16xbf16>, vector<8x16xf32> -> vector<8x16xf32>
    %101 = arith.truncf %100 : vector<8x16xf32> to vector<8x16xbf16>
    %c0_52 = arith.constant 0 : index
    %c0_53 = arith.constant 0 : index
    %c0_54 = arith.constant 0 : index
    %102 = vector.load %arg13[%c0_52, %c0_53, %c0_54] : memref<4x16x64xbf16, #tpu.memory_space<vmem>>, vector<1x16x64xbf16>
    %103 = vector.shape_cast %102 : vector<1x16x64xbf16> to vector<16x64xbf16>
    %cst_55 = arith.constant dense<0.000000e+00> : vector<8x64xf32>
    %104 = tpu.matmul %101, %103, %cst_55 {dimension_numbers = #tpu.dot_dimension_numbers<[1], [0], [0], [1], [0, 0, 1, 1], [], []>} : vector<8x16xbf16>, vector<16x64xbf16>, vector<8x64xf32> -> vector<8x64xf32>
    %105 = arith.addf %54, %104 : vector<8x64xf32>
    %c1 = arith.constant 1 : index
    %c0_56 = arith.constant 0 : index
    %c0_57 = arith.constant 0 : index
    %106 = vector.load %arg6[%c1, %c0_56, %c0_57] : memref<4x64x16xbf16, #tpu.memory_space<vmem>>, vector<1x64x16xbf16>
    %107 = vector.shape_cast %106 : vector<1x64x16xbf16> to vector<64x16xbf16>
    %108 = arith.truncf %51 : vector<8x64xf32> to vector<8x64xbf16>
    %cst_58 = arith.constant dense<0.000000e+00> : vector<8x16xf32>
    %109 = tpu.matmul %108, %107, %cst_58 {dimension_numbers = #tpu.dot_dimension_numbers<[1], [0], [0], [1], [0, 0, 1, 1], [], []>} : vector<8x64xbf16>, vector<64x16xbf16>, vector<8x16xf32> -> vector<8x16xf32>
    %c1_59 = arith.constant 1 : index
    %c0_60 = arith.constant 0 : index
    %c0_61 = arith.constant 0 : index
    %110 = vector.load %arg7[%c1_59, %c0_60, %c0_61] : memref<4x1x16xf32, #tpu.memory_space<vmem>>, vector<1x1x16xf32>
    %111 = vector.shape_cast %110 : vector<1x1x16xf32> to vector<1x16xf32>
    %112 = vector.broadcast %111 : vector<1x16xf32> to vector<8x16xf32>
    %113 = arith.addf %109, %112 : vector<8x16xf32>
    %cst_62 = arith.constant 2.500000e-01 : f32
    %114 = vector.broadcast %cst_62 : f32 to vector<8x16xf32>
    %115 = arith.mulf %113, %114 : vector<8x16xf32>
    %c1_63 = arith.constant 1 : index
    %c0_64 = arith.constant 0 : index
    %c0_65 = arith.constant 0 : index
    %116 = vector.load %arg8[%c1_63, %c0_64, %c0_65] : memref<4x64x16xbf16, #tpu.memory_space<vmem>>, vector<1x64x16xbf16>
    %117 = vector.shape_cast %116 : vector<1x64x16xbf16> to vector<64x16xbf16>
    %118 = arith.truncf %51 : vector<8x64xf32> to vector<8x64xbf16>
    %cst_66 = arith.constant dense<0.000000e+00> : vector<8x16xf32>
    %119 = tpu.matmul %118, %117, %cst_66 {dimension_numbers = #tpu.dot_dimension_numbers<[1], [0], [0], [1], [0, 0, 1, 1], [], []>} : vector<8x64xbf16>, vector<64x16xbf16>, vector<8x16xf32> -> vector<8x16xf32>
    %c1_67 = arith.constant 1 : index
    %c0_68 = arith.constant 0 : index
    %c0_69 = arith.constant 0 : index
    %120 = vector.load %arg9[%c1_67, %c0_68, %c0_69] : memref<4x1x16xf32, #tpu.memory_space<vmem>>, vector<1x1x16xf32>
    %121 = vector.shape_cast %120 : vector<1x1x16xf32> to vector<1x16xf32>
    %122 = vector.broadcast %121 : vector<1x16xf32> to vector<8x16xf32>
    %123 = arith.addf %119, %122 : vector<8x16xf32>
    %c1_70 = arith.constant 1 : index
    %c0_71 = arith.constant 0 : index
    %c0_72 = arith.constant 0 : index
    %124 = vector.load %arg10[%c1_70, %c0_71, %c0_72] : memref<4x64x16xbf16, #tpu.memory_space<vmem>>, vector<1x64x16xbf16>
    %125 = vector.shape_cast %124 : vector<1x64x16xbf16> to vector<64x16xbf16>
    %126 = arith.truncf %51 : vector<8x64xf32> to vector<8x64xbf16>
    %cst_73 = arith.constant dense<0.000000e+00> : vector<8x16xf32>
    %127 = tpu.matmul %126, %125, %cst_73 {dimension_numbers = #tpu.dot_dimension_numbers<[1], [0], [0], [1], [0, 0, 1, 1], [], []>} : vector<8x64xbf16>, vector<64x16xbf16>, vector<8x16xf32> -> vector<8x16xf32>
    %c1_74 = arith.constant 1 : index
    %c0_75 = arith.constant 0 : index
    %c0_76 = arith.constant 0 : index
    %128 = vector.load %arg11[%c1_74, %c0_75, %c0_76] : memref<4x1x16xf32, #tpu.memory_space<vmem>>, vector<1x1x16xf32>
    %129 = vector.shape_cast %128 : vector<1x1x16xf32> to vector<1x16xf32>
    %130 = vector.broadcast %129 : vector<1x16xf32> to vector<8x16xf32>
    %131 = arith.addf %127, %130 : vector<8x16xf32>
    %132 = arith.truncf %115 : vector<8x16xf32> to vector<8x16xbf16>
    %133 = arith.truncf %123 : vector<8x16xf32> to vector<8x16xbf16>
    %cst_77 = arith.constant dense<0.000000e+00> : vector<8x8xf32>
    %134 = tpu.matmul %132, %133, %cst_77 {dimension_numbers = #tpu.dot_dimension_numbers<[1], [1], [0], [0], [0, 0, 1, 0], [], []>} : vector<8x16xbf16>, vector<8x16xbf16>, vector<8x8xf32> -> vector<8x8xf32>
    %c1_78 = arith.constant 1 : index
    %c0_79 = arith.constant 0 : index
    %c0_80 = arith.constant 0 : index
    %135 = vector.load %arg12[%c1_78, %c0_79, %c0_80] : memref<4x8x8xbf16, #tpu.memory_space<vmem>>, vector<1x8x8xbf16>
    %136 = vector.shape_cast %135 : vector<1x8x8xbf16> to vector<8x8xbf16>
    %137 = arith.extf %136 : vector<8x8xbf16> to vector<8x8xf32>
    %138 = arith.addf %134, %137 : vector<8x8xf32>
    %cst_81 = arith.constant dense<0xFF800000> : vector<8xf32>
    %139 = vector.multi_reduction <maximumf>, %138, %cst_81 [1] : vector<8x8xf32> to vector<8xf32>
    %140 = vector.shape_cast %139 : vector<8xf32> to vector<8x1xf32>
    %141 = vector.broadcast %140 : vector<8x1xf32> to vector<8x8xf32>
    %142 = arith.subf %138, %141 : vector<8x8xf32>
    %143 = math.exp %142 : vector<8x8xf32>
    %cst_82 = arith.constant dense<0.000000e+00> : vector<8xf32>
    %144 = vector.multi_reduction <add>, %143, %cst_82 [1] : vector<8x8xf32> to vector<8xf32>
    %145 = vector.shape_cast %144 : vector<8xf32> to vector<8x1xf32>
    %146 = tpu.reciprocal %145 {approx = true} : vector<8x1xf32> -> vector<8x1xf32>
    %147 = vector.broadcast %146 : vector<8x1xf32> to vector<8x8xf32>
    %148 = arith.mulf %143, %147 : vector<8x8xf32>
    %149 = arith.truncf %148 : vector<8x8xf32> to vector<8x8xbf16>
    %150 = arith.truncf %131 : vector<8x16xf32> to vector<8x16xbf16>
    %cst_83 = arith.constant dense<0.000000e+00> : vector<8x16xf32>
    %151 = tpu.matmul %149, %150, %cst_83 {dimension_numbers = #tpu.dot_dimension_numbers<[1], [0], [0], [1], [0, 0, 1, 1], [], []>} : vector<8x8xbf16>, vector<8x16xbf16>, vector<8x16xf32> -> vector<8x16xf32>
    %152 = arith.truncf %151 : vector<8x16xf32> to vector<8x16xbf16>
    %c1_84 = arith.constant 1 : index
    %c0_85 = arith.constant 0 : index
    %c0_86 = arith.constant 0 : index
    %153 = vector.load %arg13[%c1_84, %c0_85, %c0_86] : memref<4x16x64xbf16, #tpu.memory_space<vmem>>, vector<1x16x64xbf16>
    %154 = vector.shape_cast %153 : vector<1x16x64xbf16> to vector<16x64xbf16>
    %cst_87 = arith.constant dense<0.000000e+00> : vector<8x64xf32>
    %155 = tpu.matmul %152, %154, %cst_87 {dimension_numbers = #tpu.dot_dimension_numbers<[1], [0], [0], [1], [0, 0, 1, 1], [], []>} : vector<8x16xbf16>, vector<16x64xbf16>, vector<8x64xf32> -> vector<8x64xf32>
    %156 = arith.addf %105, %155 : vector<8x64xf32>
    %c2 = arith.constant 2 : index
    %c0_88 = arith.constant 0 : index
    %c0_89 = arith.constant 0 : index
    %157 = vector.load %arg6[%c2, %c0_88, %c0_89] : memref<4x64x16xbf16, #tpu.memory_space<vmem>>, vector<1x64x16xbf16>
    %158 = vector.shape_cast %157 : vector<1x64x16xbf16> to vector<64x16xbf16>
    %159 = arith.truncf %51 : vector<8x64xf32> to vector<8x64xbf16>
    %cst_90 = arith.constant dense<0.000000e+00> : vector<8x16xf32>
    %160 = tpu.matmul %159, %158, %cst_90 {dimension_numbers = #tpu.dot_dimension_numbers<[1], [0], [0], [1], [0, 0, 1, 1], [], []>} : vector<8x64xbf16>, vector<64x16xbf16>, vector<8x16xf32> -> vector<8x16xf32>
    %c2_91 = arith.constant 2 : index
    %c0_92 = arith.constant 0 : index
    %c0_93 = arith.constant 0 : index
    %161 = vector.load %arg7[%c2_91, %c0_92, %c0_93] : memref<4x1x16xf32, #tpu.memory_space<vmem>>, vector<1x1x16xf32>
    %162 = vector.shape_cast %161 : vector<1x1x16xf32> to vector<1x16xf32>
    %163 = vector.broadcast %162 : vector<1x16xf32> to vector<8x16xf32>
    %164 = arith.addf %160, %163 : vector<8x16xf32>
    %cst_94 = arith.constant 2.500000e-01 : f32
    %165 = vector.broadcast %cst_94 : f32 to vector<8x16xf32>
    %166 = arith.mulf %164, %165 : vector<8x16xf32>
    %c2_95 = arith.constant 2 : index
    %c0_96 = arith.constant 0 : index
    %c0_97 = arith.constant 0 : index
    %167 = vector.load %arg8[%c2_95, %c0_96, %c0_97] : memref<4x64x16xbf16, #tpu.memory_space<vmem>>, vector<1x64x16xbf16>
    %168 = vector.shape_cast %167 : vector<1x64x16xbf16> to vector<64x16xbf16>
    %169 = arith.truncf %51 : vector<8x64xf32> to vector<8x64xbf16>
    %cst_98 = arith.constant dense<0.000000e+00> : vector<8x16xf32>
    %170 = tpu.matmul %169, %168, %cst_98 {dimension_numbers = #tpu.dot_dimension_numbers<[1], [0], [0], [1], [0, 0, 1, 1], [], []>} : vector<8x64xbf16>, vector<64x16xbf16>, vector<8x16xf32> -> vector<8x16xf32>
    %c2_99 = arith.constant 2 : index
    %c0_100 = arith.constant 0 : index
    %c0_101 = arith.constant 0 : index
    %171 = vector.load %arg9[%c2_99, %c0_100, %c0_101] : memref<4x1x16xf32, #tpu.memory_space<vmem>>, vector<1x1x16xf32>
    %172 = vector.shape_cast %171 : vector<1x1x16xf32> to vector<1x16xf32>
    %173 = vector.broadcast %172 : vector<1x16xf32> to vector<8x16xf32>
    %174 = arith.addf %170, %173 : vector<8x16xf32>
    %c2_102 = arith.constant 2 : index
    %c0_103 = arith.constant 0 : index
    %c0_104 = arith.constant 0 : index
    %175 = vector.load %arg10[%c2_102, %c0_103, %c0_104] : memref<4x64x16xbf16, #tpu.memory_space<vmem>>, vector<1x64x16xbf16>
    %176 = vector.shape_cast %175 : vector<1x64x16xbf16> to vector<64x16xbf16>
    %177 = arith.truncf %51 : vector<8x64xf32> to vector<8x64xbf16>
    %cst_105 = arith.constant dense<0.000000e+00> : vector<8x16xf32>
    %178 = tpu.matmul %177, %176, %cst_105 {dimension_numbers = #tpu.dot_dimension_numbers<[1], [0], [0], [1], [0, 0, 1, 1], [], []>} : vector<8x64xbf16>, vector<64x16xbf16>, vector<8x16xf32> -> vector<8x16xf32>
    %c2_106 = arith.constant 2 : index
    %c0_107 = arith.constant 0 : index
    %c0_108 = arith.constant 0 : index
    %179 = vector.load %arg11[%c2_106, %c0_107, %c0_108] : memref<4x1x16xf32, #tpu.memory_space<vmem>>, vector<1x1x16xf32>
    %180 = vector.shape_cast %179 : vector<1x1x16xf32> to vector<1x16xf32>
    %181 = vector.broadcast %180 : vector<1x16xf32> to vector<8x16xf32>
    %182 = arith.addf %178, %181 : vector<8x16xf32>
    %183 = arith.truncf %166 : vector<8x16xf32> to vector<8x16xbf16>
    %184 = arith.truncf %174 : vector<8x16xf32> to vector<8x16xbf16>
    %cst_109 = arith.constant dense<0.000000e+00> : vector<8x8xf32>
    %185 = tpu.matmul %183, %184, %cst_109 {dimension_numbers = #tpu.dot_dimension_numbers<[1], [1], [0], [0], [0, 0, 1, 0], [], []>} : vector<8x16xbf16>, vector<8x16xbf16>, vector<8x8xf32> -> vector<8x8xf32>
    %c2_110 = arith.constant 2 : index
    %c0_111 = arith.constant 0 : index
    %c0_112 = arith.constant 0 : index
    %186 = vector.load %arg12[%c2_110, %c0_111, %c0_112] : memref<4x8x8xbf16, #tpu.memory_space<vmem>>, vector<1x8x8xbf16>
    %187 = vector.shape_cast %186 : vector<1x8x8xbf16> to vector<8x8xbf16>
    %188 = arith.extf %187 : vector<8x8xbf16> to vector<8x8xf32>
    %189 = arith.addf %185, %188 : vector<8x8xf32>
    %cst_113 = arith.constant dense<0xFF800000> : vector<8xf32>
    %190 = vector.multi_reduction <maximumf>, %189, %cst_113 [1] : vector<8x8xf32> to vector<8xf32>
    %191 = vector.shape_cast %190 : vector<8xf32> to vector<8x1xf32>
    %192 = vector.broadcast %191 : vector<8x1xf32> to vector<8x8xf32>
    %193 = arith.subf %189, %192 : vector<8x8xf32>
    %194 = math.exp %193 : vector<8x8xf32>
    %cst_114 = arith.constant dense<0.000000e+00> : vector<8xf32>
    %195 = vector.multi_reduction <add>, %194, %cst_114 [1] : vector<8x8xf32> to vector<8xf32>
    %196 = vector.shape_cast %195 : vector<8xf32> to vector<8x1xf32>
    %197 = tpu.reciprocal %196 {approx = true} : vector<8x1xf32> -> vector<8x1xf32>
    %198 = vector.broadcast %197 : vector<8x1xf32> to vector<8x8xf32>
    %199 = arith.mulf %194, %198 : vector<8x8xf32>
    %200 = arith.truncf %199 : vector<8x8xf32> to vector<8x8xbf16>
    %201 = arith.truncf %182 : vector<8x16xf32> to vector<8x16xbf16>
    %cst_115 = arith.constant dense<0.000000e+00> : vector<8x16xf32>
    %202 = tpu.matmul %200, %201, %cst_115 {dimension_numbers = #tpu.dot_dimension_numbers<[1], [0], [0], [1], [0, 0, 1, 1], [], []>} : vector<8x8xbf16>, vector<8x16xbf16>, vector<8x16xf32> -> vector<8x16xf32>
    %203 = arith.truncf %202 : vector<8x16xf32> to vector<8x16xbf16>
    %c2_116 = arith.constant 2 : index
    %c0_117 = arith.constant 0 : index
    %c0_118 = arith.constant 0 : index
    %204 = vector.load %arg13[%c2_116, %c0_117, %c0_118] : memref<4x16x64xbf16, #tpu.memory_space<vmem>>, vector<1x16x64xbf16>
    %205 = vector.shape_cast %204 : vector<1x16x64xbf16> to vector<16x64xbf16>
    %cst_119 = arith.constant dense<0.000000e+00> : vector<8x64xf32>
    %206 = tpu.matmul %203, %205, %cst_119 {dimension_numbers = #tpu.dot_dimension_numbers<[1], [0], [0], [1], [0, 0, 1, 1], [], []>} : vector<8x16xbf16>, vector<16x64xbf16>, vector<8x64xf32> -> vector<8x64xf32>
    %207 = arith.addf %156, %206 : vector<8x64xf32>
    %c3 = arith.constant 3 : index
    %c0_120 = arith.constant 0 : index
    %c0_121 = arith.constant 0 : index
    %208 = vector.load %arg6[%c3, %c0_120, %c0_121] : memref<4x64x16xbf16, #tpu.memory_space<vmem>>, vector<1x64x16xbf16>
    %209 = vector.shape_cast %208 : vector<1x64x16xbf16> to vector<64x16xbf16>
    %210 = arith.truncf %51 : vector<8x64xf32> to vector<8x64xbf16>
    %cst_122 = arith.constant dense<0.000000e+00> : vector<8x16xf32>
    %211 = tpu.matmul %210, %209, %cst_122 {dimension_numbers = #tpu.dot_dimension_numbers<[1], [0], [0], [1], [0, 0, 1, 1], [], []>} : vector<8x64xbf16>, vector<64x16xbf16>, vector<8x16xf32> -> vector<8x16xf32>
    %c3_123 = arith.constant 3 : index
    %c0_124 = arith.constant 0 : index
    %c0_125 = arith.constant 0 : index
    %212 = vector.load %arg7[%c3_123, %c0_124, %c0_125] : memref<4x1x16xf32, #tpu.memory_space<vmem>>, vector<1x1x16xf32>
    %213 = vector.shape_cast %212 : vector<1x1x16xf32> to vector<1x16xf32>
    %214 = vector.broadcast %213 : vector<1x16xf32> to vector<8x16xf32>
    %215 = arith.addf %211, %214 : vector<8x16xf32>
    %cst_126 = arith.constant 2.500000e-01 : f32
    %216 = vector.broadcast %cst_126 : f32 to vector<8x16xf32>
    %217 = arith.mulf %215, %216 : vector<8x16xf32>
    %c3_127 = arith.constant 3 : index
    %c0_128 = arith.constant 0 : index
    %c0_129 = arith.constant 0 : index
    %218 = vector.load %arg8[%c3_127, %c0_128, %c0_129] : memref<4x64x16xbf16, #tpu.memory_space<vmem>>, vector<1x64x16xbf16>
    %219 = vector.shape_cast %218 : vector<1x64x16xbf16> to vector<64x16xbf16>
    %220 = arith.truncf %51 : vector<8x64xf32> to vector<8x64xbf16>
    %cst_130 = arith.constant dense<0.000000e+00> : vector<8x16xf32>
    %221 = tpu.matmul %220, %219, %cst_130 {dimension_numbers = #tpu.dot_dimension_numbers<[1], [0], [0], [1], [0, 0, 1, 1], [], []>} : vector<8x64xbf16>, vector<64x16xbf16>, vector<8x16xf32> -> vector<8x16xf32>
    %c3_131 = arith.constant 3 : index
    %c0_132 = arith.constant 0 : index
    %c0_133 = arith.constant 0 : index
    %222 = vector.load %arg9[%c3_131, %c0_132, %c0_133] : memref<4x1x16xf32, #tpu.memory_space<vmem>>, vector<1x1x16xf32>
    %223 = vector.shape_cast %222 : vector<1x1x16xf32> to vector<1x16xf32>
    %224 = vector.broadcast %223 : vector<1x16xf32> to vector<8x16xf32>
    %225 = arith.addf %221, %224 : vector<8x16xf32>
    %c3_134 = arith.constant 3 : index
    %c0_135 = arith.constant 0 : index
    %c0_136 = arith.constant 0 : index
    %226 = vector.load %arg10[%c3_134, %c0_135, %c0_136] : memref<4x64x16xbf16, #tpu.memory_space<vmem>>, vector<1x64x16xbf16>
    %227 = vector.shape_cast %226 : vector<1x64x16xbf16> to vector<64x16xbf16>
    %228 = arith.truncf %51 : vector<8x64xf32> to vector<8x64xbf16>
    %cst_137 = arith.constant dense<0.000000e+00> : vector<8x16xf32>
    %229 = tpu.matmul %228, %227, %cst_137 {dimension_numbers = #tpu.dot_dimension_numbers<[1], [0], [0], [1], [0, 0, 1, 1], [], []>} : vector<8x64xbf16>, vector<64x16xbf16>, vector<8x16xf32> -> vector<8x16xf32>
    %c3_138 = arith.constant 3 : index
    %c0_139 = arith.constant 0 : index
    %c0_140 = arith.constant 0 : index
    %230 = vector.load %arg11[%c3_138, %c0_139, %c0_140] : memref<4x1x16xf32, #tpu.memory_space<vmem>>, vector<1x1x16xf32>
    %231 = vector.shape_cast %230 : vector<1x1x16xf32> to vector<1x16xf32>
    %232 = vector.broadcast %231 : vector<1x16xf32> to vector<8x16xf32>
    %233 = arith.addf %229, %232 : vector<8x16xf32>
    %234 = arith.truncf %217 : vector<8x16xf32> to vector<8x16xbf16>
    %235 = arith.truncf %225 : vector<8x16xf32> to vector<8x16xbf16>
    %cst_141 = arith.constant dense<0.000000e+00> : vector<8x8xf32>
    %236 = tpu.matmul %234, %235, %cst_141 {dimension_numbers = #tpu.dot_dimension_numbers<[1], [1], [0], [0], [0, 0, 1, 0], [], []>} : vector<8x16xbf16>, vector<8x16xbf16>, vector<8x8xf32> -> vector<8x8xf32>
    %c3_142 = arith.constant 3 : index
    %c0_143 = arith.constant 0 : index
    %c0_144 = arith.constant 0 : index
    %237 = vector.load %arg12[%c3_142, %c0_143, %c0_144] : memref<4x8x8xbf16, #tpu.memory_space<vmem>>, vector<1x8x8xbf16>
    %238 = vector.shape_cast %237 : vector<1x8x8xbf16> to vector<8x8xbf16>
    %239 = arith.extf %238 : vector<8x8xbf16> to vector<8x8xf32>
    %240 = arith.addf %236, %239 : vector<8x8xf32>
    %cst_145 = arith.constant dense<0xFF800000> : vector<8xf32>
    %241 = vector.multi_reduction <maximumf>, %240, %cst_145 [1] : vector<8x8xf32> to vector<8xf32>
    %242 = vector.shape_cast %241 : vector<8xf32> to vector<8x1xf32>
    %243 = vector.broadcast %242 : vector<8x1xf32> to vector<8x8xf32>
    %244 = arith.subf %240, %243 : vector<8x8xf32>
    %245 = math.exp %244 : vector<8x8xf32>
    %cst_146 = arith.constant dense<0.000000e+00> : vector<8xf32>
    %246 = vector.multi_reduction <add>, %245, %cst_146 [1] : vector<8x8xf32> to vector<8xf32>
    %247 = vector.shape_cast %246 : vector<8xf32> to vector<8x1xf32>
    %248 = tpu.reciprocal %247 {approx = true} : vector<8x1xf32> -> vector<8x1xf32>
    %249 = vector.broadcast %248 : vector<8x1xf32> to vector<8x8xf32>
    %250 = arith.mulf %245, %249 : vector<8x8xf32>
    %251 = arith.truncf %250 : vector<8x8xf32> to vector<8x8xbf16>
    %252 = arith.truncf %233 : vector<8x16xf32> to vector<8x16xbf16>
    %cst_147 = arith.constant dense<0.000000e+00> : vector<8x16xf32>
    %253 = tpu.matmul %251, %252, %cst_147 {dimension_numbers = #tpu.dot_dimension_numbers<[1], [0], [0], [1], [0, 0, 1, 1], [], []>} : vector<8x8xbf16>, vector<8x16xbf16>, vector<8x16xf32> -> vector<8x16xf32>
    %254 = arith.truncf %253 : vector<8x16xf32> to vector<8x16xbf16>
    %c3_148 = arith.constant 3 : index
    %c0_149 = arith.constant 0 : index
    %c0_150 = arith.constant 0 : index
    %255 = vector.load %arg13[%c3_148, %c0_149, %c0_150] : memref<4x16x64xbf16, #tpu.memory_space<vmem>>, vector<1x16x64xbf16>
    %256 = vector.shape_cast %255 : vector<1x16x64xbf16> to vector<16x64xbf16>
    %cst_151 = arith.constant dense<0.000000e+00> : vector<8x64xf32>
    %257 = tpu.matmul %254, %256, %cst_151 {dimension_numbers = #tpu.dot_dimension_numbers<[1], [0], [0], [1], [0, 0, 1, 1], [], []>} : vector<8x16xbf16>, vector<16x64xbf16>, vector<8x64xf32> -> vector<8x64xf32>
    %258 = arith.addf %207, %257 : vector<8x64xf32>
    %c0_152 = arith.constant 0 : index
    %c0_153 = arith.constant 0 : index
    %259 = vector.load %arg15[%c0_152, %c0_153] : memref<1x64xf32, #tpu.memory_space<vmem>>, vector<1x64xf32>
    %c0_154 = arith.constant 0 : index
    %c0_155 = arith.constant 0 : index
    %260 = vector.load %arg16[%c0_154, %c0_155] : memref<1x64xf32, #tpu.memory_space<vmem>>, vector<1x64xf32>
    %cst_156 = arith.constant dense<0.000000e+00> : vector<8xf32>
    %261 = vector.multi_reduction <add>, %258, %cst_156 [1] : vector<8x64xf32> to vector<8xf32>
    %262 = vector.shape_cast %261 : vector<8xf32> to vector<8x1xf32>
    %cst_157 = arith.constant 6.400000e+01 : f32
    %263 = vector.broadcast %cst_157 : f32 to vector<8x1xf32>
    %264 = arith.divf %262, %263 : vector<8x1xf32>
    %265 = vector.broadcast %264 : vector<8x1xf32> to vector<8x64xf32>
    %266 = arith.subf %258, %265 : vector<8x64xf32>
    %267 = arith.mulf %266, %266 : vector<8x64xf32>
    %cst_158 = arith.constant dense<0.000000e+00> : vector<8xf32>
    %268 = vector.multi_reduction <add>, %267, %cst_158 [1] : vector<8x64xf32> to vector<8xf32>
    %269 = vector.shape_cast %268 : vector<8xf32> to vector<8x1xf32>
    %cst_159 = arith.constant 6.400000e+01 : f32
    %270 = vector.broadcast %cst_159 : f32 to vector<8x1xf32>
    %271 = arith.divf %269, %270 : vector<8x1xf32>
    %272 = vector.broadcast %264 : vector<8x1xf32> to vector<8x64xf32>
    %273 = arith.subf %258, %272 : vector<8x64xf32>
    %cst_160 = arith.constant 9.99999974E-6 : f32
    %274 = vector.broadcast %cst_160 : f32 to vector<8x1xf32>
    %275 = arith.addf %271, %274 : vector<8x1xf32>
    %276 = math.rsqrt %275 : vector<8x1xf32>
    %277 = vector.broadcast %276 : vector<8x1xf32> to vector<8x64xf32>
    %278 = arith.mulf %273, %277 : vector<8x64xf32>
    %279 = vector.broadcast %259 : vector<1x64xf32> to vector<8x64xf32>
    %280 = arith.mulf %278, %279 : vector<8x64xf32>
    %281 = vector.broadcast %260 : vector<1x64xf32> to vector<8x64xf32>
    %282 = arith.addf %280, %281 : vector<8x64xf32>
    %c0_161 = arith.constant 0 : index
    %c0_162 = arith.constant 0 : index
    %283 = vector.load %arg17[%c0_161, %c0_162] : memref<64x256xbf16, #tpu.memory_space<vmem>>, vector<64x256xbf16>
    %284 = arith.truncf %282 : vector<8x64xf32> to vector<8x64xbf16>
    %cst_163 = arith.constant dense<0.000000e+00> : vector<8x256xf32>
    %285 = tpu.matmul %284, %283, %cst_163 {dimension_numbers = #tpu.dot_dimension_numbers<[1], [0], [0], [1], [0, 0, 1, 1], [], []>} : vector<8x64xbf16>, vector<64x256xbf16>, vector<8x256xf32> -> vector<8x256xf32>
    %c0_164 = arith.constant 0 : index
    %c0_165 = arith.constant 0 : index
    %286 = vector.load %arg18[%c0_164, %c0_165] : memref<1x256xf32, #tpu.memory_space<vmem>>, vector<1x256xf32>
    %287 = vector.broadcast %286 : vector<1x256xf32> to vector<8x256xf32>
    %288 = arith.addf %285, %287 : vector<8x256xf32>
    %cst_166 = arith.constant 5.000000e-01 : f32
    %289 = vector.broadcast %cst_166 : f32 to vector<8x256xf32>
    %290 = arith.mulf %289, %288 : vector<8x256xf32>
    %cst_167 = arith.constant 4.471500e-02 : f32
    %291 = vector.broadcast %cst_167 : f32 to vector<8x256xf32>
    %292 = arith.mulf %291, %288 : vector<8x256xf32>
    %293 = arith.mulf %292, %288 : vector<8x256xf32>
    %294 = arith.mulf %293, %288 : vector<8x256xf32>
    %295 = arith.addf %288, %294 : vector<8x256xf32>
    %cst_168 = arith.constant 0.797884583 : f32
    %296 = vector.broadcast %cst_168 : f32 to vector<8x256xf32>
    %297 = arith.mulf %296, %295 : vector<8x256xf32>
    %298 = math.tanh %297 : vector<8x256xf32>
    %cst_169 = arith.constant 1.000000e+00 : f32
    %299 = vector.broadcast %cst_169 : f32 to vector<8x256xf32>
    %300 = arith.addf %299, %298 : vector<8x256xf32>
    %301 = arith.mulf %290, %300 : vector<8x256xf32>
    %c0_170 = arith.constant 0 : index
    %c0_171 = arith.constant 0 : index
    %302 = vector.load %arg19[%c0_170, %c0_171] : memref<256x64xbf16, #tpu.memory_space<vmem>>, vector<256x64xbf16>
    %303 = arith.truncf %301 : vector<8x256xf32> to vector<8x256xbf16>
    %cst_172 = arith.constant dense<0.000000e+00> : vector<8x64xf32>
    %304 = tpu.matmul %303, %302, %cst_172 {dimension_numbers = #tpu.dot_dimension_numbers<[1], [0], [0], [1], [0, 0, 1, 1], [], []>} : vector<8x256xbf16>, vector<256x64xbf16>, vector<8x64xf32> -> vector<8x64xf32>
    %c0_173 = arith.constant 0 : index
    %c0_174 = arith.constant 0 : index
    %305 = vector.load %arg20[%c0_173, %c0_174] : memref<1x64xf32, #tpu.memory_space<vmem>>, vector<1x64xf32>
    %306 = vector.broadcast %305 : vector<1x64xf32> to vector<8x64xf32>
    %307 = arith.addf %304, %306 : vector<8x64xf32>
    %308 = arith.addf %258, %307 : vector<8x64xf32>
    %c0_175 = arith.constant 0 : index
    %c0_176 = arith.constant 0 : index
    %309 = vector.load %arg21[%c0_175, %c0_176] : memref<1x64xf32, #tpu.memory_space<vmem>>, vector<1x64xf32>
    %c0_177 = arith.constant 0 : index
    %c0_178 = arith.constant 0 : index
    %310 = vector.load %arg22[%c0_177, %c0_178] : memref<1x64xf32, #tpu.memory_space<vmem>>, vector<1x64xf32>
    %cst_179 = arith.constant dense<0.000000e+00> : vector<8xf32>
    %311 = vector.multi_reduction <add>, %308, %cst_179 [1] : vector<8x64xf32> to vector<8xf32>
    %312 = vector.shape_cast %311 : vector<8xf32> to vector<8x1xf32>
    %cst_180 = arith.constant 6.400000e+01 : f32
    %313 = vector.broadcast %cst_180 : f32 to vector<8x1xf32>
    %314 = arith.divf %312, %313 : vector<8x1xf32>
    %315 = vector.broadcast %314 : vector<8x1xf32> to vector<8x64xf32>
    %316 = arith.subf %308, %315 : vector<8x64xf32>
    %317 = arith.mulf %316, %316 : vector<8x64xf32>
    %cst_181 = arith.constant dense<0.000000e+00> : vector<8xf32>
    %318 = vector.multi_reduction <add>, %317, %cst_181 [1] : vector<8x64xf32> to vector<8xf32>
    %319 = vector.shape_cast %318 : vector<8xf32> to vector<8x1xf32>
    %cst_182 = arith.constant 6.400000e+01 : f32
    %320 = vector.broadcast %cst_182 : f32 to vector<8x1xf32>
    %321 = arith.divf %319, %320 : vector<8x1xf32>
    %322 = vector.broadcast %314 : vector<8x1xf32> to vector<8x64xf32>
    %323 = arith.subf %308, %322 : vector<8x64xf32>
    %cst_183 = arith.constant 9.99999974E-6 : f32
    %324 = vector.broadcast %cst_183 : f32 to vector<8x1xf32>
    %325 = arith.addf %321, %324 : vector<8x1xf32>
    %326 = math.rsqrt %325 : vector<8x1xf32>
    %327 = vector.broadcast %326 : vector<8x1xf32> to vector<8x64xf32>
    %328 = arith.mulf %323, %327 : vector<8x64xf32>
    %329 = vector.broadcast %309 : vector<1x64xf32> to vector<8x64xf32>
    %330 = arith.mulf %328, %329 : vector<8x64xf32>
    %331 = vector.broadcast %310 : vector<1x64xf32> to vector<8x64xf32>
    %332 = arith.addf %330, %331 : vector<8x64xf32>
    %c0_184 = arith.constant 0 : index
    %c0_185 = arith.constant 0 : index
    %333 = vector.load %arg31[%c0_184, %c0_185] : memref<1x64xf32, #tpu.memory_space<vmem>>, vector<1x64xf32>
    %334 = vector.broadcast %333 : vector<1x64xf32> to vector<8x64xf32>
    %335 = arith.addf %308, %334 : vector<8x64xf32>
    %c0_186 = arith.constant 0 : index
    %c0_187 = arith.constant 0 : index
    %c0_188 = arith.constant 0 : index
    %336 = vector.load %arg23[%c0_186, %c0_187, %c0_188] : memref<4x64x16xbf16, #tpu.memory_space<vmem>>, vector<1x64x16xbf16>
    %337 = vector.shape_cast %336 : vector<1x64x16xbf16> to vector<64x16xbf16>
    %338 = arith.truncf %332 : vector<8x64xf32> to vector<8x64xbf16>
    %cst_189 = arith.constant dense<0.000000e+00> : vector<8x16xf32>
    %339 = tpu.matmul %338, %337, %cst_189 {dimension_numbers = #tpu.dot_dimension_numbers<[1], [0], [0], [1], [0, 0, 1, 1], [], []>} : vector<8x64xbf16>, vector<64x16xbf16>, vector<8x16xf32> -> vector<8x16xf32>
    %c0_190 = arith.constant 0 : index
    %c0_191 = arith.constant 0 : index
    %c0_192 = arith.constant 0 : index
    %340 = vector.load %arg24[%c0_190, %c0_191, %c0_192] : memref<4x1x16xf32, #tpu.memory_space<vmem>>, vector<1x1x16xf32>
    %341 = vector.shape_cast %340 : vector<1x1x16xf32> to vector<1x16xf32>
    %342 = vector.broadcast %341 : vector<1x16xf32> to vector<8x16xf32>
    %343 = arith.addf %339, %342 : vector<8x16xf32>
    %cst_193 = arith.constant 2.500000e-01 : f32
    %344 = vector.broadcast %cst_193 : f32 to vector<8x16xf32>
    %345 = arith.mulf %343, %344 : vector<8x16xf32>
    %c0_194 = arith.constant 0 : index
    %c0_195 = arith.constant 0 : index
    %c0_196 = arith.constant 0 : index
    %346 = vector.load %arg25[%c0_194, %c0_195, %c0_196] : memref<4x64x16xbf16, #tpu.memory_space<vmem>>, vector<1x64x16xbf16>
    %347 = vector.shape_cast %346 : vector<1x64x16xbf16> to vector<64x16xbf16>
    %348 = arith.truncf %332 : vector<8x64xf32> to vector<8x64xbf16>
    %cst_197 = arith.constant dense<0.000000e+00> : vector<8x16xf32>
    %349 = tpu.matmul %348, %347, %cst_197 {dimension_numbers = #tpu.dot_dimension_numbers<[1], [0], [0], [1], [0, 0, 1, 1], [], []>} : vector<8x64xbf16>, vector<64x16xbf16>, vector<8x16xf32> -> vector<8x16xf32>
    %c0_198 = arith.constant 0 : index
    %c0_199 = arith.constant 0 : index
    %c0_200 = arith.constant 0 : index
    %350 = vector.load %arg26[%c0_198, %c0_199, %c0_200] : memref<4x1x16xf32, #tpu.memory_space<vmem>>, vector<1x1x16xf32>
    %351 = vector.shape_cast %350 : vector<1x1x16xf32> to vector<1x16xf32>
    %352 = vector.broadcast %351 : vector<1x16xf32> to vector<8x16xf32>
    %353 = arith.addf %349, %352 : vector<8x16xf32>
    %c0_201 = arith.constant 0 : index
    %c0_202 = arith.constant 0 : index
    %c0_203 = arith.constant 0 : index
    %354 = vector.load %arg27[%c0_201, %c0_202, %c0_203] : memref<4x64x16xbf16, #tpu.memory_space<vmem>>, vector<1x64x16xbf16>
    %355 = vector.shape_cast %354 : vector<1x64x16xbf16> to vector<64x16xbf16>
    %356 = arith.truncf %332 : vector<8x64xf32> to vector<8x64xbf16>
    %cst_204 = arith.constant dense<0.000000e+00> : vector<8x16xf32>
    %357 = tpu.matmul %356, %355, %cst_204 {dimension_numbers = #tpu.dot_dimension_numbers<[1], [0], [0], [1], [0, 0, 1, 1], [], []>} : vector<8x64xbf16>, vector<64x16xbf16>, vector<8x16xf32> -> vector<8x16xf32>
    %c0_205 = arith.constant 0 : index
    %c0_206 = arith.constant 0 : index
    %c0_207 = arith.constant 0 : index
    %358 = vector.load %arg28[%c0_205, %c0_206, %c0_207] : memref<4x1x16xf32, #tpu.memory_space<vmem>>, vector<1x1x16xf32>
    %359 = vector.shape_cast %358 : vector<1x1x16xf32> to vector<1x16xf32>
    %360 = vector.broadcast %359 : vector<1x16xf32> to vector<8x16xf32>
    %361 = arith.addf %357, %360 : vector<8x16xf32>
    %362 = arith.truncf %345 : vector<8x16xf32> to vector<8x16xbf16>
    %363 = arith.truncf %353 : vector<8x16xf32> to vector<8x16xbf16>
    %cst_208 = arith.constant dense<0.000000e+00> : vector<8x8xf32>
    %364 = tpu.matmul %362, %363, %cst_208 {dimension_numbers = #tpu.dot_dimension_numbers<[1], [1], [0], [0], [0, 0, 1, 0], [], []>} : vector<8x16xbf16>, vector<8x16xbf16>, vector<8x8xf32> -> vector<8x8xf32>
    %c0_209 = arith.constant 0 : index
    %c0_210 = arith.constant 0 : index
    %c0_211 = arith.constant 0 : index
    %365 = vector.load %arg29[%c0_209, %c0_210, %c0_211] : memref<4x8x8xbf16, #tpu.memory_space<vmem>>, vector<1x8x8xbf16>
    %366 = vector.shape_cast %365 : vector<1x8x8xbf16> to vector<8x8xbf16>
    %367 = arith.extf %366 : vector<8x8xbf16> to vector<8x8xf32>
    %368 = arith.addf %364, %367 : vector<8x8xf32>
    %cst_212 = arith.constant dense<0xFF800000> : vector<8xf32>
    %369 = vector.multi_reduction <maximumf>, %368, %cst_212 [1] : vector<8x8xf32> to vector<8xf32>
    %370 = vector.shape_cast %369 : vector<8xf32> to vector<8x1xf32>
    %371 = vector.broadcast %370 : vector<8x1xf32> to vector<8x8xf32>
    %372 = arith.subf %368, %371 : vector<8x8xf32>
    %373 = math.exp %372 : vector<8x8xf32>
    %cst_213 = arith.constant dense<0.000000e+00> : vector<8xf32>
    %374 = vector.multi_reduction <add>, %373, %cst_213 [1] : vector<8x8xf32> to vector<8xf32>
    %375 = vector.shape_cast %374 : vector<8xf32> to vector<8x1xf32>
    %376 = tpu.reciprocal %375 {approx = true} : vector<8x1xf32> -> vector<8x1xf32>
    %377 = vector.broadcast %376 : vector<8x1xf32> to vector<8x8xf32>
    %378 = arith.mulf %373, %377 : vector<8x8xf32>
    %379 = arith.truncf %378 : vector<8x8xf32> to vector<8x8xbf16>
    %380 = arith.truncf %361 : vector<8x16xf32> to vector<8x16xbf16>
    %cst_214 = arith.constant dense<0.000000e+00> : vector<8x16xf32>
    %381 = tpu.matmul %379, %380, %cst_214 {dimension_numbers = #tpu.dot_dimension_numbers<[1], [0], [0], [1], [0, 0, 1, 1], [], []>} : vector<8x8xbf16>, vector<8x16xbf16>, vector<8x16xf32> -> vector<8x16xf32>
    %382 = arith.truncf %381 : vector<8x16xf32> to vector<8x16xbf16>
    %c0_215 = arith.constant 0 : index
    %c0_216 = arith.constant 0 : index
    %c0_217 = arith.constant 0 : index
    %383 = vector.load %arg30[%c0_215, %c0_216, %c0_217] : memref<4x16x64xbf16, #tpu.memory_space<vmem>>, vector<1x16x64xbf16>
    %384 = vector.shape_cast %383 : vector<1x16x64xbf16> to vector<16x64xbf16>
    %cst_218 = arith.constant dense<0.000000e+00> : vector<8x64xf32>
    %385 = tpu.matmul %382, %384, %cst_218 {dimension_numbers = #tpu.dot_dimension_numbers<[1], [0], [0], [1], [0, 0, 1, 1], [], []>} : vector<8x16xbf16>, vector<16x64xbf16>, vector<8x64xf32> -> vector<8x64xf32>
    %386 = arith.addf %335, %385 : vector<8x64xf32>
    %c1_219 = arith.constant 1 : index
    %c0_220 = arith.constant 0 : index
    %c0_221 = arith.constant 0 : index
    %387 = vector.load %arg23[%c1_219, %c0_220, %c0_221] : memref<4x64x16xbf16, #tpu.memory_space<vmem>>, vector<1x64x16xbf16>
    %388 = vector.shape_cast %387 : vector<1x64x16xbf16> to vector<64x16xbf16>
    %389 = arith.truncf %332 : vector<8x64xf32> to vector<8x64xbf16>
    %cst_222 = arith.constant dense<0.000000e+00> : vector<8x16xf32>
    %390 = tpu.matmul %389, %388, %cst_222 {dimension_numbers = #tpu.dot_dimension_numbers<[1], [0], [0], [1], [0, 0, 1, 1], [], []>} : vector<8x64xbf16>, vector<64x16xbf16>, vector<8x16xf32> -> vector<8x16xf32>
    %c1_223 = arith.constant 1 : index
    %c0_224 = arith.constant 0 : index
    %c0_225 = arith.constant 0 : index
    %391 = vector.load %arg24[%c1_223, %c0_224, %c0_225] : memref<4x1x16xf32, #tpu.memory_space<vmem>>, vector<1x1x16xf32>
    %392 = vector.shape_cast %391 : vector<1x1x16xf32> to vector<1x16xf32>
    %393 = vector.broadcast %392 : vector<1x16xf32> to vector<8x16xf32>
    %394 = arith.addf %390, %393 : vector<8x16xf32>
    %cst_226 = arith.constant 2.500000e-01 : f32
    %395 = vector.broadcast %cst_226 : f32 to vector<8x16xf32>
    %396 = arith.mulf %394, %395 : vector<8x16xf32>
    %c1_227 = arith.constant 1 : index
    %c0_228 = arith.constant 0 : index
    %c0_229 = arith.constant 0 : index
    %397 = vector.load %arg25[%c1_227, %c0_228, %c0_229] : memref<4x64x16xbf16, #tpu.memory_space<vmem>>, vector<1x64x16xbf16>
    %398 = vector.shape_cast %397 : vector<1x64x16xbf16> to vector<64x16xbf16>
    %399 = arith.truncf %332 : vector<8x64xf32> to vector<8x64xbf16>
    %cst_230 = arith.constant dense<0.000000e+00> : vector<8x16xf32>
    %400 = tpu.matmul %399, %398, %cst_230 {dimension_numbers = #tpu.dot_dimension_numbers<[1], [0], [0], [1], [0, 0, 1, 1], [], []>} : vector<8x64xbf16>, vector<64x16xbf16>, vector<8x16xf32> -> vector<8x16xf32>
    %c1_231 = arith.constant 1 : index
    %c0_232 = arith.constant 0 : index
    %c0_233 = arith.constant 0 : index
    %401 = vector.load %arg26[%c1_231, %c0_232, %c0_233] : memref<4x1x16xf32, #tpu.memory_space<vmem>>, vector<1x1x16xf32>
    %402 = vector.shape_cast %401 : vector<1x1x16xf32> to vector<1x16xf32>
    %403 = vector.broadcast %402 : vector<1x16xf32> to vector<8x16xf32>
    %404 = arith.addf %400, %403 : vector<8x16xf32>
    %c1_234 = arith.constant 1 : index
    %c0_235 = arith.constant 0 : index
    %c0_236 = arith.constant 0 : index
    %405 = vector.load %arg27[%c1_234, %c0_235, %c0_236] : memref<4x64x16xbf16, #tpu.memory_space<vmem>>, vector<1x64x16xbf16>
    %406 = vector.shape_cast %405 : vector<1x64x16xbf16> to vector<64x16xbf16>
    %407 = arith.truncf %332 : vector<8x64xf32> to vector<8x64xbf16>
    %cst_237 = arith.constant dense<0.000000e+00> : vector<8x16xf32>
    %408 = tpu.matmul %407, %406, %cst_237 {dimension_numbers = #tpu.dot_dimension_numbers<[1], [0], [0], [1], [0, 0, 1, 1], [], []>} : vector<8x64xbf16>, vector<64x16xbf16>, vector<8x16xf32> -> vector<8x16xf32>
    %c1_238 = arith.constant 1 : index
    %c0_239 = arith.constant 0 : index
    %c0_240 = arith.constant 0 : index
    %409 = vector.load %arg28[%c1_238, %c0_239, %c0_240] : memref<4x1x16xf32, #tpu.memory_space<vmem>>, vector<1x1x16xf32>
    %410 = vector.shape_cast %409 : vector<1x1x16xf32> to vector<1x16xf32>
    %411 = vector.broadcast %410 : vector<1x16xf32> to vector<8x16xf32>
    %412 = arith.addf %408, %411 : vector<8x16xf32>
    %413 = arith.truncf %396 : vector<8x16xf32> to vector<8x16xbf16>
    %414 = arith.truncf %404 : vector<8x16xf32> to vector<8x16xbf16>
    %cst_241 = arith.constant dense<0.000000e+00> : vector<8x8xf32>
    %415 = tpu.matmul %413, %414, %cst_241 {dimension_numbers = #tpu.dot_dimension_numbers<[1], [1], [0], [0], [0, 0, 1, 0], [], []>} : vector<8x16xbf16>, vector<8x16xbf16>, vector<8x8xf32> -> vector<8x8xf32>
    %c1_242 = arith.constant 1 : index
    %c0_243 = arith.constant 0 : index
    %c0_244 = arith.constant 0 : index
    %416 = vector.load %arg29[%c1_242, %c0_243, %c0_244] : memref<4x8x8xbf16, #tpu.memory_space<vmem>>, vector<1x8x8xbf16>
    %417 = vector.shape_cast %416 : vector<1x8x8xbf16> to vector<8x8xbf16>
    %418 = arith.extf %417 : vector<8x8xbf16> to vector<8x8xf32>
    %419 = arith.addf %415, %418 : vector<8x8xf32>
    %cst_245 = arith.constant dense<0xFF800000> : vector<8xf32>
    %420 = vector.multi_reduction <maximumf>, %419, %cst_245 [1] : vector<8x8xf32> to vector<8xf32>
    %421 = vector.shape_cast %420 : vector<8xf32> to vector<8x1xf32>
    %422 = vector.broadcast %421 : vector<8x1xf32> to vector<8x8xf32>
    %423 = arith.subf %419, %422 : vector<8x8xf32>
    %424 = math.exp %423 : vector<8x8xf32>
    %cst_246 = arith.constant dense<0.000000e+00> : vector<8xf32>
    %425 = vector.multi_reduction <add>, %424, %cst_246 [1] : vector<8x8xf32> to vector<8xf32>
    %426 = vector.shape_cast %425 : vector<8xf32> to vector<8x1xf32>
    %427 = tpu.reciprocal %426 {approx = true} : vector<8x1xf32> -> vector<8x1xf32>
    %428 = vector.broadcast %427 : vector<8x1xf32> to vector<8x8xf32>
    %429 = arith.mulf %424, %428 : vector<8x8xf32>
    %430 = arith.truncf %429 : vector<8x8xf32> to vector<8x8xbf16>
    %431 = arith.truncf %412 : vector<8x16xf32> to vector<8x16xbf16>
    %cst_247 = arith.constant dense<0.000000e+00> : vector<8x16xf32>
    %432 = tpu.matmul %430, %431, %cst_247 {dimension_numbers = #tpu.dot_dimension_numbers<[1], [0], [0], [1], [0, 0, 1, 1], [], []>} : vector<8x8xbf16>, vector<8x16xbf16>, vector<8x16xf32> -> vector<8x16xf32>
    %433 = arith.truncf %432 : vector<8x16xf32> to vector<8x16xbf16>
    %c1_248 = arith.constant 1 : index
    %c0_249 = arith.constant 0 : index
    %c0_250 = arith.constant 0 : index
    %434 = vector.load %arg30[%c1_248, %c0_249, %c0_250] : memref<4x16x64xbf16, #tpu.memory_space<vmem>>, vector<1x16x64xbf16>
    %435 = vector.shape_cast %434 : vector<1x16x64xbf16> to vector<16x64xbf16>
    %cst_251 = arith.constant dense<0.000000e+00> : vector<8x64xf32>
    %436 = tpu.matmul %433, %435, %cst_251 {dimension_numbers = #tpu.dot_dimension_numbers<[1], [0], [0], [1], [0, 0, 1, 1], [], []>} : vector<8x16xbf16>, vector<16x64xbf16>, vector<8x64xf32> -> vector<8x64xf32>
    %437 = arith.addf %386, %436 : vector<8x64xf32>
    %c2_252 = arith.constant 2 : index
    %c0_253 = arith.constant 0 : index
    %c0_254 = arith.constant 0 : index
    %438 = vector.load %arg23[%c2_252, %c0_253, %c0_254] : memref<4x64x16xbf16, #tpu.memory_space<vmem>>, vector<1x64x16xbf16>
    %439 = vector.shape_cast %438 : vector<1x64x16xbf16> to vector<64x16xbf16>
    %440 = arith.truncf %332 : vector<8x64xf32> to vector<8x64xbf16>
    %cst_255 = arith.constant dense<0.000000e+00> : vector<8x16xf32>
    %441 = tpu.matmul %440, %439, %cst_255 {dimension_numbers = #tpu.dot_dimension_numbers<[1], [0], [0], [1], [0, 0, 1, 1], [], []>} : vector<8x64xbf16>, vector<64x16xbf16>, vector<8x16xf32> -> vector<8x16xf32>
    %c2_256 = arith.constant 2 : index
    %c0_257 = arith.constant 0 : index
    %c0_258 = arith.constant 0 : index
    %442 = vector.load %arg24[%c2_256, %c0_257, %c0_258] : memref<4x1x16xf32, #tpu.memory_space<vmem>>, vector<1x1x16xf32>
    %443 = vector.shape_cast %442 : vector<1x1x16xf32> to vector<1x16xf32>
    %444 = vector.broadcast %443 : vector<1x16xf32> to vector<8x16xf32>
    %445 = arith.addf %441, %444 : vector<8x16xf32>
    %cst_259 = arith.constant 2.500000e-01 : f32
    %446 = vector.broadcast %cst_259 : f32 to vector<8x16xf32>
    %447 = arith.mulf %445, %446 : vector<8x16xf32>
    %c2_260 = arith.constant 2 : index
    %c0_261 = arith.constant 0 : index
    %c0_262 = arith.constant 0 : index
    %448 = vector.load %arg25[%c2_260, %c0_261, %c0_262] : memref<4x64x16xbf16, #tpu.memory_space<vmem>>, vector<1x64x16xbf16>
    %449 = vector.shape_cast %448 : vector<1x64x16xbf16> to vector<64x16xbf16>
    %450 = arith.truncf %332 : vector<8x64xf32> to vector<8x64xbf16>
    %cst_263 = arith.constant dense<0.000000e+00> : vector<8x16xf32>
    %451 = tpu.matmul %450, %449, %cst_263 {dimension_numbers = #tpu.dot_dimension_numbers<[1], [0], [0], [1], [0, 0, 1, 1], [], []>} : vector<8x64xbf16>, vector<64x16xbf16>, vector<8x16xf32> -> vector<8x16xf32>
    %c2_264 = arith.constant 2 : index
    %c0_265 = arith.constant 0 : index
    %c0_266 = arith.constant 0 : index
    %452 = vector.load %arg26[%c2_264, %c0_265, %c0_266] : memref<4x1x16xf32, #tpu.memory_space<vmem>>, vector<1x1x16xf32>
    %453 = vector.shape_cast %452 : vector<1x1x16xf32> to vector<1x16xf32>
    %454 = vector.broadcast %453 : vector<1x16xf32> to vector<8x16xf32>
    %455 = arith.addf %451, %454 : vector<8x16xf32>
    %c2_267 = arith.constant 2 : index
    %c0_268 = arith.constant 0 : index
    %c0_269 = arith.constant 0 : index
    %456 = vector.load %arg27[%c2_267, %c0_268, %c0_269] : memref<4x64x16xbf16, #tpu.memory_space<vmem>>, vector<1x64x16xbf16>
    %457 = vector.shape_cast %456 : vector<1x64x16xbf16> to vector<64x16xbf16>
    %458 = arith.truncf %332 : vector<8x64xf32> to vector<8x64xbf16>
    %cst_270 = arith.constant dense<0.000000e+00> : vector<8x16xf32>
    %459 = tpu.matmul %458, %457, %cst_270 {dimension_numbers = #tpu.dot_dimension_numbers<[1], [0], [0], [1], [0, 0, 1, 1], [], []>} : vector<8x64xbf16>, vector<64x16xbf16>, vector<8x16xf32> -> vector<8x16xf32>
    %c2_271 = arith.constant 2 : index
    %c0_272 = arith.constant 0 : index
    %c0_273 = arith.constant 0 : index
    %460 = vector.load %arg28[%c2_271, %c0_272, %c0_273] : memref<4x1x16xf32, #tpu.memory_space<vmem>>, vector<1x1x16xf32>
    %461 = vector.shape_cast %460 : vector<1x1x16xf32> to vector<1x16xf32>
    %462 = vector.broadcast %461 : vector<1x16xf32> to vector<8x16xf32>
    %463 = arith.addf %459, %462 : vector<8x16xf32>
    %464 = arith.truncf %447 : vector<8x16xf32> to vector<8x16xbf16>
    %465 = arith.truncf %455 : vector<8x16xf32> to vector<8x16xbf16>
    %cst_274 = arith.constant dense<0.000000e+00> : vector<8x8xf32>
    %466 = tpu.matmul %464, %465, %cst_274 {dimension_numbers = #tpu.dot_dimension_numbers<[1], [1], [0], [0], [0, 0, 1, 0], [], []>} : vector<8x16xbf16>, vector<8x16xbf16>, vector<8x8xf32> -> vector<8x8xf32>
    %c2_275 = arith.constant 2 : index
    %c0_276 = arith.constant 0 : index
    %c0_277 = arith.constant 0 : index
    %467 = vector.load %arg29[%c2_275, %c0_276, %c0_277] : memref<4x8x8xbf16, #tpu.memory_space<vmem>>, vector<1x8x8xbf16>
    %468 = vector.shape_cast %467 : vector<1x8x8xbf16> to vector<8x8xbf16>
    %469 = arith.extf %468 : vector<8x8xbf16> to vector<8x8xf32>
    %470 = arith.addf %466, %469 : vector<8x8xf32>
    %cst_278 = arith.constant dense<0xFF800000> : vector<8xf32>
    %471 = vector.multi_reduction <maximumf>, %470, %cst_278 [1] : vector<8x8xf32> to vector<8xf32>
    %472 = vector.shape_cast %471 : vector<8xf32> to vector<8x1xf32>
    %473 = vector.broadcast %472 : vector<8x1xf32> to vector<8x8xf32>
    %474 = arith.subf %470, %473 : vector<8x8xf32>
    %475 = math.exp %474 : vector<8x8xf32>
    %cst_279 = arith.constant dense<0.000000e+00> : vector<8xf32>
    %476 = vector.multi_reduction <add>, %475, %cst_279 [1] : vector<8x8xf32> to vector<8xf32>
    %477 = vector.shape_cast %476 : vector<8xf32> to vector<8x1xf32>
    %478 = tpu.reciprocal %477 {approx = true} : vector<8x1xf32> -> vector<8x1xf32>
    %479 = vector.broadcast %478 : vector<8x1xf32> to vector<8x8xf32>
    %480 = arith.mulf %475, %479 : vector<8x8xf32>
    %481 = arith.truncf %480 : vector<8x8xf32> to vector<8x8xbf16>
    %482 = arith.truncf %463 : vector<8x16xf32> to vector<8x16xbf16>
    %cst_280 = arith.constant dense<0.000000e+00> : vector<8x16xf32>
    %483 = tpu.matmul %481, %482, %cst_280 {dimension_numbers = #tpu.dot_dimension_numbers<[1], [0], [0], [1], [0, 0, 1, 1], [], []>} : vector<8x8xbf16>, vector<8x16xbf16>, vector<8x16xf32> -> vector<8x16xf32>
    %484 = arith.truncf %483 : vector<8x16xf32> to vector<8x16xbf16>
    %c2_281 = arith.constant 2 : index
    %c0_282 = arith.constant 0 : index
    %c0_283 = arith.constant 0 : index
    %485 = vector.load %arg30[%c2_281, %c0_282, %c0_283] : memref<4x16x64xbf16, #tpu.memory_space<vmem>>, vector<1x16x64xbf16>
    %486 = vector.shape_cast %485 : vector<1x16x64xbf16> to vector<16x64xbf16>
    %cst_284 = arith.constant dense<0.000000e+00> : vector<8x64xf32>
    %487 = tpu.matmul %484, %486, %cst_284 {dimension_numbers = #tpu.dot_dimension_numbers<[1], [0], [0], [1], [0, 0, 1, 1], [], []>} : vector<8x16xbf16>, vector<16x64xbf16>, vector<8x64xf32> -> vector<8x64xf32>
    %488 = arith.addf %437, %487 : vector<8x64xf32>
    %c3_285 = arith.constant 3 : index
    %c0_286 = arith.constant 0 : index
    %c0_287 = arith.constant 0 : index
    %489 = vector.load %arg23[%c3_285, %c0_286, %c0_287] : memref<4x64x16xbf16, #tpu.memory_space<vmem>>, vector<1x64x16xbf16>
    %490 = vector.shape_cast %489 : vector<1x64x16xbf16> to vector<64x16xbf16>
    %491 = arith.truncf %332 : vector<8x64xf32> to vector<8x64xbf16>
    %cst_288 = arith.constant dense<0.000000e+00> : vector<8x16xf32>
    %492 = tpu.matmul %491, %490, %cst_288 {dimension_numbers = #tpu.dot_dimension_numbers<[1], [0], [0], [1], [0, 0, 1, 1], [], []>} : vector<8x64xbf16>, vector<64x16xbf16>, vector<8x16xf32> -> vector<8x16xf32>
    %c3_289 = arith.constant 3 : index
    %c0_290 = arith.constant 0 : index
    %c0_291 = arith.constant 0 : index
    %493 = vector.load %arg24[%c3_289, %c0_290, %c0_291] : memref<4x1x16xf32, #tpu.memory_space<vmem>>, vector<1x1x16xf32>
    %494 = vector.shape_cast %493 : vector<1x1x16xf32> to vector<1x16xf32>
    %495 = vector.broadcast %494 : vector<1x16xf32> to vector<8x16xf32>
    %496 = arith.addf %492, %495 : vector<8x16xf32>
    %cst_292 = arith.constant 2.500000e-01 : f32
    %497 = vector.broadcast %cst_292 : f32 to vector<8x16xf32>
    %498 = arith.mulf %496, %497 : vector<8x16xf32>
    %c3_293 = arith.constant 3 : index
    %c0_294 = arith.constant 0 : index
    %c0_295 = arith.constant 0 : index
    %499 = vector.load %arg25[%c3_293, %c0_294, %c0_295] : memref<4x64x16xbf16, #tpu.memory_space<vmem>>, vector<1x64x16xbf16>
    %500 = vector.shape_cast %499 : vector<1x64x16xbf16> to vector<64x16xbf16>
    %501 = arith.truncf %332 : vector<8x64xf32> to vector<8x64xbf16>
    %cst_296 = arith.constant dense<0.000000e+00> : vector<8x16xf32>
    %502 = tpu.matmul %501, %500, %cst_296 {dimension_numbers = #tpu.dot_dimension_numbers<[1], [0], [0], [1], [0, 0, 1, 1], [], []>} : vector<8x64xbf16>, vector<64x16xbf16>, vector<8x16xf32> -> vector<8x16xf32>
    %c3_297 = arith.constant 3 : index
    %c0_298 = arith.constant 0 : index
    %c0_299 = arith.constant 0 : index
    %503 = vector.load %arg26[%c3_297, %c0_298, %c0_299] : memref<4x1x16xf32, #tpu.memory_space<vmem>>, vector<1x1x16xf32>
    %504 = vector.shape_cast %503 : vector<1x1x16xf32> to vector<1x16xf32>
    %505 = vector.broadcast %504 : vector<1x16xf32> to vector<8x16xf32>
    %506 = arith.addf %502, %505 : vector<8x16xf32>
    %c3_300 = arith.constant 3 : index
    %c0_301 = arith.constant 0 : index
    %c0_302 = arith.constant 0 : index
    %507 = vector.load %arg27[%c3_300, %c0_301, %c0_302] : memref<4x64x16xbf16, #tpu.memory_space<vmem>>, vector<1x64x16xbf16>
    %508 = vector.shape_cast %507 : vector<1x64x16xbf16> to vector<64x16xbf16>
    %509 = arith.truncf %332 : vector<8x64xf32> to vector<8x64xbf16>
    %cst_303 = arith.constant dense<0.000000e+00> : vector<8x16xf32>
    %510 = tpu.matmul %509, %508, %cst_303 {dimension_numbers = #tpu.dot_dimension_numbers<[1], [0], [0], [1], [0, 0, 1, 1], [], []>} : vector<8x64xbf16>, vector<64x16xbf16>, vector<8x16xf32> -> vector<8x16xf32>
    %c3_304 = arith.constant 3 : index
    %c0_305 = arith.constant 0 : index
    %c0_306 = arith.constant 0 : index
    %511 = vector.load %arg28[%c3_304, %c0_305, %c0_306] : memref<4x1x16xf32, #tpu.memory_space<vmem>>, vector<1x1x16xf32>
    %512 = vector.shape_cast %511 : vector<1x1x16xf32> to vector<1x16xf32>
    %513 = vector.broadcast %512 : vector<1x16xf32> to vector<8x16xf32>
    %514 = arith.addf %510, %513 : vector<8x16xf32>
    %515 = arith.truncf %498 : vector<8x16xf32> to vector<8x16xbf16>
    %516 = arith.truncf %506 : vector<8x16xf32> to vector<8x16xbf16>
    %cst_307 = arith.constant dense<0.000000e+00> : vector<8x8xf32>
    %517 = tpu.matmul %515, %516, %cst_307 {dimension_numbers = #tpu.dot_dimension_numbers<[1], [1], [0], [0], [0, 0, 1, 0], [], []>} : vector<8x16xbf16>, vector<8x16xbf16>, vector<8x8xf32> -> vector<8x8xf32>
    %c3_308 = arith.constant 3 : index
    %c0_309 = arith.constant 0 : index
    %c0_310 = arith.constant 0 : index
    %518 = vector.load %arg29[%c3_308, %c0_309, %c0_310] : memref<4x8x8xbf16, #tpu.memory_space<vmem>>, vector<1x8x8xbf16>
    %519 = vector.shape_cast %518 : vector<1x8x8xbf16> to vector<8x8xbf16>
    %520 = arith.extf %519 : vector<8x8xbf16> to vector<8x8xf32>
    %521 = arith.addf %517, %520 : vector<8x8xf32>
    %cst_311 = arith.constant dense<0xFF800000> : vector<8xf32>
    %522 = vector.multi_reduction <maximumf>, %521, %cst_311 [1] : vector<8x8xf32> to vector<8xf32>
    %523 = vector.shape_cast %522 : vector<8xf32> to vector<8x1xf32>
    %524 = vector.broadcast %523 : vector<8x1xf32> to vector<8x8xf32>
    %525 = arith.subf %521, %524 : vector<8x8xf32>
    %526 = math.exp %525 : vector<8x8xf32>
    %cst_312 = arith.constant dense<0.000000e+00> : vector<8xf32>
    %527 = vector.multi_reduction <add>, %526, %cst_312 [1] : vector<8x8xf32> to vector<8xf32>
    %528 = vector.shape_cast %527 : vector<8xf32> to vector<8x1xf32>
    %529 = tpu.reciprocal %528 {approx = true} : vector<8x1xf32> -> vector<8x1xf32>
    %530 = vector.broadcast %529 : vector<8x1xf32> to vector<8x8xf32>
    %531 = arith.mulf %526, %530 : vector<8x8xf32>
    %532 = arith.truncf %531 : vector<8x8xf32> to vector<8x8xbf16>
    %533 = arith.truncf %514 : vector<8x16xf32> to vector<8x16xbf16>
    %cst_313 = arith.constant dense<0.000000e+00> : vector<8x16xf32>
    %534 = tpu.matmul %532, %533, %cst_313 {dimension_numbers = #tpu.dot_dimension_numbers<[1], [0], [0], [1], [0, 0, 1, 1], [], []>} : vector<8x8xbf16>, vector<8x16xbf16>, vector<8x16xf32> -> vector<8x16xf32>
    %535 = arith.truncf %534 : vector<8x16xf32> to vector<8x16xbf16>
    %c3_314 = arith.constant 3 : index
    %c0_315 = arith.constant 0 : index
    %c0_316 = arith.constant 0 : index
    %536 = vector.load %arg30[%c3_314, %c0_315, %c0_316] : memref<4x16x64xbf16, #tpu.memory_space<vmem>>, vector<1x16x64xbf16>
    %537 = vector.shape_cast %536 : vector<1x16x64xbf16> to vector<16x64xbf16>
    %cst_317 = arith.constant dense<0.000000e+00> : vector<8x64xf32>
    %538 = tpu.matmul %535, %537, %cst_317 {dimension_numbers = #tpu.dot_dimension_numbers<[1], [0], [0], [1], [0, 0, 1, 1], [], []>} : vector<8x16xbf16>, vector<16x64xbf16>, vector<8x64xf32> -> vector<8x64xf32>
    %539 = arith.addf %488, %538 : vector<8x64xf32>
    %c0_318 = arith.constant 0 : index
    %c0_319 = arith.constant 0 : index
    %540 = vector.load %arg32[%c0_318, %c0_319] : memref<1x64xf32, #tpu.memory_space<vmem>>, vector<1x64xf32>
    %c0_320 = arith.constant 0 : index
    %c0_321 = arith.constant 0 : index
    %541 = vector.load %arg33[%c0_320, %c0_321] : memref<1x64xf32, #tpu.memory_space<vmem>>, vector<1x64xf32>
    %cst_322 = arith.constant dense<0.000000e+00> : vector<8xf32>
    %542 = vector.multi_reduction <add>, %539, %cst_322 [1] : vector<8x64xf32> to vector<8xf32>
    %543 = vector.shape_cast %542 : vector<8xf32> to vector<8x1xf32>
    %cst_323 = arith.constant 6.400000e+01 : f32
    %544 = vector.broadcast %cst_323 : f32 to vector<8x1xf32>
    %545 = arith.divf %543, %544 : vector<8x1xf32>
    %546 = vector.broadcast %545 : vector<8x1xf32> to vector<8x64xf32>
    %547 = arith.subf %539, %546 : vector<8x64xf32>
    %548 = arith.mulf %547, %547 : vector<8x64xf32>
    %cst_324 = arith.constant dense<0.000000e+00> : vector<8xf32>
    %549 = vector.multi_reduction <add>, %548, %cst_324 [1] : vector<8x64xf32> to vector<8xf32>
    %550 = vector.shape_cast %549 : vector<8xf32> to vector<8x1xf32>
    %cst_325 = arith.constant 6.400000e+01 : f32
    %551 = vector.broadcast %cst_325 : f32 to vector<8x1xf32>
    %552 = arith.divf %550, %551 : vector<8x1xf32>
    %553 = vector.broadcast %545 : vector<8x1xf32> to vector<8x64xf32>
    %554 = arith.subf %539, %553 : vector<8x64xf32>
    %cst_326 = arith.constant 9.99999974E-6 : f32
    %555 = vector.broadcast %cst_326 : f32 to vector<8x1xf32>
    %556 = arith.addf %552, %555 : vector<8x1xf32>
    %557 = math.rsqrt %556 : vector<8x1xf32>
    %558 = vector.broadcast %557 : vector<8x1xf32> to vector<8x64xf32>
    %559 = arith.mulf %554, %558 : vector<8x64xf32>
    %560 = vector.broadcast %540 : vector<1x64xf32> to vector<8x64xf32>
    %561 = arith.mulf %559, %560 : vector<8x64xf32>
    %562 = vector.broadcast %541 : vector<1x64xf32> to vector<8x64xf32>
    %563 = arith.addf %561, %562 : vector<8x64xf32>
    %c0_327 = arith.constant 0 : index
    %c0_328 = arith.constant 0 : index
    %564 = vector.load %arg34[%c0_327, %c0_328] : memref<64x256xbf16, #tpu.memory_space<vmem>>, vector<64x256xbf16>
    %565 = arith.truncf %563 : vector<8x64xf32> to vector<8x64xbf16>
    %cst_329 = arith.constant dense<0.000000e+00> : vector<8x256xf32>
    %566 = tpu.matmul %565, %564, %cst_329 {dimension_numbers = #tpu.dot_dimension_numbers<[1], [0], [0], [1], [0, 0, 1, 1], [], []>} : vector<8x64xbf16>, vector<64x256xbf16>, vector<8x256xf32> -> vector<8x256xf32>
    %c0_330 = arith.constant 0 : index
    %c0_331 = arith.constant 0 : index
    %567 = vector.load %arg35[%c0_330, %c0_331] : memref<1x256xf32, #tpu.memory_space<vmem>>, vector<1x256xf32>
    %568 = vector.broadcast %567 : vector<1x256xf32> to vector<8x256xf32>
    %569 = arith.addf %566, %568 : vector<8x256xf32>
    %cst_332 = arith.constant 5.000000e-01 : f32
    %570 = vector.broadcast %cst_332 : f32 to vector<8x256xf32>
    %571 = arith.mulf %570, %569 : vector<8x256xf32>
    %cst_333 = arith.constant 4.471500e-02 : f32
    %572 = vector.broadcast %cst_333 : f32 to vector<8x256xf32>
    %573 = arith.mulf %572, %569 : vector<8x256xf32>
    %574 = arith.mulf %573, %569 : vector<8x256xf32>
    %575 = arith.mulf %574, %569 : vector<8x256xf32>
    %576 = arith.addf %569, %575 : vector<8x256xf32>
    %cst_334 = arith.constant 0.797884583 : f32
    %577 = vector.broadcast %cst_334 : f32 to vector<8x256xf32>
    %578 = arith.mulf %577, %576 : vector<8x256xf32>
    %579 = math.tanh %578 : vector<8x256xf32>
    %cst_335 = arith.constant 1.000000e+00 : f32
    %580 = vector.broadcast %cst_335 : f32 to vector<8x256xf32>
    %581 = arith.addf %580, %579 : vector<8x256xf32>
    %582 = arith.mulf %571, %581 : vector<8x256xf32>
    %c0_336 = arith.constant 0 : index
    %c0_337 = arith.constant 0 : index
    %583 = vector.load %arg36[%c0_336, %c0_337] : memref<256x64xbf16, #tpu.memory_space<vmem>>, vector<256x64xbf16>
    %584 = arith.truncf %582 : vector<8x256xf32> to vector<8x256xbf16>
    %cst_338 = arith.constant dense<0.000000e+00> : vector<8x64xf32>
    %585 = tpu.matmul %584, %583, %cst_338 {dimension_numbers = #tpu.dot_dimension_numbers<[1], [0], [0], [1], [0, 0, 1, 1], [], []>} : vector<8x256xbf16>, vector<256x64xbf16>, vector<8x64xf32> -> vector<8x64xf32>
    %c0_339 = arith.constant 0 : index
    %c0_340 = arith.constant 0 : index
    %586 = vector.load %arg37[%c0_339, %c0_340] : memref<1x64xf32, #tpu.memory_space<vmem>>, vector<1x64xf32>
    %587 = vector.broadcast %586 : vector<1x64xf32> to vector<8x64xf32>
    %588 = arith.addf %585, %587 : vector<8x64xf32>
    %589 = arith.addf %539, %588 : vector<8x64xf32>
    %c0_341 = arith.constant 0 : index
    %c0_342 = arith.constant 0 : index
    %590 = vector.load %arg38[%c0_341, %c0_342] : memref<1x64xf32, #tpu.memory_space<vmem>>, vector<1x64xf32>
    %c0_343 = arith.constant 0 : index
    %c0_344 = arith.constant 0 : index
    %591 = vector.load %arg39[%c0_343, %c0_344] : memref<1x64xf32, #tpu.memory_space<vmem>>, vector<1x64xf32>
    %cst_345 = arith.constant dense<0.000000e+00> : vector<8xf32>
    %592 = vector.multi_reduction <add>, %589, %cst_345 [1] : vector<8x64xf32> to vector<8xf32>
    %593 = vector.shape_cast %592 : vector<8xf32> to vector<8x1xf32>
    %cst_346 = arith.constant 6.400000e+01 : f32
    %594 = vector.broadcast %cst_346 : f32 to vector<8x1xf32>
    %595 = arith.divf %593, %594 : vector<8x1xf32>
    %596 = vector.broadcast %595 : vector<8x1xf32> to vector<8x64xf32>
    %597 = arith.subf %589, %596 : vector<8x64xf32>
    %598 = arith.mulf %597, %597 : vector<8x64xf32>
    %cst_347 = arith.constant dense<0.000000e+00> : vector<8xf32>
    %599 = vector.multi_reduction <add>, %598, %cst_347 [1] : vector<8x64xf32> to vector<8xf32>
    %600 = vector.shape_cast %599 : vector<8xf32> to vector<8x1xf32>
    %cst_348 = arith.constant 6.400000e+01 : f32
    %601 = vector.broadcast %cst_348 : f32 to vector<8x1xf32>
    %602 = arith.divf %600, %601 : vector<8x1xf32>
    %603 = vector.broadcast %595 : vector<8x1xf32> to vector<8x64xf32>
    %604 = arith.subf %589, %603 : vector<8x64xf32>
    %cst_349 = arith.constant 9.99999974E-6 : f32
    %605 = vector.broadcast %cst_349 : f32 to vector<8x1xf32>
    %606 = arith.addf %602, %605 : vector<8x1xf32>
    %607 = math.rsqrt %606 : vector<8x1xf32>
    %608 = vector.broadcast %607 : vector<8x1xf32> to vector<8x64xf32>
    %609 = arith.mulf %604, %608 : vector<8x64xf32>
    %610 = vector.broadcast %590 : vector<1x64xf32> to vector<8x64xf32>
    %611 = arith.mulf %609, %610 : vector<8x64xf32>
    %612 = vector.broadcast %591 : vector<1x64xf32> to vector<8x64xf32>
    %613 = arith.addf %611, %612 : vector<8x64xf32>
    %c0_350 = arith.constant 0 : index
    %c0_351 = arith.constant 0 : index
    %614 = vector.load %arg40[%c0_350, %c0_351] : memref<64x5xbf16, #tpu.memory_space<vmem>>, vector<64x5xbf16>
    %c0_352 = arith.constant 0 : index
    %c0_353 = arith.constant 0 : index
    %615 = vector.load %arg41[%c0_352, %c0_353] : memref<1x5xf32, #tpu.memory_space<vmem>>, vector<1x5xf32>
    %616 = vector.extract_strided_slice %613 {offsets = [0, 0], sizes = [4, 64], strides = [1, 1]} : vector<8x64xf32> to vector<4x64xf32>
    %cst_354 = arith.constant dense<0.000000e+00> : vector<64xf32>
    %617 = vector.multi_reduction <add>, %616, %cst_354 [0] : vector<4x64xf32> to vector<64xf32>
    %618 = vector.shape_cast %617 : vector<64xf32> to vector<1x64xf32>
    %cst_355 = arith.constant 4.000000e+00 : f32
    %619 = vector.broadcast %cst_355 : f32 to vector<1x64xf32>
    %620 = arith.divf %618, %619 : vector<1x64xf32>
    %621 = arith.truncf %620 : vector<1x64xf32> to vector<1x64xbf16>
    %cst_356 = arith.constant dense<0.000000e+00> : vector<1x5xf32>
    %622 = tpu.matmul %621, %614, %cst_356 {dimension_numbers = #tpu.dot_dimension_numbers<[1], [0], [0], [1], [0, 0, 1, 1], [], []>} : vector<1x64xbf16>, vector<64x5xbf16>, vector<1x5xf32> -> vector<1x5xf32>
    %623 = arith.addf %622, %615 : vector<1x5xf32>
    %624 = arith.negf %623 : vector<1x5xf32>
    %625 = math.exp %624 : vector<1x5xf32>
    %cst_357 = arith.constant 1.000000e+00 : f32
    %626 = vector.broadcast %cst_357 : f32 to vector<1x5xf32>
    %627 = arith.addf %626, %625 : vector<1x5xf32>
    %628 = arith.divf %626, %627 : vector<1x5xf32>
    %c0_358 = arith.constant 0 : index
    %c0_359 = arith.constant 0 : index
    %629 = vector.load %arg42[%c0_358, %c0_359] : memref<2x5xf32, #tpu.memory_space<vmem>>, vector<1x5xf32>
    tpu.vector_store %arg42[%c0_358, %c0_359], %628 {strides = array<i32>} : memref<2x5xf32, #tpu.memory_space<vmem>>, vector<1x5xf32>,
    %630 = vector.extract_strided_slice %613 {offsets = [4, 0], sizes = [4, 64], strides = [1, 1]} : vector<8x64xf32> to vector<4x64xf32>
    %cst_360 = arith.constant dense<0.000000e+00> : vector<64xf32>
    %631 = vector.multi_reduction <add>, %630, %cst_360 [0] : vector<4x64xf32> to vector<64xf32>
    %632 = vector.shape_cast %631 : vector<64xf32> to vector<1x64xf32>
    %cst_361 = arith.constant 4.000000e+00 : f32
    %633 = vector.broadcast %cst_361 : f32 to vector<1x64xf32>
    %634 = arith.divf %632, %633 : vector<1x64xf32>
    %635 = arith.truncf %634 : vector<1x64xf32> to vector<1x64xbf16>
    %cst_362 = arith.constant dense<0.000000e+00> : vector<1x5xf32>
    %636 = tpu.matmul %635, %614, %cst_362 {dimension_numbers = #tpu.dot_dimension_numbers<[1], [0], [0], [1], [0, 0, 1, 1], [], []>} : vector<1x64xbf16>, vector<64x5xbf16>, vector<1x5xf32> -> vector<1x5xf32>
    %637 = arith.addf %636, %615 : vector<1x5xf32>
    %638 = arith.negf %637 : vector<1x5xf32>
    %639 = math.exp %638 : vector<1x5xf32>
    %cst_363 = arith.constant 1.000000e+00 : f32
    %640 = vector.broadcast %cst_363 : f32 to vector<1x5xf32>
    %641 = arith.addf %640, %639 : vector<1x5xf32>
    %642 = arith.divf %640, %641 : vector<1x5xf32>
    %c1_364 = arith.constant 1 : index
    %c0_365 = arith.constant 0 : index
    %643 = vector.load %arg42[%c1_364, %c0_365] : memref<2x5xf32, #tpu.memory_space<vmem>>, vector<1x5xf32>
    tpu.vector_store %arg42[%c1_364, %c0_365], %642 {strides = array<i32>} : memref<2x5xf32, #tpu.memory_space<vmem>>, vector<1x5xf32>,
    return
  }
}

</mosaic_0001>

<bundles_post_ra>
// kernel: swin_forward.2
= control target key start
LH: loop header
LB: loop body
LE: loop exit
PB: predicated region body
PF: predicated region fallthrough
CT: control target
= control target key end

     0   :  { %s3897_s3 = smov 1   ;;  %vm200_vm0 = vcmask 392192   ;;  %s3898_s10 = smov 2   ;;  %vm258_vm1 = vcmask 261120   ;;  %vm657_vm2 = vcmask 130048   ;;  %s4438_s0 = inlined_call_operand.smem [shape: u32[40], index: -1, kind: input, shape index: {}] }
   0x1   :  { %s3035_s6 = sld [smem:[%s4438_s0 + %s3897_s3]]   ;;  %s3899_s14 = smov 3  }
   0x2   :  { %s1_s9 = sld [smem:[%s4438_s0]]   ;;  %s3900_s18 = smov 4  }
   0x3   :  { %s3036_s13 = sld [smem:[%s4438_s0 + %s3898_s10]]   ;;  %s3901_s22 = smov 7  }
   0x4   :  { %s3037_s17 = sld [smem:[%s4438_s0 + %s3899_s14]]   ;;  %s3902_s26 = smov 11  }
   0x5   :  { %s3038_s21 = sld [smem:[%s4438_s0 + %s3900_s18]]   ;;  %s3903_s30 = smov 9  }
   0x6   :  { %s3995_s25 = sld [smem:[%s4438_s0 + %s3901_s22]]   ;;  %s3904_s4 = smov 5  }
   0x7   :  { %v3726_v0 = vld [vmem:[%s3035_s6] sm:$0xff]   ;;  %v3727_v1 = vld [vmem:[%s3035_s6 + $0x8] sm:$0xff]   ;;  %v3728_v4 = vld [vmem:[%s3035_s6 + $0x10] sm:$0xff]   ;;  %s4000_s29 = sld [smem:[%s4438_s0 + %s3902_s26]]   ;;  %s3905_s8 = smov 6  }
   0x8   :  { %3413 = vmatprep.subr.bf16.mxu1 %v3726_v0  ;;  %v163_v2 = vld [vmem:[%s1_s9] sm:$0xff]  ;;  %v164_v3 = vld [vmem:[%s1_s9 + $0x8] sm:$0xff]  ;;  %v165_v6 = vld [vmem:[%s1_s9 + $0x10] sm:$0xff]  ;;  %s4007_s3 = sld [smem:[%s4438_s0 + %s3903_s30]]   ;;  %s3906_s12 = smov 8  }
   0x9   :  { %3414 = vmatpush3.bf16.msra.mxu1 %v3726_v0  ;;  %v173_v5 = vpack.c.bf16 %v164_v3, %v163_v2  ;;  %v166_v7 = vld [vmem:[%s1_s9 + $0x18] sm:$0xff]  ;;  %v3074_v9 = vld [vmem:[%s3036_s13] ss:$0 sm:$0xff]  ;;  %s3039_s7 = sld [smem:[%s4438_s0 + %s3904_s4]]   ;;  %s3907_s16 = smov 12  }
   0xa   :  { %3415 = vmatprep.subr.bf16.mxu1 %v3727_v1  ;;  %v174_v8 = vpack.c.bf16 %v166_v7, %v165_v6  ;;  %v3080_v55 = vld [vmem:[%s3037_s17] ss:$0 sm:$0xff]  ;;  %s3040_s11 = sld [smem:[%s4438_s0 + %s3905_s8]]   ;;  %s3908_s20 = smov 10  }
   0xb   :  { %3419 = vmatprep.mubr.msk.bf16.mxu1 %vm200_vm0, %v173_v5  ;;  %v3081_v57 = vld [vmem:[%s3038_s21] ss:$0 sm:$0xff]  ;;  %s4039_s15 = sld [smem:[%s4438_s0 + %s3906_s12]]   ;;  %s3909_s24 = smov 13  }
   0xc   :  { %s4044_s19 = sld [smem:[%s4438_s0 + %s3907_s16]]   ;;  %s3910_s28 = smov 14  }
   0xd   :  { %3416 = vmatpush3.bf16.msra.mxu1 %v3727_v1  ;;  %s4051_s23 = sld [smem:[%s4438_s0 + %s3908_s20]]   ;;  %s3911_s2 = smov 15  }
   0xe   :  { %3417 = vmatprep.subr.bf16.mxu1 %v3728_v4  ;;  %s4075_s27 = sld [smem:[%s4438_s0 + %s3909_s24]]   ;;  %s3912_s6 = smov 18  }
   0xf   :  { %s4104_s1 = sld [smem:[%s4438_s0 + %s3910_s28]]   ;;  %s3913_s10 = smov 16  }
  0x10   :  { %s3049_s5 = sld [smem:[%s4438_s0 + %s3911_s2]]   ;;  %s3914_s14 = smov 17  }
  0x11   :  { %3418 = vmatpush3.bf16.msra.mxu1 %v3728_v4  ;;  %s3052_s9 = sld [smem:[%s4438_s0 + %s3912_s6]]   ;;  %s3915_s18 = smov 20  }
  0x12   :  { %s3050_s13 = sld [smem:[%s4438_s0 + %s3913_s10]]   ;;  %s3916_s22 = smov 19  }
  0x13   :  { %s3051_s17 = sld [smem:[%s4438_s0 + %s3914_s14]]   ;;  %s3917_s26 = smov 21  }
  0x14   :  { %3420 = vmatmul.mubr.msk.bf16.vlgmr.msra.gmra.mrb[0].mxu1 %vm200_vm0, %v174_v8  ;;  %s3054_s21 = sld [smem:[%s4438_s0 + %s3915_s18]]   ;;  %s3918_s30 = smov 24  }
  0x15   :  { %s3919_s4 = smov 26   ;;  %s3920_s8 = smov 28  }
  0x16   :  { %s3921_s12 = smov 22   ;;  %s3922_s16 = smov 23  }
  0x17   :  { %s3923_s20 = smov 25   ;;  %s3924_s24 = smov 27  }
  0x18   :  { %s3925_s28 = smov 29   ;;  %s3926_s2 = smov 30  }
  0x19   :  { %s3927_s6 = smov 31   ;;  %s3929_s14 = smov 35  }
  0x1a   :  { %s4335_s10 = sld [smem:[%s4438_s0 + %s3927_s6]]   ;;  %s3930_s18 = smov 33  }
  0xe7   :  { %v3421_v10 = vpop.f32.mrb[0].mxu1 }
  0xe8   :  { %v250_v11 = vadd.f32 %v3421_v10, %v3074_v9  ;;  %v241_v12 = vpop.f32.mrb[1].mxu1 }
  0xe9   :  { %v242_v13 = vadd.f32 %v3074_v9, %v241_v12  ;;  %v3422_v14 = vpop.f32.mrb[2].mxu1 }
  0xea   :  { %v253_v15 = vadd.f32 %v3422_v14, %v3074_v9  ;;  %v244_v16 = vpop.f32.mrb[3].mxu1  ;;  %v265_v17 = vsel %vm258_vm1, %v250_v11, 0.0 }
  0xeb   :  { %v245_v18 = vadd.f32 %v3074_v9, %v244_v16  ;;  %266 = vadd.xlane.f32.xlu1 %v265_v17  ;;  %v259_v19 = vsel %vm258_vm1, %v242_v13, 0.0 }
  0xec   :  { %260 = vadd.xlane.f32.xlu0 %v259_v19  ;;  %v268_v20 = vsel %vm258_vm1, %v253_v15, 0.0 }
  0xed   :  { %v262_v21 = vsel %vm258_vm1, %v245_v18, 0.0 }
  0xef   :  { %269 = vadd.xlane.f32.xlu1 %v268_v20 }
  0xf0   :  { %263 = vadd.xlane.f32.xlu0 %v262_v21 }
 0x178   :  { %v267_v22 = vpop.xlane.xlu1 %266 }
 0x179   :  { %v274_v23 = vmul.f32 0.03125, %v267_v22  ;;  %v261_v24 = vpop.xlane.xlu0 %260 }
 0x17a   :  { %v272_v25 = vmul.f32 0.03125, %v261_v24 }
 0x17b   :  { %v278_v26 = vsub.f32 %v250_v11, %v274_v23 }
 0x17c   :  { %v276_v27 = vsub.f32 %v242_v13, %v272_v25  ;;  %v270_v28 = vpop.xlane.xlu1 %269 }
 0x17d   :  { %v275_v29 = vmul.f32 0.03125, %v270_v28  ;;  %v264_v30 = vpop.xlane.xlu0 %263  ;;  %v282_v36 = vmul.f32 %v278_v26, %v278_v26 }
 0x17e   :  { %v273_v31 = vmul.f32 0.03125, %v264_v30  ;;  %v280_v32 = vmul.f32 %v276_v27, %v276_v27 }
 0x17f   :  { %v279_v33 = vsub.f32 %v253_v15, %v275_v29  ;;  %v290_v38 = vsel %vm258_vm1, %v282_v36, 0.0  ;;  %v3733_v36 = vld [vmem:[%s4007_s3] sm:$0xff]  }
 0x180   :  { %v277_v34 = vsub.f32 %v245_v18, %v273_v31  ;;  %v284_v35 = vsel %vm258_vm1, %v280_v32, 0.0  ;;  %v3729_v32 = vld [vmem:[%s3995_s25] sm:$0xff]  }
 0x181   :  { %285 = vadd.xlane.f32.xlu0 %v284_v35  ;;  %v283_v40 = vmul.f32 %v279_v33, %v279_v33  ;;  %3423 = vmatprep.subr.bf16.mxu1 %v3729_v32  ;;  %v3732_v35 = vld [vmem:[%s4000_s29 + $0x8] sm:$0xff]  }
 0x182   :  { %v281_v37 = vmul.f32 %v277_v34, %v277_v34  ;;  %3424 = vmatpush3.bf16.msra.mxu1 %v3729_v32 }
 0x183   :  { %v293_v41 = vsel %vm258_vm1, %v283_v40, 0.0 }
 0x184   :  { %v287_v39 = vsel %vm258_vm1, %v281_v37, 0.0 }
 0x185   :  { %291 = vadd.xlane.f32.xlu0 %v290_v38  ;;  %288 = vadd.xlane.f32.xlu1 %v287_v39 }
 0x189   :  { %294 = vadd.xlane.f32.xlu1 %v293_v41 }
 0x20e   :  { %v286_v42 = vpop.xlane.xlu0 %285 }
 0x20f   :  { %v296_v43 = vmul.f32 0.03125, %v286_v42 }
 0x211   :  { %v300_v44 = vadd.f32 1e-05, %v296_v43 }
 0x212   :  { %v289_v45 = vpop.xlane.xlu1 %288  ;;  %v292_v46 = vpop.xlane.xlu0 %291 }
 0x213   :  { %3777 = vrsqrt.f32 %v300_v44  ;;  %v297_v47 = vmul.f32 0.03125, %v289_v45  ;;  %v298_v48 = vmul.f32 0.03125, %v292_v46 }
 0x215   :  { %v301_v49 = vadd.f32 1e-05, %v297_v47  ;;  %v302_v50 = vadd.f32 1e-05, %v298_v48 }
 0x216   :  { %v295_v51 = vpop.xlane.xlu1 %294 }
 0x217   :  { %3779 = vrsqrt.f32 %v301_v49  ;;  %v299_v52 = vmul.f32 0.03125, %v295_v51  ;;  %v3082_v51 = vld [vmem:[%s3039_s7] ss:$0 sm:$0xff]  ;;  %s4233_s7 = sld [smem:[%s4438_s0 + %s3919_s4]]   ;;  %s3934_s4 = smov 38  }
 0x218   :  { %3781 = vrsqrt.f32 %v302_v50 }
 0x219   :  { %v303_v53 = vadd.f32 1e-05, %v299_v52 }
 0x21b   :  { %3783 = vrsqrt.f32 %v303_v53 }
 0x21d   :  { %v3778_v54 = vpop.eup %3777 }
 0x21e   :  { %v308_v56 = vmul.f32 %v3778_v54, %v276_v27 }
 0x220   :  { %v318_v58 = vmul.f32 %v3080_v55, %v308_v56  ;;  %v3083_v56 = vld [vmem:[%s3040_s11] ss:$0 sm:$0xff]  ;;  %s4240_s11 = sld [smem:[%s4438_s0 + %s3920_s8]]  }
 0x221   :  { %v3780_v59 = vpop.eup %3779  ;;  %s3072_s8 = sld [smem:[%s4438_s0 + %s3934_s4]]  }
 0x222   :  { %v3782_v60 = vpop.eup %3781  ;;  %v3964_v61 = vadd.f32 %v3081_v57, %v318_v58  ;;  %v309_v62 = vmul.f32 %v3780_v59, %v277_v34  ;;  %v3731_v34 = vld [vmem:[%s3995_s25 + $0x8] sm:$0xff]  }
 0x223   :  { %v310_v63 = vmul.f32 %v3782_v60, %v278_v26  ;;  %3425 = vmatprep.subr.bf16.mxu1 %v3731_v34 }
 0x224   :  { %v334_v0 = vsel %vm258_vm1, %v3964_v61, 0.0  ;;  %v319_v1 = vmul.f32 %v3080_v55, %v309_v62  ;;  %3426 = vmatpush3.bf16.msra.mxu1 %v3731_v34 }
 0x225   :  { %v3784_v2 = vpop.eup %3783  ;;  %335 = vadd.xlane.f32.xlu0 %v334_v0  ;;  %v320_v3 = vmul.f32 %v3080_v55, %v310_v63  ;;  %3431 = vmatprep.subr.bf16.mxu1 %v3733_v36 }
 0x226   :  { %v3968_v4 = vadd.f32 %v3081_v57, %v319_v1  ;;  %v311_v5 = vmul.f32 %v3784_v2, %v279_v33  ;;  %v3730_v33 = vld [vmem:[%s4000_s29] sm:$0xff]  }
 0x227   :  { %v3970_v6 = vadd.f32 %v3081_v57, %v320_v3  ;;  %3439 = vmatprep.subr.bf16.mxu0 %v3730_v33 }
 0x228   :  { %v337_v7 = vsel %vm258_vm1, %v3968_v4, 0.0  ;;  %v321_v8 = vmul.f32 %v3080_v55, %v311_v5  ;;  %3440 = vmatpush3.bf16.msra.mxu0 %v3730_v33 }
 0x229   :  { %338 = vadd.xlane.f32.xlu1 %v337_v7  ;;  %v340_v9 = vsel %vm258_vm1, %v3970_v6, 0.0  ;;  %3441 = vmatprep.subr.bf16.mxu0 %v3732_v35 }
 0x22a   :  { %341 = vadd.xlane.f32.xlu0 %v340_v9  ;;  %v3976_v10 = vadd.f32 %v3081_v57, %v321_v8  ;;  %v3734_v8 = vld [vmem:[%s4007_s3 + $0x8] sm:$0xff]   ;;  %v3085_v9 = vld [vmem:[%s4039_s15] ss:$0 sm:$0xff] }
 0x22c   :  { %v343_v11 = vsel %vm258_vm1, %v3976_v10, 0.0  ;;  %3442 = vmatpush3.bf16.msra.mxu0 %v3732_v35 }
 0x22d   :  { %344 = vadd.xlane.f32.xlu1 %v343_v11 }
 0x2b2   :  { %v336_v12 = vpop.xlane.xlu0 %335 }
 0x2b3   :  { %v346_v13 = vmul.f32 0.03125, %v336_v12 }
 0x2b5   :  { %v3981_v14 = vsub.f32 %v3964_v61, %v346_v13  ;;  %v3095_v13 = vld [vmem:[%s4044_s19] ss:$0 sm:$0xff] }
 0x2b6   :  { %v339_v15 = vpop.xlane.xlu1 %338 }
 0x2b7   :  { %v347_v16 = vmul.f32 0.03125, %v339_v15  ;;  %v342_v17 = vpop.xlane.xlu0 %341  ;;  %v354_v18 = vmul.f32 %v3981_v14, %v3981_v14 }
 0x2b8   :  { %v348_v19 = vmul.f32 0.03125, %v342_v17 }
 0x2b9   :  { %v351_v20 = vsub.f32 %v3968_v4, %v347_v16  ;;  %v358_v21 = vsel %vm258_vm1, %v354_v18, 0.0 }
 0x2ba   :  { %v352_v22 = vsub.f32 %v3970_v6, %v348_v19  ;;  %v345_v23 = vpop.xlane.xlu1 %344  ;;  %359 = vadd.xlane.f32.xlu0 %v358_v21 }
 0x2bb   :  { %v349_v24 = vmul.f32 0.03125, %v345_v23  ;;  %v355_v25 = vmul.f32 %v351_v20, %v351_v20 }
 0x2bc   :  { %v356_v26 = vmul.f32 %v352_v22, %v352_v22 }
 0x2bd   :  { %v353_v27 = vsub.f32 %v3976_v10, %v349_v24  ;;  %v361_v28 = vsel %vm258_vm1, %v355_v25, 0.0 }
 0x2be   :  { %362 = vadd.xlane.f32.xlu1 %v361_v28  ;;  %v364_v29 = vsel %vm258_vm1, %v356_v26, 0.0 }
 0x2bf   :  { %365 = vadd.xlane.f32.xlu0 %v364_v29  ;;  %v357_v30 = vmul.f32 %v353_v27, %v353_v27 }
 0x2c1   :  { %v367_v31 = vsel %vm258_vm1, %v357_v30, 0.0 }
 0x2c2   :  { %368 = vadd.xlane.f32.xlu1 %v367_v31 }
 0x347   :  { %v360_v37 = vpop.xlane.xlu0 %359 }
 0x348   :  { %v370_v38 = vmul.f32 0.03125, %v360_v37  ;;  %v3090_v37 = vld [vmem:[%s4051_s23] ss:$0 sm:$0xff] }
 0x34a   :  { %v374_v39 = vadd.f32 1e-05, %v370_v38 }
 0x34b   :  { %v363_v40 = vpop.xlane.xlu1 %362 }
 0x34c   :  { %3785 = vrsqrt.f32 %v374_v39  ;;  %v371_v41 = vmul.f32 0.03125, %v363_v40  ;;  %v366_v42 = vpop.xlane.xlu0 %365 }
 0x34d   :  { %v372_v43 = vmul.f32 0.03125, %v366_v42 }
 0x34e   :  { %v375_v44 = vadd.f32 1e-05, %v371_v41 }
 0x34f   :  { %v376_v45 = vadd.f32 1e-05, %v372_v43  ;;  %v369_v46 = vpop.xlane.xlu1 %368 }
 0x350   :  { %3787 = vrsqrt.f32 %v375_v44  ;;  %v373_v47 = vmul.f32 0.03125, %v369_v46 }
 0x351   :  { %3789 = vrsqrt.f32 %v376_v45 }
 0x352   :  { %v377_v48 = vadd.f32 1e-05, %v373_v47 }
 0x354   :  { %3791 = vrsqrt.f32 %v377_v48  ;;  %v3735_v48 = vld [vmem:[%s3995_s25 + $0x10] sm:$0xff]  }
 0x356   :  { %v3786_v49 = vpop.eup %3785 }
 0x357   :  { %v382_v50 = vmul.f32 %v3786_v49, %v3981_v14 }
 0x359   :  { %v392_v54 = vmul.f32 %v3082_v51, %v382_v50  ;;  %v3736_v50 = vld [vmem:[%s3995_s25 + $0x18] sm:$0xff]   ;;  %s3053_s25 = sld [smem:[%s4438_s0 + %s3916_s22]]   ;;  %s3931_s22 = smov 34  }
 0x35a   :  { %v3788_v52 = vpop.eup %3787 }
 0x35b   :  { %v3790_v53 = vpop.eup %3789  ;;  %v383_v55 = vmul.f32 %v3788_v52, %v351_v20  ;;  %v402_v60 = vadd.f32 %v3083_v56, %v392_v54  ;;  %v3738_v52 = vld [vmem:[%s4000_s29 + $0x18] sm:$0xff]   ;;  %v3282_v54 = vld [vmem:[%s4075_s27 + $0x8] sm:$0xff]  }
 0x35c   :  { %v384_v57 = vmul.f32 %v3790_v53, %v352_v22  ;;  %v3251_v53 = vld [vmem:[%s4075_s27] sm:$0xff]  }
 0x35d   :  { %v393_v58 = vmul.f32 %v3082_v51, %v383_v55  ;;  %v3252_v55 = vunpack.c.l.bf16 %v3251_v53 }
 0x35e   :  { %v3792_v59 = vpop.eup %3791  ;;  %v394_v63 = vmul.f32 %v3082_v51, %v384_v57 }
 0x35f   :  { %v403_v62 = vadd.f32 %v3083_v56, %v393_v58  ;;  %v385_v0 = vmul.f32 %v3792_v59, %v353_v27  ;;  %v3253_v58 = vunpack.c.h.bf16 %v3251_v53 }
 0x360   :  { %v404_v3 = vadd.f32 %v3083_v56, %v394_v63 }
 0x361   :  { %v395_v1 = vmul.f32 %v3082_v51, %v385_v0  ;;  %v4019_v2 = vpack.c.bf16 %v403_v62, %v402_v60  ;;  %v3737_v51 = vld [vmem:[%s4000_s29 + $0x10] sm:$0xff]   ;;  %v3257_v62 = vunpack.c.h.bf16 %v3282_v54  ;;  %s3055_s29 = sld [smem:[%s4438_s0 + %s3917_s26]]   ;;  %s3932_s26 = smov 37  }
 0x363   :  { %v405_v5 = vadd.f32 %v3083_v56, %v395_v1  ;;  %3427 = vmatprep.mubr.msk.bf16.mxu1 %vm258_vm1, %v4019_v2  ;;  %3443 = vmatprep.mubr.msk.bf16.mxu0 %vm258_vm1, %v4019_v2  ;;  %v3256_v56 = vunpack.c.l.bf16 %v3282_v54 }
 0x365   :  { %v4025_v7 = vpack.c.bf16 %v405_v5, %v404_v3 }
 0x367   :  { %3428 = vmatmul.mubr.msk.bf16.vlgmr.msra.gmra.mrb[4].mxu1 %vm258_vm1, %v4025_v7  ;;  %3444 = vmatmul.mubr.msk.bf16.vlgmr.msra.gmra.mrb[0].mxu0 %vm258_vm1, %v4025_v7 }
 0x368   :  { %3432 = vmatpush3.bf16.msra.mxu1 %v3733_v36  ;;  %3435 = vmatprep.mubr.msk.bf16.mxu1 %vm258_vm1, %v4019_v2 }
 0x369   :  { %3433 = vmatprep.subr.bf16.mxu1 %v3734_v8 }
 0x36c   :  { %3434 = vmatpush3.bf16.msra.mxu1 %v3734_v8 }
 0x36f   :  { %3436 = vmatmul.mubr.msk.bf16.vlgmr.msra.gmra.mrb[8].mxu1 %vm258_vm1, %v4025_v7 }
 0x43a   :  { %v3429_v11 = vpop.f32.mrb[4].mxu1  ;;  %v3445_v12 = vpop.f32.mrb[0].mxu0 }
 0x43b   :  { %v491_v14 = vadd.f32 %v3429_v11, %v3085_v9  ;;  %v482_v15 = vpop.f32.mrb[5].mxu1  ;;  %v630_v16 = vpop.f32.mrb[1].mxu0  ;;  %v639_v20 = vadd.f32 %v3445_v12, %v3095_v13  ;;  %v3112_v11 = vld [vmem:[%s4039_s15 + $0x1] ss:$0 sm:$0xff]  ;;  %s3056_s15 = sld [smem:[%s4438_s0 + %s3921_s12]]  }
 0x43c   :  { %v483_v17 = vadd.f32 %v3085_v9, %v482_v15  ;;  %v3430_v18 = vpop.f32.mrb[6].mxu1  ;;  %v3446_v19 = vpop.f32.mrb[2].mxu0  ;;  %v631_v25 = vadd.f32 %v3095_v13, %v630_v16 }
 0x43d   :  { %v494_v21 = vadd.f32 %v3430_v18, %v3085_v9  ;;  %v642_v22 = vadd.f32 %v3446_v19, %v3095_v13  ;;  %v485_v23 = vpop.f32.mrb[7].mxu1  ;;  %v633_v24 = vpop.f32.mrb[3].mxu0  ;;  %v499_v28 = vmul.f32 0.25, %v491_v14 }
 0x43e   :  { %v486_v26 = vadd.f32 %v3085_v9, %v485_v23  ;;  %v634_v27 = vadd.f32 %v3095_v13, %v633_v24  ;;  %v497_v31 = vmul.f32 0.25, %v483_v17 }
 0x43f   :  { %v500_v29 = vmul.f32 0.25, %v494_v21  ;;  %v766_v30 = vpack.c.bf16 %v642_v22, %v639_v20 }
 0x440   :  { %v498_v32 = vmul.f32 0.25, %v486_v26  ;;  %v765_v33 = vpack.c.bf16 %v634_v27, %v631_v25 }
 0x441   :  { %v646_v34 = vpack.c.bf16 %v500_v29, %v499_v28  ;;  %v3132_v29 = vld [vmem:[%s4044_s19 + $0x1] ss:$0 sm:$0xff]  ;;  %s3057_s19 = sld [smem:[%s4438_s0 + %s3922_s16]]  }
 0x442   :  { %v645_v35 = vpack.c.bf16 %v498_v32, %v497_v31  ;;  %v3437_v36 = vpop.f32.mrb[8].mxu1  ;;  %3455 = vmatprep.subr.bf16.mxu0 %v765_v33 }
 0x443   :  { %v558_v38 = vpop.f32.mrb[9].mxu1  ;;  %3456 = vmatpush3.bf16.msra.mxu0 %v765_v33  ;;  %v567_v40 = vadd.f32 %v3437_v36, %v3090_v37 }
 0x444   :  { %v3438_v39 = vpop.f32.mrb[10].mxu1  ;;  %3451 = vmatprep.mubr.msk.bf16.mxu1 %vm657_vm2, %v645_v35  ;;  %3457 = vmatprep.subr.bf16.mxu0 %v766_v30  ;;  %v559_v43 = vadd.f32 %v3090_v37, %v558_v38 }
 0x445   :  { %v570_v41 = vadd.f32 %v3438_v39, %v3090_v37  ;;  %v561_v42 = vpop.f32.mrb[11].mxu1 }
 0x446   :  { %v562_v44 = vadd.f32 %v3090_v37, %v561_v42 }
 0x447   :  { %v648_v45 = vpack.c.bf16 %v570_v41, %v567_v40  ;;  %3458 = vmatpush3.bf16.msra.mxu0 %v766_v30 }
 0x448   :  { %v647_v46 = vpack.c.bf16 %v562_v44, %v559_v43 }
 0x449   :  { %v668_v49 = vsel %vm657_vm2, %v648_v45, 0 }
 0x44a   :  { %3679 = vmatprep.subr.msk.bf16.mxu1 %vm657_vm2, %v647_v46  ;;  %v665_v47 = vsel %vm657_vm2, %v647_v46, 0 }
 0x44b   :  { %3448 = vmatpush3.bf16.xpose.msra.mxu1 %v665_v47 }
 0x44c   :  { %3680 = vmatprep.subr.msk.bf16.mxu1 %vm657_vm2, %v648_v45 }
 0x453   :  { %3450 = vmatpush3.bf16.xpose.msra.mxu1 %v668_v49 }
 0x454   :  { %3469 = vmatprep.subr.bf16.mxu1 %v3735_v48 }
 0x45a   :  { %3452 = vmatmul.mubr.msk.bf16.vlgmr.msra.gmra.mrb[12].mxu1 %vm657_vm2, %v646_v34 }
 0x45b   :  { %3470 = vmatpush3.bf16.msra.mxu1 %v3735_v48  ;;  %3473 = vmatprep.mubr.msk.bf16.mxu1 %vm258_vm1, %v4019_v2 }
 0x45c   :  { %3471 = vmatprep.subr.bf16.mxu1 %v3736_v50 }
 0x45f   :  { %3472 = vmatpush3.bf16.msra.mxu1 %v3736_v50 }
 0x460   :  { %3485 = vmatprep.subr.bf16.mxu1 %v3737_v51 }
 0x462   :  { %3474 = vmatmul.mubr.msk.bf16.vlgmr.msra.gmra.mrb[16].mxu1 %vm258_vm1, %v4025_v7 }
 0x463   :  { %3486 = vmatpush3.bf16.msra.mxu1 %v3737_v51  ;;  %3489 = vmatprep.mubr.msk.bf16.mxu1 %vm258_vm1, %v4019_v2 }
 0x464   :  { %3487 = vmatprep.subr.bf16.mxu1 %v3738_v52 }
 0x467   :  { %3488 = vmatpush3.bf16.msra.mxu1 %v3738_v52 }
 0x46a   :  { %3490 = vmatmul.mubr.msk.bf16.vlgmr.msra.gmra.mrb[20].mxu1 %vm258_vm1, %v4025_v7 }
 0x52d   :  { %v3453_v57 = vpop.f32.mrb[12].mxu1 }
 0x52e   :  { %v704_v59 = vpop.f32.mrb[13].mxu1  ;;  %v713_v1 = vadd.f32 %v3453_v57, %v3256_v56 }
 0x52f   :  { %v705_v60 = vadd.f32 %v3252_v55, %v704_v59  ;;  %v3454_v63 = vpop.f32.mrb[14].mxu1  ;;  %v3739_v59 = vld [vmem:[%s4104_s1] sm:$0xff]  }
 0x530   :  { %v707_v0 = vpop.f32.mrb[15].mxu1  ;;  %v716_v8 = vadd.f32 %v3454_v63, %v3257_v62  ;;  %v725_v13 = vsel %vm258_vm1, %v713_v1, -inf  ;;  %3463 = vmatprep.subr.bf16.mxu0 %v3739_v59 }
 0x531   :  { %v708_v3 = vadd.f32 %v3253_v58, %v707_v0  ;;  %v719_v5 = vsel %vm258_vm1, %v705_v60, -inf }
 0x532   :  { %720 = vmax.xlane.f32.xlu0 %v719_v5  ;;  %v728_v18 = vsel %vm258_vm1, %v716_v8, -inf }
 0x533   :  { %v722_v9 = vsel %vm258_vm1, %v708_v3, -inf }
 0x534   :  { %723 = vmax.xlane.f32.xlu1 %v722_v9 }
 0x535   :  { %v3475_v12 = vpop.f32.mrb[16].mxu1 }
 0x536   :  { %v959_v14 = vadd.f32 %v3475_v12, %v3112_v11  ;;  %v950_v15 = vpop.f32.mrb[17].mxu1  ;;  %726 = vmax.xlane.f32.xlu0 %v725_v13 }
 0x537   :  { %v951_v16 = vadd.f32 %v3112_v11, %v950_v15  ;;  %v3476_v17 = vpop.f32.mrb[18].mxu1 }
 0x538   :  { %v962_v19 = vadd.f32 %v3476_v17, %v3112_v11  ;;  %v953_v20 = vpop.f32.mrb[19].mxu1  ;;  %729 = vmax.xlane.f32.xlu1 %v728_v18  ;;  %v4084_v22 = vmul.f32 0.25, %v959_v14 }
 0x539   :  { %v954_v21 = vadd.f32 %v3112_v11, %v953_v20  ;;  %v4088_v24 = vmul.f32 0.25, %v951_v16  ;;  %v3740_v16 = vld [vmem:[%s4007_s3 + $0x10] sm:$0xff]  }
 0x53a   :  { %v4086_v23 = vmul.f32 0.25, %v962_v19 }
 0x53b   :  { %v4090_v25 = vmul.f32 0.25, %v954_v21 }
 0x53c   :  { %v1118_v26 = vpack.c.bf16 %v4086_v23, %v4084_v22 }
 0x53d   :  { %v1117_v27 = vpack.c.bf16 %v4090_v25, %v4088_v24  ;;  %v3491_v28 = vpop.f32.mrb[20].mxu1  ;;  %v3283_v25 = vld [vmem:[%s4075_s27 + $0x10] sm:$0xff]  }
 0x53e   :  { %v1102_v30 = vpop.f32.mrb[21].mxu1  ;;  %v1111_v32 = vadd.f32 %v3491_v28, %v3132_v29 }
 0x53f   :  { %v3492_v31 = vpop.f32.mrb[22].mxu1  ;;  %v1103_v35 = vadd.f32 %v3132_v29, %v1102_v30 }
 0x540   :  { %v1114_v33 = vadd.f32 %v3492_v31, %v3132_v29  ;;  %v1105_v34 = vpop.f32.mrb[23].mxu1  ;;  %v3122_v31 = vld [vmem:[%s4051_s23 + $0x1] ss:$0 sm:$0xff]  ;;  %s4270_s23 = sld [smem:[%s4438_s0 + %s3923_s20]]  }
 0x541   :  { %v1106_v36 = vadd.f32 %v3132_v29, %v1105_v34  ;;  %v3741_v29 = vld [vmem:[%s4007_s3 + $0x18] sm:$0xff]   ;;  %s4227_s3 = sld [smem:[%s4438_s0 + %s3918_s30]]   ;;  %s3933_s30 = smov 36  }
 0x542   :  { %v1238_v37 = vpack.c.bf16 %v1114_v33, %v1111_v32 }
 0x543   :  { %v1237_v38 = vpack.c.bf16 %v1106_v36, %v1103_v35 }
 0x545   :  { %3501 = vmatprep.subr.bf16.mxu1 %v1237_v38 }
 0x546   :  { %3502 = vmatpush3.bf16.msra.mxu1 %v1237_v38 }
 0x547   :  { %3503 = vmatprep.subr.bf16.mxu1 %v1238_v37 }
 0x54a   :  { %3504 = vmatpush3.bf16.msra.mxu1 %v1238_v37 }
 0x5bf   :  { %v721_v39 = vpop.xlane.xlu0 %720 }
 0x5c0   :  { %v731_v40 = vsub.f32 %v705_v60, %v721_v39 }
 0x5c1   :  { %v724_v41 = vpop.xlane.xlu1 %723 }
 0x5c2   :  { %v735_v42 = vmul.f32 1.442695, %v731_v40  ;;  %v732_v43 = vsub.f32 %v708_v3, %v724_v41  ;;  %v3260_v40 = vunpack.c.l.bf16 %v3283_v25 }
 0x5c3   :  { %v727_v44 = vpop.xlane.xlu0 %726 }
 0x5c4   :  { %3793 = vpow2.f32 %v735_v42  ;;  %v737_v45 = vmul.f32 1.442695, %v732_v43  ;;  %v733_v46 = vsub.f32 %v713_v1, %v727_v44  ;;  %v3261_v43 = vunpack.c.h.bf16 %v3283_v25 }
 0x5c5   :  { %v730_v47 = vpop.xlane.xlu1 %729 }
 0x5c6   :  { %3795 = vpow2.f32 %v737_v45  ;;  %v739_v48 = vmul.f32 1.442695, %v733_v46  ;;  %v734_v49 = vsub.f32 %v716_v8, %v730_v47 }
 0x5c8   :  { %3797 = vpow2.f32 %v739_v48  ;;  %v741_v50 = vmul.f32 1.442695, %v734_v49 }
 0x5ca   :  { %3799 = vpow2.f32 %v741_v50 }
 0x5ce   :  { %v3794_v51 = vpop.eup %3793 }
 0x5cf   :  { %v743_v52 = vsel %vm258_vm1, %v3794_v51, 0.0 }
 0x5d0   :  { %v3796_v53 = vpop.eup %3795  ;;  %744 = vadd.xlane.f32.xlu0 %v743_v52 }
 0x5d1   :  { %v746_v54 = vsel %vm258_vm1, %v3796_v53, 0.0 }
 0x5d2   :  { %v3798_v55 = vpop.eup %3797  ;;  %747 = vadd.xlane.f32.xlu1 %v746_v54 }
 0x5d3   :  { %v749_v56 = vsel %vm258_vm1, %v3798_v55, 0.0 }
 0x5d4   :  { %v3800_v57 = vpop.eup %3799  ;;  %750 = vadd.xlane.f32.xlu0 %v749_v56 }
 0x5d5   :  { %v752_v58 = vsel %vm258_vm1, %v3800_v57, 0.0 }
 0x5d6   :  { %753 = vadd.xlane.f32.xlu1 %v752_v58 }
 0x65d   :  { %v745_v60 = vpop.xlane.xlu0 %744 }
 0x65e   :  { %3801 = vrcp.f32 %v745_v60 }
 0x65f   :  { %v748_v62 = vpop.xlane.xlu1 %747 }
 0x660   :  { %3803 = vrcp.f32 %v748_v62 }
 0x661   :  { %v751_v63 = vpop.xlane.xlu0 %750 }
 0x662   :  { %3805 = vrcp.f32 %v751_v63 }
 0x663   :  { %v754_v0 = vpop.xlane.xlu1 %753 }
 0x664   :  { %3807 = vrcp.f32 %v754_v0 }
 0x668   :  { %v3802_v1 = vpop.eup %3801 }
 0x669   :  { %v759_v5 = vmul.f32 %v3802_v1, %v3794_v51 }
 0x66a   :  { %v3804_v3 = vpop.eup %3803 }
 0x66b   :  { %v760_v8 = vmul.f32 %v3804_v3, %v3796_v53 }
 0x66c   :  { %v3806_v9 = vpop.eup %3805 }
 0x66d   :  { %v763_v11 = vpack.c.bf16 %v760_v8, %v759_v5  ;;  %v761_v13 = vmul.f32 %v3806_v9, %v3798_v55 }
 0x66e   :  { %v3808_v12 = vpop.eup %3807 }
 0x66f   :  { %v762_v14 = vmul.f32 %v3808_v12, %v3800_v57  ;;  %3459 = vmatprep.mubr.msk.bf16.mxu0 %vm258_vm1, %v763_v11 }
 0x671   :  { %v764_v15 = vpack.c.bf16 %v762_v14, %v761_v13 }
 0x673   :  { %3460 = vmatmul.mubr.msk.bf16.vlgmr.msra.gmra.mrb[4].mxu0 %vm258_vm1, %v764_v15  ;;  %v3742_v15 = vld [vmem:[%s4104_s1 + $0x8] sm:$0xff]   ;;  %s4282_s1 = sld [smem:[%s4438_s0 + %s3925_s28]]  }
 0x674   :  { %3464 = vmatpush3.bf16.msra.mxu0 %v3739_v59 }
 0x675   :  { %3477 = vmatprep.subr.bf16.mxu0 %v3740_v16 }
 0x746   :  { %v3461_v17 = vpop.f32.mrb[4].mxu0 }
 0x747   :  { %v807_v18 = vpop.f32.mrb[5].mxu0 }
 0x748   :  { %v3462_v19 = vpop.f32.mrb[6].mxu0 }
 0x749   :  { %v823_v20 = vpack.c.bf16 %v3462_v19, %v3461_v17  ;;  %v810_v21 = vpop.f32.mrb[7].mxu0 }
 0x74a   :  { %v822_v28 = vpack.c.bf16 %v810_v21, %v807_v18 }
 0x74c   :  { %3465 = vmatprep.mubr.msk.bf16.mxu0 %vm657_vm2, %v822_v28 }
 0x74d   :  { %3466 = vmatmul.mubr.msk.bf16.vlgmr.msra.gmra.mrb[8].mxu0 %vm657_vm2, %v823_v20 }
 0x74e   :  { %3478 = vmatpush3.bf16.msra.mxu0 %v3740_v16  ;;  %3481 = vmatprep.mubr.msk.bf16.mxu0 %vm258_vm1, %v4019_v2 }
 0x74f   :  { %3479 = vmatprep.subr.bf16.mxu0 %v3741_v29 }
 0x752   :  { %3480 = vmatpush3.bf16.msra.mxu0 %v3741_v29 }
 0x755   :  { %3482 = vmatmul.mubr.msk.bf16.vlgmr.msra.gmra.mrb[12].mxu0 %vm258_vm1, %v4025_v7 }
 0x756   :  { %3497 = vmatprep.mubr.msk.bf16.mxu0 %vm657_vm2, %v1117_v27  ;;  %v3284_v27 = vld [vmem:[%s4075_s27 + $0x18] sm:$0xff]   ;;  %s4276_s27 = sld [smem:[%s4438_s0 + %s3924_s24]]  }
 0x757   :  { %v3264_v41 = vunpack.c.l.bf16 %v3284_v27  ;;  %v3265_v46 = vunpack.c.h.bf16 %v3284_v27 }
 0x828   :  { %v3483_v30 = vpop.f32.mrb[12].mxu0 }
 0x829   :  { %v1028_v32 = vpop.f32.mrb[13].mxu0  ;;  %v1037_v34 = vadd.f32 %v3483_v30, %v3122_v31 }
 0x82a   :  { %v3484_v33 = vpop.f32.mrb[14].mxu0  ;;  %v1029_v2 = vadd.f32 %v3122_v31, %v1028_v32 }
 0x82b   :  { %v1040_v35 = vadd.f32 %v3484_v33, %v3122_v31  ;;  %v1031_v36 = vpop.f32.mrb[15].mxu0 }
 0x82c   :  { %v1032_v37 = vadd.f32 %v3122_v31, %v1031_v36 }
 0x82d   :  { %v1120_v38 = vpack.c.bf16 %v1040_v35, %v1037_v34 }
 0x82e   :  { %v1119_v39 = vpack.c.bf16 %v1032_v37, %v1029_v2 }
 0x82f   :  { %v1140_v24 = vsel %vm657_vm2, %v1120_v38, 0 }
 0x830   :  { %3681 = vmatprep.subr.msk.bf16.mxu0 %vm657_vm2, %v1119_v39  ;;  %v1137_v7 = vsel %vm657_vm2, %v1119_v39, 0 }
 0x831   :  { %3494 = vmatpush3.bf16.xpose.msra.mxu0 %v1137_v7 }
 0x832   :  { %3682 = vmatprep.subr.msk.bf16.mxu0 %vm657_vm2, %v1120_v38 }
 0x839   :  { %3496 = vmatpush3.bf16.xpose.msra.mxu0 %v1140_v24  ;;  %v3084_v24 = vld [vmem:[%s3049_s5] ss:$0 sm:$0xff]  ;;  %s4306_s5 = sld [smem:[%s4438_s0 + %s3926_s2]]  }
 0x83a   :  { %3509 = vmatprep.subr.bf16.mxu0 %v3742_v15  ;;  %v413_v27 = vadd.f32 %v3084_v24, %v3964_v61 }
 0x840   :  { %3498 = vmatmul.mubr.msk.bf16.vlgmr.msra.gmra.mrb[16].mxu0 %vm657_vm2, %v1118_v26 }
 0x841   :  { %3510 = vmatpush3.bf16.msra.mxu0 %v3742_v15 }
 0x913   :  { %v3499_v42 = vpop.f32.mrb[16].mxu0 }
 0x914   :  { %v1176_v44 = vpop.f32.mrb[17].mxu0  ;;  %v1185_v49 = vadd.f32 %v3499_v42, %v3264_v41  ;;  %v415_v41 = vadd.f32 %v3084_v24, %v3970_v6 }
 0x915   :  { %v1177_v45 = vadd.f32 %v3260_v40, %v1176_v44  ;;  %v3500_v47 = vpop.f32.mrb[18].mxu0  ;;  %v414_v44 = vadd.f32 %v3084_v24, %v3968_v4 }
 0x916   :  { %v1179_v48 = vpop.f32.mrb[19].mxu0  ;;  %v1188_v52 = vadd.f32 %v3500_v47, %v3265_v46  ;;  %v1197_v23 = vsel %vm258_vm1, %v1185_v49, -inf  ;;  %v416_v47 = vadd.f32 %v3084_v24, %v3976_v10 }
 0x917   :  { %v1180_v50 = vadd.f32 %v3261_v43, %v1179_v48  ;;  %v1191_v51 = vsel %vm258_vm1, %v1177_v45, -inf }
 0x918   :  { %1192 = vmax.xlane.f32.xlu0 %v1191_v51  ;;  %v1200_v26 = vsel %vm258_vm1, %v1188_v52, -inf }
 0x919   :  { %v1194_v22 = vsel %vm258_vm1, %v1180_v50, -inf }
 0x91a   :  { %1195 = vmax.xlane.f32.xlu1 %v1194_v22 }
 0x91c   :  { %1198 = vmax.xlane.f32.xlu0 %v1197_v23 }
 0x91e   :  { %1201 = vmax.xlane.f32.xlu1 %v1200_v26 }
 0x9a5   :  { %v1193_v53 = vpop.xlane.xlu0 %1192 }
 0x9a6   :  { %v1203_v54 = vsub.f32 %v1177_v45, %v1193_v53 }
 0x9a7   :  { %v1196_v55 = vpop.xlane.xlu1 %1195 }
 0x9a8   :  { %v1207_v56 = vmul.f32 1.442695, %v1203_v54  ;;  %v1204_v57 = vsub.f32 %v1180_v50, %v1196_v55 }
 0x9a9   :  { %v1199_v58 = vpop.xlane.xlu0 %1198 }
 0x9aa   :  { %3809 = vpow2.f32 %v1207_v56  ;;  %v1209_v59 = vmul.f32 1.442695, %v1204_v57  ;;  %v1205_v60 = vsub.f32 %v1185_v49, %v1199_v58 }
 0x9ab   :  { %v1202_v62 = vpop.xlane.xlu1 %1201 }
 0x9ac   :  { %3811 = vpow2.f32 %v1209_v59  ;;  %v1211_v63 = vmul.f32 1.442695, %v1205_v60  ;;  %v1206_v0 = vsub.f32 %v1188_v52, %v1202_v62 }
 0x9ae   :  { %3813 = vpow2.f32 %v1211_v63  ;;  %v1213_v1 = vmul.f32 1.442695, %v1206_v0 }
 0x9b0   :  { %3815 = vpow2.f32 %v1213_v1 }
 0x9b4   :  { %v3810_v3 = vpop.eup %3809 }
 0x9b5   :  { %v1215_v5 = vsel %vm258_vm1, %v3810_v3, 0.0 }
 0x9b6   :  { %v3812_v8 = vpop.eup %3811  ;;  %1216 = vadd.xlane.f32.xlu0 %v1215_v5 }
 0x9b7   :  { %v1218_v9 = vsel %vm258_vm1, %v3812_v8, 0.0 }
 0x9b8   :  { %v3814_v11 = vpop.eup %3813  ;;  %1219 = vadd.xlane.f32.xlu1 %v1218_v9  ;;  %v3744_v9 = vld [vmem:[%s3052_s9 + $0x8] sm:$0xff]  }
 0x9b9   :  { %v1221_v12 = vsel %vm258_vm1, %v3814_v11, 0.0 }
 0x9ba   :  { %v3816_v13 = vpop.eup %3815  ;;  %1222 = vadd.xlane.f32.xlu0 %v1221_v12 }
 0x9bb   :  { %v1224_v14 = vsel %vm258_vm1, %v3816_v13, 0.0 }
 0x9bc   :  { %1225 = vadd.xlane.f32.xlu1 %v1224_v14 }
 0xa43   :  { %v1217_v16 = vpop.xlane.xlu0 %1216 }
 0xa44   :  { %3817 = vrcp.f32 %v1217_v16 }
 0xa45   :  { %v1220_v17 = vpop.xlane.xlu1 %1219 }
 0xa46   :  { %3819 = vrcp.f32 %v1220_v17 }
 0xa47   :  { %v1223_v18 = vpop.xlane.xlu0 %1222 }
 0xa48   :  { %3821 = vrcp.f32 %v1223_v18 }
 0xa49   :  { %v1226_v19 = vpop.xlane.xlu1 %1225 }
 0xa4a   :  { %3823 = vrcp.f32 %v1226_v19 }
 0xa4e   :  { %v3818_v20 = vpop.eup %3817 }
 0xa4f   :  { %v1231_v28 = vmul.f32 %v3818_v20, %v3810_v3 }
 0xa50   :  { %v3820_v21 = vpop.eup %3819 }
 0xa51   :  { %v1232_v29 = vmul.f32 %v3820_v21, %v3812_v8  ;;  %v3743_v8 = vld [vmem:[%s3052_s9] sm:$0xff]   ;;  %s3935_s9 = smov 39  }
 0xa52   :  { %v3822_v30 = vpop.eup %3821  ;;  %3515 = vmatprep.subr.bf16.mxu1 %v3743_v8 }
 0xa53   :  { %v1235_v31 = vpack.c.bf16 %v1232_v29, %v1231_v28  ;;  %v1233_v33 = vmul.f32 %v3822_v30, %v3814_v11  ;;  %v3150_v30 = vld [vmem:[%s3050_s13] ss:$0 sm:$0xff] }
 0xa54   :  { %v3824_v32 = vpop.eup %3823 }
 0xa55   :  { %v1234_v34 = vmul.f32 %v3824_v32, %v3816_v13  ;;  %3505 = vmatprep.mubr.msk.bf16.mxu1 %vm258_vm1, %v1235_v31 }
 0xa57   :  { %v1236_v35 = vpack.c.bf16 %v1234_v34, %v1233_v33 }
 0xa59   :  { %3506 = vmatmul.mubr.msk.bf16.vlgmr.msra.gmra.mrb[24].mxu1 %vm258_vm1, %v1236_v35 }
 0xa5a   :  { %3516 = vmatpush3.bf16.msra.mxu1 %v3743_v8 }
 0xa5b   :  { %3517 = vmatprep.subr.bf16.mxu1 %v3744_v9 }
 0xa5e   :  { %3518 = vmatpush3.bf16.msra.mxu1 %v3744_v9 }
 0xb2c   :  { %v3507_v36 = vpop.f32.mrb[24].mxu1 }
 0xb2d   :  { %v1279_v2 = vpop.f32.mrb[25].mxu1 }
 0xb2e   :  { %v3508_v37 = vpop.f32.mrb[26].mxu1 }
 0xb2f   :  { %v1295_v38 = vpack.c.bf16 %v3508_v37, %v3507_v36  ;;  %v1282_v39 = vpop.f32.mrb[27].mxu1  ;;  %v3151_v36 = vld [vmem:[%s3051_s17] ss:$0 sm:$0xff]  ;;  %s3069_s17 = sld [smem:[%s4438_s0 + %s3929_s14]]  }
 0xb30   :  { %v1294_v7 = vpack.c.bf16 %v1282_v39, %v1279_v2 }
 0xb32   :  { %3511 = vmatprep.mubr.msk.bf16.mxu0 %vm657_vm2, %v1294_v7 }
 0xb33   :  { %3512 = vmatmul.mubr.msk.bf16.vlgmr.msra.gmra.mrb[8].mxu0 %vm657_vm2, %v1295_v38 }
 0xc06   :  { %v3513_v25 = vpop.f32.mrb[8].mxu0 }
 0xc07   :  { %v1345_v40 = vpop.f32.mrb[9].mxu0  ;;  %v4153_v46 = vadd.f32 %v3513_v25, %v415_v41 }
 0xc08   :  { %v4150_v42 = vadd.f32 %v1345_v40, %v413_v27  ;;  %v3514_v43 = vpop.f32.mrb[10].mxu0 }
 0xc09   :  { %v1348_v45 = vpop.f32.mrb[11].mxu0  ;;  %v4160_v61 = vadd.f32 %v3514_v43, %v416_v47  ;;  %v1372_v4 = vsel %vm258_vm1, %v4153_v46, 0.0  ;;  %v3746_v47 = vld [vmem:[%s3054_s21 + $0x8] sm:$0xff]  }
 0xc0a   :  { %v4156_v48 = vadd.f32 %v1348_v45, %v414_v44  ;;  %v1366_v49 = vsel %vm258_vm1, %v4150_v42, 0.0  ;;  %v3745_v45 = vld [vmem:[%s3054_s21] sm:$0xff]  }
 0xc0b   :  { %1367 = vadd.xlane.f32.xlu0 %v1366_v49  ;;  %v1375_v50 = vsel %vm258_vm1, %v4160_v61, 0.0  ;;  %3523 = vmatprep.subr.bf16.mxu1 %v3745_v45  ;;  %v3747_v49 = vld [vmem:[%s3054_s21 + $0x10] sm:$0xff]  }
 0xc0c   :  { %v1369_v6 = vsel %vm258_vm1, %v4156_v48, 0.0 }
 0xc0d   :  { %1370 = vadd.xlane.f32.xlu1 %v1369_v6  ;;  %v3748_v6 = vld [vmem:[%s3054_s21 + $0x18] sm:$0xff]  }
 0xc0f   :  { %1373 = vadd.xlane.f32.xlu0 %v1372_v4  ;;  %v3749_v4 = vld [vmem:[%s3054_s21 + $0x20] sm:$0xff]  }
 0xc11   :  { %1376 = vadd.xlane.f32.xlu1 %v1375_v50  ;;  %v3750_v50 = vld [vmem:[%s3054_s21 + $0x28] sm:$0xff]  }
 0xc98   :  { %v1368_v10 = vpop.xlane.xlu0 %1367 }
 0xc99   :  { %v1378_v51 = vmul.f32 0.03125, %v1368_v10  ;;  %v3751_v10 = vld [vmem:[%s3054_s21 + $0x30] sm:$0xff]  }
 0xc9a   :  { %v1371_v52 = vpop.xlane.xlu1 %1370 }
 0xc9b   :  { %v1382_v22 = vsub.f32 %v4150_v42, %v1378_v51  ;;  %v1379_v23 = vmul.f32 0.03125, %v1371_v52  ;;  %v3752_v51 = vld [vmem:[%s3054_s21 + $0x38] sm:$0xff]   ;;  %v3152_v52 = vld [vmem:[%s3053_s25] ss:$0 sm:$0xff]  ;;  %s3067_s21 = sld [smem:[%s4438_s0 + %s3930_s18]]  }
 0xc9c   :  { %v1374_v26 = vpop.xlane.xlu0 %1373  ;;  %s3068_s25 = sld [smem:[%s4438_s0 + %s3931_s22]]  }
 0xc9d   :  { %v1383_v53 = vsub.f32 %v4156_v48, %v1379_v23  ;;  %v1380_v54 = vmul.f32 0.03125, %v1374_v26  ;;  %v1386_v55 = vmul.f32 %v1382_v22, %v1382_v22 }
 0xc9e   :  { %v1377_v56 = vpop.xlane.xlu1 %1376 }
 0xc9f   :  { %v1384_v57 = vsub.f32 %v4153_v46, %v1380_v54  ;;  %v1381_v58 = vmul.f32 0.03125, %v1377_v56  ;;  %v1390_v59 = vsel %vm258_vm1, %v1386_v55, 0.0  ;;  %v1387_v60 = vmul.f32 %v1383_v53, %v1383_v53 }
 0xca0   :  { %1391 = vadd.xlane.f32.xlu0 %v1390_v59 }
 0xca1   :  { %v1385_v62 = vsub.f32 %v4160_v61, %v1381_v58  ;;  %v1393_v63 = vsel %vm258_vm1, %v1387_v60, 0.0  ;;  %v1388_v0 = vmul.f32 %v1384_v57, %v1384_v57 }
 0xca2   :  { %1394 = vadd.xlane.f32.xlu1 %v1393_v63 }
 0xca3   :  { %v1396_v1 = vsel %vm258_vm1, %v1388_v0, 0.0  ;;  %v1389_v3 = vmul.f32 %v1385_v62, %v1385_v62 }
 0xca4   :  { %1397 = vadd.xlane.f32.xlu0 %v1396_v1 }
 0xca5   :  { %v1399_v5 = vsel %vm258_vm1, %v1389_v3, 0.0 }
 0xca6   :  { %1400 = vadd.xlane.f32.xlu1 %v1399_v5 }
 0xd2d   :  { %v1392_v11 = vpop.xlane.xlu0 %1391 }
 0xd2e   :  { %v1402_v12 = vmul.f32 0.03125, %v1392_v11 }
 0xd2f   :  { %v1395_v13 = vpop.xlane.xlu1 %1394 }
 0xd30   :  { %v1406_v14 = vadd.f32 1e-05, %v1402_v12  ;;  %v1403_v15 = vmul.f32 0.03125, %v1395_v13 }
 0xd31   :  { %v1398_v16 = vpop.xlane.xlu0 %1397 }
 0xd32   :  { %3825 = vrsqrt.f32 %v1406_v14  ;;  %v1407_v17 = vadd.f32 1e-05, %v1403_v15  ;;  %v1404_v18 = vmul.f32 0.03125, %v1398_v16 }
 0xd33   :  { %v1401_v19 = vpop.xlane.xlu1 %1400 }
 0xd34   :  { %3827 = vrsqrt.f32 %v1407_v17  ;;  %v1408_v20 = vadd.f32 1e-05, %v1404_v18  ;;  %v1405_v21 = vmul.f32 0.03125, %v1401_v19 }
 0xd36   :  { %3829 = vrsqrt.f32 %v1408_v20  ;;  %v1409_v28 = vadd.f32 1e-05, %v1405_v21 }
 0xd38   :  { %3831 = vrsqrt.f32 %v1409_v28 }
 0xd3c   :  { %v3826_v29 = vpop.eup %3825 }
 0xd3d   :  { %v1414_v31 = vmul.f32 %v3826_v29, %v1382_v22 }
 0xd3e   :  { %v3828_v32 = vpop.eup %3827 }
 0xd3f   :  { %v1415_v33 = vmul.f32 %v3828_v32, %v1383_v53  ;;  %v1424_v34 = vmul.f32 %v3150_v30, %v1414_v31 }
 0xd40   :  { %v3830_v35 = vpop.eup %3829 }
 0xd41   :  { %v1416_v2 = vmul.f32 %v3830_v35, %v1384_v57  ;;  %v1425_v37 = vmul.f32 %v3150_v30, %v1415_v33  ;;  %v1434_v24 = vadd.f32 %v3151_v36, %v1424_v34 }
 0xd42   :  { %v3832_v38 = vpop.eup %3831 }
 0xd43   :  { %v1426_v39 = vmul.f32 %v3150_v30, %v1416_v2  ;;  %v1417_v7 = vmul.f32 %v3832_v38, %v1385_v62  ;;  %v1435_v25 = vadd.f32 %v3151_v36, %v1425_v37 }
 0xd45   :  { %v1427_v27 = vmul.f32 %v3150_v30, %v1417_v7  ;;  %v1442_v40 = vpack.c.bf16 %v1435_v25, %v1434_v24  ;;  %v1436_v41 = vadd.f32 %v3151_v36, %v1426_v39 }
 0xd47   :  { %3519 = vmatprep.mubr.msk.bf16.mxu1 %vm258_vm1, %v1442_v40  ;;  %v1437_v43 = vadd.f32 %v3151_v36, %v1427_v27  ;;  %v3157_v27 = vld [vmem:[%s3055_s29] ss:$0 sm:$0xff]  ;;  %s3071_s29 = sld [smem:[%s4438_s0 + %s3932_s26]]  }
 0xd49   :  { %v1443_v44 = vpack.c.bf16 %v1437_v43, %v1436_v41 }
 0xd4b   :  { %3520 = vmatmul.mubr.msk.bf16.vlgmr.msra.gmra.mrb[28].mxu1 %vm258_vm1, %v1443_v44 }
 0xd4c   :  { %3524 = vmatpush3.bf16.msra.mxu1 %v3745_v45 }
 0xd4d   :  { %3525 = vmatprep.subr.bf16.mxu1 %v3746_v47 }
 0xd50   :  { %3526 = vmatpush3.bf16.msra.mxu1 %v3746_v47 }
 0xd51   :  { %3527 = vmatprep.subr.bf16.mxu1 %v3747_v49 }
 0xd54   :  { %3528 = vmatpush3.bf16.msra.mxu1 %v3747_v49 }
 0xd55   :  { %3529 = vmatprep.subr.bf16.mxu1 %v3748_v6 }
 0xd58   :  { %3530 = vmatpush3.bf16.msra.mxu1 %v3748_v6 }
 0xd59   :  { %3531 = vmatprep.subr.bf16.mxu1 %v3749_v4 }
 0xd5c   :  { %3532 = vmatpush3.bf16.msra.mxu1 %v3749_v4 }
 0xd5d   :  { %3533 = vmatprep.subr.bf16.mxu1 %v3750_v50 }
 0xd60   :  { %3534 = vmatpush3.bf16.msra.mxu1 %v3750_v50 }
 0xd61   :  { %3535 = vmatprep.subr.bf16.mxu1 %v3751_v10 }
 0xd64   :  { %3536 = vmatpush3.bf16.msra.mxu1 %v3751_v10 }
 0xd65   :  { %3537 = vmatprep.subr.bf16.mxu1 %v3752_v51 }
 0xd68   :  { %3538 = vmatpush3.bf16.msra.mxu1 %v3752_v51 }
 0xe1e   :  { %v3521_v22 = vpop.f32.mrb[28].mxu1 }
 0xe1f   :  { %v1512_v23 = vadd.f32 %v3521_v22, %v3152_v52  ;;  %v1503_v26 = vpop.f32.mrb[29].mxu1 }
 0xe20   :  { %v1504_v53 = vadd.f32 %v3152_v52, %v1503_v26  ;;  %v3522_v54 = vpop.f32.mrb[30].mxu1 }
 0xe21   :  { %v1524_v55 = vmul.f32 0.044715, %v1512_v23  ;;  %v1515_v56 = vadd.f32 %v3522_v54, %v3152_v52  ;;  %v1506_v57 = vpop.f32.mrb[31].mxu1  ;;  %v1520_v32 = vmul.f32 0.5, %v1512_v23 }
 0xe22   :  { %v1522_v58 = vmul.f32 0.044715, %v1504_v53  ;;  %v1507_v59 = vadd.f32 %v3152_v52, %v1506_v57  ;;  %v1518_v35 = vmul.f32 0.5, %v1504_v53 }
 0xe23   :  { %v1528_v60 = vmul.f32 %v1524_v55, %v1512_v23  ;;  %v1525_v62 = vmul.f32 0.044715, %v1515_v56  ;;  %v1521_v33 = vmul.f32 0.5, %v1515_v56 }
 0xe24   :  { %v1526_v63 = vmul.f32 %v1522_v58, %v1504_v53  ;;  %v1523_v0 = vmul.f32 0.044715, %v1507_v59  ;;  %v1519_v36 = vmul.f32 0.5, %v1507_v59 }
 0xe25   :  { %v1532_v1 = vmul.f32 %v1528_v60, %v1512_v23  ;;  %v1529_v3 = vmul.f32 %v1525_v62, %v1515_v56 }
 0xe26   :  { %v1530_v5 = vmul.f32 %v1526_v63, %v1504_v53  ;;  %v1527_v8 = vmul.f32 %v1523_v0, %v1507_v59 }
 0xe27   :  { %v1536_v9 = vadd.f32 %v1532_v1, %v1512_v23  ;;  %v1533_v11 = vmul.f32 %v1529_v3, %v1515_v56 }
 0xe28   :  { %v1531_v12 = vmul.f32 %v1527_v8, %v1507_v59  ;;  %v1534_v13 = vadd.f32 %v1530_v5, %v1504_v53 }
 0xe29   :  { %v1540_v14 = vmul.f32 0.7978846, %v1536_v9  ;;  %v1537_v15 = vadd.f32 %v1533_v11, %v1515_v56  ;;  %v3753_v11 = vld [vmem:[%s4227_s3] sm:$0xff]  }
 0xe2a   :  { %v1535_v16 = vadd.f32 %v1531_v12, %v1507_v59  ;;  %v1538_v17 = vmul.f32 0.7978846, %v1534_v13  ;;  %3543 = vmatprep.subr.bf16.mxu0 %v3753_v11  ;;  %v3754_v12 = vld [vmem:[%s4227_s3 + $0x8] sm:$0xff]   ;;  %v3755_v13 = vld [vmem:[%s4233_s7] sm:$0xff]  }
 0xe2b   :  { %3833 = vtanh.f32 %v1540_v14  ;;  %v1541_v18 = vmul.f32 0.7978846, %v1537_v15  ;;  %3544 = vmatpush3.bf16.msra.mxu0 %v3753_v11 }
 0xe2c   :  { %v1539_v19 = vmul.f32 0.7978846, %v1535_v16  ;;  %3835 = vtanh.f32 %v1538_v17  ;;  %3545 = vmatprep.subr.bf16.mxu0 %v3754_v12 }
 0xe2d   :  { %3837 = vtanh.f32 %v1541_v18 }
 0xe2e   :  { %3839 = vtanh.f32 %v1539_v19 }
 0xe2f   :  { %3546 = vmatpush3.bf16.msra.mxu0 %v3754_v12 }
 0xe30   :  { %3551 = vmatprep.subr.bf16.mxu0 %v3755_v13 }
 0xe35   :  { %v3834_v20 = vpop.eup %3833 }
 0xe36   :  { %v3836_v21 = vpop.eup %3835  ;;  %v1548_v28 = vadd.f32 1.0, %v3834_v20 }
 0xe37   :  { %v3838_v29 = vpop.eup %3837  ;;  %v1546_v30 = vadd.f32 1.0, %v3836_v21 }
 0xe38   :  { %v3840_v31 = vpop.eup %3839  ;;  %v1549_v34 = vadd.f32 1.0, %v3838_v29  ;;  %v1552_v37 = vmul.f32 %v1548_v28, %v1520_v32 }
 0xe39   :  { %v1547_v2 = vadd.f32 1.0, %v3840_v31  ;;  %v1550_v39 = vmul.f32 %v1546_v30, %v1518_v35 }
 0xe3a   :  { %v1553_v38 = vmul.f32 %v1549_v34, %v1521_v33  ;;  %v3166_v33 = vld [vmem:[%s3056_s15] ss:$0 sm:$0xff] }
 0xe3b   :  { %v1551_v7 = vmul.f32 %v1547_v2, %v1519_v36 }
 0xe3c   :  { %v1571_v24 = vpack.c.bf16 %v1553_v38, %v1552_v37  ;;  %v3167_v38 = vld [vmem:[%s3057_s19] ss:$0 sm:$0xff] }
 0xe3d   :  { %v1570_v25 = vpack.c.bf16 %v1551_v7, %v1550_v39 }
 0xe3f   :  { %3539 = vmatprep.mubr.bf16.mxu1 %v1570_v25 }
 0xe40   :  { %3540 = vmatmul.mubr.bf16.vlgmr.msra.gmra.mrb[32].mxu1 %v1571_v24 }
 0xf13   :  { %v3541_v40 = vpop.f32.mrb[32].mxu1 }
 0xf14   :  { %v1661_v41 = vpop.f32.mrb[33].mxu1  ;;  %v1670_v43 = vadd.f32 %v3541_v40, %v3157_v27 }
 0xf15   :  { %v1662_v44 = vadd.f32 %v3157_v27, %v1661_v41  ;;  %v3542_v45 = vpop.f32.mrb[34].mxu1 }
 0xf16   :  { %v1664_v47 = vpop.f32.mrb[35].mxu1  ;;  %v1673_v6 = vadd.f32 %v3542_v45, %v3157_v27  ;;  %v4200_v50 = vadd.f32 %v4153_v46, %v1670_v43 }
 0xf17   :  { %v4197_v49 = vadd.f32 %v4150_v42, %v1662_v44  ;;  %v1665_v4 = vadd.f32 %v3157_v27, %v1664_v47 }
 0xf18   :  { %v4208_v52 = vadd.f32 %v4160_v61, %v1673_v6  ;;  %v1688_v42 = vsel %vm258_vm1, %v4200_v50, 0.0 }
 0xf19   :  { %v4203_v10 = vadd.f32 %v4156_v48, %v1665_v4  ;;  %v1682_v51 = vsel %vm258_vm1, %v4197_v49, 0.0  ;;  %v3756_v4 = vld [vmem:[%s4233_s7 + $0x8] sm:$0xff]  }
 0xf1a   :  { %1683 = vadd.xlane.f32.xlu0 %v1682_v51  ;;  %v1691_v46 = vsel %vm258_vm1, %v4208_v52, 0.0  ;;  %v3757_v51 = vld [vmem:[%s4240_s11] sm:$0xff]  }
 0xf1b   :  { %v1685_v22 = vsel %vm258_vm1, %v4203_v10, 0.0 }
 0xf1c   :  { %1686 = vadd.xlane.f32.xlu1 %v1685_v22  ;;  %v3758_v22 = vld [vmem:[%s4240_s11 + $0x8] sm:$0xff]  }
 0xf1e   :  { %1689 = vadd.xlane.f32.xlu0 %v1688_v42  ;;  %v3169_v42 = vld [vmem:[%s4270_s23] ss:$0 sm:$0xff] }
 0xf20   :  { %1692 = vadd.xlane.f32.xlu1 %v1691_v46 }
 0xfa7   :  { %v1684_v48 = vpop.xlane.xlu0 %1683 }
 0xfa8   :  { %v1694_v23 = vmul.f32 0.03125, %v1684_v48 }
 0xfa9   :  { %v1687_v26 = vpop.xlane.xlu1 %1686 }
 0xfaa   :  { %v1698_v53 = vsub.f32 %v4197_v49, %v1694_v23  ;;  %v1695_v54 = vmul.f32 0.03125, %v1687_v26 }
 0xfab   :  { %v1690_v61 = vpop.xlane.xlu0 %1689 }
 0xfac   :  { %v1699_v55 = vsub.f32 %v4203_v10, %v1695_v54  ;;  %v1696_v56 = vmul.f32 0.03125, %v1690_v61  ;;  %v1702_v57 = vmul.f32 %v1698_v53, %v1698_v53 }
 0xfad   :  { %v1693_v58 = vpop.xlane.xlu1 %1692 }
 0xfae   :  { %v1700_v59 = vsub.f32 %v4200_v50, %v1696_v56  ;;  %v1697_v60 = vmul.f32 0.03125, %v1693_v58  ;;  %v1706_v62 = vsel %vm258_vm1, %v1702_v57, 0.0  ;;  %v1703_v63 = vmul.f32 %v1699_v55, %v1699_v55 }
 0xfaf   :  { %1707 = vadd.xlane.f32.xlu0 %v1706_v62 }
 0xfb0   :  { %v1701_v0 = vsub.f32 %v4208_v52, %v1697_v60  ;;  %v1709_v1 = vsel %vm258_vm1, %v1703_v63, 0.0  ;;  %v1704_v3 = vmul.f32 %v1700_v59, %v1700_v59 }
 0xfb1   :  { %1710 = vadd.xlane.f32.xlu1 %v1709_v1 }
 0xfb2   :  { %v1712_v5 = vsel %vm258_vm1, %v1704_v3, 0.0  ;;  %v1705_v8 = vmul.f32 %v1701_v0, %v1701_v0 }
 0xfb3   :  { %1713 = vadd.xlane.f32.xlu0 %v1712_v5 }
 0xfb4   :  { %v1715_v9 = vsel %vm258_vm1, %v1705_v8, 0.0 }
 0xfb5   :  { %1716 = vadd.xlane.f32.xlu1 %v1715_v9 }
0x103c   :  { %v1708_v14 = vpop.xlane.xlu0 %1707 }
0x103d   :  { %v1718_v15 = vmul.f32 0.03125, %v1708_v14 }
0x103e   :  { %v1711_v16 = vpop.xlane.xlu1 %1710 }
0x103f   :  { %v1722_v17 = vadd.f32 1e-05, %v1718_v15  ;;  %v1719_v18 = vmul.f32 0.03125, %v1711_v16  ;;  %v3179_v16 = vld [vmem:[%s4282_s1] ss:$0 sm:$0xff] }
0x1040   :  { %v1714_v19 = vpop.xlane.xlu0 %1713 }
0x1041   :  { %3841 = vrsqrt.f32 %v1722_v17  ;;  %v1723_v20 = vadd.f32 1e-05, %v1719_v18  ;;  %v1720_v21 = vmul.f32 0.03125, %v1714_v19 }
0x1042   :  { %v1717_v28 = vpop.xlane.xlu1 %1716 }
0x1043   :  { %3843 = vrsqrt.f32 %v1723_v20  ;;  %v1724_v29 = vadd.f32 1e-05, %v1720_v21  ;;  %v1721_v30 = vmul.f32 0.03125, %v1717_v28 }
0x1045   :  { %3845 = vrsqrt.f32 %v1724_v29  ;;  %v1725_v31 = vadd.f32 1e-05, %v1721_v30 }
0x1047   :  { %3847 = vrsqrt.f32 %v1725_v31 }
0x104b   :  { %v3842_v32 = vpop.eup %3841 }
0x104c   :  { %v1730_v34 = vmul.f32 %v3842_v32, %v1698_v53 }
0x104d   :  { %v3844_v35 = vpop.eup %3843 }
0x104e   :  { %v1740_v36 = vmul.f32 %v3166_v33, %v1730_v34  ;;  %v1731_v2 = vmul.f32 %v3844_v35, %v1699_v55  ;;  %v3760_v35 = vld [vmem:[%s4227_s3 + $0x18] sm:$0xff]  }
0x104f   :  { %v3846_v37 = vpop.eup %3845 }
0x1050   :  { %v1741_v39 = vmul.f32 %v3166_v33, %v1731_v2  ;;  %v1732_v7 = vmul.f32 %v3846_v37, %v1700_v59  ;;  %v1750_v25 = vadd.f32 %v3167_v38, %v1740_v36  ;;  %v3761_v36 = vld [vmem:[%s4240_s11 + $0x10] sm:$0xff]   ;;  %v3762_v2 = vld [vmem:[%s4240_s11 + $0x18] sm:$0xff]   ;;  %v3267_v37 = vld [vmem:[%s4306_s5] sm:$0xff]   ;;  %s3073_s11 = sld [smem:[%s4438_s0 + %s3935_s9]]  }
0x1051   :  { %v3848_v24 = vpop.eup %3847 }
0x1052   :  { %v1751_v27 = vadd.f32 %v3167_v38, %v1741_v39  ;;  %v1742_v40 = vmul.f32 %v3166_v33, %v1732_v7  ;;  %v1733_v41 = vmul.f32 %v3848_v24, %v1701_v0  ;;  %v3174_v0 = vld [vmem:[%s4276_s27] ss:$0 sm:$0xff]  ;;  %v3268_v39 = vunpack.c.l.bf16 %v3267_v37 }
0x1054   :  { %v1743_v43 = vmul.f32 %v3166_v33, %v1733_v41  ;;  %v4248_v44 = vpack.c.bf16 %v1751_v27, %v1750_v25  ;;  %v1752_v45 = vadd.f32 %v3167_v38, %v1742_v40  ;;  %v3759_v33 = vld [vmem:[%s4227_s3 + $0x10] sm:$0xff]   ;;  %v3269_v25 = vunpack.c.h.bf16 %v3267_v37  ;;  %s3070_s3 = sld [smem:[%s4438_s0 + %s3933_s30]]  }
0x1056   :  { %v1753_v47 = vadd.f32 %v3167_v38, %v1743_v43  ;;  %3547 = vmatprep.mubr.msk.bf16.mxu0 %vm258_vm1, %v4248_v44  ;;  %v3285_v38 = vld [vmem:[%s4306_s5 + $0x8] sm:$0xff]  }
0x1057   :  { %v3272_v7 = vunpack.c.l.bf16 %v3285_v38  ;;  %v3273_v41 = vunpack.c.h.bf16 %v3285_v38 }
0x1058   :  { %v4252_v6 = vpack.c.bf16 %v1753_v47, %v1752_v45 }
0x105a   :  { %3548 = vmatmul.mubr.msk.bf16.vlgmr.msra.gmra.mrb[20].mxu0 %vm258_vm1, %v4252_v6 }
0x105b   :  { %3552 = vmatpush3.bf16.msra.mxu0 %v3755_v13  ;;  %3555 = vmatprep.mubr.msk.bf16.mxu0 %vm258_vm1, %v4248_v44 }
0x105c   :  { %3553 = vmatprep.subr.bf16.mxu0 %v3756_v4 }
0x105f   :  { %3554 = vmatpush3.bf16.msra.mxu0 %v3756_v4 }
0x1060   :  { %3559 = vmatprep.subr.bf16.mxu0 %v3757_v51 }
0x1062   :  { %3556 = vmatmul.mubr.msk.bf16.vlgmr.msra.gmra.mrb[24].mxu0 %vm258_vm1, %v4252_v6 }
0x1063   :  { %3560 = vmatpush3.bf16.msra.mxu0 %v3757_v51  ;;  %3563 = vmatprep.mubr.msk.bf16.mxu0 %vm258_vm1, %v4248_v44 }
0x1064   :  { %3561 = vmatprep.subr.bf16.mxu0 %v3758_v22 }
0x1067   :  { %3562 = vmatpush3.bf16.msra.mxu0 %v3758_v22 }
0x106a   :  { %3564 = vmatmul.mubr.msk.bf16.vlgmr.msra.gmra.mrb[28].mxu0 %vm258_vm1, %v4252_v6 }
0x112d   :  { %v3549_v46 = vpop.f32.mrb[20].mxu0 }
0x112e   :  { %v1839_v48 = vadd.f32 %v3549_v46, %v3169_v42  ;;  %v1830_v23 = vpop.f32.mrb[21].mxu0  ;;  %v3196_v46 = vld [vmem:[%s4270_s23 + $0x1] ss:$0 sm:$0xff] }
0x112f   :  { %v1831_v26 = vadd.f32 %v3169_v42, %v1830_v23  ;;  %v3550_v53 = vpop.f32.mrb[22].mxu0 }
0x1130   :  { %v1842_v54 = vadd.f32 %v3550_v53, %v3169_v42  ;;  %v1833_v61 = vpop.f32.mrb[23].mxu0  ;;  %v1847_v56 = vmul.f32 0.25, %v1839_v48 }
0x1131   :  { %v1834_v55 = vadd.f32 %v3169_v42, %v1833_v61  ;;  %v1845_v58 = vmul.f32 0.25, %v1831_v26 }
0x1132   :  { %v1848_v57 = vmul.f32 0.25, %v1842_v54 }
0x1133   :  { %v1846_v59 = vmul.f32 0.25, %v1834_v55 }
0x1134   :  { %v1994_v60 = vpack.c.bf16 %v1848_v57, %v1847_v56 }
0x1135   :  { %v1993_v62 = vpack.c.bf16 %v1846_v59, %v1845_v58  ;;  %v3557_v63 = vpop.f32.mrb[24].mxu0 }
0x1136   :  { %v1906_v1 = vpop.f32.mrb[25].mxu0  ;;  %v1915_v5 = vadd.f32 %v3557_v63, %v3174_v0 }
0x1137   :  { %v3558_v3 = vpop.f32.mrb[26].mxu0  ;;  %3571 = vmatprep.mubr.msk.bf16.mxu0 %vm657_vm2, %v1993_v62  ;;  %v1907_v11 = vadd.f32 %v3174_v0, %v1906_v1 }
0x1138   :  { %v1918_v8 = vadd.f32 %v3558_v3, %v3174_v0  ;;  %v1909_v9 = vpop.f32.mrb[27].mxu0 }
0x1139   :  { %v1910_v12 = vadd.f32 %v3174_v0, %v1909_v9 }
0x113a   :  { %v1996_v13 = vpack.c.bf16 %v1918_v8, %v1915_v5  ;;  %v3216_v5 = vld [vmem:[%s4282_s1 + $0x1] ss:$0 sm:$0xff] }
0x113b   :  { %v1995_v14 = vpack.c.bf16 %v1910_v12, %v1907_v11 }
0x113c   :  { %v2015_v34 = vsel %vm657_vm2, %v1996_v13, 0 }
0x113d   :  { %v3565_v15 = vpop.f32.mrb[28].mxu0  ;;  %3683 = vmatprep.subr.msk.bf16.mxu0 %vm657_vm2, %v1995_v14  ;;  %v2012_v17 = vsel %vm657_vm2, %v1995_v14, 0 }
0x113e   :  { %v1978_v18 = vpop.f32.mrb[29].mxu0  ;;  %3568 = vmatpush3.bf16.xpose.msra.mxu0 %v2012_v17  ;;  %v1987_v20 = vadd.f32 %v3565_v15, %v3179_v16 }
0x113f   :  { %v3566_v19 = vpop.f32.mrb[30].mxu0  ;;  %3684 = vmatprep.subr.msk.bf16.mxu0 %vm657_vm2, %v1996_v13  ;;  %v1979_v29 = vadd.f32 %v3179_v16, %v1978_v18 }
0x1140   :  { %v1990_v21 = vadd.f32 %v3566_v19, %v3179_v16  ;;  %v1981_v28 = vpop.f32.mrb[31].mxu0 }
0x1141   :  { %v1982_v30 = vadd.f32 %v3179_v16, %v1981_v28 }
0x1142   :  { %v2113_v31 = vpack.c.bf16 %v1990_v21, %v1987_v20 }
0x1143   :  { %v2112_v32 = vpack.c.bf16 %v1982_v30, %v1979_v29 }
0x1145   :  { %3575 = vmatprep.subr.bf16.mxu1 %v2112_v32 }
0x1146   :  { %3570 = vmatpush3.bf16.xpose.msra.mxu0 %v2015_v34  ;;  %3576 = vmatpush3.bf16.msra.mxu1 %v2112_v32 }
0x1147   :  { %3577 = vmatprep.subr.bf16.mxu1 %v2113_v31  ;;  %3589 = vmatprep.subr.bf16.mxu0 %v3759_v33 }
0x114a   :  { %3578 = vmatpush3.bf16.msra.mxu1 %v2113_v31 }
0x114d   :  { %3572 = vmatmul.mubr.msk.bf16.vlgmr.msra.gmra.mrb[32].mxu0 %vm657_vm2, %v1994_v60 }
0x114e   :  { %3590 = vmatpush3.bf16.msra.mxu0 %v3759_v33  ;;  %3593 = vmatprep.mubr.msk.bf16.mxu0 %vm258_vm1, %v4248_v44 }
0x114f   :  { %3591 = vmatprep.subr.bf16.mxu0 %v3760_v35 }
0x1152   :  { %3592 = vmatpush3.bf16.msra.mxu0 %v3760_v35 }
0x1153   :  { %3605 = vmatprep.subr.bf16.mxu0 %v3761_v36 }
0x1155   :  { %3594 = vmatmul.mubr.msk.bf16.vlgmr.msra.gmra.mrb[36].mxu0 %vm258_vm1, %v4252_v6 }
0x1156   :  { %3606 = vmatpush3.bf16.msra.mxu0 %v3761_v36  ;;  %3609 = vmatprep.mubr.msk.bf16.mxu0 %vm258_vm1, %v4248_v44 }
0x1157   :  { %3607 = vmatprep.subr.bf16.mxu0 %v3762_v2 }
0x115a   :  { %3608 = vmatpush3.bf16.msra.mxu0 %v3762_v2 }
0x115d   :  { %3610 = vmatmul.mubr.msk.bf16.vlgmr.msra.gmra.mrb[40].mxu0 %vm258_vm1, %v4252_v6 }
0x1220   :  { %v3573_v24 = vpop.f32.mrb[32].mxu0 }
0x1221   :  { %v2051_v27 = vpop.f32.mrb[33].mxu0  ;;  %v2060_v47 = vadd.f32 %v3573_v24, %v3272_v7 }
0x1222   :  { %v2052_v40 = vadd.f32 %v3268_v39, %v2051_v27  ;;  %v3574_v43 = vpop.f32.mrb[34].mxu0  ;;  %v3763_v27 = vld [vmem:[%s4335_s10] sm:$0xff]  }
0x1223   :  { %v2054_v45 = vpop.f32.mrb[35].mxu0  ;;  %v2063_v22 = vadd.f32 %v3574_v43, %v3273_v41  ;;  %v2072_v23 = vsel %vm258_vm1, %v2060_v47, -inf  ;;  %3583 = vmatprep.subr.bf16.mxu1 %v3763_v27 }
0x1224   :  { %v2055_v4 = vadd.f32 %v3269_v25, %v2054_v45  ;;  %v2066_v51 = vsel %vm258_vm1, %v2052_v40, -inf }
0x1225   :  { %2067 = vmax.xlane.f32.xlu0 %v2066_v51  ;;  %v2075_v55 = vsel %vm258_vm1, %v2063_v22, -inf }
0x1226   :  { %v2069_v42 = vsel %vm258_vm1, %v2055_v4, -inf }
0x1227   :  { %2070 = vmax.xlane.f32.xlu1 %v2069_v42 }
0x1228   :  { %v3595_v48 = vpop.f32.mrb[36].mxu0 }
0x1229   :  { %v2306_v26 = vadd.f32 %v3595_v48, %v3196_v46  ;;  %v2297_v53 = vpop.f32.mrb[37].mxu0  ;;  %2073 = vmax.xlane.f32.xlu0 %v2072_v23 }
0x122a   :  { %v2298_v54 = vadd.f32 %v3196_v46, %v2297_v53  ;;  %v3596_v61 = vpop.f32.mrb[38].mxu0 }
0x122b   :  { %v2309_v56 = vadd.f32 %v3596_v61, %v3196_v46  ;;  %v2300_v57 = vpop.f32.mrb[39].mxu0  ;;  %2076 = vmax.xlane.f32.xlu1 %v2075_v55  ;;  %v4315_v59 = vmul.f32 0.25, %v2306_v26 }
0x122c   :  { %v2301_v58 = vadd.f32 %v3196_v46, %v2300_v57  ;;  %v4319_v62 = vmul.f32 0.25, %v2298_v54  ;;  %v3764_v54 = vld [vmem:[%s4233_s7 + $0x10] sm:$0xff]  }
0x122d   :  { %v4317_v60 = vmul.f32 0.25, %v2309_v56 }
0x122e   :  { %v4321_v63 = vmul.f32 0.25, %v2301_v58 }
0x122f   :  { %v2465_v0 = vpack.c.bf16 %v4317_v60, %v4315_v59 }
0x1230   :  { %v2464_v1 = vpack.c.bf16 %v4321_v63, %v4319_v62  ;;  %v3611_v3 = vpop.f32.mrb[40].mxu0  ;;  %v3286_v63 = vld [vmem:[%s4306_s5 + $0x10] sm:$0xff]  }
0x1231   :  { %v2449_v8 = vpop.f32.mrb[41].mxu0  ;;  %v2458_v11 = vadd.f32 %v3611_v3, %v3216_v5 }
0x1232   :  { %v3612_v9 = vpop.f32.mrb[42].mxu0  ;;  %v2450_v14 = vadd.f32 %v3216_v5, %v2449_v8 }
0x1233   :  { %v2461_v12 = vadd.f32 %v3612_v9, %v3216_v5  ;;  %v2452_v13 = vpop.f32.mrb[43].mxu0  ;;  %v3206_v9 = vld [vmem:[%s4276_s27 + $0x1] ss:$0 sm:$0xff] }
0x1234   :  { %v2453_v15 = vadd.f32 %v3216_v5, %v2452_v13  ;;  %v3765_v5 = vld [vmem:[%s4233_s7 + $0x18] sm:$0xff]   ;;  %s3928_s7 = smov 32  }
0x1235   :  { %v2585_v16 = vpack.c.bf16 %v2461_v12, %v2458_v11  ;;  %s3066_s13 = sld [smem:[%s4438_s0 + %s3928_s7]]  }
0x1236   :  { %v2584_v17 = vpack.c.bf16 %v2453_v15, %v2450_v14 }
0x1238   :  { %3621 = vmatprep.subr.bf16.mxu0 %v2584_v17 }
0x1239   :  { %3622 = vmatpush3.bf16.msra.mxu0 %v2584_v17 }
0x123a   :  { %3623 = vmatprep.subr.bf16.mxu0 %v2585_v16 }
0x123d   :  { %3624 = vmatpush3.bf16.msra.mxu0 %v2585_v16 }
0x12b2   :  { %v2068_v18 = vpop.xlane.xlu0 %2067 }
0x12b3   :  { %v2078_v19 = vsub.f32 %v2052_v40, %v2068_v18 }
0x12b4   :  { %v2071_v20 = vpop.xlane.xlu1 %2070 }
0x12b5   :  { %v2082_v21 = vmul.f32 1.442695, %v2078_v19  ;;  %v2079_v28 = vsub.f32 %v2055_v4, %v2071_v20  ;;  %v3276_v19 = vunpack.c.l.bf16 %v3286_v63 }
0x12b6   :  { %v2074_v29 = vpop.xlane.xlu0 %2073 }
0x12b7   :  { %3849 = vpow2.f32 %v2082_v21  ;;  %v2084_v30 = vmul.f32 1.442695, %v2079_v28  ;;  %v2080_v31 = vsub.f32 %v2060_v47, %v2074_v29  ;;  %v3277_v28 = vunpack.c.h.bf16 %v3286_v63 }
0x12b8   :  { %v2077_v32 = vpop.xlane.xlu1 %2076 }
0x12b9   :  { %3851 = vpow2.f32 %v2084_v30  ;;  %v2086_v33 = vmul.f32 1.442695, %v2080_v31  ;;  %v2081_v34 = vsub.f32 %v2063_v22, %v2077_v32 }
0x12bb   :  { %3853 = vpow2.f32 %v2086_v33  ;;  %v2088_v35 = vmul.f32 1.442695, %v2081_v34 }
0x12bd   :  { %3855 = vpow2.f32 %v2088_v35 }
0x12c1   :  { %v3850_v36 = vpop.eup %3849 }
0x12c2   :  { %v2090_v2 = vsel %vm258_vm1, %v3850_v36, 0.0 }
0x12c3   :  { %v3852_v37 = vpop.eup %3851  ;;  %2091 = vadd.xlane.f32.xlu0 %v2090_v2 }
0x12c4   :  { %v2093_v38 = vsel %vm258_vm1, %v3852_v37, 0.0 }
0x12c5   :  { %v3854_v39 = vpop.eup %3853  ;;  %2094 = vadd.xlane.f32.xlu1 %v2093_v38 }
0x12c6   :  { %v2096_v7 = vsel %vm258_vm1, %v3854_v39, 0.0 }
0x12c7   :  { %v3856_v24 = vpop.eup %3855  ;;  %2097 = vadd.xlane.f32.xlu0 %v2096_v7 }
0x12c8   :  { %v2099_v25 = vsel %vm258_vm1, %v3856_v24, 0.0 }
0x12c9   :  { %2100 = vadd.xlane.f32.xlu1 %v2099_v25 }
0x1350   :  { %v2092_v40 = vpop.xlane.xlu0 %2091 }
0x1351   :  { %3857 = vrcp.f32 %v2092_v40 }
0x1352   :  { %v2095_v41 = vpop.xlane.xlu1 %2094 }
0x1353   :  { %3859 = vrcp.f32 %v2095_v41 }
0x1354   :  { %v2098_v43 = vpop.xlane.xlu0 %2097 }
0x1355   :  { %3861 = vrcp.f32 %v2098_v43 }
0x1356   :  { %v2101_v45 = vpop.xlane.xlu1 %2100 }
0x1357   :  { %3863 = vrcp.f32 %v2101_v45 }
0x135b   :  { %v3858_v47 = vpop.eup %3857 }
0x135c   :  { %v2106_v51 = vmul.f32 %v3858_v47, %v3850_v36 }
0x135d   :  { %v3860_v4 = vpop.eup %3859 }
0x135e   :  { %v2107_v22 = vmul.f32 %v3860_v4, %v3852_v37 }
0x135f   :  { %v3862_v42 = vpop.eup %3861 }
0x1360   :  { %v2110_v46 = vpack.c.bf16 %v2107_v22, %v2106_v51  ;;  %v2108_v23 = vmul.f32 %v3862_v42, %v3854_v39 }
0x1361   :  { %v3864_v48 = vpop.eup %3863 }
0x1362   :  { %v2109_v26 = vmul.f32 %v3864_v48, %v3856_v24  ;;  %3579 = vmatprep.mubr.msk.bf16.mxu1 %vm258_vm1, %v2110_v46 }
0x1364   :  { %v2111_v53 = vpack.c.bf16 %v2109_v26, %v2108_v23 }
0x1366   :  { %3580 = vmatmul.mubr.msk.bf16.vlgmr.msra.gmra.mrb[36].mxu1 %vm258_vm1, %v2111_v53  ;;  %v3766_v53 = vld [vmem:[%s4335_s10 + $0x8] sm:$0xff]  }
0x1367   :  { %3584 = vmatpush3.bf16.msra.mxu1 %v3763_v27 }
0x1368   :  { %3597 = vmatprep.subr.bf16.mxu1 %v3764_v54 }
0x1439   :  { %v3581_v61 = vpop.f32.mrb[36].mxu1 }
0x143a   :  { %v2154_v55 = vpop.f32.mrb[37].mxu1 }
0x143b   :  { %v3582_v56 = vpop.f32.mrb[38].mxu1 }
0x143c   :  { %v2170_v57 = vpack.c.bf16 %v3582_v56, %v3581_v61  ;;  %v2157_v58 = vpop.f32.mrb[39].mxu1 }
0x143d   :  { %v2169_v3 = vpack.c.bf16 %v2157_v58, %v2154_v55 }
0x143f   :  { %3585 = vmatprep.mubr.msk.bf16.mxu1 %vm657_vm2, %v2169_v3 }
0x1440   :  { %3586 = vmatmul.mubr.msk.bf16.vlgmr.msra.gmra.mrb[40].mxu1 %vm657_vm2, %v2170_v57 }
0x1441   :  { %3598 = vmatpush3.bf16.msra.mxu1 %v3764_v54  ;;  %3601 = vmatprep.mubr.msk.bf16.mxu1 %vm258_vm1, %v4248_v44 }
0x1442   :  { %3599 = vmatprep.subr.bf16.mxu1 %v3765_v5 }
0x1445   :  { %3600 = vmatpush3.bf16.msra.mxu1 %v3765_v5 }
0x1448   :  { %3602 = vmatmul.mubr.msk.bf16.vlgmr.msra.gmra.mrb[44].mxu1 %vm258_vm1, %v4252_v6 }
0x1449   :  { %3617 = vmatprep.mubr.msk.bf16.mxu1 %vm657_vm2, %v2464_v1  ;;  %v3287_v1 = vld [vmem:[%s4306_s5 + $0x18] sm:$0xff]  }
0x144a   :  { %v3280_v20 = vunpack.c.l.bf16 %v3287_v1  ;;  %v3281_v31 = vunpack.c.h.bf16 %v3287_v1 }
0x151b   :  { %v3603_v8 = vpop.f32.mrb[44].mxu1 }
0x151c   :  { %v2375_v11 = vpop.f32.mrb[45].mxu1  ;;  %v2384_v13 = vadd.f32 %v3603_v8, %v3206_v9 }
0x151d   :  { %v3604_v12 = vpop.f32.mrb[46].mxu1  ;;  %v2376_v44 = vadd.f32 %v3206_v9, %v2375_v11 }
0x151e   :  { %v2387_v14 = vadd.f32 %v3604_v12, %v3206_v9  ;;  %v2378_v15 = vpop.f32.mrb[47].mxu1 }
0x151f   :  { %v2379_v16 = vadd.f32 %v3206_v9, %v2378_v15 }
0x1520   :  { %v2467_v17 = vpack.c.bf16 %v2387_v14, %v2384_v13 }
0x1521   :  { %v2466_v18 = vpack.c.bf16 %v2379_v16, %v2376_v44 }
0x1522   :  { %v2487_v62 = vsel %vm657_vm2, %v2467_v17, 0 }
0x1523   :  { %3685 = vmatprep.subr.msk.bf16.mxu1 %vm657_vm2, %v2466_v18  ;;  %v2484_v6 = vsel %vm657_vm2, %v2466_v18, 0 }
0x1524   :  { %3614 = vmatpush3.bf16.xpose.msra.mxu1 %v2484_v6 }
0x1525   :  { %3686 = vmatprep.subr.msk.bf16.mxu1 %vm657_vm2, %v2467_v17 }
0x152c   :  { %3616 = vmatpush3.bf16.xpose.msra.mxu1 %v2487_v62  ;;  %v3168_v62 = vld [vmem:[%s3066_s13] ss:$0 sm:$0xff] }
0x152d   :  { %3629 = vmatprep.subr.bf16.mxu1 %v3766_v53  ;;  %v1761_v1 = vadd.f32 %v3168_v62, %v4197_v49 }
0x1533   :  { %3618 = vmatmul.mubr.msk.bf16.vlgmr.msra.gmra.mrb[48].mxu1 %vm657_vm2, %v2465_v0 }
0x1534   :  { %3630 = vmatpush3.bf16.msra.mxu1 %v3766_v53 }
0x1606   :  { %v3619_v21 = vpop.f32.mrb[48].mxu1 }
0x1607   :  { %v2523_v29 = vpop.f32.mrb[49].mxu1  ;;  %v2532_v34 = vadd.f32 %v3619_v21, %v3280_v20  ;;  %v1763_v20 = vadd.f32 %v3168_v62, %v4200_v50 }
0x1608   :  { %v2524_v30 = vadd.f32 %v3276_v19, %v2523_v29  ;;  %v3620_v32 = vpop.f32.mrb[50].mxu1  ;;  %v1762_v29 = vadd.f32 %v3168_v62, %v4203_v10 }
0x1609   :  { %v2526_v33 = vpop.f32.mrb[51].mxu1  ;;  %v2535_v2 = vadd.f32 %v3620_v32, %v3281_v31  ;;  %v2544_v60 = vsel %vm258_vm1, %v2532_v34, -inf  ;;  %v1764_v32 = vadd.f32 %v3168_v62, %v4208_v52 }
0x160a   :  { %v2527_v35 = vadd.f32 %v3277_v28, %v2526_v33  ;;  %v2538_v36 = vsel %vm258_vm1, %v2524_v30, -inf }
0x160b   :  { %2539 = vmax.xlane.f32.xlu0 %v2538_v36  ;;  %v2547_v0 = vsel %vm258_vm1, %v2535_v2, -inf }
0x160c   :  { %v2541_v59 = vsel %vm258_vm1, %v2527_v35, -inf }
0x160d   :  { %2542 = vmax.xlane.f32.xlu1 %v2541_v59 }
0x160f   :  { %2545 = vmax.xlane.f32.xlu0 %v2544_v60 }
0x1611   :  { %2548 = vmax.xlane.f32.xlu1 %v2547_v0 }
0x1698   :  { %v2540_v37 = vpop.xlane.xlu0 %2539 }
0x1699   :  { %v2550_v38 = vsub.f32 %v2524_v30, %v2540_v37 }
0x169a   :  { %v2543_v39 = vpop.xlane.xlu1 %2542 }
0x169b   :  { %v2554_v7 = vmul.f32 1.442695, %v2550_v38  ;;  %v2551_v24 = vsub.f32 %v2527_v35, %v2543_v39 }
0x169c   :  { %v2546_v25 = vpop.xlane.xlu0 %2545 }
0x169d   :  { %3865 = vpow2.f32 %v2554_v7  ;;  %v2556_v27 = vmul.f32 1.442695, %v2551_v24  ;;  %v2552_v40 = vsub.f32 %v2532_v34, %v2546_v25 }
0x169e   :  { %v2549_v41 = vpop.xlane.xlu1 %2548 }
0x169f   :  { %3867 = vpow2.f32 %v2556_v27  ;;  %v2558_v43 = vmul.f32 1.442695, %v2552_v40  ;;  %v2553_v45 = vsub.f32 %v2535_v2, %v2549_v41 }
0x16a1   :  { %3869 = vpow2.f32 %v2558_v43  ;;  %v2560_v47 = vmul.f32 1.442695, %v2553_v45 }
0x16a3   :  { %3871 = vpow2.f32 %v2560_v47 }
0x16a7   :  { %v3866_v4 = vpop.eup %3865 }
0x16a8   :  { %v2562_v51 = vsel %vm258_vm1, %v3866_v4, 0.0 }
0x16a9   :  { %v3868_v22 = vpop.eup %3867  ;;  %2563 = vadd.xlane.f32.xlu0 %v2562_v51 }
0x16aa   :  { %v2565_v42 = vsel %vm258_vm1, %v3868_v22, 0.0 }
0x16ab   :  { %v3870_v46 = vpop.eup %3869  ;;  %2566 = vadd.xlane.f32.xlu1 %v2565_v42  ;;  %v3768_v42 = vld [vmem:[%s3069_s17 + $0x8] sm:$0xff]  }
0x16ac   :  { %v2568_v48 = vsel %vm258_vm1, %v3870_v46, 0.0 }
0x16ad   :  { %v3872_v23 = vpop.eup %3871  ;;  %2569 = vadd.xlane.f32.xlu0 %v2568_v48 }
0x16ae   :  { %v2571_v26 = vsel %vm258_vm1, %v3872_v23, 0.0 }
0x16af   :  { %2572 = vadd.xlane.f32.xlu1 %v2571_v26 }
0x1736   :  { %v2564_v54 = vpop.xlane.xlu0 %2563 }
0x1737   :  { %3873 = vrcp.f32 %v2564_v54 }
0x1738   :  { %v2567_v61 = vpop.xlane.xlu1 %2566 }
0x1739   :  { %3875 = vrcp.f32 %v2567_v61 }
0x173a   :  { %v2570_v55 = vpop.xlane.xlu0 %2569 }
0x173b   :  { %3877 = vrcp.f32 %v2570_v55 }
0x173c   :  { %v2573_v56 = vpop.xlane.xlu1 %2572 }
0x173d   :  { %3879 = vrcp.f32 %v2573_v56 }
0x1741   :  { %v3874_v57 = vpop.eup %3873 }
0x1742   :  { %v2578_v3 = vmul.f32 %v3874_v57, %v3866_v4 }
0x1743   :  { %v3876_v58 = vpop.eup %3875 }
0x1744   :  { %v2579_v5 = vmul.f32 %v3876_v58, %v3868_v22  ;;  %v3767_v22 = vld [vmem:[%s3069_s17] sm:$0xff]  }
0x1745   :  { %v3878_v8 = vpop.eup %3877  ;;  %3635 = vmatprep.subr.bf16.mxu0 %v3767_v22 }
0x1746   :  { %v2582_v9 = vpack.c.bf16 %v2579_v5, %v2578_v3  ;;  %v2580_v12 = vmul.f32 %v3878_v8, %v3870_v46  ;;  %v3234_v8 = vld [vmem:[%s3067_s21] ss:$0 sm:$0xff] }
0x1747   :  { %v3880_v11 = vpop.eup %3879 }
0x1748   :  { %v2581_v13 = vmul.f32 %v3880_v11, %v3872_v23  ;;  %3625 = vmatprep.mubr.msk.bf16.mxu0 %vm258_vm1, %v2582_v9 }
0x174a   :  { %v2583_v14 = vpack.c.bf16 %v2581_v13, %v2580_v12 }
0x174c   :  { %3626 = vmatmul.mubr.msk.bf16.vlgmr.msra.gmra.mrb[44].mxu0 %vm258_vm1, %v2583_v14 }
0x174d   :  { %3636 = vmatpush3.bf16.msra.mxu0 %v3767_v22 }
0x174e   :  { %3637 = vmatprep.subr.bf16.mxu0 %v3768_v42 }
0x1751   :  { %3638 = vmatpush3.bf16.msra.mxu0 %v3768_v42 }
0x181f   :  { %v3627_v15 = vpop.f32.mrb[44].mxu0 }
0x1820   :  { %v2626_v44 = vpop.f32.mrb[45].mxu0 }
0x1821   :  { %v3628_v16 = vpop.f32.mrb[46].mxu0 }
0x1822   :  { %v2642_v17 = vpack.c.bf16 %v3628_v16, %v3627_v15  ;;  %v2629_v18 = vpop.f32.mrb[47].mxu0  ;;  %v3235_v15 = vld [vmem:[%s3068_s25] ss:$0 sm:$0xff] }
0x1823   :  { %v2641_v6 = vpack.c.bf16 %v2629_v18, %v2626_v44 }
0x1825   :  { %3631 = vmatprep.mubr.msk.bf16.mxu1 %vm657_vm2, %v2641_v6 }
0x1826   :  { %3632 = vmatmul.mubr.msk.bf16.vlgmr.msra.gmra.mrb[40].mxu1 %vm657_vm2, %v2642_v17 }
0x18f9   :  { %v3633_v63 = vpop.f32.mrb[40].mxu1 }
0x18fa   :  { %v2692_v19 = vpop.f32.mrb[41].mxu1  ;;  %v4384_v31 = vadd.f32 %v3633_v63, %v1763_v20 }
0x18fb   :  { %v4381_v21 = vadd.f32 %v2692_v19, %v1761_v1  ;;  %v3634_v28 = vpop.f32.mrb[42].mxu1 }
0x18fc   :  { %v2695_v30 = vpop.f32.mrb[43].mxu1  ;;  %v4391_v49 = vadd.f32 %v3634_v28, %v1764_v32  ;;  %v2719_v10 = vsel %vm258_vm1, %v4384_v31, 0.0  ;;  %v3770_v32 = vld [vmem:[%s3071_s29 + $0x8] sm:$0xff]  }
0x18fd   :  { %v4387_v33 = vadd.f32 %v2695_v30, %v1762_v29  ;;  %v2713_v34 = vsel %vm258_vm1, %v4381_v21, 0.0  ;;  %v3769_v30 = vld [vmem:[%s3071_s29] sm:$0xff]  }
0x18fe   :  { %2714 = vadd.xlane.f32.xlu0 %v2713_v34  ;;  %v2722_v35 = vsel %vm258_vm1, %v4391_v49, 0.0  ;;  %3643 = vmatprep.subr.bf16.mxu0 %v3769_v30  ;;  %v3771_v34 = vld [vmem:[%s3071_s29 + $0x10] sm:$0xff]  }
0x18ff   :  { %v2716_v50 = vsel %vm258_vm1, %v4387_v33, 0.0 }
0x1900   :  { %2717 = vadd.xlane.f32.xlu1 %v2716_v50  ;;  %v3772_v50 = vld [vmem:[%s3071_s29 + $0x18] sm:$0xff]  }
0x1902   :  { %2720 = vadd.xlane.f32.xlu0 %v2719_v10  ;;  %v3773_v10 = vld [vmem:[%s3071_s29 + $0x20] sm:$0xff]  }
0x1904   :  { %2723 = vadd.xlane.f32.xlu1 %v2722_v35  ;;  %v3774_v35 = vld [vmem:[%s3071_s29 + $0x28] sm:$0xff]  }
0x198b   :  { %v2715_v52 = vpop.xlane.xlu0 %2714 }
0x198c   :  { %v2725_v36 = vmul.f32 0.03125, %v2715_v52  ;;  %v3775_v52 = vld [vmem:[%s3071_s29 + $0x30] sm:$0xff]  }
0x198d   :  { %v2718_v2 = vpop.xlane.xlu1 %2717 }
0x198e   :  { %v2729_v59 = vsub.f32 %v4381_v21, %v2725_v36  ;;  %v2726_v60 = vmul.f32 0.03125, %v2718_v2  ;;  %v3776_v36 = vld [vmem:[%s3071_s29 + $0x38] sm:$0xff]   ;;  %v3236_v2 = vld [vmem:[%s3070_s3] ss:$0 sm:$0xff] }
0x198f   :  { %v2721_v0 = vpop.xlane.xlu0 %2720 }
0x1990   :  { %v2730_v37 = vsub.f32 %v4387_v33, %v2726_v60  ;;  %v2727_v38 = vmul.f32 0.03125, %v2721_v0  ;;  %v2733_v39 = vmul.f32 %v2729_v59, %v2729_v59 }
0x1991   :  { %v2724_v7 = vpop.xlane.xlu1 %2723 }
0x1992   :  { %v2731_v24 = vsub.f32 %v4384_v31, %v2727_v38  ;;  %v2728_v25 = vmul.f32 0.03125, %v2724_v7  ;;  %v2737_v27 = vsel %vm258_vm1, %v2733_v39, 0.0  ;;  %v2734_v40 = vmul.f32 %v2730_v37, %v2730_v37 }
0x1993   :  { %2738 = vadd.xlane.f32.xlu0 %v2737_v27 }
0x1994   :  { %v2732_v41 = vsub.f32 %v4391_v49, %v2728_v25  ;;  %v2740_v43 = vsel %vm258_vm1, %v2734_v40, 0.0  ;;  %v2735_v45 = vmul.f32 %v2731_v24, %v2731_v24 }
0x1995   :  { %2741 = vadd.xlane.f32.xlu1 %v2740_v43 }
0x1996   :  { %v2743_v47 = vsel %vm258_vm1, %v2735_v45, 0.0  ;;  %v2736_v4 = vmul.f32 %v2732_v41, %v2732_v41 }
0x1997   :  { %2744 = vadd.xlane.f32.xlu0 %v2743_v47 }
0x1998   :  { %v2746_v51 = vsel %vm258_vm1, %v2736_v4, 0.0 }
0x1999   :  { %2747 = vadd.xlane.f32.xlu1 %v2746_v51 }
0x1a20   :  { %v2739_v46 = vpop.xlane.xlu0 %2738 }
0x1a21   :  { %v2749_v48 = vmul.f32 0.03125, %v2739_v46 }
0x1a22   :  { %v2742_v23 = vpop.xlane.xlu1 %2741 }
0x1a23   :  { %v2753_v26 = vadd.f32 1e-05, %v2749_v48  ;;  %v2750_v53 = vmul.f32 0.03125, %v2742_v23 }
0x1a24   :  { %v2745_v54 = vpop.xlane.xlu0 %2744 }
0x1a25   :  { %3881 = vrsqrt.f32 %v2753_v26  ;;  %v2754_v61 = vadd.f32 1e-05, %v2750_v53  ;;  %v2751_v55 = vmul.f32 0.03125, %v2745_v54 }
0x1a26   :  { %v2748_v56 = vpop.xlane.xlu1 %2747 }
0x1a27   :  { %3883 = vrsqrt.f32 %v2754_v61  ;;  %v2755_v57 = vadd.f32 1e-05, %v2751_v55  ;;  %v2752_v58 = vmul.f32 0.03125, %v2748_v56 }
0x1a29   :  { %3885 = vrsqrt.f32 %v2755_v57  ;;  %v2756_v3 = vadd.f32 1e-05, %v2752_v58 }
0x1a2b   :  { %3887 = vrsqrt.f32 %v2756_v3 }
0x1a2f   :  { %v3882_v5 = vpop.eup %3881 }
0x1a30   :  { %v2761_v9 = vmul.f32 %v3882_v5, %v2729_v59 }
0x1a31   :  { %v3884_v11 = vpop.eup %3883 }
0x1a32   :  { %v2762_v12 = vmul.f32 %v3884_v11, %v2730_v37  ;;  %v2771_v13 = vmul.f32 %v3234_v8, %v2761_v9 }
0x1a33   :  { %v3886_v14 = vpop.eup %3885 }
0x1a34   :  { %v2763_v44 = vmul.f32 %v3886_v14, %v2731_v24  ;;  %v2772_v16 = vmul.f32 %v3234_v8, %v2762_v12  ;;  %v2781_v62 = vadd.f32 %v3235_v15, %v2771_v13 }
0x1a35   :  { %v3888_v17 = vpop.eup %3887 }
0x1a36   :  { %v2773_v18 = vmul.f32 %v3234_v8, %v2763_v44  ;;  %v2764_v6 = vmul.f32 %v3888_v17, %v2732_v41  ;;  %v2782_v63 = vadd.f32 %v3235_v15, %v2772_v16 }
0x1a38   :  { %v2774_v1 = vmul.f32 %v3234_v8, %v2764_v6  ;;  %v2789_v19 = vpack.c.bf16 %v2782_v63, %v2781_v62  ;;  %v2783_v20 = vadd.f32 %v3235_v15, %v2773_v18 }
0x1a3a   :  { %3639 = vmatprep.mubr.msk.bf16.mxu0 %vm258_vm1, %v2789_v19  ;;  %v2784_v28 = vadd.f32 %v3235_v15, %v2774_v1  ;;  %v3241_v1 = vld [vmem:[%s3072_s8] ss:$0 sm:$0xff] }
0x1a3c   :  { %v2790_v29 = vpack.c.bf16 %v2784_v28, %v2783_v20 }
0x1a3e   :  { %3640 = vmatmul.mubr.msk.bf16.vlgmr.msra.gmra.mrb[48].mxu0 %vm258_vm1, %v2790_v29 }
0x1a3f   :  { %3644 = vmatpush3.bf16.msra.mxu0 %v3769_v30 }
0x1a40   :  { %3645 = vmatprep.subr.bf16.mxu0 %v3770_v32 }
0x1a43   :  { %3646 = vmatpush3.bf16.msra.mxu0 %v3770_v32 }
0x1a44   :  { %3647 = vmatprep.subr.bf16.mxu0 %v3771_v34 }
0x1a47   :  { %3648 = vmatpush3.bf16.msra.mxu0 %v3771_v34 }
0x1a48   :  { %3649 = vmatprep.subr.bf16.mxu0 %v3772_v50 }
0x1a4b   :  { %3650 = vmatpush3.bf16.msra.mxu0 %v3772_v50 }
0x1a4c   :  { %3651 = vmatprep.subr.bf16.mxu0 %v3773_v10 }
0x1a4f   :  { %3652 = vmatpush3.bf16.msra.mxu0 %v3773_v10 }
0x1a50   :  { %3653 = vmatprep.subr.bf16.mxu0 %v3774_v35 }
0x1a53   :  { %3654 = vmatpush3.bf16.msra.mxu0 %v3774_v35 }
0x1a54   :  { %3655 = vmatprep.subr.bf16.mxu0 %v3775_v52 }
0x1a57   :  { %3656 = vmatpush3.bf16.msra.mxu0 %v3775_v52 }
0x1a58   :  { %3657 = vmatprep.subr.bf16.mxu0 %v3776_v36 }
0x1a5b   :  { %3658 = vmatpush3.bf16.msra.mxu0 %v3776_v36 }
0x1b11   :  { %v3641_v59 = vpop.f32.mrb[48].mxu0 }
0x1b12   :  { %v2859_v60 = vadd.f32 %v3641_v59, %v3236_v2  ;;  %v2850_v0 = vpop.f32.mrb[49].mxu0 }
0x1b13   :  { %v2851_v37 = vadd.f32 %v3236_v2, %v2850_v0  ;;  %v3642_v38 = vpop.f32.mrb[50].mxu0 }
0x1b14   :  { %v2871_v39 = vmul.f32 0.044715, %v2859_v60  ;;  %v2862_v7 = vadd.f32 %v3642_v38, %v3236_v2  ;;  %v2853_v24 = vpop.f32.mrb[51].mxu0  ;;  %v2867_v11 = vmul.f32 0.5, %v2859_v60 }
0x1b15   :  { %v2869_v25 = vmul.f32 0.044715, %v2851_v37  ;;  %v2854_v27 = vadd.f32 %v3236_v2, %v2853_v24  ;;  %v2865_v14 = vmul.f32 0.5, %v2851_v37 }
0x1b16   :  { %v2875_v40 = vmul.f32 %v2871_v39, %v2859_v60  ;;  %v2872_v41 = vmul.f32 0.044715, %v2862_v7  ;;  %v2868_v12 = vmul.f32 0.5, %v2862_v7 }
0x1b17   :  { %v2873_v43 = vmul.f32 %v2869_v25, %v2851_v37  ;;  %v2870_v45 = vmul.f32 0.044715, %v2854_v27  ;;  %v2866_v15 = vmul.f32 0.5, %v2854_v27 }
0x1b18   :  { %v2879_v47 = vmul.f32 %v2875_v40, %v2859_v60  ;;  %v2876_v4 = vmul.f32 %v2872_v41, %v2862_v7 }
0x1b19   :  { %v2877_v51 = vmul.f32 %v2873_v43, %v2851_v37  ;;  %v2874_v22 = vmul.f32 %v2870_v45, %v2854_v27 }
0x1b1a   :  { %v2883_v42 = vadd.f32 %v2879_v47, %v2859_v60  ;;  %v2880_v46 = vmul.f32 %v2876_v4, %v2862_v7 }
0x1b1b   :  { %v2878_v48 = vmul.f32 %v2874_v22, %v2854_v27  ;;  %v2881_v23 = vadd.f32 %v2877_v51, %v2851_v37 }
0x1b1c   :  { %v2887_v26 = vmul.f32 0.7978846, %v2883_v42  ;;  %v2884_v53 = vadd.f32 %v2880_v46, %v2862_v7 }
0x1b1d   :  { %v2882_v54 = vadd.f32 %v2878_v48, %v2854_v27  ;;  %v2885_v61 = vmul.f32 0.7978846, %v2881_v23 }
0x1b1e   :  { %3889 = vtanh.f32 %v2887_v26  ;;  %v2888_v55 = vmul.f32 0.7978846, %v2884_v53 }
0x1b1f   :  { %v2886_v56 = vmul.f32 0.7978846, %v2882_v54  ;;  %3891 = vtanh.f32 %v2885_v61 }
0x1b20   :  { %3893 = vtanh.f32 %v2888_v55 }
0x1b21   :  { %3895 = vtanh.f32 %v2886_v56 }
0x1b28   :  { %v3890_v57 = vpop.eup %3889 }
0x1b29   :  { %v3892_v58 = vpop.eup %3891  ;;  %v2895_v3 = vadd.f32 1.0, %v3890_v57 }
0x1b2a   :  { %v3894_v5 = vpop.eup %3893  ;;  %v2893_v8 = vadd.f32 1.0, %v3892_v58 }
0x1b2b   :  { %v3896_v9 = vpop.eup %3895  ;;  %v2896_v13 = vadd.f32 1.0, %v3894_v5  ;;  %v2899_v16 = vmul.f32 %v2895_v3, %v2867_v11 }
0x1b2c   :  { %v2894_v44 = vadd.f32 1.0, %v3896_v9  ;;  %v2897_v18 = vmul.f32 %v2893_v8, %v2865_v14 }
0x1b2d   :  { %v2900_v17 = vmul.f32 %v2896_v13, %v2868_v12 }
0x1b2e   :  { %v2898_v6 = vmul.f32 %v2894_v44, %v2866_v15 }
0x1b2f   :  { %v2918_v62 = vpack.c.bf16 %v2900_v17, %v2899_v16 }
0x1b30   :  { %v2917_v63 = vpack.c.bf16 %v2898_v6, %v2897_v18 }
0x1b32   :  { %3659 = vmatprep.mubr.bf16.mxu0 %v2917_v63 }
0x1b33   :  { %3660 = vmatmul.mubr.bf16.vlgmr.msra.gmra.mrb[52].mxu0 %v2918_v62 }
0x1c06   :  { %v3661_v19 = vpop.f32.mrb[52].mxu0 }
0x1c07   :  { %v3017_v20 = vadd.f32 %v3661_v19, %v3241_v1  ;;  %v3008_v28 = vpop.f32.mrb[53].mxu0 }
0x1c08   :  { %v3009_v29 = vadd.f32 %v3241_v1, %v3008_v28  ;;  %v3662_v30 = vpop.f32.mrb[54].mxu0 }
0x1c09   :  { %v3025_v32 = vadd.f32 %v4384_v31, %v3017_v20  ;;  %v3020_v34 = vadd.f32 %v3662_v30, %v3241_v1  ;;  %v3011_v50 = vpop.f32.mrb[55].mxu0 }
0x1c0a   :  { %v3023_v10 = vadd.f32 %v4381_v21, %v3009_v29  ;;  %v3012_v35 = vadd.f32 %v3241_v1, %v3011_v50 }
0x1c0b   :  { %3029 = vst.msk [vmem:[%s3073_s11 + $0x10] sm:$0xff] %vm258_vm1, %v3025_v32  ;;  %v3026_v52 = vadd.f32 %v4391_v49, %v3020_v34 }
0x1c0c   :  { %3027 = vst.msk [vmem:[%s3073_s11] sm:$0xff] %vm258_vm1, %v3023_v10  ;;  %v3024_v36 = vadd.f32 %v4387_v33, %v3012_v35 }
0x1c0d   :  { %3030 = vst.msk [vmem:[%s3073_s11 + $0x18] sm:$0xff] %vm258_vm1, %v3026_v52 }
0x1c0e   :  { %3028 = vst.msk [vmem:[%s3073_s11 + $0x8] sm:$0xff] %vm258_vm1, %v3024_v36 }

// kernel: swin_forward.3
= control target key start
LH: loop header
LB: loop body
LE: loop exit
PB: predicated region body
PF: predicated region fallthrough
CT: control target
= control target key end

     0   :  { %s6020_s6 = smov 1   ;;  %s6021_s10 = smov 2   ;;  %s6918_s0 = inlined_call_operand.smem [shape: u32[43], index: -1, kind: input, shape index: {}] }
   0x1   :  { %s6074_s5 = sld [smem:[%s6918_s0]]   ;;  %s6022_s14 = smov 3  }
   0x2   :  { %s6079_s9 = sld [smem:[%s6918_s0 + %s6020_s6]]   ;;  %s6023_s18 = smov 4  }
   0x3   :  { %s6084_s13 = sld [smem:[%s6918_s0 + %s6021_s10]]   ;;  %s6024_s22 = smov 5  }
   0x4   :  { %s6089_s17 = sld [smem:[%s6918_s0 + %s6022_s14]]   ;;  %s6025_s26 = smov 6  }
   0x5   :  { %s6094_s21 = sld [smem:[%s6918_s0 + %s6023_s18]]   ;;  %s6026_s30 = smov 7  }
   0x6   :  { %s6099_s25 = sld [smem:[%s6918_s0 + %s6024_s22]]   ;;  %s6027_s4 = smov 8  }
   0x7   :  { %s6104_s29 = sld [smem:[%s6918_s0 + %s6025_s26]]   ;;  %s6028_s10 = smov 9  }
   0x8   :  { %s6109_s3 = sld [smem:[%s6918_s0 + %s6026_s30]]   ;;  %s6029_s15 = smov 10  }
   0x9   :  { %s6114_s8 = sld [smem:[%s6918_s0 + %s6027_s4]]   ;;  %s6030_s20 = smov 11  }
   0xa   :  { %s6119_s14 = sld [smem:[%s6918_s0 + %s6028_s10]]   ;;  %s6031_s26 = smov 12  }
   0xb   :  { %s6124_s19 = sld [smem:[%s6918_s0 + %s6029_s15]]   ;;  %s6032_s1 = smov 13  }
   0xc   :  { %s6129_s24 = sld [smem:[%s6918_s0 + %s6030_s20]]   ;;  %s6033_s7 = smov 14  }
   0xd   :  { %s6134_s30 = sld [smem:[%s6918_s0 + %s6031_s26]]   ;;  %s6034_s15 = smov 15  }
   0xe   :  { %s6139_s6 = sld [smem:[%s6918_s0 + %s6032_s1]]   ;;  %s6035_s22 = smov 16  }
   0xf   :  { %s6144_s12 = sld [smem:[%s6918_s0 + %s6033_s7]]   ;;  %s6036_s28 = smov 17  }
  0x10   :  { %s6149_s20 = sld [smem:[%s6918_s0 + %s6034_s15]]   ;;  %s6037_s7 = smov 18  }
  0x11   :  { %s6154_s27 = sld [smem:[%s6918_s0 + %s6035_s22]]   ;;  %s6038_s15 = smov 19  }
  0x12   :  { %s6159_s4 = sld [smem:[%s6918_s0 + %s6036_s28]]   ;;  %s6039_s22 = smov 20  }
  0x13   :  { %s6040_s28 = smov 21  }
  0x15   :  { %6931 = sst [smem:[#allocation5_spill]] %s6144_s12 }
  0x16   :  { %6932 = sst [smem:[#allocation6_spill]] %s6149_s20 }
  0x17   :  { %6933 = sst [smem:[#allocation7_spill]] %s6154_s27 }
  0x18   :  { %6934 = sst [smem:[#allocation8_spill]] %s6159_s4 }
  0x19   :  { %s6164_s12 = sld [smem:[%s6918_s0 + %s6037_s7]]   ;;  %s6041_s7 = smov 22  }
  0x1a   :  { %s6169_s20 = sld [smem:[%s6918_s0 + %s6038_s15]]   ;;  %s6042_s15 = smov 23  }
  0x1b   :  { %s6174_s27 = sld [smem:[%s6918_s0 + %s6039_s22]]   ;;  %s6043_s22 = smov 24  }
  0x1c   :  { %s6179_s4 = sld [smem:[%s6918_s0 + %s6040_s28]]   ;;  %s6044_s28 = smov 25  }
  0x1f   :  { %6935 = sst [smem:[#allocation9_spill]] %s6164_s12 }
  0x20   :  { %6936 = sst [smem:[#allocation10_spill]] %s6169_s20 }
  0x21   :  { %6937 = sst [smem:[#allocation11_spill]] %s6174_s27 }
  0x22   :  { %6938 = sst [smem:[#allocation12_spill]] %s6179_s4 }
  0x23   :  { %s6184_s12 = sld [smem:[%s6918_s0 + %s6041_s7]]   ;;  %s6045_s7 = smov 26  }
  0x24   :  { %s6189_s20 = sld [smem:[%s6918_s0 + %s6042_s15]]   ;;  %s6046_s15 = smov 27  }
  0x25   :  { %s6194_s27 = sld [smem:[%s6918_s0 + %s6043_s22]]   ;;  %s6047_s22 = smov 28  }
  0x26   :  { %s6199_s4 = sld [smem:[%s6918_s0 + %s6044_s28]]   ;;  %s6048_s28 = smov 29  }
  0x29   :  { %6939 = sst [smem:[#allocation13_spill]] %s6184_s12 }
  0x2a   :  { %6940 = sst [smem:[#allocation14_spill]] %s6189_s20 }
  0x2b   :  { %6941 = sst [smem:[#allocation15_spill]] %s6194_s27 }
  0x2c   :  { %6942 = sst [smem:[#allocation16_spill]] %s6199_s4 }
  0x2d   :  { %s6204_s12 = sld [smem:[%s6918_s0 + %s6045_s7]]   ;;  %s6049_s7 = smov 30  }
  0x2e   :  { %s6209_s20 = sld [smem:[%s6918_s0 + %s6046_s15]]   ;;  %s6050_s15 = smov 31  }
  0x2f   :  { %s6214_s27 = sld [smem:[%s6918_s0 + %s6047_s22]]   ;;  %s6051_s22 = smov 32  }
  0x30   :  { %s6219_s4 = sld [smem:[%s6918_s0 + %s6048_s28]]   ;;  %s6052_s28 = smov 33  }
  0x33   :  { %6943 = sst [smem:[#allocation17_spill]] %s6204_s12 }
  0x34   :  { %6944 = sst [smem:[#allocation18_spill]] %s6209_s20 }
  0x35   :  { %6945 = sst [smem:[#allocation19_spill]] %s6214_s27 }
  0x36   :  { %6946 = sst [smem:[#allocation20_spill]] %s6219_s4 }
  0x37   :  { %s6224_s12 = sld [smem:[%s6918_s0 + %s6049_s7]]   ;;  %s6053_s7 = smov 34  }
  0x38   :  { %s6229_s20 = sld [smem:[%s6918_s0 + %s6050_s15]]   ;;  %s6054_s15 = smov 35  }
  0x39   :  { %s6234_s27 = sld [smem:[%s6918_s0 + %s6051_s22]]   ;;  %s6055_s22 = smov 36  }
  0x3a   :  { %s6239_s4 = sld [smem:[%s6918_s0 + %s6052_s28]]   ;;  %s6056_s28 = smov 37  }
  0x3d   :  { %6947 = sst [smem:[#allocation21_spill]] %s6224_s12 }
  0x3e   :  { %6948 = sst [smem:[#allocation22_spill]] %s6229_s20 }
  0x3f   :  { %6949 = sst [smem:[#allocation23_spill]] %s6234_s27 }
  0x40   :  { %6950 = sst [smem:[#allocation24_spill]] %s6239_s4 }
  0x41   :  { %s6244_s12 = sld [smem:[%s6918_s0 + %s6053_s7]]   ;;  %s6057_s7 = smov 38  }
  0x42   :  { %s6249_s20 = sld [smem:[%s6918_s0 + %s6054_s15]]   ;;  %s6058_s15 = smov 39  }
  0x43   :  { %s6254_s27 = sld [smem:[%s6918_s0 + %s6055_s22]]   ;;  %s6059_s22 = smov 40  }
  0x44   :  { %s6259_s4 = sld [smem:[%s6918_s0 + %s6056_s28]]   ;;  %s6060_s28 = smov 41  }
  0x47   :  { %6951 = sst [smem:[#allocation25_spill]] %s6244_s12 }
  0x48   :  { %6952 = sst [smem:[#allocation26_spill]] %s6249_s20 }
  0x49   :  { %6953 = sst [smem:[#allocation27_spill]] %s6254_s27 }
  0x4a   :  { %6954 = sst [smem:[#allocation28_spill]] %s6259_s4 }
  0x4b   :  { %s6264_s12 = sld [smem:[%s6918_s0 + %s6057_s7]]   ;;  %s6061_s7 = smov 42  }
  0x4c   :  { %s6269_s20 = sld [smem:[%s6918_s0 + %s6058_s15]]  }
  0x4d   :  { %s6274_s27 = sld [smem:[%s6918_s0 + %s6059_s22]]  }
  0x4e   :  { %s6279_s4 = sld [smem:[%s6918_s0 + %s6060_s28]]  }
  0x51   :  { %6955 = sst [smem:[#allocation29_spill]] %s6264_s12 }
  0x52   :  { %s6284_s12 = sld [smem:[%s6918_s0 + %s6061_s7]]  }
  0x53   :  { %v176_v0 = vld [vmem:[%s6074_s5] sm:$0xff]  ;;  %v5765_v2 = vld [vmem:[%s6089_s17 + $0x8] sm:$0xff]   ;;  %v6062_v3 = vmov 0.0  }
  0x54   :  { %179 = vadd.xlane.f32.xlu0 %v176_v0  ;;  %v5764_v1 = vld [vmem:[%s6089_s17] sm:$0xff]   ;;  %5216 = vmatprep.subr.bf16.mxu0 %v6062_v3 }
  0x55   :  { %5236 = vmatprep.subr.bf16.mxu1 %v6062_v3  ;;  %5217 = vmatpush3.bf16.msra.mxu0 %v5764_v1 }
  0x56   :  { %5218 = vmatprep.subr.bf16.mxu0 %v6062_v3 }
  0x59   :  { %5219 = vmatpush3.bf16.msra.mxu0 %v5765_v2 }
  0x5a   :  { %5220 = vmatprep.subr.bf16.mxu0 %v6062_v3 }
  0x5b   :  { %90 = vsyncpa [#allocation3], 0  ;;  %v5766_v8 = vld [vmem:[%s6089_s17 + $0x10] sm:$0xff]   ;;  %v5767_v9 = vld [vmem:[%s6089_s17 + $0x18] sm:$0xff]   ;;  %vm6063_vm0 = vmmov 0   ;;  %vm312_vm1 = vcmask 523264  }
  0x5c   :  { %v5768_v10 = vld [vmem:[%s6089_s17 + $0x20] sm:$0xff]   ;;  %5232 = vmatprep.mubr.msk.bf16.mxu0 %vm6063_vm0, %v6062_v3  ;;  %5244 = vmatprep.mubr.msk.bf16.mxu1 %vm6063_vm0, %v6062_v3  ;;  %v5769_v11 = vld [vmem:[%s6089_s17 + $0x28] sm:$0xff]   ;;  %v5770_v12 = vld [vmem:[%s6089_s17 + $0x30] sm:$0xff]   ;;  %vm595_vm2 = vcmask 130048   ;;  %vm659_vm3 = vcmask 1043456   ;;  %vm642_vm4 = vcmask 64512  }
  0x5d   :  { %5221 = vmatpush3.bf16.msra.mxu0 %v5766_v8  ;;  %v5771_v13 = vld [vmem:[%s6089_s17 + $0x38] sm:$0xff]   ;;  %v4547_v18 = vld [vmem:[%s6079_s9] ss:$0 sm:$0xff]  ;;  %v5774_v36 = vld [vmem:[%s6104_s29 + $0x8] sm:$0xff]   ;;  %s6956_s0 = sld [smem:[#allocation5_spill]]  ;;  %s6957_s5 = sld [smem:[#allocation8_spill]] }
  0x5e   :  { %5222 = vmatprep.subr.bf16.mxu0 %v6062_v3  ;;  %v4548_v20 = vld [vmem:[%s6084_s13] ss:$0 sm:$0xff]  ;;  %v5775_v37 = vld [vmem:[%s6124_s19 + $0x8] sm:$0xff]   ;;  %v5776_v38 = vld [vmem:[%s6104_s29 + $0x10] sm:$0xff]   ;;  %s6958_s9 = sld [smem:[#allocation6_spill]]  ;;  %s6959_s13 = sld [smem:[#allocation7_spill]] }
  0x5f   :  { %v5772_v34 = vld [vmem:[%s6104_s29] sm:$0xff]   ;;  %v5777_v39 = vld [vmem:[%s6124_s19 + $0x10] sm:$0xff]   ;;  %v5778_v40 = vld [vmem:[%s6104_s29 + $0x18] sm:$0xff]   ;;  %s6960_s17 = sld [smem:[#allocation10_spill]]  ;;  %s6971_s15 = sld [smem:[#allocation20_spill]]  ;;  %vm4343_vm5 = vcmask 519168  }
  0x60   :  { %v5773_v35 = vld [vmem:[%s6124_s19] sm:$0xff]   ;;  %5237 = vmatpush3.bf16.msra.mxu1 %v5772_v34  ;;  %v5779_v41 = vld [vmem:[%s6124_s19 + $0x18] sm:$0xff]   ;;  %v5781_v53 = vld [vmem:[%s6114_s8 + $0x8] sm:$0xff]   ;;  %s6972_s16 = sld [smem:[#allocation21_spill]]  ;;  %s6973_s18 = sld [smem:[#allocation22_spill]]  ;;  %vm4427_vm6 = vcmask 32768  }
  0x61   :  { %5223 = vmatpush3.bf16.msra.mxu0 %v5767_v9  ;;  %5238 = vmatprep.subr.bf16.mxu1 %v6062_v3  ;;  %v4557_v46 = vld [vmem:[%s6094_s21] ss:$0 sm:$0xff]  ;;  %v5782_v54 = vld [vmem:[%s6114_s8 + $0x10] sm:$0xff]   ;;  %v5783_v55 = vld [vmem:[%s6114_s8 + $0x18] sm:$0xff]   ;;  %s6961_s21 = sld [smem:[#allocation9_spill]]  ;;  %s6975_s23 = sld [smem:[#allocation23_spill]] }
  0x62   :  { %5224 = vmatprep.subr.bf16.mxu0 %v6062_v3  ;;  %v4558_v48 = vld [vmem:[%s6099_s25] ss:$0 sm:$0xff]  ;;  %s6962_s25 = sld [smem:[#allocation11_spill]]  ;;  %s6974_s22 = sld [smem:[#allocation25_spill]] }
  0x63   :  { %v5780_v51 = vld [vmem:[%s6114_s8] sm:$0xff]   ;;  %s6976_s26 = sld [smem:[#allocation24_spill]]  ;;  %s6977_s28 = sld [smem:[#allocation27_spill]] }
  0x64   :  { %5239 = vmatpush3.bf16.msra.mxu1 %v5774_v36  ;;  %v4560_v1 = vld [vmem:[%s6109_s3] ss:$0 sm:$0xff]  ;;  %s6978_s1 = sld [smem:[#allocation26_spill]]  ;;  %s6979_s2 = sld [smem:[#allocation28_spill]] }
  0x65   :  { %5225 = vmatpush3.bf16.msra.mxu0 %v5768_v10  ;;  %5240 = vmatprep.subr.bf16.mxu1 %v6062_v3  ;;  %s6980_s7 = sld [smem:[#allocation29_spill]] }
  0x66   :  { %5226 = vmatprep.subr.bf16.mxu0 %v6062_v3 }
  0x68   :  { %5241 = vmatpush3.bf16.msra.mxu1 %v5776_v38  ;;  %v5786_v38 = vld [vmem:[%s6104_s29 + $0x30] sm:$0xff]  }
  0x69   :  { %5227 = vmatpush3.bf16.msra.mxu0 %v5769_v11  ;;  %5242 = vmatprep.subr.bf16.mxu1 %v6062_v3 }
  0x6a   :  { %5228 = vmatprep.subr.bf16.mxu0 %v6062_v3 }
  0x6c   :  { %5243 = vmatpush3.bf16.msra.mxu1 %v5778_v40  ;;  %v5788_v40 = vld [vmem:[%s6124_s19 + $0x20] sm:$0xff]  }
  0x6d   :  { %5229 = vmatpush3.bf16.msra.mxu0 %v5770_v12  ;;  %5248 = vmatprep.subr.bf16.mxu1 %v6062_v3 }
  0x6e   :  { %5230 = vmatprep.subr.bf16.mxu0 %v6062_v3 }
  0x71   :  { %5231 = vmatpush3.bf16.msra.mxu0 %v5771_v13 }
  0x72   :  { %5260 = vmatprep.subr.bf16.mxu0 %v6062_v3 }
  0xe1   :  { %v180_v4 = vpop.xlane.xlu0 %179 }
  0xe2   :  { %v182_v5 = vmul.f32 0.0078125, %v180_v4 }
  0xe4   :  { %v183_v6 = vsub.f32 %v176_v0, %v182_v5  ;;  %v4566_v0 = vld [vmem:[%s6119_s14] ss:$0 sm:$0xff] }
  0xe6   :  { %v184_v7 = vmul.f32 %v183_v6, %v183_v6 }
  0xe8   :  { %185 = vadd.xlane.f32.xlu0 %v184_v7 }
 0x175   :  { %v186_v14 = vpop.xlane.xlu0 %185 }
 0x176   :  { %v187_v15 = vmul.f32 0.0078125, %v186_v14 }
 0x178   :  { %v188_v16 = vadd.f32 1e-05, %v187_v15 }
 0x17a   :  { %5936 = vrsqrt.f32 %v188_v16 }
 0x184   :  { %v5937_v17 = vpop.eup %5936 }
 0x185   :  { %v190_v19 = vmul.f32 %v5937_v17, %v183_v6  ;;  %v4572_v6 = vld [vmem:[%s6129_s24] ss:$0 sm:$0xff] }
 0x186   :  { %v6370_v17 = vld [vmem:[%s6134_s30] sm:$0xff]  }
 0x187   :  { %v197_v21 = vmul.f32 %v4547_v18, %v190_v19  ;;  %v594_v18 = vunpack.c.l.bf16 %v6370_v17 }
 0x189   :  { %v204_v22 = vadd.f32 %v4548_v20, %v197_v21 }
 0x18b   :  { %v221_v23 = vpack.c.bf16 %v204_v22, %v204_v22 }
 0x18d   :  { %5233 = vmatmul.mubr.bf16.vlgmr.msra.gmra.mrb[0].mxu0 %v221_v23 }
 0x18e   :  { %5268 = vmatprep.mubr.msk.bf16.mxu0 %vm6063_vm0, %v6062_v3  ;;  %5261 = vmatpush3.bf16.msra.mxu0 %v5773_v35  ;;  %v5784_v35 = vld [vmem:[%s6104_s29 + $0x20] sm:$0xff]  }
 0x18f   :  { %5262 = vmatprep.subr.bf16.mxu0 %v6062_v3 }
 0x192   :  { %5263 = vmatpush3.bf16.msra.mxu0 %v5775_v37  ;;  %v5785_v37 = vld [vmem:[%s6104_s29 + $0x28] sm:$0xff]  }
 0x193   :  { %5264 = vmatprep.subr.bf16.mxu0 %v6062_v3 }
 0x196   :  { %5265 = vmatpush3.bf16.msra.mxu0 %v5777_v39  ;;  %v5787_v39 = vld [vmem:[%s6104_s29 + $0x38] sm:$0xff]  }
 0x197   :  { %5266 = vmatprep.subr.bf16.mxu0 %v6062_v3 }
 0x19a   :  { %5267 = vmatpush3.bf16.msra.mxu0 %v5779_v41  ;;  %v5789_v41 = vld [vmem:[%s6124_s19 + $0x28] sm:$0xff]  }
 0x19b   :  { %5284 = vmatprep.subr.bf16.mxu0 %v6062_v3 }
 0x260   :  { %v6313_v24 = vpop.f32.mrb[0].mxu0 }
 0x261   :  { %v5234_v25 = vpop.f32.mrb[1].mxu0  ;;  %v313_v26 = vsel %vm312_vm1, %v6313_v24, 0.0 }
 0x262   :  { %314 = vadd.xlane.f32.xlu1 %v313_v26  ;;  %v307_v27 = vpop.f32.mrb[2].mxu0 }
 0x263   :  { %v5235_v28 = vpop.f32.mrb[3].mxu0 }
 0x2ef   :  { %v315_v29 = vpop.xlane.xlu1 %314 }
 0x2f0   :  { %v317_v30 = vmul.f32 0.015625, %v315_v29 }
 0x2f2   :  { %v318_v31 = vsub.f32 %v6313_v24, %v317_v30 }
 0x2f4   :  { %v319_v32 = vmul.f32 %v318_v31, %v318_v31 }
 0x2f6   :  { %v320_v33 = vsel %vm312_vm1, %v319_v32, 0.0 }
 0x2f7   :  { %321 = vadd.xlane.f32.xlu1 %v320_v33 }
 0x384   :  { %v322_v42 = vpop.xlane.xlu1 %321 }
 0x385   :  { %v323_v43 = vmul.f32 0.015625, %v322_v42  ;;  %v5790_v42 = vld [vmem:[%s6124_s19 + $0x30] sm:$0xff]  }
 0x387   :  { %v324_v44 = vadd.f32 1e-05, %v323_v43  ;;  %v5791_v43 = vld [vmem:[%s6124_s19 + $0x38] sm:$0xff]  }
 0x389   :  { %5938 = vrsqrt.f32 %v324_v44  ;;  %v5792_v44 = vld [vmem:[%s6104_s29 + $0x40] sm:$0xff]  }
 0x393   :  { %v5939_v45 = vpop.eup %5938 }
 0x394   :  { %v326_v47 = vmul.f32 %v5939_v45, %v318_v31  ;;  %v5800_v31 = vld [vmem:[%s6139_s6] sm:$0xff]   ;;  %v5793_v45 = vld [vmem:[%s6104_s29 + $0x48] sm:$0xff]  }
 0x396   :  { %v333_v49 = vmul.f32 %v4557_v46, %v326_v47  ;;  %v5794_v46 = vld [vmem:[%s6104_s29 + $0x50] sm:$0xff]   ;;  %v5795_v47 = vld [vmem:[%s6104_s29 + $0x58] sm:$0xff]  }
 0x398   :  { %v340_v50 = vadd.f32 %v4558_v48, %v333_v49  ;;  %v5796_v48 = vld [vmem:[%s6124_s19 + $0x40] sm:$0xff]   ;;  %v5797_v49 = vld [vmem:[%s6124_s19 + $0x48] sm:$0xff]  }
 0x39a   :  { %v6338_v52 = vpack.c.bf16 %v340_v50, %v340_v50  ;;  %v5798_v50 = vld [vmem:[%s6124_s19 + $0x50] sm:$0xff]  }
 0x39c   :  { %5245 = vmatmul.mubr.msk.bf16.vlgmr.msra.gmra.mrb[0].mxu1 %vm312_vm1, %v6338_v52  ;;  %5269 = vmatmul.mubr.msk.bf16.vlgmr.msra.gmra.mrb[4].mxu0 %vm312_vm1, %v6338_v52 }
 0x39d   :  { %5249 = vmatpush3.bf16.msra.mxu1 %v5780_v51  ;;  %5256 = vmatprep.mubr.msk.bf16.mxu1 %vm6063_vm0, %v6062_v3  ;;  %v5799_v51 = vld [vmem:[%s6124_s19 + $0x58] sm:$0xff]  }
 0x39e   :  { %5250 = vmatprep.subr.bf16.mxu1 %v6062_v3  ;;  %5286 = vmatprep.mubr.msk.bf16.mxu0 %vm6063_vm0, %v6062_v3 }
 0x39f   :  { %5285 = vmatpush3.bf16.msra.mxu0 %v5800_v31 }
 0x3a0   :  { %5302 = vmatprep.subr.bf16.mxu0 %v6062_v3 }
 0x3a1   :  { %5251 = vmatpush3.bf16.msra.mxu1 %v5781_v53 }
 0x3a2   :  { %5252 = vmatprep.subr.bf16.mxu1 %v6062_v3 }
 0x3a5   :  { %5253 = vmatpush3.bf16.msra.mxu1 %v5782_v54  ;;  %v5801_v54 = vld [vmem:[%s6114_s8 + $0x20] sm:$0xff]  }
 0x3a6   :  { %5254 = vmatprep.subr.bf16.mxu1 %v6062_v3 }
 0x3a9   :  { %5255 = vmatpush3.bf16.msra.mxu1 %v5783_v55 }
 0x3aa   :  { %5272 = vmatprep.subr.bf16.mxu1 %v6062_v3 }
 0x3ac   :  { %5257 = vmatmul.mubr.msk.bf16.vlgmr.msra.gmra.mrb[4].mxu1 %vm312_vm1, %v6338_v52 }
 0x3ad   :  { %5274 = vmatprep.mubr.msk.bf16.mxu1 %vm6063_vm0, %v6062_v3 }
 0x46f   :  { %v426_v56 = vpop.f32.mrb[0].mxu1  ;;  %v585_v57 = vpop.f32.mrb[4].mxu0 }
 0x470   :  { %v5246_v58 = vpop.f32.mrb[1].mxu1  ;;  %v5270_v59 = vpop.f32.mrb[5].mxu0  ;;  %v427_v8 = vadd.f32 %v4560_v1, %v426_v56  ;;  %v586_v11 = vadd.f32 %v4572_v6, %v585_v57 }
 0x471   :  { %v429_v60 = vpop.f32.mrb[2].mxu1  ;;  %v588_v61 = vpop.f32.mrb[6].mxu0  ;;  %v5802_v59 = vld [vmem:[%s6114_s8 + $0x28] sm:$0xff]  }
 0x472   :  { %v5247_v62 = vpop.f32.mrb[3].mxu1  ;;  %v5271_v63 = vpop.f32.mrb[7].mxu0  ;;  %v432_v13 = vmul.f32 0.25, %v427_v8  ;;  %v655_v14 = vpack.c.bf16 %v586_v11, %v586_v11  ;;  %v5803_v60 = vld [vmem:[%s6114_s8 + $0x30] sm:$0xff]   ;;  %v5804_v61 = vld [vmem:[%s6114_s8 + $0x38] sm:$0xff]  }
 0x473   :  { %v4673_v11 = vld [vmem:[%s6129_s24 + $0x2] ss:$0 sm:$0xff] }
 0x474   :  { %v591_v15 = vpack.c.bf16 %v432_v13, %v432_v13  ;;  %v661_v16 = vsel %vm659_vm3, %v655_v14, 0 }
 0x47f   :  { %v506_v2 = vpop.f32.mrb[4].mxu1 }
 0x480   :  { %v507_v4 = vadd.f32 %v4566_v0, %v506_v2  ;;  %v5258_v5 = vpop.f32.mrb[5].mxu1 }
 0x481   :  { %v509_v7 = vpop.f32.mrb[6].mxu1 }
 0x482   :  { %v592_v9 = vpack.c.bf16 %v507_v4, %v507_v4  ;;  %v5259_v10 = vpop.f32.mrb[7].mxu1 }
 0x484   :  { %v600_v12 = vsel %vm595_vm2, %v592_v9, 0 }
 0x485   :  { %5273 = vmatpush3.bf16.xpose.msra.mxu1 %v600_v12 }
 0x486   :  { %5278 = vmatprep.subr.bf16.mxu1 %v6062_v3 }
 0x48c   :  { %5275 = vmatmul.mubr.msk.bf16.vlgmr.msra.gmra.mrb[8].mxu1 %vm595_vm2, %v591_v15 }
 0x48d   :  { %5279 = vmatpush3.bf16.msra.mxu1 %v661_v16  ;;  %5280 = vmatprep.mubr.msk.bf16.mxu1 %vm6063_vm0, %v6062_v3 }
 0x48e   :  { %5290 = vmatprep.subr.bf16.mxu1 %v6062_v3 }
 0x55f   :  { %v636_v19 = vpop.f32.mrb[8].mxu1 }
 0x560   :  { %v637_v20 = vadd.f32 %v636_v19, %v594_v18  ;;  %v5276_v21 = vpop.f32.mrb[9].mxu1 }
 0x561   :  { %v639_v22 = vpop.f32.mrb[10].mxu1  ;;  %v4591_v21 = vld [vmem:[%s6109_s3 + $0x1] ss:$0 sm:$0xff] }
 0x562   :  { %v5277_v23 = vpop.f32.mrb[11].mxu1  ;;  %v643_v25 = vsel %vm642_vm4, %v637_v20, -inf }
 0x563   :  { %644 = vmax.xlane.f32.xlu0 %v643_v25 }
 0x5f0   :  { %v645_v26 = vpop.xlane.xlu0 %644 }
 0x5f1   :  { %v646_v27 = vsub.f32 %v637_v20, %v645_v26  ;;  %v4606_v20 = vld [vmem:[%s6119_s14 + $0x1] ss:$0 sm:$0xff] }
 0x5f2   :  { %v4621_v26 = vld [vmem:[%s6129_s24 + $0x1] ss:$0 sm:$0xff] }
 0x5f3   :  { %v647_v28 = vmul.f32 1.442695, %v646_v27 }
 0x5f5   :  { %5940 = vpow2.f32 %v647_v28 }
 0x5ff   :  { %v5941_v29 = vpop.eup %5940 }
 0x600   :  { %v649_v30 = vsel %vm642_vm4, %v5941_v29, 0.0 }
 0x601   :  { %650 = vadd.xlane.f32.xlu1 %v649_v30 }
 0x68e   :  { %v651_v32 = vpop.xlane.xlu1 %650 }
 0x68f   :  { %5942 = vrcp.f32 %v651_v32 }
 0x699   :  { %v5943_v33 = vpop.eup %5942 }
 0x69a   :  { %v653_v34 = vmul.f32 %v5943_v33, %v5941_v29 }
 0x69c   :  { %v654_v36 = vpack.c.bf16 %v653_v34, %v653_v34 }
 0x69e   :  { %5281 = vmatmul.mubr.msk.bf16.vlgmr.msra.gmra.mrb[12].mxu1 %vm642_vm4, %v654_v36 }
 0x69f   :  { %5291 = vmatpush3.bf16.msra.mxu1 %v5784_v35  ;;  %5298 = vmatprep.mubr.msk.bf16.mxu1 %vm6063_vm0, %v6062_v3 }
 0x6a0   :  { %5292 = vmatprep.subr.bf16.mxu1 %v6062_v3 }
 0x6a3   :  { %5293 = vmatpush3.bf16.msra.mxu1 %v5785_v37  ;;  %v1004_v37 = vunpack.c.h.bf16 %v6370_v17 }
 0x6a4   :  { %5294 = vmatprep.subr.bf16.mxu1 %v6062_v3 }
 0x6a7   :  { %5295 = vmatpush3.bf16.msra.mxu1 %v5786_v38 }
 0x6a8   :  { %5296 = vmatprep.subr.bf16.mxu1 %v6062_v3 }
 0x6ab   :  { %5297 = vmatpush3.bf16.msra.mxu1 %v5787_v39 }
 0x6ac   :  { %5314 = vmatprep.subr.bf16.mxu1 %v6062_v3 }
 0x6ae   :  { %5299 = vmatmul.mubr.msk.bf16.vlgmr.msra.gmra.mrb[16].mxu1 %vm312_vm1, %v6338_v52 }
 0x6af   :  { %5315 = vmatpush3.bf16.msra.mxu1 %v5788_v40  ;;  %5322 = vmatprep.mubr.msk.bf16.mxu1 %vm6063_vm0, %v6062_v3 }
 0x6b0   :  { %5316 = vmatprep.subr.bf16.mxu1 %v6062_v3 }
 0x6b3   :  { %5317 = vmatpush3.bf16.msra.mxu1 %v5789_v41 }
 0x6b4   :  { %5318 = vmatprep.subr.bf16.mxu1 %v6062_v3 }
 0x6b7   :  { %5319 = vmatpush3.bf16.msra.mxu1 %v5790_v42 }
 0x6b8   :  { %5320 = vmatprep.subr.bf16.mxu1 %v6062_v3 }
 0x6bb   :  { %5321 = vmatpush3.bf16.msra.mxu1 %v5791_v43 }
 0x6bc   :  { %5344 = vmatprep.subr.bf16.mxu1 %v6062_v3 }
 0x6be   :  { %5323 = vmatmul.mubr.msk.bf16.vlgmr.msra.gmra.mrb[20].mxu1 %vm312_vm1, %v6338_v52 }
 0x6bf   :  { %5345 = vmatpush3.bf16.msra.mxu1 %v5792_v44  ;;  %5352 = vmatprep.mubr.msk.bf16.mxu1 %vm6063_vm0, %v6062_v3 }
 0x6c0   :  { %5346 = vmatprep.subr.bf16.mxu1 %v6062_v3 }
 0x6c3   :  { %5347 = vmatpush3.bf16.msra.mxu1 %v5793_v45 }
 0x6c4   :  { %5348 = vmatprep.subr.bf16.mxu1 %v6062_v3 }
 0x6c7   :  { %5349 = vmatpush3.bf16.msra.mxu1 %v5794_v46 }
 0x6c8   :  { %5350 = vmatprep.subr.bf16.mxu1 %v6062_v3 }
 0x6cb   :  { %5351 = vmatpush3.bf16.msra.mxu1 %v5795_v47 }
 0x6cc   :  { %5368 = vmatprep.subr.bf16.mxu1 %v6062_v3 }
 0x6ce   :  { %5353 = vmatmul.mubr.msk.bf16.vlgmr.msra.gmra.mrb[24].mxu1 %vm312_vm1, %v6338_v52 }
 0x6cf   :  { %5369 = vmatpush3.bf16.msra.mxu1 %v5796_v48  ;;  %5376 = vmatprep.mubr.msk.bf16.mxu1 %vm6063_vm0, %v6062_v3 }
 0x6d0   :  { %5370 = vmatprep.subr.bf16.mxu1 %v6062_v3 }
 0x6d3   :  { %5371 = vmatpush3.bf16.msra.mxu1 %v5797_v49 }
 0x6d4   :  { %5372 = vmatprep.subr.bf16.mxu1 %v6062_v3 }
 0x6d7   :  { %5373 = vmatpush3.bf16.msra.mxu1 %v5798_v50 }
 0x6d8   :  { %5374 = vmatprep.subr.bf16.mxu1 %v6062_v3 }
 0x6db   :  { %5375 = vmatpush3.bf16.msra.mxu1 %v5799_v51  ;;  %v5805_v51 = vld [vmem:[%s6139_s6 + $0x8] sm:$0xff]  }
 0x6dc   :  { %5386 = vmatprep.subr.bf16.mxu1 %v6062_v3 }
 0x6de   :  { %5377 = vmatmul.mubr.msk.bf16.vlgmr.msra.gmra.mrb[28].mxu1 %vm312_vm1, %v6338_v52 }
 0x6df   :  { %5388 = vmatprep.mubr.msk.bf16.mxu1 %vm6063_vm0, %v6062_v3 }
 0x771   :  { %v697_v53 = vpop.f32.mrb[12].mxu1 }
 0x772   :  { %v703_v55 = vpack.c.bf16 %v697_v53, %v697_v53  ;;  %v5282_v56 = vpop.f32.mrb[13].mxu1 }
 0x773   :  { %v700_v57 = vpop.f32.mrb[14].mxu1 }
 0x774   :  { %v5283_v58 = vpop.f32.mrb[15].mxu1  ;;  %5287 = vmatmul.mubr.msk.bf16.vlgmr.msra.gmra.mrb[8].mxu0 %vm595_vm2, %v703_v55  ;;  %v5806_v55 = vld [vmem:[%s6114_s8 + $0x40] sm:$0xff]  }
 0x775   :  { %5303 = vmatpush3.bf16.msra.mxu0 %v5801_v54  ;;  %5310 = vmatprep.mubr.msk.bf16.mxu0 %vm6063_vm0, %v6062_v3 }
 0x776   :  { %5304 = vmatprep.subr.bf16.mxu0 %v6062_v3 }
 0x779   :  { %5305 = vmatpush3.bf16.msra.mxu0 %v5802_v59 }
 0x77a   :  { %5306 = vmatprep.subr.bf16.mxu0 %v6062_v3 }
 0x77d   :  { %5307 = vmatpush3.bf16.msra.mxu0 %v5803_v60  ;;  %v5807_v60 = vld [vmem:[%s6114_s8 + $0x48] sm:$0xff]  }
 0x77e   :  { %5308 = vmatprep.subr.bf16.mxu0 %v6062_v3 }
 0x781   :  { %v831_v62 = vpop.f32.mrb[16].mxu1  ;;  %5309 = vmatpush3.bf16.msra.mxu0 %v5804_v61  ;;  %v5808_v61 = vld [vmem:[%s6114_s8 + $0x50] sm:$0xff]  }
 0x782   :  { %v5300_v63 = vpop.f32.mrb[17].mxu1  ;;  %5326 = vmatprep.subr.bf16.mxu0 %v6062_v3  ;;  %v832_v28 = vadd.f32 %v4591_v21, %v831_v62  ;;  %v5809_v62 = vld [vmem:[%s6114_s8 + $0x58] sm:$0xff]  }
 0x783   :  { %v834_v0 = vpop.f32.mrb[18].mxu1  ;;  %v4658_v63 = vld [vmem:[%s6119_s14 + $0x2] ss:$0 sm:$0xff] }
 0x784   :  { %v5301_v1 = vpop.f32.mrb[19].mxu1  ;;  %5311 = vmatmul.mubr.msk.bf16.vlgmr.msra.gmra.mrb[12].mxu0 %vm312_vm1, %v6338_v52  ;;  %v837_v33 = vmul.f32 0.25, %v832_v28  ;;  %v4643_v0 = vld [vmem:[%s6109_s3 + $0x2] ss:$0 sm:$0xff] }
 0x785   :  { %5328 = vmatprep.mubr.msk.bf16.mxu0 %vm6063_vm0, %v6062_v3 }
 0x786   :  { %v1000_v35 = vpack.c.bf16 %v837_v33, %v837_v33  ;;  %v5811_v33 = vld [vmem:[%s6104_s29 + $0x68] sm:$0xff]  }
 0x791   :  { %v994_v2 = vpop.f32.mrb[20].mxu1 }
 0x792   :  { %v5324_v4 = vpop.f32.mrb[21].mxu1  ;;  %v995_v31 = vadd.f32 %v4621_v26, %v994_v2 }
 0x793   :  { %v997_v5 = vpop.f32.mrb[22].mxu1 }
 0x794   :  { %v5325_v6 = vpop.f32.mrb[23].mxu1  ;;  %v1063_v34 = vpack.c.bf16 %v995_v31, %v995_v31  ;;  %v5810_v31 = vld [vmem:[%s6104_s29 + $0x60] sm:$0xff]  }
 0x796   :  { %v1068_v36 = vsel %vm659_vm3, %v1063_v34, 0  ;;  %v5812_v34 = vld [vmem:[%s6104_s29 + $0x70] sm:$0xff]  }
 0x7a1   :  { %v6443_v7 = vpop.f32.mrb[24].mxu1 }
 0x7a2   :  { %v5354_v8 = vpop.f32.mrb[25].mxu1  ;;  %v1240_v6 = vadd.f32 %v4643_v0, %v6443_v7 }
 0x7a3   :  { %v1242_v9 = vpop.f32.mrb[26].mxu1 }
 0x7a4   :  { %v5355_v10 = vpop.f32.mrb[27].mxu1 }
 0x7b1   :  { %v1402_v12 = vpop.f32.mrb[28].mxu1 }
 0x7b2   :  { %v1403_v13 = vadd.f32 %v4673_v11, %v1402_v12  ;;  %v5378_v14 = vpop.f32.mrb[29].mxu1  ;;  %v1245_v11 = vmul.f32 0.25, %v1240_v6 }
 0x7b3   :  { %v1405_v15 = vpop.f32.mrb[30].mxu1 }
 0x7b4   :  { %v1471_v16 = vpack.c.bf16 %v1403_v13, %v1403_v13  ;;  %v5379_v18 = vpop.f32.mrb[31].mxu1  ;;  %v1408_v12 = vpack.c.bf16 %v1245_v11, %v1245_v11  ;;  %v6490_v13 = vld [vmem:[%s6134_s30 + $0x8] sm:$0xff]   ;;  %s6969_s30 = sld [smem:[#allocation15_spill]] }
 0x7b5   :  { %v1412_v14 = vunpack.c.l.bf16 %v6490_v13 }
 0x7b6   :  { %v1476_v19 = vsel %vm659_vm3, %v1471_v16, 0 }
 0x7b7   :  { %5387 = vmatpush3.bf16.msra.mxu1 %v1476_v19 }
 0x7b8   :  { %5398 = vmatprep.subr.bf16.mxu1 %v6062_v3 }
 0x857   :  { %v913_v22 = vpop.f32.mrb[12].mxu0 }
 0x858   :  { %v914_v23 = vadd.f32 %v4606_v20, %v913_v22  ;;  %v5312_v25 = vpop.f32.mrb[13].mxu0 }
 0x859   :  { %v916_v27 = vpop.f32.mrb[14].mxu0 }
 0x85a   :  { %v1001_v29 = vpack.c.bf16 %v914_v23, %v914_v23  ;;  %v5313_v30 = vpop.f32.mrb[15].mxu0  ;;  %v5818_v27 = vld [vmem:[%s6139_s6 + $0x10] sm:$0xff]  }
 0x85c   :  { %v1009_v32 = vsel %vm595_vm2, %v1001_v29, 0 }
 0x85d   :  { %5327 = vmatpush3.bf16.xpose.msra.mxu0 %v1009_v32 }
 0x85e   :  { %5332 = vmatprep.subr.bf16.mxu0 %v6062_v3 }
 0x864   :  { %5329 = vmatmul.mubr.msk.bf16.vlgmr.msra.gmra.mrb[16].mxu0 %vm595_vm2, %v1000_v35  ;;  %v5813_v35 = vld [vmem:[%s6104_s29 + $0x78] sm:$0xff]   ;;  %s6963_s29 = sld [smem:[#allocation14_spill]] }
 0x865   :  { %5333 = vmatpush3.bf16.msra.mxu0 %v1068_v36  ;;  %5334 = vmatprep.mubr.msk.bf16.mxu0 %vm6063_vm0, %v6062_v3  ;;  %v5814_v36 = vld [vmem:[%s6124_s19 + $0x60] sm:$0xff]  }
 0x866   :  { %5338 = vmatprep.subr.bf16.mxu0 %v6062_v3 }
 0x937   :  { %v1045_v38 = vpop.f32.mrb[16].mxu0 }
 0x938   :  { %v1046_v39 = vadd.f32 %v1045_v38, %v1004_v37  ;;  %v5330_v40 = vpop.f32.mrb[17].mxu0  ;;  %v5815_v37 = vld [vmem:[%s6124_s19 + $0x68] sm:$0xff]   ;;  %v5816_v38 = vld [vmem:[%s6124_s19 + $0x70] sm:$0xff]  }
 0x939   :  { %v1048_v41 = vpop.f32.mrb[18].mxu0 }
 0x93a   :  { %v5331_v42 = vpop.f32.mrb[19].mxu0  ;;  %v1051_v43 = vsel %vm642_vm4, %v1046_v39, -inf  ;;  %v5819_v41 = vld [vmem:[%s6114_s8 + $0x60] sm:$0xff]  }
 0x93b   :  { %1052 = vmax.xlane.f32.xlu0 %v1051_v43 }
 0x9c8   :  { %v1053_v44 = vpop.xlane.xlu0 %1052 }
 0x9c9   :  { %v1054_v45 = vsub.f32 %v1046_v39, %v1053_v44  ;;  %v5817_v39 = vld [vmem:[%s6124_s19 + $0x78] sm:$0xff]   ;;  %s6967_s19 = sld [smem:[#allocation16_spill]] }
 0x9cb   :  { %v1055_v46 = vmul.f32 1.442695, %v1054_v45 }
 0x9cd   :  { %5944 = vpow2.f32 %v1055_v46  ;;  %v5820_v46 = vld [vmem:[%s6114_s8 + $0x68] sm:$0xff]  }
 0x9d7   :  { %v5945_v47 = vpop.eup %5944 }
 0x9d8   :  { %v1057_v48 = vsel %vm642_vm4, %v5945_v47, 0.0 }
 0x9d9   :  { %1058 = vadd.xlane.f32.xlu1 %v1057_v48  ;;  %v5822_v48 = vld [vmem:[%s6114_s8 + $0x78] sm:$0xff]  }
 0xa66   :  { %v1059_v49 = vpop.xlane.xlu1 %1058 }
 0xa67   :  { %5946 = vrcp.f32 %v1059_v49 }
 0xa71   :  { %v5947_v17 = vpop.eup %5946 }
 0xa72   :  { %v1061_v50 = vmul.f32 %v5947_v17, %v5945_v47  ;;  %v5821_v47 = vld [vmem:[%s6114_s8 + $0x70] sm:$0xff]   ;;  %s6965_s8 = sld [smem:[#allocation12_spill]] }
 0xa74   :  { %v1062_v53 = vpack.c.bf16 %v1061_v50, %v1061_v50 }
 0xa76   :  { %5335 = vmatmul.mubr.msk.bf16.vlgmr.msra.gmra.mrb[20].mxu0 %vm642_vm4, %v1062_v53 }
 0xa77   :  { %5339 = vmatpush3.bf16.msra.mxu0 %v5805_v51  ;;  %5340 = vmatprep.mubr.msk.bf16.mxu0 %vm6063_vm0, %v6062_v3 }
 0xa78   :  { %5356 = vmatprep.subr.bf16.mxu0 %v6062_v3 }
 0xb49   :  { %v1104_v54 = vpop.f32.mrb[20].mxu0 }
 0xb4a   :  { %v1110_v56 = vpack.c.bf16 %v1104_v54, %v1104_v54  ;;  %v5336_v57 = vpop.f32.mrb[21].mxu0 }
 0xb4b   :  { %v1107_v58 = vpop.f32.mrb[22].mxu0  ;;  %v4710_v57 = vld [vmem:[%s6119_s14 + $0x3] ss:$0 sm:$0xff]  ;;  %s6966_s14 = sld [smem:[#allocation13_spill]] }
 0xb4c   :  { %v5337_v59 = vpop.f32.mrb[23].mxu0  ;;  %5341 = vmatmul.mubr.msk.bf16.vlgmr.msra.gmra.mrb[8].mxu0 %vm595_vm2, %v1110_v56  ;;  %v4695_v58 = vld [vmem:[%s6109_s3 + $0x3] ss:$0 sm:$0xff]  ;;  %s6964_s3 = sld [smem:[#allocation18_spill]] }
 0xb4d   :  { %5357 = vmatpush3.bf16.msra.mxu0 %v5806_v55  ;;  %5364 = vmatprep.mubr.msk.bf16.mxu0 %vm6063_vm0, %v6062_v3 }
 0xb4e   :  { %5358 = vmatprep.subr.bf16.mxu0 %v6062_v3 }
 0xb51   :  { %5359 = vmatpush3.bf16.msra.mxu0 %v5807_v60 }
 0xb52   :  { %5360 = vmatprep.subr.bf16.mxu0 %v6062_v3 }
 0xb55   :  { %5361 = vmatpush3.bf16.msra.mxu0 %v5808_v61 }
 0xb56   :  { %5362 = vmatprep.subr.bf16.mxu0 %v6062_v3 }
 0xb59   :  { %5363 = vmatpush3.bf16.msra.mxu0 %v5809_v62  ;;  %v4725_v62 = vld [vmem:[%s6129_s24 + $0x3] ss:$0 sm:$0xff]  ;;  %s6968_s24 = sld [smem:[#allocation17_spill]] }
 0xb5a   :  { %5380 = vmatprep.subr.bf16.mxu0 %v6062_v3 }
 0xb5c   :  { %5365 = vmatmul.mubr.msk.bf16.vlgmr.msra.gmra.mrb[24].mxu0 %vm312_vm1, %v6338_v52 }
 0xb5d   :  { %5382 = vmatprep.mubr.msk.bf16.mxu0 %vm6063_vm0, %v6062_v3 }
 0xc2f   :  { %v1321_v1 = vpop.f32.mrb[24].mxu0 }
 0xc30   :  { %v1322_v2 = vadd.f32 %v4658_v63, %v1321_v1  ;;  %v5366_v4 = vpop.f32.mrb[25].mxu0 }
 0xc31   :  { %v1324_v5 = vpop.f32.mrb[26].mxu0 }
 0xc32   :  { %v1409_v8 = vpack.c.bf16 %v1322_v2, %v1322_v2  ;;  %v5367_v9 = vpop.f32.mrb[27].mxu0 }
 0xc34   :  { %v1417_v10 = vsel %vm595_vm2, %v1409_v8, 0 }
 0xc35   :  { %5381 = vmatpush3.bf16.xpose.msra.mxu0 %v1417_v10  ;;  %v1820_v10 = vunpack.c.h.bf16 %v6490_v13 }
 0xc36   :  { %5392 = vmatprep.subr.bf16.mxu0 %v6062_v3 }
 0xc3c   :  { %5383 = vmatmul.mubr.msk.bf16.vlgmr.msra.gmra.mrb[28].mxu0 %vm595_vm2, %v1408_v12 }
 0xc3d   :  { %5394 = vmatprep.mubr.msk.bf16.mxu0 %vm6063_vm0, %v6062_v3  ;;  %5393 = vmatpush3.bf16.msra.mxu0 %v5818_v27 }
 0xc3e   :  { %5410 = vmatprep.subr.bf16.mxu0 %v6062_v3 }
 0xd0f   :  { %v1453_v7 = vpop.f32.mrb[28].mxu0 }
 0xd10   :  { %v1454_v15 = vadd.f32 %v1453_v7, %v1412_v14  ;;  %v5384_v16 = vpop.f32.mrb[29].mxu0 }
 0xd11   :  { %v1456_v18 = vpop.f32.mrb[30].mxu0 }
 0xd12   :  { %v5385_v19 = vpop.f32.mrb[31].mxu0  ;;  %v1459_v20 = vsel %vm642_vm4, %v1454_v15, -inf }
 0xd13   :  { %1460 = vmax.xlane.f32.xlu0 %v1459_v20 }
 0xda0   :  { %v1461_v21 = vpop.xlane.xlu0 %1460 }
 0xda1   :  { %v1462_v22 = vsub.f32 %v1454_v15, %v1461_v21 }
 0xda3   :  { %v1463_v23 = vmul.f32 1.442695, %v1462_v22 }
 0xda5   :  { %5948 = vpow2.f32 %v1463_v23 }
 0xdaf   :  { %v5949_v25 = vpop.eup %5948 }
 0xdb0   :  { %v1465_v26 = vsel %vm642_vm4, %v5949_v25, 0.0 }
 0xdb1   :  { %1466 = vadd.xlane.f32.xlu1 %v1465_v26  ;;  %v5823_v26 = vld [vmem:[%s6139_s6 + $0x18] sm:$0xff]   ;;  %s6970_s6 = sld [smem:[#allocation19_spill]] }
 0xe3e   :  { %v1467_v28 = vpop.xlane.xlu1 %1466 }
 0xe3f   :  { %5950 = vrcp.f32 %v1467_v28 }
 0xe49   :  { %v5951_v29 = vpop.eup %5950 }
 0xe4a   :  { %v1469_v30 = vmul.f32 %v5951_v29, %v5949_v25 }
 0xe4c   :  { %v1470_v32 = vpack.c.bf16 %v1469_v30, %v1469_v30 }
 0xe4e   :  { %5389 = vmatmul.mubr.msk.bf16.vlgmr.msra.gmra.mrb[32].mxu1 %vm642_vm4, %v1470_v32 }
 0xe4f   :  { %5399 = vmatpush3.bf16.msra.mxu1 %v5810_v31  ;;  %5406 = vmatprep.mubr.msk.bf16.mxu1 %vm6063_vm0, %v6062_v3 }
 0xe50   :  { %5400 = vmatprep.subr.bf16.mxu1 %v6062_v3 }
 0xe53   :  { %5401 = vmatpush3.bf16.msra.mxu1 %v5811_v33  ;;  %v4559_v33 = vld [vmem:[%s6956_s0] ss:$0 sm:$0xff] }
 0xe54   :  { %5402 = vmatprep.subr.bf16.mxu1 %v6062_v3 }
 0xe57   :  { %5403 = vmatpush3.bf16.msra.mxu1 %v5812_v34  ;;  %v348_v34 = vadd.f32 %v4559_v33, %v6313_v24 }
 0xe58   :  { %5404 = vmatprep.subr.bf16.mxu1 %v6062_v3 }
 0xe5b   :  { %5405 = vmatpush3.bf16.msra.mxu1 %v5813_v35 }
 0xe5c   :  { %5422 = vmatprep.subr.bf16.mxu1 %v6062_v3 }
 0xe5e   :  { %5407 = vmatmul.mubr.msk.bf16.vlgmr.msra.gmra.mrb[36].mxu1 %vm312_vm1, %v6338_v52 }
 0xe5f   :  { %5423 = vmatpush3.bf16.msra.mxu1 %v5814_v36  ;;  %5430 = vmatprep.mubr.msk.bf16.mxu1 %vm6063_vm0, %v6062_v3 }
 0xe60   :  { %5424 = vmatprep.subr.bf16.mxu1 %v6062_v3 }
 0xe63   :  { %5425 = vmatpush3.bf16.msra.mxu1 %v5815_v37 }
 0xe64   :  { %5426 = vmatprep.subr.bf16.mxu1 %v6062_v3 }
 0xe67   :  { %5427 = vmatpush3.bf16.msra.mxu1 %v5816_v38 }
 0xe68   :  { %5428 = vmatprep.subr.bf16.mxu1 %v6062_v3 }
 0xe6b   :  { %5429 = vmatpush3.bf16.msra.mxu1 %v5817_v39 }
 0xe6e   :  { %5431 = vmatmul.mubr.msk.bf16.vlgmr.msra.gmra.mrb[40].mxu1 %vm312_vm1, %v6338_v52 }
 0xf21   :  { %v1512_v40 = vpop.f32.mrb[32].mxu1 }
 0xf22   :  { %v1518_v42 = vpack.c.bf16 %v1512_v40, %v1512_v40  ;;  %v5390_v43 = vpop.f32.mrb[33].mxu1 }
 0xf23   :  { %v1515_v44 = vpop.f32.mrb[34].mxu1 }
 0xf24   :  { %v5391_v45 = vpop.f32.mrb[35].mxu1  ;;  %5395 = vmatmul.mubr.msk.bf16.vlgmr.msra.gmra.mrb[8].mxu0 %vm595_vm2, %v1518_v42 }
 0xf25   :  { %5411 = vmatpush3.bf16.msra.mxu0 %v5819_v41  ;;  %5418 = vmatprep.mubr.msk.bf16.mxu0 %vm6063_vm0, %v6062_v3  ;;  %v5826_v45 = vld [vmem:[%s6957_s5 + $0x4] ss:$8 sps:$4 sm:$0xff]  }
 0xf26   :  { %5412 = vmatprep.subr.bf16.mxu0 %v6062_v3  ;;  %2073 = vmatprep.subr.bf16.mxu1 %v5826_v45 }
 0xf29   :  { %5413 = vmatpush3.bf16.msra.mxu0 %v5820_v46  ;;  %v5824_v46 = vld [vmem:[%s6957_s5] ss:$8 sps:$4 sm:$0xff]  }
 0xf2a   :  { %5414 = vmatprep.subr.bf16.mxu0 %v6062_v3  ;;  %2074 = vmatpush1.bf16.msra.mxu1 %v5824_v46 }
 0xf2d   :  { %5415 = vmatpush3.bf16.msra.mxu0 %v5821_v47  ;;  %v5829_v47 = vld [vmem:[%s6957_s5 + $0x14] ss:$8 sps:$4 sm:$0xff]  }
 0xf2e   :  { %5416 = vmatprep.subr.bf16.mxu0 %v6062_v3  ;;  %2075 = vmatprep.subr.bf16.mxu1 %v5829_v47 }
 0xf31   :  { %v1647_v49 = vpop.f32.mrb[36].mxu1  ;;  %5417 = vmatpush3.bf16.msra.mxu0 %v5822_v48  ;;  %v5827_v48 = vld [vmem:[%s6957_s5 + $0x10] ss:$8 sps:$4 sm:$0xff]  }
 0xf32   :  { %v5408_v17 = vpop.f32.mrb[37].mxu1  ;;  %5434 = vmatprep.subr.bf16.mxu0 %v6062_v3  ;;  %v1648_v0 = vadd.f32 %v4695_v58, %v1647_v49  ;;  %2076 = vmatpush1.bf16.msra.mxu1 %v5827_v48  ;;  %v5832_v49 = vld [vmem:[%s6957_s5 + $0x24] ss:$8 sps:$4 sm:$0xff]   ;;  %v4738_v58 = vld [vmem:[%s6958_s9] ss:$0 sm:$0xff] }
 0xf33   :  { %v1650_v50 = vpop.f32.mrb[38].mxu1  ;;  %v5830_v17 = vld [vmem:[%s6957_s5 + $0x20] ss:$8 sps:$4 sm:$0xff]   ;;  %2077 = vmatprep.subr.bf16.mxu1 %v5832_v49 }
 0xf34   :  { %v5409_v51 = vpop.f32.mrb[39].mxu1  ;;  %5419 = vmatmul.mubr.msk.bf16.vlgmr.msra.gmra.mrb[32].mxu0 %vm312_vm1, %v6338_v52  ;;  %v1653_v5 = vmul.f32 0.25, %v1648_v0  ;;  %v5835_v50 = vld [vmem:[%s6957_s5 + $0x34] ss:$8 sps:$4 sm:$0xff]   ;;  %v5836_v0 = vld [vmem:[%s6960_s17 + $0x40] sm:$0xff]  }
 0xf35   :  { %5436 = vmatprep.mubr.msk.bf16.mxu0 %vm6063_vm0, %v6062_v3  ;;  %v5833_v51 = vld [vmem:[%s6957_s5 + $0x30] ss:$8 sps:$4 sm:$0xff]  }
 0xf36   :  { %v1816_v8 = vpack.c.bf16 %v1653_v5, %v1653_v5  ;;  %2078 = vmatpush1.bf16.msra.mxu1 %v5830_v17  ;;  %v5841_v5 = vld [vmem:[%s6960_s17 + $0x10] sm:$0xff]  }
 0xf37   :  { %2079 = vmatprep.subr.bf16.mxu1 %v5835_v50 }
 0xf3a   :  { %2080 = vmatpush1.bf16.msra.mxu1 %v5833_v51  ;;  %v4749_v51 = vld [vmem:[%s6962_s25] ss:$0 sm:$0xff] }
 0xf3b   :  { %5452 = vmatprep.subr.bf16.mxu1 %v6062_v3 }
 0xf41   :  { %v1810_v53 = vpop.f32.mrb[40].mxu1 }
 0xf42   :  { %v5432_v54 = vpop.f32.mrb[41].mxu1  ;;  %v1811_v4 = vadd.f32 %v4725_v62, %v1810_v53  ;;  %v6064_v53 = vmov 0  }
 0xf43   :  { %v1813_v55 = vpop.f32.mrb[42].mxu1  ;;  %2105 = vmatprep.mubr.bf16.mxu1 %v6064_v53 }
 0xf44   :  { %v5433_v56 = vpop.f32.mrb[43].mxu1  ;;  %v1879_v6 = vpack.c.bf16 %v1811_v4, %v1811_v4  ;;  %v5839_v4 = vld [vmem:[%s6960_s17 + $0x8] sm:$0xff]  }
 0xf46   :  { %v1884_v9 = vsel %vm659_vm3, %v1879_v6, 0  ;;  %v5842_v6 = vld [vmem:[%s6960_s17 + $0x58] sm:$0xff]  }
0x1007   :  { %v1729_v59 = vpop.f32.mrb[32].mxu0 }
0x1008   :  { %v1730_v60 = vadd.f32 %v4710_v57, %v1729_v59  ;;  %v5420_v61 = vpop.f32.mrb[33].mxu0 }
0x1009   :  { %v1732_v63 = vpop.f32.mrb[34].mxu0 }
0x100a   :  { %v1817_v1 = vpack.c.bf16 %v1730_v60, %v1730_v60  ;;  %v5421_v2 = vpop.f32.mrb[35].mxu0  ;;  %v4739_v60 = vld [vmem:[%s6959_s13] ss:$0 sm:$0xff] }
0x100b   :  { %v5838_v2 = vld [vmem:[%s6960_s17 + $0x48] sm:$0xff]  }
0x100c   :  { %v1825_v52 = vsel %vm595_vm2, %v1817_v1, 0  ;;  %v5837_v1 = vld [vmem:[%s6960_s17] sm:$0xff]  }
0x100d   :  { %5435 = vmatpush3.bf16.xpose.msra.mxu0 %v1825_v52  ;;  %v5840_v52 = vld [vmem:[%s6960_s17 + $0x50] sm:$0xff]  }
0x100e   :  { %5440 = vmatprep.subr.bf16.mxu0 %v6062_v3 }
0x1014   :  { %5437 = vmatmul.mubr.msk.bf16.vlgmr.msra.gmra.mrb[36].mxu0 %vm595_vm2, %v1816_v8  ;;  %v5843_v8 = vld [vmem:[%s6960_s17 + $0x18] sm:$0xff]  }
0x1015   :  { %5441 = vmatpush3.bf16.msra.mxu0 %v1884_v9  ;;  %5442 = vmatprep.mubr.msk.bf16.mxu0 %vm6063_vm0, %v6062_v3  ;;  %v5844_v9 = vld [vmem:[%s6960_s17 + $0x60] sm:$0xff]  }
0x1016   :  { %5446 = vmatprep.subr.bf16.mxu0 %v6062_v3 }
0x10e7   :  { %v1861_v11 = vpop.f32.mrb[36].mxu0 }
0x10e8   :  { %v1862_v12 = vadd.f32 %v1861_v11, %v1820_v10  ;;  %v5438_v14 = vpop.f32.mrb[37].mxu0  ;;  %v5845_v10 = vld [vmem:[%s6960_s17 + $0x20] sm:$0xff]   ;;  %v5846_v11 = vld [vmem:[%s6960_s17 + $0x68] sm:$0xff]  }
0x10e9   :  { %v1864_v7 = vpop.f32.mrb[38].mxu0  ;;  %v5848_v14 = vld [vmem:[%s6960_s17 + $0x70] sm:$0xff]  }
0x10ea   :  { %v5439_v15 = vpop.f32.mrb[39].mxu0  ;;  %v1867_v16 = vsel %vm642_vm4, %v1862_v12, -inf  ;;  %v5849_v7 = vld [vmem:[%s6960_s17 + $0x30] sm:$0xff]  }
0x10eb   :  { %1868 = vmax.xlane.f32.xlu0 %v1867_v16  ;;  %v5850_v15 = vld [vmem:[%s6960_s17 + $0x78] sm:$0xff]  }
0x10ec   :  { %v5851_v16 = vld [vmem:[%s6960_s17 + $0x38] sm:$0xff]  }
0x1178   :  { %v1869_v18 = vpop.xlane.xlu0 %1868 }
0x1179   :  { %v1870_v19 = vsub.f32 %v1862_v12, %v1869_v18  ;;  %v5847_v12 = vld [vmem:[%s6960_s17 + $0x28] sm:$0xff]   ;;  %v2020_v18 = vlaneseq }
0x117b   :  { %v1871_v20 = vmul.f32 1.442695, %v1870_v19  ;;  %v6594_v19 = vshrl.u32 %v2020_v18, 7 }
0x117d   :  { %5952 = vpow2.f32 %v1871_v20  ;;  %v2022_v20 = vsub.s32 0, %v6594_v19 }
0x1187   :  { %v5953_v21 = vpop.eup %5952 }
0x1188   :  { %v1873_v22 = vsel %vm642_vm4, %v5953_v21, 0.0 }
0x1189   :  { %1874 = vadd.xlane.f32.xlu1 %v1873_v22  ;;  %v2026_v22 = vsub.s32 1, %v6594_v19 }
0x1216   :  { %v1875_v23 = vpop.xlane.xlu1 %1874 }
0x1217   :  { %5954 = vrcp.f32 %v1875_v23 }
0x1221   :  { %v5955_v13 = vpop.eup %5954 }
0x1222   :  { %v1877_v25 = vmul.f32 %v5955_v13, %v5953_v21  ;;  %v2018_v21 = vld [vmem:[%s6961_s21] sm:$0x3] }
0x1223   :  { %v2023_v23 = vrot.slane %v2018_v21, %v2022_v20  ;;  %v2027_v13 = vrot.slane %v2018_v21, %v2026_v22 }
0x1224   :  { %v1878_v27 = vpack.c.bf16 %v1877_v25, %v1877_v25 }
0x1226   :  { %5443 = vmatmul.mubr.msk.bf16.vlgmr.msra.gmra.mrb[40].mxu0 %vm642_vm4, %v1878_v27 }
0x1227   :  { %5447 = vmatpush3.bf16.msra.mxu0 %v5823_v26  ;;  %5448 = vmatprep.mubr.msk.bf16.mxu0 %vm6063_vm0, %v6062_v3 }
0x1228   :  { %5078 = vmatprep.subr.bf16.mxu0 %v5836_v0 }
0x12f9   :  { %v1920_v28 = vpop.f32.mrb[40].mxu0 }
0x12fa   :  { %v1926_v29 = vpack.c.bf16 %v1920_v28, %v1920_v28  ;;  %v5444_v30 = vpop.f32.mrb[41].mxu0 }
0x12fb   :  { %v1923_v31 = vpop.f32.mrb[42].mxu0 }
0x12fc   :  { %v5445_v32 = vpop.f32.mrb[43].mxu0  ;;  %5449 = vmatmul.mubr.msk.bf16.vlgmr.msra.gmra.mrb[8].mxu0 %vm595_vm2, %v1926_v29 }
0x12fd   :  { %5079 = vmatpush3.bf16.msra.mxu0 %v5837_v1 }
0x12fe   :  { %5080 = vmatprep.subr.bf16.mxu0 %v5838_v2  ;;  %v5852_v2 = vld [vmem:[%s6963_s29] sm:$0xff]  }
0x1301   :  { %5081 = vmatpush3.bf16.msra.mxu0 %v5839_v4  ;;  %v5853_v4 = vld [vmem:[%s6964_s3] sm:$0xff]  }
0x1302   :  { %5082 = vmatprep.subr.bf16.mxu0 %v5840_v52  ;;  %v5855_v52 = vld [vmem:[%s6964_s3 + $0x8] sm:$0xff]  }
0x1305   :  { %5083 = vmatpush3.bf16.msra.mxu0 %v5841_v5  ;;  %v5856_v5 = vld [vmem:[%s6963_s29 + $0x10] sm:$0xff]  }
0x1306   :  { %5084 = vmatprep.subr.bf16.mxu0 %v5842_v6  ;;  %v5857_v6 = vld [vmem:[%s6964_s3 + $0x10] sm:$0xff]  }
0x1309   :  { %5085 = vmatpush3.bf16.msra.mxu0 %v5843_v8  ;;  %v5858_v8 = vld [vmem:[%s6963_s29 + $0x18] sm:$0xff]  }
0x130a   :  { %5086 = vmatprep.subr.bf16.mxu0 %v5844_v9  ;;  %v5859_v9 = vld [vmem:[%s6964_s3 + $0x18] sm:$0xff]  }
0x130d   :  { %5087 = vmatpush3.bf16.msra.mxu0 %v5845_v10 }
0x130e   :  { %5088 = vmatprep.subr.bf16.mxu0 %v5846_v11 }
0x1311   :  { %5089 = vmatpush3.bf16.msra.mxu0 %v5847_v12 }
0x1312   :  { %5090 = vmatprep.subr.bf16.mxu0 %v5848_v14 }
0x1315   :  { %5091 = vmatpush3.bf16.msra.mxu0 %v5849_v7  ;;  %v4766_v7 = vld [vmem:[%s6965_s8] ss:$0 sm:$0xff] }
0x1316   :  { %5092 = vmatprep.subr.bf16.mxu0 %v5850_v15 }
0x1319   :  { %5093 = vmatpush3.bf16.msra.mxu0 %v5851_v16  ;;  %v4767_v16 = vld [vmem:[%s6966_s14] ss:$0 sm:$0xff] }
0x131a   :  { %5476 = vmatprep.subr.bf16.mxu0 %v6062_v3 }
0x13cf   :  { %v1973_v35 = vpop.f32.mrb[8].mxu0 }
0x13d0   :  { %v6556_v36 = vadd.f32 %v1973_v35, %v348_v34  ;;  %v5450_v37 = vpop.f32.mrb[9].mxu0 }
0x13d1   :  { %v1976_v38 = vpop.f32.mrb[10].mxu0 }
0x13d2   :  { %v5451_v39 = vpop.f32.mrb[11].mxu0  ;;  %v1982_v40 = vsel %vm312_vm1, %v6556_v36, 0.0 }
0x13d3   :  { %1983 = vadd.xlane.f32.xlu0 %v1982_v40 }
0x1460   :  { %v1984_v41 = vpop.xlane.xlu0 %1983 }
0x1461   :  { %v1985_v42 = vmul.f32 0.015625, %v1984_v41 }
0x1463   :  { %v1986_v43 = vsub.f32 %v6556_v36, %v1985_v42 }
0x1465   :  { %v1987_v24 = vmul.f32 %v1986_v43, %v1986_v43 }
0x1467   :  { %v1988_v44 = vsel %vm312_vm1, %v1987_v24, 0.0 }
0x1468   :  { %1989 = vadd.xlane.f32.xlu1 %v1988_v44 }
0x14f5   :  { %v1990_v54 = vpop.xlane.xlu1 %1989 }
0x14f6   :  { %v1991_v55 = vmul.f32 0.015625, %v1990_v54 }
0x14f8   :  { %v1992_v56 = vadd.f32 1e-05, %v1991_v55 }
0x14fa   :  { %5956 = vrsqrt.f32 %v1992_v56 }
0x1504   :  { %v5957_v57 = vpop.eup %5956 }
0x1505   :  { %v1994_v59 = vmul.f32 %v5957_v57, %v1986_v43 }
0x1507   :  { %v2001_v61 = vmul.f32 %v4738_v58, %v1994_v59 }
0x1509   :  { %v2008_v62 = vadd.f32 %v4739_v60, %v2001_v61 }
0x150b   :  { %v2017_v63 = vpack.c.bf16 %v2008_v62, %v2008_v62 }
0x150d   :  { %4748 = vmatmul.mubr.msk.bf16.vlgmr.msra.gmra.mrb[44].mxu1 %vm312_vm1, %v2017_v63 }
0x150e   :  { %5460 = vmatprep.mubr.msk.bf16.mxu1 %vm6063_vm0, %v6062_v3  ;;  %5453 = vmatpush3.bf16.msra.mxu1 %v5852_v2 }
0x150f   :  { %5454 = vmatprep.subr.bf16.mxu1 %v6062_v3 }
0x15e0   :  { %v2107_v25 = vpop.f32.mrb[44].mxu1 }
0x15e1   :  { %v2108_v26 = vadd.f32 %v2107_v25, %v2023_v23  ;;  %v2109_v27 = vpop.f32.mrb[45].mxu1  ;;  %v5860_v23 = vld [vmem:[%s6967_s19] sm:$0xff]   ;;  %v5861_v25 = vld [vmem:[%s6967_s19 + $0x8] sm:$0xff]  }
0x15e2   :  { %v2110_v28 = vadd.f32 %v2109_v27, %v2027_v13  ;;  %v2111_v29 = vpop.f32.mrb[46].mxu1  ;;  %v5863_v27 = vld [vmem:[%s6967_s19 + $0x18] sm:$0xff]  }
0x15e3   :  { %v2116_v30 = vmul.f32 0.044715, %v2108_v26  ;;  %v2112_v31 = vpop.f32.mrb[47].mxu1  ;;  %v2114_v24 = vmul.f32 0.5, %v2108_v26 }
0x15e4   :  { %v2117_v32 = vmul.f32 0.044715, %v2110_v28  ;;  %v2115_v45 = vmul.f32 0.5, %v2110_v28 }
0x15e5   :  { %v2118_v33 = vmul.f32 %v2116_v30, %v2108_v26 }
0x15e6   :  { %v2119_v34 = vmul.f32 %v2117_v32, %v2110_v28 }
0x15e7   :  { %v2120_v35 = vmul.f32 %v2118_v33, %v2108_v26 }
0x15e8   :  { %v2121_v37 = vmul.f32 %v2119_v34, %v2110_v28 }
0x15e9   :  { %v2122_v38 = vadd.f32 %v2120_v35, %v2108_v26  ;;  %v5862_v26 = vld [vmem:[%s6967_s19 + $0x10] sm:$0xff]  }
0x15ea   :  { %v2123_v39 = vadd.f32 %v2121_v37, %v2110_v28  ;;  %v4775_v37 = vld [vmem:[%s6968_s24] ss:$0 sm:$0xff] }
0x15eb   :  { %v2124_v40 = vmul.f32 0.7978846, %v2122_v38  ;;  %v4769_v38 = vld [vmem:[%s6969_s30] ss:$0 sm:$0xff] }
0x15ec   :  { %v2125_v41 = vmul.f32 0.7978846, %v2123_v39 }
0x15ed   :  { %5958 = vtanh.f32 %v2124_v40 }
0x15ee   :  { %5960 = vtanh.f32 %v2125_v41 }
0x15f7   :  { %v5959_v42 = vpop.eup %5958 }
0x15f8   :  { %v5961_v43 = vpop.eup %5960  ;;  %v2128_v44 = vadd.f32 1.0, %v5959_v42  ;;  %v4781_v42 = vld [vmem:[%s6970_s6] ss:$0 sm:$0xff] }
0x15f9   :  { %v2129_v46 = vadd.f32 1.0, %v5961_v43 }
0x15fa   :  { %v2130_v47 = vmul.f32 %v2128_v44, %v2114_v24 }
0x15fb   :  { %v2131_v48 = vmul.f32 %v2129_v46, %v2115_v45 }
0x15fc   :  { %v2164_v17 = vpack.c.bf16 %v2130_v47, %v2130_v47 }
0x15fd   :  { %v2165_v49 = vpack.c.bf16 %v2131_v48, %v2131_v48 }
0x15ff   :  { %2301 = vmatprep.mubr.bf16.mxu0 %v2165_v49 }
0x1600   :  { %2302 = vmatmul.mubr.bf16.vlgmr.msra.gmra.mrb[44].mxu0 %v2164_v17 }
0x1601   :  { %5484 = vmatprep.mubr.msk.bf16.mxu0 %vm6063_vm0, %v6062_v3  ;;  %5477 = vmatpush3.bf16.msra.mxu0 %v5853_v4  ;;  %v5880_v4 = vld [vmem:[%s6972_s16] sm:$0xff]  }
0x1602   :  { %5478 = vmatprep.subr.bf16.mxu0 %v6062_v3 }
0x1605   :  { %5479 = vmatpush3.bf16.msra.mxu0 %v5855_v52 }
0x1606   :  { %5480 = vmatprep.subr.bf16.mxu0 %v6062_v3 }
0x1609   :  { %5481 = vmatpush3.bf16.msra.mxu0 %v5857_v6  ;;  %v5864_v6 = vld [vmem:[%s6963_s29 + $0x20] sm:$0xff]  }
0x160a   :  { %5482 = vmatprep.subr.bf16.mxu0 %v6062_v3 }
0x160d   :  { %5483 = vmatpush3.bf16.msra.mxu0 %v5859_v9  ;;  %v5865_v9 = vld [vmem:[%s6963_s29 + $0x28] sm:$0xff]  }
0x160e   :  { %5500 = vmatprep.subr.bf16.mxu0 %v6062_v3 }
0x16d3   :  { %v5094_v50 = vpop.f32.mrb[44].mxu0 }
0x16d4   :  { %v5095_v54 = vpop.f32.mrb[45].mxu0 }
0x16d5   :  { %v5096_v55 = vadd.f32 %v5095_v54, %v5094_v50  ;;  %v5097_v56 = vpop.f32.mrb[46].mxu0 }
0x16d6   :  { %v5098_v57 = vpop.f32.mrb[47].mxu0 }
0x16d7   :  { %v2304_v58 = vadd.f32 %v5096_v55, %v4749_v51  ;;  %v6664_v51 = vld [vmem:[%s6971_s15] sm:$0xff]  }
0x16d8   :  { %v2592_v54 = vunpack.c.l.bf16 %v6664_v51 }
0x16d9   :  { %v6607_v59 = vadd.f32 %v6556_v36, %v2304_v58  ;;  %v5854_v36 = vld [vmem:[%s6963_s29 + $0x8] sm:$0xff]  }
0x16da   :  { %5455 = vmatpush3.bf16.msra.mxu1 %v5854_v36 }
0x16db   :  { %v2312_v60 = vsel %vm312_vm1, %v6607_v59, 0.0  ;;  %5456 = vmatprep.subr.bf16.mxu1 %v6062_v3 }
0x16dc   :  { %2313 = vadd.xlane.f32.xlu0 %v2312_v60 }
0x16de   :  { %5457 = vmatpush3.bf16.msra.mxu1 %v5856_v5 }
0x16df   :  { %5458 = vmatprep.subr.bf16.mxu1 %v6062_v3 }
0x16e2   :  { %5459 = vmatpush3.bf16.msra.mxu1 %v5858_v8 }
0x16e3   :  { %5464 = vmatprep.subr.bf16.mxu1 %v6062_v3 }
0x1769   :  { %v2314_v61 = vpop.xlane.xlu0 %2313 }
0x176a   :  { %v2315_v62 = vmul.f32 0.015625, %v2314_v61 }
0x176c   :  { %v2316_v63 = vsub.f32 %v6607_v59, %v2315_v62 }
0x176e   :  { %v2317_v0 = vmul.f32 %v2316_v63, %v2316_v63 }
0x1770   :  { %v2318_v1 = vsel %vm312_vm1, %v2317_v0, 0.0 }
0x1771   :  { %2319 = vadd.xlane.f32.xlu1 %v2318_v1 }
0x17fe   :  { %v2320_v10 = vpop.xlane.xlu1 %2319 }
0x17ff   :  { %v2321_v11 = vmul.f32 0.015625, %v2320_v10  ;;  %v5866_v10 = vld [vmem:[%s6963_s29 + $0x30] sm:$0xff]  }
0x1801   :  { %v2322_v12 = vadd.f32 1e-05, %v2321_v11  ;;  %v5867_v11 = vld [vmem:[%s6963_s29 + $0x38] sm:$0xff]  }
0x1803   :  { %5962 = vrsqrt.f32 %v2322_v12  ;;  %v5868_v12 = vld [vmem:[%s6964_s3 + $0x20] sm:$0xff]  }
0x180d   :  { %v5963_v14 = vpop.eup %5962 }
0x180e   :  { %v2324_v15 = vmul.f32 %v5963_v14, %v2316_v63  ;;  %v5869_v14 = vld [vmem:[%s6964_s3 + $0x28] sm:$0xff]  }
0x1810   :  { %v2331_v18 = vmul.f32 %v4766_v7, %v2324_v15  ;;  %v5870_v7 = vld [vmem:[%s6964_s3 + $0x30] sm:$0xff]   ;;  %v5871_v15 = vld [vmem:[%s6964_s3 + $0x38] sm:$0xff]  }
0x1812   :  { %v2338_v21 = vadd.f32 %v4767_v16, %v2331_v18  ;;  %v5872_v16 = vld [vmem:[%s6963_s29 + $0x40] sm:$0xff]   ;;  %v5873_v18 = vld [vmem:[%s6963_s29 + $0x48] sm:$0xff]  }
0x1814   :  { %v6632_v13 = vpack.c.bf16 %v2338_v21, %v2338_v21  ;;  %v5874_v21 = vld [vmem:[%s6963_s29 + $0x50] sm:$0xff]  }
0x1816   :  { %5461 = vmatmul.mubr.msk.bf16.vlgmr.msra.gmra.mrb[48].mxu1 %vm312_vm1, %v6632_v13  ;;  %5485 = vmatmul.mubr.msk.bf16.vlgmr.msra.gmra.mrb[48].mxu0 %vm312_vm1, %v6632_v13 }
0x1817   :  { %5465 = vmatpush3.bf16.msra.mxu1 %v5860_v23  ;;  %5472 = vmatprep.mubr.msk.bf16.mxu1 %vm6063_vm0, %v6062_v3  ;;  %v5875_v23 = vld [vmem:[%s6963_s29 + $0x58] sm:$0xff]  }
0x1818   :  { %5466 = vmatprep.subr.bf16.mxu1 %v6062_v3  ;;  %5502 = vmatprep.mubr.msk.bf16.mxu0 %vm6063_vm0, %v6062_v3 }
0x1819   :  { %5501 = vmatpush3.bf16.msra.mxu0 %v5880_v4 }
0x181a   :  { %5518 = vmatprep.subr.bf16.mxu0 %v6062_v3 }
0x181b   :  { %5467 = vmatpush3.bf16.msra.mxu1 %v5861_v25  ;;  %v5876_v25 = vld [vmem:[%s6964_s3 + $0x40] sm:$0xff]  }
0x181c   :  { %5468 = vmatprep.subr.bf16.mxu1 %v6062_v3 }
0x181f   :  { %5469 = vmatpush3.bf16.msra.mxu1 %v5862_v26  ;;  %v5877_v26 = vld [vmem:[%s6964_s3 + $0x48] sm:$0xff]  }
0x1820   :  { %5470 = vmatprep.subr.bf16.mxu1 %v6062_v3 }
0x1823   :  { %5471 = vmatpush3.bf16.msra.mxu1 %v5863_v27  ;;  %v5878_v27 = vld [vmem:[%s6964_s3 + $0x50] sm:$0xff]  }
0x1824   :  { %5488 = vmatprep.subr.bf16.mxu1 %v6062_v3 }
0x1826   :  { %5473 = vmatmul.mubr.msk.bf16.vlgmr.msra.gmra.mrb[52].mxu1 %vm312_vm1, %v6632_v13 }
0x1827   :  { %5490 = vmatprep.mubr.msk.bf16.mxu1 %vm6063_vm0, %v6062_v3 }
0x18e9   :  { %v2424_v28 = vpop.f32.mrb[48].mxu1  ;;  %v2583_v29 = vpop.f32.mrb[48].mxu0 }
0x18ea   :  { %v5462_v30 = vpop.f32.mrb[49].mxu1  ;;  %v5486_v31 = vpop.f32.mrb[49].mxu0  ;;  %v2425_v24 = vadd.f32 %v4769_v38, %v2424_v28  ;;  %v2584_v46 = vadd.f32 %v4781_v42, %v2583_v29  ;;  %v5879_v28 = vld [vmem:[%s6964_s3 + $0x58] sm:$0xff]  }
0x18eb   :  { %v2427_v32 = vpop.f32.mrb[50].mxu1  ;;  %v2586_v33 = vpop.f32.mrb[50].mxu0  ;;  %v5881_v30 = vld [vmem:[%s6967_s19 + $0x20] sm:$0xff]   ;;  %v5884_v38 = vld [vmem:[%s6967_s19 + $0x38] sm:$0xff]  }
0x18ec   :  { %v5463_v34 = vpop.f32.mrb[51].mxu1  ;;  %v5487_v35 = vpop.f32.mrb[51].mxu0  ;;  %v2430_v48 = vmul.f32 0.25, %v2425_v24  ;;  %v2651_v49 = vpack.c.bf16 %v2584_v46, %v2584_v46 }
0x18ed   :  { %v5882_v35 = vld [vmem:[%s6967_s19 + $0x28] sm:$0xff]  }
0x18ee   :  { %v2589_v17 = vpack.c.bf16 %v2430_v48, %v2430_v48  ;;  %v2656_v50 = vsel %vm659_vm3, %v2651_v49, 0 }
0x18f9   :  { %v2504_v39 = vpop.f32.mrb[52].mxu1 }
0x18fa   :  { %v2505_v40 = vadd.f32 %v4775_v37, %v2504_v39  ;;  %v5474_v41 = vpop.f32.mrb[53].mxu1  ;;  %v5883_v37 = vld [vmem:[%s6967_s19 + $0x30] sm:$0xff]  }
0x18fb   :  { %v2507_v43 = vpop.f32.mrb[54].mxu1 }
0x18fc   :  { %v2590_v44 = vpack.c.bf16 %v2505_v40, %v2505_v40  ;;  %v5475_v45 = vpop.f32.mrb[55].mxu1 }
0x18fe   :  { %v2597_v47 = vsel %vm595_vm2, %v2590_v44, 0 }
0x18ff   :  { %5489 = vmatpush3.bf16.xpose.msra.mxu1 %v2597_v47 }
0x1900   :  { %5494 = vmatprep.subr.bf16.mxu1 %v6062_v3 }
0x1906   :  { %5491 = vmatmul.mubr.msk.bf16.vlgmr.msra.gmra.mrb[56].mxu1 %vm595_vm2, %v2589_v17  ;;  %v4882_v17 = vld [vmem:[%s6970_s6 + $0x2] ss:$0 sm:$0xff] }
0x1907   :  { %5495 = vmatpush3.bf16.msra.mxu1 %v2656_v50  ;;  %5496 = vmatprep.mubr.msk.bf16.mxu1 %vm6063_vm0, %v6062_v3 }
0x1908   :  { %5506 = vmatprep.subr.bf16.mxu1 %v6062_v3 }
0x19d9   :  { %v2633_v55 = vpop.f32.mrb[56].mxu1 }
0x19da   :  { %v2634_v56 = vadd.f32 %v2633_v55, %v2592_v54  ;;  %v5492_v57 = vpop.f32.mrb[57].mxu1 }
0x19db   :  { %v2636_v58 = vpop.f32.mrb[58].mxu1 }
0x19dc   :  { %v5493_v60 = vpop.f32.mrb[59].mxu1  ;;  %v2639_v61 = vsel %vm642_vm4, %v2634_v56, -inf }
0x19dd   :  { %2640 = vmax.xlane.f32.xlu0 %v2639_v61  ;;  %v4815_v61 = vld [vmem:[%s6968_s24 + $0x1] ss:$0 sm:$0xff] }
0x1a6a   :  { %v2641_v62 = vpop.xlane.xlu0 %2640 }
0x1a6b   :  { %v2642_v63 = vsub.f32 %v2634_v56, %v2641_v62  ;;  %v4800_v62 = vld [vmem:[%s6969_s30 + $0x1] ss:$0 sm:$0xff] }
0x1a6d   :  { %v2643_v0 = vmul.f32 1.442695, %v2642_v63 }
0x1a6f   :  { %5964 = vpow2.f32 %v2643_v0 }
0x1a79   :  { %v5965_v1 = vpop.eup %5964 }
0x1a7a   :  { %v2645_v2 = vsel %vm642_vm4, %v5965_v1, 0.0 }
0x1a7b   :  { %2646 = vadd.xlane.f32.xlu1 %v2645_v2  ;;  %v4830_v2 = vld [vmem:[%s6970_s6 + $0x1] ss:$0 sm:$0xff] }
0x1b08   :  { %v2647_v36 = vpop.xlane.xlu1 %2646 }
0x1b09   :  { %5966 = vrcp.f32 %v2647_v36 }
0x1b13   :  { %v5967_v52 = vpop.eup %5966 }
0x1b14   :  { %v2649_v5 = vmul.f32 %v5967_v52, %v5965_v1 }
0x1b16   :  { %v2650_v8 = vpack.c.bf16 %v2649_v5, %v2649_v5 }
0x1b18   :  { %5497 = vmatmul.mubr.msk.bf16.vlgmr.msra.gmra.mrb[60].mxu1 %vm642_vm4, %v2650_v8 }
0x1b19   :  { %5507 = vmatpush3.bf16.msra.mxu1 %v5864_v6  ;;  %5514 = vmatprep.mubr.msk.bf16.mxu1 %vm6063_vm0, %v6062_v3 }
0x1b1a   :  { %5508 = vmatprep.subr.bf16.mxu1 %v6062_v3 }
0x1b1d   :  { %5509 = vmatpush3.bf16.msra.mxu1 %v5865_v9 }
0x1b1e   :  { %5510 = vmatprep.subr.bf16.mxu1 %v6062_v3 }
0x1b21   :  { %5511 = vmatpush3.bf16.msra.mxu1 %v5866_v10 }
0x1b22   :  { %5512 = vmatprep.subr.bf16.mxu1 %v6062_v3 }
0x1b25   :  { %5513 = vmatpush3.bf16.msra.mxu1 %v5867_v11 }
0x1b26   :  { %5530 = vmatprep.subr.bf16.mxu1 %v6062_v3 }
0x1b28   :  { %5515 = vmatmul.mubr.msk.bf16.vlgmr.msra.gmra.mrb[64].mxu1 %vm312_vm1, %v6632_v13 }
0x1b29   :  { %5531 = vmatpush3.bf16.msra.mxu1 %v5868_v12  ;;  %5538 = vmatprep.mubr.msk.bf16.mxu1 %vm6063_vm0, %v6062_v3 }
0x1b2a   :  { %5532 = vmatprep.subr.bf16.mxu1 %v6062_v3 }
0x1b2d   :  { %5533 = vmatpush3.bf16.msra.mxu1 %v5869_v14  ;;  %v2999_v14 = vunpack.c.h.bf16 %v6664_v51 }
0x1b2e   :  { %5534 = vmatprep.subr.bf16.mxu1 %v6062_v3 }
0x1b31   :  { %5535 = vmatpush3.bf16.msra.mxu1 %v5870_v7 }
0x1b32   :  { %5536 = vmatprep.subr.bf16.mxu1 %v6062_v3 }
0x1b35   :  { %5537 = vmatpush3.bf16.msra.mxu1 %v5871_v15 }
0x1b36   :  { %5560 = vmatprep.subr.bf16.mxu1 %v6062_v3 }
0x1b38   :  { %5539 = vmatmul.mubr.msk.bf16.vlgmr.msra.gmra.mrb[68].mxu1 %vm312_vm1, %v6632_v13 }
0x1b39   :  { %5561 = vmatpush3.bf16.msra.mxu1 %v5872_v16  ;;  %5568 = vmatprep.mubr.msk.bf16.mxu1 %vm6063_vm0, %v6062_v3 }
0x1b3a   :  { %5562 = vmatprep.subr.bf16.mxu1 %v6062_v3 }
0x1b3d   :  { %5563 = vmatpush3.bf16.msra.mxu1 %v5873_v18 }
0x1b3e   :  { %5564 = vmatprep.subr.bf16.mxu1 %v6062_v3 }
0x1b41   :  { %5565 = vmatpush3.bf16.msra.mxu1 %v5874_v21 }
0x1b42   :  { %5566 = vmatprep.subr.bf16.mxu1 %v6062_v3 }
0x1b45   :  { %5567 = vmatpush3.bf16.msra.mxu1 %v5875_v23 }
0x1b46   :  { %5584 = vmatprep.subr.bf16.mxu1 %v6062_v3 }
0x1b48   :  { %5569 = vmatmul.mubr.msk.bf16.vlgmr.msra.gmra.mrb[72].mxu1 %vm312_vm1, %v6632_v13 }
0x1b49   :  { %5585 = vmatpush3.bf16.msra.mxu1 %v5876_v25  ;;  %5592 = vmatprep.mubr.msk.bf16.mxu1 %vm6063_vm0, %v6062_v3 }
0x1b4a   :  { %5586 = vmatprep.subr.bf16.mxu1 %v6062_v3 }
0x1b4d   :  { %5587 = vmatpush3.bf16.msra.mxu1 %v5877_v26 }
0x1b4e   :  { %5588 = vmatprep.subr.bf16.mxu1 %v6062_v3 }
0x1b51   :  { %5589 = vmatpush3.bf16.msra.mxu1 %v5878_v27 }
0x1b52   :  { %5590 = vmatprep.subr.bf16.mxu1 %v6062_v3 }
0x1b55   :  { %5591 = vmatpush3.bf16.msra.mxu1 %v5879_v28 }
0x1b56   :  { %5602 = vmatprep.subr.bf16.mxu1 %v6062_v3 }
0x1b58   :  { %5593 = vmatmul.mubr.msk.bf16.vlgmr.msra.gmra.mrb[76].mxu1 %vm312_vm1, %v6632_v13 }
0x1b59   :  { %5604 = vmatprep.mubr.msk.bf16.mxu1 %vm6063_vm0, %v6062_v3 }
0x1beb   :  { %v2692_v29 = vpop.f32.mrb[60].mxu1 }
0x1bec   :  { %v2698_v31 = vpack.c.bf16 %v2692_v29, %v2692_v29  ;;  %v5498_v32 = vpop.f32.mrb[61].mxu1 }
0x1bed   :  { %v2695_v33 = vpop.f32.mrb[62].mxu1  ;;  %v5885_v32 = vld [vmem:[%s6972_s16 + $0x8] sm:$0xff]  }
0x1bee   :  { %v5499_v34 = vpop.f32.mrb[63].mxu1  ;;  %5503 = vmatmul.mubr.msk.bf16.vlgmr.msra.gmra.mrb[52].mxu0 %vm595_vm2, %v2698_v31 }
0x1bef   :  { %5519 = vmatpush3.bf16.msra.mxu0 %v5881_v30  ;;  %5526 = vmatprep.mubr.msk.bf16.mxu0 %vm6063_vm0, %v6062_v3 }
0x1bf0   :  { %5520 = vmatprep.subr.bf16.mxu0 %v6062_v3 }
0x1bf3   :  { %5521 = vmatpush3.bf16.msra.mxu0 %v5882_v35  ;;  %v5886_v35 = vld [vmem:[%s6967_s19 + $0x40] sm:$0xff]  }
0x1bf4   :  { %5522 = vmatprep.subr.bf16.mxu0 %v6062_v3 }
0x1bf7   :  { %5523 = vmatpush3.bf16.msra.mxu0 %v5883_v37 }
0x1bf8   :  { %5524 = vmatprep.subr.bf16.mxu0 %v6062_v3 }
0x1bfb   :  { %v2826_v39 = vpop.f32.mrb[64].mxu1  ;;  %5525 = vmatpush3.bf16.msra.mxu0 %v5884_v38 }
0x1bfc   :  { %v5516_v40 = vpop.f32.mrb[65].mxu1  ;;  %5542 = vmatprep.subr.bf16.mxu0 %v6062_v3  ;;  %v2827_v36 = vadd.f32 %v4800_v62, %v2826_v39 }
0x1bfd   :  { %v2829_v41 = vpop.f32.mrb[66].mxu1 }
0x1bfe   :  { %v5517_v42 = vpop.f32.mrb[67].mxu1  ;;  %5527 = vmatmul.mubr.msk.bf16.vlgmr.msra.gmra.mrb[56].mxu0 %vm312_vm1, %v6632_v13  ;;  %v2832_v9 = vmul.f32 0.25, %v2827_v36  ;;  %v5887_v41 = vld [vmem:[%s6967_s19 + $0x48] sm:$0xff]  }
0x1bff   :  { %5544 = vmatprep.mubr.msk.bf16.mxu0 %vm6063_vm0, %v6062_v3  ;;  %v5888_v42 = vld [vmem:[%s6967_s19 + $0x50] sm:$0xff]  }
0x1c00   :  { %v2995_v11 = vpack.c.bf16 %v2832_v9, %v2832_v9 }
0x1c0b   :  { %v2989_v43 = vpop.f32.mrb[68].mxu1 }
0x1c0c   :  { %v5540_v24 = vpop.f32.mrb[69].mxu1  ;;  %v2990_v6 = vadd.f32 %v4830_v2, %v2989_v43  ;;  %v5889_v43 = vld [vmem:[%s6967_s19 + $0x58] sm:$0xff]  }
0x1c0d   :  { %v2992_v44 = vpop.f32.mrb[70].mxu1  ;;  %v4867_v24 = vld [vmem:[%s6968_s24 + $0x2] ss:$0 sm:$0xff] }
0x1c0e   :  { %v5541_v45 = vpop.f32.mrb[71].mxu1  ;;  %v3058_v10 = vpack.c.bf16 %v2990_v6, %v2990_v6  ;;  %v4852_v44 = vld [vmem:[%s6969_s30 + $0x2] ss:$0 sm:$0xff]  ;;  %v5898_v6 = vld [vmem:[%s6972_s16 + $0x10] sm:$0xff]  }
0x1c10   :  { %v3063_v12 = vsel %vm659_vm3, %v3058_v10, 0 }
0x1c1b   :  { %v6737_v46 = vpop.f32.mrb[72].mxu1 }
0x1c1c   :  { %v5570_v47 = vpop.f32.mrb[73].mxu1 }
0x1c1d   :  { %v3237_v48 = vpop.f32.mrb[74].mxu1 }
0x1c1e   :  { %v5571_v49 = vpop.f32.mrb[75].mxu1 }
0x1c2b   :  { %v3397_v50 = vpop.f32.mrb[76].mxu1 }
0x1c2c   :  { %v3398_v54 = vadd.f32 %v4882_v17, %v3397_v50  ;;  %v5594_v55 = vpop.f32.mrb[77].mxu1  ;;  %v3235_v17 = vadd.f32 %v4852_v44, %v6737_v46 }
0x1c2d   :  { %v3400_v56 = vpop.f32.mrb[78].mxu1 }
0x1c2e   :  { %v3466_v57 = vpack.c.bf16 %v3398_v54, %v3398_v54  ;;  %v5595_v58 = vpop.f32.mrb[79].mxu1  ;;  %v3240_v56 = vmul.f32 0.25, %v3235_v17 }
0x1c2f   :  { %v6784_v58 = vld [vmem:[%s6971_s15 + $0x8] sm:$0xff]  }
0x1c30   :  { %v3471_v60 = vsel %vm659_vm3, %v3466_v57, 0  ;;  %v3403_v57 = vpack.c.bf16 %v3240_v56, %v3240_v56 }
0x1c31   :  { %5603 = vmatpush3.bf16.msra.mxu1 %v3471_v60  ;;  %v3407_v60 = vunpack.c.l.bf16 %v6784_v58 }
0x1c32   :  { %5614 = vmatprep.subr.bf16.mxu1 %v6062_v3 }
0x1cd1   :  { %v2908_v63 = vpop.f32.mrb[56].mxu0 }
0x1cd2   :  { %v2909_v0 = vadd.f32 %v4815_v61, %v2908_v63  ;;  %v5528_v1 = vpop.f32.mrb[57].mxu0 }
0x1cd3   :  { %v2911_v4 = vpop.f32.mrb[58].mxu0 }
0x1cd4   :  { %v2996_v52 = vpack.c.bf16 %v2909_v0, %v2909_v0  ;;  %v5529_v5 = vpop.f32.mrb[59].mxu0 }
0x1cd6   :  { %v3004_v8 = vsel %vm595_vm2, %v2996_v52, 0 }
0x1cd7   :  { %5543 = vmatpush3.bf16.xpose.msra.mxu0 %v3004_v8 }
0x1cd8   :  { %5548 = vmatprep.subr.bf16.mxu0 %v6062_v3 }
0x1cde   :  { %5545 = vmatmul.mubr.msk.bf16.vlgmr.msra.gmra.mrb[60].mxu0 %vm595_vm2, %v2995_v11  ;;  %v5890_v11 = vld [vmem:[%s6963_s29 + $0x60] sm:$0xff]  }
0x1cdf   :  { %5549 = vmatpush3.bf16.msra.mxu0 %v3063_v12  ;;  %5550 = vmatprep.mubr.msk.bf16.mxu0 %vm6063_vm0, %v6062_v3 }
0x1ce0   :  { %5554 = vmatprep.subr.bf16.mxu0 %v6062_v3 }
0x1db1   :  { %v3040_v7 = vpop.f32.mrb[60].mxu0 }
0x1db2   :  { %v3041_v15 = vadd.f32 %v3040_v7, %v2999_v14  ;;  %v5546_v16 = vpop.f32.mrb[61].mxu0  ;;  %v5891_v14 = vld [vmem:[%s6963_s29 + $0x68] sm:$0xff]   ;;  %v5892_v7 = vld [vmem:[%s6963_s29 + $0x70] sm:$0xff]  }
0x1db3   :  { %v3043_v18 = vpop.f32.mrb[62].mxu0  ;;  %v5894_v16 = vld [vmem:[%s6964_s3 + $0x60] sm:$0xff]  }
0x1db4   :  { %v5547_v21 = vpop.f32.mrb[63].mxu0  ;;  %v3046_v23 = vsel %vm642_vm4, %v3041_v15, -inf  ;;  %v5895_v18 = vld [vmem:[%s6964_s3 + $0x68] sm:$0xff]  }
0x1db5   :  { %3047 = vmax.xlane.f32.xlu0 %v3046_v23  ;;  %v5896_v21 = vld [vmem:[%s6964_s3 + $0x70] sm:$0xff]   ;;  %v5897_v23 = vld [vmem:[%s6964_s3 + $0x78] sm:$0xff]  }
0x1e42   :  { %v3048_v25 = vpop.xlane.xlu0 %3047 }
0x1e43   :  { %v3049_v26 = vsub.f32 %v3041_v15, %v3048_v25  ;;  %v5893_v15 = vld [vmem:[%s6963_s29 + $0x78] sm:$0xff]  }
0x1e45   :  { %v3050_v27 = vmul.f32 1.442695, %v3049_v26  ;;  %v5899_v26 = vld [vmem:[%s6967_s19 + $0x60] sm:$0xff]  }
0x1e47   :  { %5968 = vpow2.f32 %v3050_v27 }
0x1e51   :  { %v5969_v28 = vpop.eup %5968 }
0x1e52   :  { %v3052_v29 = vsel %vm642_vm4, %v5969_v28, 0.0 }
0x1e53   :  { %3053 = vadd.xlane.f32.xlu1 %v3052_v29 }
0x1ee0   :  { %v3054_v30 = vpop.xlane.xlu1 %3053 }
0x1ee1   :  { %5970 = vrcp.f32 %v3054_v30 }
0x1eeb   :  { %v5971_v51 = vpop.eup %5970 }
0x1eec   :  { %v3056_v31 = vmul.f32 %v5971_v51, %v5969_v28  ;;  %v5900_v51 = vld [vmem:[%s6967_s19 + $0x68] sm:$0xff]  }
0x1eee   :  { %v3057_v33 = vpack.c.bf16 %v3056_v31, %v3056_v31  ;;  %v5901_v31 = vld [vmem:[%s6967_s19 + $0x70] sm:$0xff]  }
0x1ef0   :  { %5551 = vmatmul.mubr.msk.bf16.vlgmr.msra.gmra.mrb[64].mxu0 %vm642_vm4, %v3057_v33 }
0x1ef1   :  { %5555 = vmatpush3.bf16.msra.mxu0 %v5885_v32  ;;  %5556 = vmatprep.mubr.msk.bf16.mxu0 %vm6063_vm0, %v6062_v3 }
0x1ef2   :  { %5572 = vmatprep.subr.bf16.mxu0 %v6062_v3 }
0x1fc3   :  { %v3099_v34 = vpop.f32.mrb[64].mxu0 }
0x1fc4   :  { %v3105_v37 = vpack.c.bf16 %v3099_v34, %v3099_v34  ;;  %v5552_v38 = vpop.f32.mrb[65].mxu0 }
0x1fc5   :  { %v3102_v39 = vpop.f32.mrb[66].mxu0 }
0x1fc6   :  { %v5553_v40 = vpop.f32.mrb[67].mxu0  ;;  %5557 = vmatmul.mubr.msk.bf16.vlgmr.msra.gmra.mrb[52].mxu0 %vm595_vm2, %v3105_v37 }
0x1fc7   :  { %5573 = vmatpush3.bf16.msra.mxu0 %v5886_v35  ;;  %5580 = vmatprep.mubr.msk.bf16.mxu0 %vm6063_vm0, %v6062_v3 }
0x1fc8   :  { %5574 = vmatprep.subr.bf16.mxu0 %v6062_v3 }
0x1fcb   :  { %5575 = vmatpush3.bf16.msra.mxu0 %v5887_v41  ;;  %v4919_v41 = vld [vmem:[%s6968_s24 + $0x3] ss:$0 sm:$0xff] }
0x1fcc   :  { %5576 = vmatprep.subr.bf16.mxu0 %v6062_v3 }
0x1fcf   :  { %5577 = vmatpush3.bf16.msra.mxu0 %v5888_v42  ;;  %v4904_v42 = vld [vmem:[%s6969_s30 + $0x3] ss:$0 sm:$0xff] }
0x1fd0   :  { %5578 = vmatprep.subr.bf16.mxu0 %v6062_v3 }
0x1fd3   :  { %5579 = vmatpush3.bf16.msra.mxu0 %v5889_v43 }
0x1fd4   :  { %5596 = vmatprep.subr.bf16.mxu0 %v6062_v3 }
0x1fd6   :  { %5581 = vmatmul.mubr.msk.bf16.vlgmr.msra.gmra.mrb[68].mxu0 %vm312_vm1, %v6632_v13 }
0x1fd7   :  { %5598 = vmatprep.mubr.msk.bf16.mxu0 %vm6063_vm0, %v6062_v3 }
0x20a9   :  { %v3316_v45 = vpop.f32.mrb[68].mxu0 }
0x20aa   :  { %v3317_v47 = vadd.f32 %v4867_v24, %v3316_v45  ;;  %v5582_v48 = vpop.f32.mrb[69].mxu0  ;;  %v4934_v45 = vld [vmem:[%s6970_s6 + $0x3] ss:$0 sm:$0xff] }
0x20ab   :  { %v3319_v49 = vpop.f32.mrb[70].mxu0 }
0x20ac   :  { %v3404_v50 = vpack.c.bf16 %v3317_v47, %v3317_v47  ;;  %v5583_v54 = vpop.f32.mrb[71].mxu0 }
0x20ae   :  { %v3412_v55 = vsel %vm595_vm2, %v3404_v50, 0 }
0x20af   :  { %5597 = vmatpush3.bf16.xpose.msra.mxu0 %v3412_v55 }
0x20b0   :  { %5608 = vmatprep.subr.bf16.mxu0 %v6062_v3 }
0x20b6   :  { %5599 = vmatmul.mubr.msk.bf16.vlgmr.msra.gmra.mrb[72].mxu0 %vm595_vm2, %v3403_v57 }
0x20b7   :  { %5610 = vmatprep.mubr.msk.bf16.mxu0 %vm6063_vm0, %v6062_v3  ;;  %5609 = vmatpush3.bf16.msra.mxu0 %v5898_v6 }
0x20b8   :  { %5626 = vmatprep.subr.bf16.mxu0 %v6062_v3 }
0x2189   :  { %v3448_v46 = vpop.f32.mrb[72].mxu0 }
0x218a   :  { %v3449_v61 = vadd.f32 %v3448_v46, %v3407_v60  ;;  %v5600_v62 = vpop.f32.mrb[73].mxu0  ;;  %v3815_v60 = vunpack.c.h.bf16 %v6784_v58 }
0x218b   :  { %v3451_v63 = vpop.f32.mrb[74].mxu0 }
0x218c   :  { %v5601_v0 = vpop.f32.mrb[75].mxu0  ;;  %v3454_v1 = vsel %vm642_vm4, %v3449_v61, -inf }
0x218d   :  { %3455 = vmax.xlane.f32.xlu0 %v3454_v1 }
0x221a   :  { %v3456_v2 = vpop.xlane.xlu0 %3455 }
0x221b   :  { %v3457_v4 = vsub.f32 %v3449_v61, %v3456_v2 }
0x221d   :  { %v3458_v36 = vmul.f32 1.442695, %v3457_v4 }
0x221f   :  { %5972 = vpow2.f32 %v3458_v36 }
0x2229   :  { %v5973_v52 = vpop.eup %5972 }
0x222a   :  { %v3460_v5 = vsel %vm642_vm4, %v5973_v52, 0.0 }
0x222b   :  { %3461 = vadd.xlane.f32.xlu1 %v3460_v5 }
0x22b8   :  { %v3462_v8 = vpop.xlane.xlu1 %3461 }
0x22b9   :  { %5974 = vrcp.f32 %v3462_v8 }
0x22c3   :  { %v5975_v9 = vpop.eup %5974 }
0x22c4   :  { %v3464_v10 = vmul.f32 %v5975_v9, %v5973_v52  ;;  %v5903_v9 = vld [vmem:[%s6972_s16 + $0x18] sm:$0xff]  }
0x22c6   :  { %v3465_v12 = vpack.c.bf16 %v3464_v10, %v3464_v10 }
0x22c8   :  { %5605 = vmatmul.mubr.msk.bf16.vlgmr.msra.gmra.mrb[80].mxu1 %vm642_vm4, %v3465_v12 }
0x22c9   :  { %5615 = vmatpush3.bf16.msra.mxu1 %v5890_v11  ;;  %5622 = vmatprep.mubr.msk.bf16.mxu1 %vm6063_vm0, %v6062_v3 }
0x22ca   :  { %5616 = vmatprep.subr.bf16.mxu1 %v6062_v3 }
0x22cd   :  { %5617 = vmatpush3.bf16.msra.mxu1 %v5891_v14 }
0x22ce   :  { %5618 = vmatprep.subr.bf16.mxu1 %v6062_v3 }
0x22d1   :  { %5619 = vmatpush3.bf16.msra.mxu1 %v5892_v7 }
0x22d2   :  { %5620 = vmatprep.subr.bf16.mxu1 %v6062_v3 }
0x22d5   :  { %5621 = vmatpush3.bf16.msra.mxu1 %v5893_v15 }
0x22d6   :  { %5638 = vmatprep.subr.bf16.mxu1 %v6062_v3 }
0x22d8   :  { %5623 = vmatmul.mubr.msk.bf16.vlgmr.msra.gmra.mrb[84].mxu1 %vm312_vm1, %v6632_v13 }
0x22d9   :  { %5639 = vmatpush3.bf16.msra.mxu1 %v5894_v16  ;;  %5646 = vmatprep.mubr.msk.bf16.mxu1 %vm6063_vm0, %v6062_v3  ;;  %v4768_v16 = vld [vmem:[%s6973_s18] ss:$0 sm:$0xff] }
0x22da   :  { %5640 = vmatprep.subr.bf16.mxu1 %v6062_v3 }
0x22dd   :  { %5641 = vmatpush3.bf16.msra.mxu1 %v5895_v18  ;;  %v2346_v18 = vadd.f32 %v4768_v16, %v6607_v59 }
0x22de   :  { %5642 = vmatprep.subr.bf16.mxu1 %v6062_v3 }
0x22e1   :  { %5643 = vmatpush3.bf16.msra.mxu1 %v5896_v21 }
0x22e2   :  { %5644 = vmatprep.subr.bf16.mxu1 %v6062_v3 }
0x22e5   :  { %5645 = vmatpush3.bf16.msra.mxu1 %v5897_v23 }
0x22e8   :  { %5647 = vmatmul.mubr.msk.bf16.vlgmr.msra.gmra.mrb[88].mxu1 %vm312_vm1, %v6632_v13 }
0x22e9   :  { %4100 = vmatprep.mubr.bf16.mxu1 %v6064_v53  ;;  %v5902_v53 = vld [vmem:[%s6967_s19 + $0x78] sm:$0xff]  }
0x239b   :  { %v3507_v25 = vpop.f32.mrb[80].mxu1 }
0x239c   :  { %v3513_v27 = vpack.c.bf16 %v3507_v25, %v3507_v25  ;;  %v5606_v28 = vpop.f32.mrb[81].mxu1 }
0x239d   :  { %v3510_v29 = vpop.f32.mrb[82].mxu1 }
0x239e   :  { %v5607_v30 = vpop.f32.mrb[83].mxu1  ;;  %5611 = vmatmul.mubr.msk.bf16.vlgmr.msra.gmra.mrb[52].mxu0 %vm595_vm2, %v3513_v27 }
0x239f   :  { %5627 = vmatpush3.bf16.msra.mxu0 %v5899_v26  ;;  %5634 = vmatprep.mubr.msk.bf16.mxu0 %vm6063_vm0, %v6062_v3 }
0x23a0   :  { %5628 = vmatprep.subr.bf16.mxu0 %v6062_v3 }
0x23a3   :  { %5629 = vmatpush3.bf16.msra.mxu0 %v5900_v51 }
0x23a4   :  { %5630 = vmatprep.subr.bf16.mxu0 %v6062_v3 }
0x23a7   :  { %5631 = vmatpush3.bf16.msra.mxu0 %v5901_v31 }
0x23a8   :  { %5632 = vmatprep.subr.bf16.mxu0 %v6062_v3 }
0x23ab   :  { %v3642_v32 = vpop.f32.mrb[84].mxu1  ;;  %5633 = vmatpush3.bf16.msra.mxu0 %v5902_v53  ;;  %v5906_v53 = vld [vmem:[%s6974_s22 + $0x4] ss:$8 sps:$4 sm:$0xff]  }
0x23ac   :  { %v5624_v33 = vpop.f32.mrb[85].mxu1  ;;  %5650 = vmatprep.subr.bf16.mxu0 %v6062_v3  ;;  %v3643_v48 = vadd.f32 %v4904_v42, %v3642_v32  ;;  %v5904_v32 = vld [vmem:[%s6974_s22] ss:$8 sps:$4 sm:$0xff]   ;;  %4068 = vmatprep.subr.bf16.mxu1 %v5906_v53 }
0x23ad   :  { %v3645_v34 = vpop.f32.mrb[86].mxu1  ;;  %4069 = vmatpush1.bf16.msra.mxu1 %v5904_v32  ;;  %v5909_v33 = vld [vmem:[%s6974_s22 + $0x14] ss:$8 sps:$4 sm:$0xff]  }
0x23ae   :  { %v5625_v35 = vpop.f32.mrb[87].mxu1  ;;  %5635 = vmatmul.mubr.msk.bf16.vlgmr.msra.gmra.mrb[76].mxu0 %vm312_vm1, %v6632_v13  ;;  %v3648_v54 = vmul.f32 0.25, %v3643_v48  ;;  %v5907_v34 = vld [vmem:[%s6974_s22 + $0x10] ss:$8 sps:$4 sm:$0xff]   ;;  %4070 = vmatprep.subr.bf16.mxu1 %v5909_v33  ;;  %v4958_v33 = vld [vmem:[%s6979_s2] ss:$0 sm:$0xff] }
0x23af   :  { %5652 = vmatprep.mubr.msk.bf16.mxu0 %vm6063_vm0, %v6062_v3  ;;  %v5912_v35 = vld [vmem:[%s6974_s22 + $0x24] ss:$8 sps:$4 sm:$0xff]  }
0x23b0   :  { %v3811_v56 = vpack.c.bf16 %v3648_v54, %v3648_v54  ;;  %v5919_v54 = vld [vmem:[%s6977_s28 + $0x8] sm:$0xff]  }
0x23b1   :  { %4071 = vmatpush1.bf16.msra.mxu1 %v5907_v34 }
0x23b2   :  { %4072 = vmatprep.subr.bf16.mxu1 %v5912_v35 }
0x23bb   :  { %v3805_v37 = vpop.f32.mrb[88].mxu1 }
0x23bc   :  { %v5648_v38 = vpop.f32.mrb[89].mxu1  ;;  %v3806_v50 = vadd.f32 %v4934_v45, %v3805_v37  ;;  %v5910_v37 = vld [vmem:[%s6974_s22 + $0x20] ss:$8 sps:$4 sm:$0xff]  }
0x23bd   :  { %v3808_v39 = vpop.f32.mrb[90].mxu1  ;;  %v5915_v38 = vld [vmem:[%s6974_s22 + $0x34] ss:$8 sps:$4 sm:$0xff]   ;;  %4073 = vmatpush1.bf16.msra.mxu1 %v5910_v37  ;;  %v4948_v45 = vld [vmem:[%s6976_s26] ss:$0 sm:$0xff] }
0x23be   :  { %v5649_v40 = vpop.f32.mrb[91].mxu1  ;;  %v3874_v55 = vpack.c.bf16 %v3806_v50, %v3806_v50  ;;  %v5913_v39 = vld [vmem:[%s6974_s22 + $0x30] ss:$8 sps:$4 sm:$0xff]   ;;  %4074 = vmatprep.subr.bf16.mxu1 %v5915_v38  ;;  %v5917_v50 = vld [vmem:[%s6977_s28] sm:$0xff]  }
0x23c0   :  { %v3879_v57 = vsel %vm659_vm3, %v3874_v55, 0  ;;  %v5920_v55 = vld [vmem:[%s6977_s28 + $0x50] sm:$0xff]  }
0x23c1   :  { %4075 = vmatpush1.bf16.msra.mxu1 %v5913_v39 }
0x23c2   :  { %5668 = vmatprep.subr.bf16.mxu1 %v6062_v3 }
0x2481   :  { %v3724_v43 = vpop.f32.mrb[76].mxu0 }
0x2482   :  { %v3725_v24 = vadd.f32 %v4919_v41, %v3724_v43  ;;  %v5636_v44 = vpop.f32.mrb[77].mxu0 }
0x2483   :  { %v3727_v47 = vpop.f32.mrb[78].mxu0 }
0x2484   :  { %v3812_v49 = vpack.c.bf16 %v3725_v24, %v3725_v24  ;;  %v5637_v17 = vpop.f32.mrb[79].mxu0  ;;  %v4947_v24 = vld [vmem:[%s6975_s23] ss:$0 sm:$0xff] }
0x2485   :  { %v5916_v17 = vld [vmem:[%s6977_s28 + $0x40] sm:$0xff]  }
0x2486   :  { %v3820_v13 = vsel %vm595_vm2, %v3812_v49, 0 }
0x2487   :  { %5651 = vmatpush3.bf16.xpose.msra.mxu0 %v3820_v13  ;;  %v5918_v13 = vld [vmem:[%s6977_s28 + $0x48] sm:$0xff]  }
0x2488   :  { %5656 = vmatprep.subr.bf16.mxu0 %v6062_v3 }
0x248e   :  { %5653 = vmatmul.mubr.msk.bf16.vlgmr.msra.gmra.mrb[80].mxu0 %vm595_vm2, %v3811_v56  ;;  %v5921_v56 = vld [vmem:[%s6977_s28 + $0x10] sm:$0xff]  }
0x248f   :  { %5657 = vmatpush3.bf16.msra.mxu0 %v3879_v57  ;;  %5658 = vmatprep.mubr.msk.bf16.mxu0 %vm6063_vm0, %v6062_v3  ;;  %v5922_v57 = vld [vmem:[%s6977_s28 + $0x58] sm:$0xff]  }
0x2490   :  { %5662 = vmatprep.subr.bf16.mxu0 %v6062_v3 }
0x2561   :  { %v3856_v46 = vpop.f32.mrb[80].mxu0 }
0x2562   :  { %v3857_v61 = vadd.f32 %v3856_v46, %v3815_v60  ;;  %v5654_v62 = vpop.f32.mrb[81].mxu0  ;;  %v5923_v60 = vld [vmem:[%s6977_s28 + $0x18] sm:$0xff]   ;;  %v5924_v46 = vld [vmem:[%s6977_s28 + $0x60] sm:$0xff]  }
0x2563   :  { %v3859_v63 = vpop.f32.mrb[82].mxu0  ;;  %v5926_v62 = vld [vmem:[%s6977_s28 + $0x68] sm:$0xff]  }
0x2564   :  { %v5655_v0 = vpop.f32.mrb[83].mxu0  ;;  %v3862_v1 = vsel %vm642_vm4, %v3857_v61, -inf  ;;  %v5927_v63 = vld [vmem:[%s6977_s28 + $0x28] sm:$0xff]  }
0x2565   :  { %3863 = vmax.xlane.f32.xlu0 %v3862_v1  ;;  %v5928_v0 = vld [vmem:[%s6977_s28 + $0x70] sm:$0xff]  }
0x2566   :  { %v5929_v1 = vld [vmem:[%s6977_s28 + $0x30] sm:$0xff]  }
0x25f2   :  { %v3864_v2 = vpop.xlane.xlu0 %3863 }
0x25f3   :  { %v3865_v4 = vsub.f32 %v3857_v61, %v3864_v2  ;;  %v5925_v61 = vld [vmem:[%s6977_s28 + $0x20] sm:$0xff]   ;;  %v5930_v2 = vld [vmem:[%s6977_s28 + $0x78] sm:$0xff]  }
0x25f5   :  { %v3866_v36 = vmul.f32 1.442695, %v3865_v4  ;;  %v5931_v4 = vld [vmem:[%s6977_s28 + $0x38] sm:$0xff]  }
0x25f7   :  { %5976 = vpow2.f32 %v3866_v36  ;;  %v4013_v36 = vld [vmem:[%s6978_s1] sm:$0x3] }
0x2601   :  { %v5977_v52 = vpop.eup %5976 }
0x2602   :  { %v3868_v5 = vsel %vm642_vm4, %v5977_v52, 0.0 }
0x2603   :  { %3869 = vadd.xlane.f32.xlu1 %v3868_v5  ;;  %v4022_v5 = vrot.slane %v4013_v36, %v2026_v22 }
0x2690   :  { %v3870_v6 = vpop.xlane.xlu1 %3869 }
0x2691   :  { %5978 = vrcp.f32 %v3870_v6 }
0x269b   :  { %v5979_v58 = vpop.eup %5978 }
0x269c   :  { %v3872_v8 = vmul.f32 %v5979_v58, %v5977_v52  ;;  %v4018_v52 = vrot.slane %v4013_v36, %v2022_v20 }
0x269e   :  { %v3873_v10 = vpack.c.bf16 %v3872_v8, %v3872_v8 }
0x26a0   :  { %5659 = vmatmul.mubr.msk.bf16.vlgmr.msra.gmra.mrb[84].mxu0 %vm642_vm4, %v3873_v10 }
0x26a1   :  { %5663 = vmatpush3.bf16.msra.mxu0 %v5903_v9  ;;  %5664 = vmatprep.mubr.msk.bf16.mxu0 %vm6063_vm0, %v6062_v3 }
0x26a2   :  { %5184 = vmatprep.subr.bf16.mxu0 %v5916_v17 }
0x2773   :  { %v3915_v11 = vpop.f32.mrb[84].mxu0 }
0x2774   :  { %v3921_v12 = vpack.c.bf16 %v3915_v11, %v3915_v11  ;;  %v5660_v14 = vpop.f32.mrb[85].mxu0 }
0x2775   :  { %v3918_v7 = vpop.f32.mrb[86].mxu0 }
0x2776   :  { %v5661_v15 = vpop.f32.mrb[87].mxu0  ;;  %5665 = vmatmul.mubr.msk.bf16.vlgmr.msra.gmra.mrb[52].mxu0 %vm595_vm2, %v3921_v12 }
0x2777   :  { %5185 = vmatpush3.bf16.msra.mxu0 %v5917_v50 }
0x2778   :  { %5186 = vmatprep.subr.bf16.mxu0 %v5918_v13 }
0x277b   :  { %5187 = vmatpush3.bf16.msra.mxu0 %v5919_v54 }
0x277c   :  { %5188 = vmatprep.subr.bf16.mxu0 %v5920_v55  ;;  %v4975_v55 = vld [vmem:[%s6980_s7] ss:$0 sm:$0xff] }
0x277f   :  { %5189 = vmatpush3.bf16.msra.mxu0 %v5921_v56 }
0x2780   :  { %5190 = vmatprep.subr.bf16.mxu0 %v5922_v57  ;;  %v4976_v57 = vld [vmem:[%s6269_s20] ss:$0 sm:$0xff]  ;;  %s6065_s20 = smov [#allocation2]  }
0x2783   :  { %5191 = vmatpush3.bf16.msra.mxu0 %v5923_v60 }
0x2784   :  { %5192 = vmatprep.subr.bf16.mxu0 %v5924_v46 }
0x2787   :  { %5193 = vmatpush3.bf16.msra.mxu0 %v5925_v61 }
0x2788   :  { %5194 = vmatprep.subr.bf16.mxu0 %v5926_v62 }
0x278b   :  { %5195 = vmatpush3.bf16.msra.mxu0 %v5927_v63 }
0x278c   :  { %5196 = vmatprep.subr.bf16.mxu0 %v5928_v0 }
0x278f   :  { %5197 = vmatpush3.bf16.msra.mxu0 %v5929_v1 }
0x2790   :  { %5198 = vmatprep.subr.bf16.mxu0 %v5930_v2 }
0x2793   :  { %5199 = vmatpush3.bf16.msra.mxu0 %v5931_v4 }
0x2849   :  { %v3968_v21 = vpop.f32.mrb[52].mxu0 }
0x284a   :  { %v6851_v23 = vadd.f32 %v3968_v21, %v2346_v18  ;;  %v5666_v25 = vpop.f32.mrb[53].mxu0 }
0x284b   :  { %v3971_v26 = vpop.f32.mrb[54].mxu0 }
0x284c   :  { %v5667_v27 = vpop.f32.mrb[55].mxu0  ;;  %v3977_v28 = vsel %vm312_vm1, %v6851_v23, 0.0 }
0x284d   :  { %3978 = vadd.xlane.f32.xlu0 %v3977_v28 }
0x28da   :  { %v3979_v29 = vpop.xlane.xlu0 %3978 }
0x28db   :  { %v3980_v30 = vmul.f32 0.015625, %v3979_v29 }
0x28dd   :  { %v3981_v51 = vsub.f32 %v6851_v23, %v3980_v30 }
0x28df   :  { %v3982_v59 = vmul.f32 %v3981_v51, %v3981_v51 }
0x28e1   :  { %v3983_v31 = vsel %vm312_vm1, %v3982_v59, 0.0 }
0x28e2   :  { %3984 = vadd.xlane.f32.xlu1 %v3983_v31 }
0x296f   :  { %v3985_v40 = vpop.xlane.xlu1 %3984 }
0x2970   :  { %v3986_v41 = vmul.f32 0.015625, %v3985_v40 }
0x2972   :  { %v3987_v42 = vadd.f32 1e-05, %v3986_v41 }
0x2974   :  { %5980 = vrsqrt.f32 %v3987_v42 }
0x297e   :  { %v5981_v43 = vpop.eup %5980 }
0x297f   :  { %v3989_v44 = vmul.f32 %v5981_v43, %v3981_v51 }
0x2981   :  { %v3996_v47 = vmul.f32 %v4947_v24, %v3989_v44 }
0x2983   :  { %v4003_v48 = vadd.f32 %v4948_v45, %v3996_v47  ;;  %v5932_v47 = vld [vmem:[%s6274_s27] sm:$0xff]  }
0x2985   :  { %v4012_v49 = vpack.c.bf16 %v4003_v48, %v4003_v48  ;;  %v5933_v48 = vld [vmem:[%s6274_s27 + $0x8] sm:$0xff]  }
0x2987   :  { %4957 = vmatmul.mubr.msk.bf16.vlgmr.msra.gmra.mrb[92].mxu1 %vm312_vm1, %v4012_v49  ;;  %v5935_v49 = vld [vmem:[%s6274_s27 + $0x18] sm:$0xff]  }
0x2988   :  { %5676 = vmatprep.mubr.msk.bf16.mxu1 %vm6063_vm0, %v6062_v3  ;;  %5669 = vmatpush3.bf16.msra.mxu1 %v5932_v47 }
0x2989   :  { %5670 = vmatprep.subr.bf16.mxu1 %v6062_v3 }
0x298c   :  { %5671 = vmatpush3.bf16.msra.mxu1 %v5933_v48 }
0x298d   :  { %5672 = vmatprep.subr.bf16.mxu1 %v6062_v3 }
0x2a5a   :  { %v4102_v6 = vpop.f32.mrb[92].mxu1 }
0x2a5b   :  { %v4103_v58 = vadd.f32 %v4102_v6, %v4018_v52  ;;  %v4104_v8 = vpop.f32.mrb[93].mxu1 }
0x2a5c   :  { %v4105_v9 = vadd.f32 %v4104_v8, %v4022_v5  ;;  %v4106_v10 = vpop.f32.mrb[94].mxu1 }
0x2a5d   :  { %v4111_v11 = vmul.f32 0.044715, %v4103_v58  ;;  %v4107_v12 = vpop.f32.mrb[95].mxu1  ;;  %v4109_v22 = vmul.f32 0.5, %v4103_v58 }
0x2a5e   :  { %v4112_v14 = vmul.f32 0.044715, %v4105_v9  ;;  %v4110_v29 = vmul.f32 0.5, %v4105_v9 }
0x2a5f   :  { %v4113_v7 = vmul.f32 %v4111_v11, %v4103_v58 }
0x2a60   :  { %v4114_v15 = vmul.f32 %v4112_v14, %v4105_v9 }
0x2a61   :  { %v4115_v16 = vmul.f32 %v4113_v7, %v4103_v58 }
0x2a62   :  { %v4116_v18 = vmul.f32 %v4114_v15, %v4105_v9  ;;  %v4342_v15 = vld [vmem:[%s6279_s4] sm:$0x1] }
0x2a63   :  { %v4117_v21 = vadd.f32 %v4115_v16, %v4103_v58 }
0x2a64   :  { %v4118_v25 = vadd.f32 %v4116_v18, %v4105_v9 }
0x2a65   :  { %v4119_v26 = vmul.f32 0.7978846, %v4117_v21 }
0x2a66   :  { %v4120_v27 = vmul.f32 0.7978846, %v4118_v25 }
0x2a67   :  { %5982 = vtanh.f32 %v4119_v26 }
0x2a68   :  { %5984 = vtanh.f32 %v4120_v27 }
0x2a71   :  { %v5983_v19 = vpop.eup %5982 }
0x2a72   :  { %v5985_v20 = vpop.eup %5984  ;;  %v4123_v28 = vadd.f32 1.0, %v5983_v19 }
0x2a73   :  { %v4124_v30 = vadd.f32 1.0, %v5985_v20 }
0x2a74   :  { %v4125_v51 = vmul.f32 %v4123_v28, %v4109_v22 }
0x2a75   :  { %v4126_v59 = vmul.f32 %v4124_v30, %v4110_v29 }
0x2a76   :  { %v4159_v53 = vpack.c.bf16 %v4125_v51, %v4125_v51 }
0x2a77   :  { %v4160_v31 = vpack.c.bf16 %v4126_v59, %v4126_v59 }
0x2a79   :  { %4296 = vmatprep.mubr.bf16.mxu0 %v4160_v31 }
0x2a7a   :  { %4297 = vmatmul.mubr.bf16.vlgmr.msra.gmra.mrb[88].mxu0 %v4159_v53 }
0x2b4d   :  { %v5200_v32 = vpop.f32.mrb[88].mxu0 }
0x2b4e   :  { %v5201_v34 = vpop.f32.mrb[89].mxu0 }
0x2b4f   :  { %v5202_v35 = vadd.f32 %v5201_v34, %v5200_v32  ;;  %v5203_v37 = vpop.f32.mrb[90].mxu0 }
0x2b50   :  { %v5204_v38 = vpop.f32.mrb[91].mxu0 }
0x2b51   :  { %v4299_v39 = vadd.f32 %v5202_v35, %v4958_v33 }
0x2b53   :  { %v4304_v40 = vadd.f32 %v6851_v23, %v4299_v39  ;;  %v5934_v23 = vld [vmem:[%s6274_s27 + $0x10] sm:$0xff]   ;;  %s4497_s27 = sshll.u32 %s6065_s20, 4  ;;  %s4498_s27 = int_to_ptr.vmem [resolvable:$true] %s4497_s27 }
0x2b54   :  { %5673 = vmatpush3.bf16.msra.mxu1 %v5934_v23  ;;  %s5996_s4 = scalar_lea.vmem %s4498_s27, 32  ;;  %p6001_p1 = scmp.lt.s32.totalorder %s4498_s27, %s4498_s27 }
0x2b55   :  { %v4307_v41 = vsel %vm312_vm1, %v4304_v40, 0.0  ;;  %5674 = vmatprep.subr.bf16.mxu1 %v6062_v3  ;;  %p5997_p0 = scmp.ne.s32.totalorder %s4498_s27, %s5996_s4  ;;  %p6002_p2 = scmp.lt.s32.totalorder %s5996_s4, %s5996_s4 }
0x2b56   :  { %4308 = vadd.xlane.f32.xlu0 %v4307_v41 }
0x2b57   :  { %p6003_p3 = por %p6002_p2, %p6001_p1 }
0x2b58   :  { %5675 = vmatpush3.bf16.msra.mxu1 %v5935_v49 }
0x2b59   :  { %5680 = vmatprep.subr.bf16.mxu1 %v6062_v3  ;;  %p6004_p4 = pnand %p6003_p3, %p5997_p0 }
0x2be3   :  { %v4309_v42 = vpop.xlane.xlu0 %4308 }
0x2be4   :  { %v4310_v43 = vmul.f32 0.015625, %v4309_v42 }
0x2be6   :  { %v4311_v24 = vsub.f32 %v4304_v40, %v4310_v43 }
0x2be8   :  { %v4312_v44 = vmul.f32 %v4311_v24, %v4311_v24 }
0x2bea   :  { %v4313_v45 = vsel %vm312_vm1, %v4312_v44, 0.0 }
0x2beb   :  { %4314 = vadd.xlane.f32.xlu1 %v4313_v45 }
0x2c78   :  { %v4315_v17 = vpop.xlane.xlu1 %4314 }
0x2c79   :  { %v4316_v50 = vmul.f32 0.015625, %v4315_v17 }
0x2c7b   :  { %v4317_v13 = vadd.f32 1e-05, %v4316_v50 }
0x2c7d   :  { %5986 = vrsqrt.f32 %v4317_v13 }
0x2c87   :  { %v5987_v54 = vpop.eup %5986 }
0x2c88   :  { %v4319_v56 = vmul.f32 %v5987_v54, %v4311_v24 }
0x2c8a   :  { %v4326_v60 = vmul.f32 %v4975_v55, %v4319_v56 }
0x2c8c   :  { %v4333_v46 = vadd.f32 %v4976_v57, %v4326_v60 }
0x2c8e   :  { %v4344_v61 = vsel %vm4343_vm5, %v4333_v46, 0.0  ;;  %v4430_v62 = vrot.slane %v4333_v46, 4 }
0x2c8f   :  { %v4345_v63 = vrot.slane %v4344_v61, 4 }
0x2c90   :  { %v4432_v0 = vsel %vm4343_vm5, %v4430_v62, 0.0 }
0x2c91   :  { %v4346_v1 = vadd.f32 %v4345_v63, %v4344_v61  ;;  %v4433_v2 = vrot.slane %v4432_v0, 4 }
0x2c93   :  { %v4347_v4 = vrot.slane %v4346_v1, 2  ;;  %v4434_v52 = vadd.f32 %v4433_v2, %v4432_v0 }
0x2c95   :  { %v4348_v36 = vadd.f32 %v4347_v4, %v4346_v1  ;;  %v4435_v58 = vrot.slane %v4434_v52, 2 }
0x2c97   :  { %v4349_v5 = vrot.slane %v4348_v36, 1  ;;  %v4436_v10 = vadd.f32 %v4435_v58, %v4434_v52 }
0x2c99   :  { %v4350_v6 = vadd.f32 %v4349_v5, %v4348_v36  ;;  %v4437_v11 = vrot.slane %v4436_v10, 1 }
0x2c9b   :  { %v4352_v8 = vmul.f32 0.25, %v4350_v6  ;;  %v4438_v12 = vadd.f32 %v4437_v11, %v4436_v10 }
0x2c9d   :  { %v4353_v9 = vpack.c.bf16 %v4352_v8, %v4352_v8  ;;  %v4439_v14 = vmul.f32 0.25, %v4438_v12 }
0x2c9f   :  { %5677 = vmatmul.mubr.msk.bf16.vlgmr.msra.gmra.mrb[96].mxu1 %vm312_vm1, %v4353_v9  ;;  %v4440_v7 = vpack.c.bf16 %v4439_v14, %v4439_v14 }
0x2ca0   :  { %5681 = vmatpush3.bf16.msra.mxu1 %v5932_v47  ;;  %5688 = vmatprep.mubr.msk.bf16.mxu1 %vm6063_vm0, %v6062_v3 }
0x2ca1   :  { %5682 = vmatprep.subr.bf16.mxu1 %v6062_v3 }
0x2ca4   :  { %5683 = vmatpush3.bf16.msra.mxu1 %v5933_v48 }
0x2ca5   :  { %5684 = vmatprep.subr.bf16.mxu1 %v6062_v3 }
0x2ca8   :  { %5685 = vmatpush3.bf16.msra.mxu1 %v5934_v23 }
0x2ca9   :  { %5686 = vmatprep.subr.bf16.mxu1 %v6062_v3 }
0x2cac   :  { %5687 = vmatpush3.bf16.msra.mxu1 %v5935_v49 }
0x2caf   :  { %5689 = vmatmul.mubr.msk.bf16.vlgmr.msra.gmra.mrb[100].mxu1 %vm312_vm1, %v4440_v7 }
0x2d72   :  { %v4415_v16 = vpop.f32.mrb[96].mxu1 }
0x2d73   :  { %v4416_v18 = vadd.f32 %v4415_v16, %v4342_v15  ;;  %v5678_v21 = vpop.f32.mrb[97].mxu1 }
0x2d74   :  { %v4418_v25 = vpop.f32.mrb[98].mxu1 }
0x2d75   :  { %v4982_v26 = vmul.f32 -1.442695, %v4416_v18  ;;  %v5679_v27 = vpop.f32.mrb[99].mxu1 }
0x2d77   :  { %5988 = vpow2.f32 %v4982_v26 }
0x2d81   :  { %v5989_v19 = vpop.eup %5988 }
0x2d82   :  { %v4424_v20 = vadd.f32 1.0, %v5989_v19  ;;  %v4478_v22 = vpop.f32.mrb[100].mxu1 }
0x2d83   :  { %v4479_v28 = vadd.f32 %v4478_v22, %v4342_v15  ;;  %v5690_v29 = vpop.f32.mrb[101].mxu1 }
0x2d84   :  { %5990 = vrcp.f32 %v4424_v20  ;;  %v4481_v3 = vpop.f32.mrb[102].mxu1 }
0x2d85   :  { %v4984_v30 = vmul.f32 -1.442695, %v4479_v28  ;;  %v5691_v51 = vpop.f32.mrb[103].mxu1 }
0x2d87   :  { %5992 = vpow2.f32 %v4984_v30 }
0x2d8e   :  { %v5991_v59 = vpop.eup %5990 }
0x2d8f   :  { %4428 = vst.msk [vmem:[#allocation2] sm:$0x1] %vm4427_vm6, %v5991_v59 }
0x2d91   :  { %v5993_v31 = vpop.eup %5992 }
0x2d92   :  { %v4487_v53 = vadd.f32 1.0, %v5993_v31 }
0x2d94   :  { %5994 = vrcp.f32 %v4487_v53 }
0x2d9e   :  { %v5995_v32 = vpop.eup %5994 }
0x2d9f   :  { %4490 = vst.msk [vmem:[#allocation2 + $0x1] sm:$0x1] %vm4427_vm6, %v5995_v32 }
0x2da0   :  { %6007 = shalt.err (!%p6004_p4)
}
0x2da1   :  { %s6008_s10 = scalar_lea.hbm %s6284_s12, 32 }
0x2da2   :  { %p6009_p5 = scmp.ne.s32.totalorder %s6284_s12, %s6008_s10  ;;  %p6012_p6 = scmp.lt.u32.totalorder %s6008_s10, %s6284_s12 }
0x2da4   :  { %p6014_p7 = pnand %p6012_p6, %p6009_p5 }
0x2da6   :  { %6017 = shalt.err (!%p6014_p7)
}
0x2da7   :  { %4500 = dma.vmem_to_hbm [thread:$0]  %s4498_s27, 32, %s6284_s12, [#allocation3]  }
0x2da8   :  { %6018 = dma.done.wait [#allocation3], 32  }
0x2da9   :  { %6019 = vsyncadd [#allocation3], 4294967264 }
0x2daa   :  { %4504 = vsyncpa [#allocation3], 1 }

</bundles_post_ra>
